<compile_context>
chip_gen: v7x
topology: tpu7x:2x2x1
jax: 0.10.0
libtpu: 0.0.40
codegen_flags: <defaults>
</compile_context>

<pallas_src>
import jax
import jax.numpy as jnp
from jax.experimental import pallas as pl
from jax.experimental.pallas import tpu as pltpu


def pred_dense_kernel(x_ref, w1_ref, b1_ref, w2_ref, b2_ref,
                      w3_ref, b3_ref, w4_ref, o_ref):
    # lin1 + ReLU: bf16 operands on the MXU, f32 accumulation.
    x_bf16 = x_ref[...].astype(jnp.bfloat16)
    h = jnp.dot(x_bf16, w1_ref[...],
                preferred_element_type=jnp.float32) + b1_ref[...]
    h = jnp.maximum(h, 0.0)
    # lin2 + ReLU (f32; tiny weights, not on the roofline).
    h = jnp.dot(h, w2_ref[...],
                preferred_element_type=jnp.float32) + b2_ref[...]
    h = jnp.maximum(h, 0.0)
    # lin3 + ReLU
    h = jnp.dot(h, w3_ref[...],
                preferred_element_type=jnp.float32) + b3_ref[...]
    h = jnp.maximum(h, 0.0)
    # lin (no bias)
    o_ref[...] = jnp.dot(h, w4_ref[...],
                         preferred_element_type=jnp.float32).astype(o_ref.dtype)


def _round_up(n, m):
    return ((n + m - 1) // m) * m


def _resident_spec(shape):
    """Weight/bias stays in VMEM for the whole grid (constant block index)."""
    return pl.BlockSpec(shape, lambda i: (0, 0))


def pred_dense_forward(x, w1_bf16, b1, w2, b2, w3, b3, w4, *, tm=256):
    B, in_dim = x.shape
    out_dim = w4.shape[1]
    # MXU-native M tile on v6e/v7x; shrink for tiny batches (no grid overhead
    # when B is only a handful of rows).
    tm = min(tm, _round_up(B, 8))
    grid = (pl.cdiv(B, tm),)

    return pl.pallas_call(
        pred_dense_kernel,
        out_shape=jax.ShapeDtypeStruct((B, out_dim), jnp.float32),
        grid=grid,
        in_specs=[
            pl.BlockSpec((tm, in_dim), lambda i: (i, 0)),  # x tile streams
            _resident_spec(w1_bf16.shape),                 # bf16, fetched once
            _resident_spec(b1.shape),
            _resident_spec(w2.shape),
            _resident_spec(b2.shape),
            _resident_spec(w3.shape),
            _resident_spec(b3.shape),
            _resident_spec(w4.shape),
        ],
        out_specs=pl.BlockSpec((tm, out_dim), lambda i: (i, 0)),
        compiler_params=pltpu.CompilerParams(
            dimension_semantics=("parallel",),  # megacore sharding on v7x
        ),
    )(x, w1_bf16, b1, w2, b2, w3, b3, w4)


def init_params(key, input_dim=3200, hidden_dim=(512, 128, 32), output_dim=8):
    """Deterministic init mimicking PyTorch Linear default (uniform +/- 1/sqrt(fan_in)).

    Weights are stored [in_features, out_features] (transposed vs. PyTorch) so
    each layer is `h = h @ W + b`. w1 is returned in bfloat16 (dominant HBM
    traffic); everything else stays f32.
    """
    dims = [input_dim, hidden_dim[0], hidden_dim[1], hidden_dim[2], output_dim]
    keys = jax.random.split(key, 7)
    params = []
    for i in range(3):
        fan_in = dims[i]
        bound = 1.0 / jnp.sqrt(fan_in)
        w = jax.random.uniform(keys[2 * i], (dims[i], dims[i + 1]),
                               jnp.float32, -bound, bound)
        b = jax.random.uniform(keys[2 * i + 1], (1, dims[i + 1]),
                               jnp.float32, -bound, bound)
        params += [w, b]
    fan_in = dims[3]
    bound = 1.0 / jnp.sqrt(fan_in)
    w4 = jax.random.uniform(keys[6], (dims[3], dims[4]),
                            jnp.float32, -bound, bound)
    params.append(w4)
    # Narrow w1 to bf16 once, at init time (not per forward).
    params[0] = params[0].astype(jnp.bfloat16)
    return params


def reference_forward(x, w1_bf16, b1, w2, b2, w3, b3, w4):
    # Mirror the kernel numerics: bf16 lin1 operands, f32 accumulation.
    h = jnp.dot(x.astype(jnp.bfloat16), w1_bf16,
                preferred_element_type=jnp.float32) + b1
    h = jnp.maximum(h, 0.0)
    h = jnp.maximum(h @ w2 + b2, 0.0)
    h = jnp.maximum(h @ w3 + b3, 0.0)
    return h @ w4


if __name__ == "__main__":
    key = jax.random.PRNGKey(0)
    k_x, k_p = jax.random.split(key)

    B = 512                       # exercises a 2-step batch grid (TM=256)
    input_dim = 3200
    hidden_dim = (512, 128, 32)
    output_dim = 8

    x = jax.random.normal(k_x, (B, input_dim), dtype=jnp.float32)
    w1, b1, w2, b2, w3, b3, w4 = init_params(
        k_p, input_dim=input_dim, hidden_dim=hidden_dim, output_dim=output_dim)

    out = pred_dense_forward(x, w1, b1, w2, b2, w3, b3, w4)
    out = jax.block_until_ready(out)

    ref = reference_forward(x, w1, b1, w2, b2, w3, b3, w4)
    assert out.shape == (B, output_dim)
    assert jnp.allclose(out, ref, atol=1e-3, rtol=1e-3), (
        float(jnp.max(jnp.abs(out - ref))))

    print("KERNEL_OK")
</pallas_src>

<mosaic_0001>
module attributes {stable_mosaic.version = 11 : i64} {
  func.func @pred_dense_kernel(%arg0: i32, %arg1: memref<256x3200xf32, #tpu.memory_space<vmem>>, %arg2: memref<3200x512xbf16, #tpu.memory_space<vmem>>, %arg3: memref<1x512xf32, #tpu.memory_space<vmem>>, %arg4: memref<512x128xf32, #tpu.memory_space<vmem>>, %arg5: memref<1x128xf32, #tpu.memory_space<vmem>>, %arg6: memref<128x32xf32, #tpu.memory_space<vmem>>, %arg7: memref<1x32xf32, #tpu.memory_space<vmem>>, %arg8: memref<32x8xf32, #tpu.memory_space<vmem>>, %arg9: memref<256x8xf32, #tpu.memory_space<vmem>>) attributes {dimension_semantics = [#tpu.dimension_semantics<parallel>], iteration_bounds = array<i64: 2>, scalar_prefetch = 0 : i64, scratch_operands = 0 : i64, tpu.core_type = #tpu.core_type<tc>, window_params = [{transform_indices = @transform_0, window_bounds = array<i64: 256, 3200>}, {pipeline_mode = #tpu.pipeline_mode<synchronous>, transform_indices = @transform_1, window_bounds = array<i64: 3200, 512>}, {pipeline_mode = #tpu.pipeline_mode<synchronous>, transform_indices = @transform_2, window_bounds = array<i64: 1, 512>}, {pipeline_mode = #tpu.pipeline_mode<synchronous>, transform_indices = @transform_3, window_bounds = array<i64: 512, 128>}, {pipeline_mode = #tpu.pipeline_mode<synchronous>, transform_indices = @transform_4, window_bounds = array<i64: 1, 128>}, {pipeline_mode = #tpu.pipeline_mode<synchronous>, transform_indices = @transform_5, window_bounds = array<i64: 128, 32>}, {pipeline_mode = #tpu.pipeline_mode<synchronous>, transform_indices = @transform_6, window_bounds = array<i64: 1, 32>}, {pipeline_mode = #tpu.pipeline_mode<synchronous>, transform_indices = @transform_7, window_bounds = array<i64: 32, 8>}, {transform_indices = @transform_8, window_bounds = array<i64: 256, 8>}]} {
    %c0 = arith.constant 0 : index
    %c0_0 = arith.constant 0 : index
    %0 = vector.load %arg1[%c0, %c0_0] : memref<256x3200xf32, #tpu.memory_space<vmem>>, vector<256x3200xf32>
    %1 = arith.truncf %0 : vector<256x3200xf32> to vector<256x3200xbf16>
    %c0_1 = arith.constant 0 : index
    %c0_2 = arith.constant 0 : index
    %2 = vector.load %arg2[%c0_1, %c0_2] : memref<3200x512xbf16, #tpu.memory_space<vmem>>, vector<3200x512xbf16>
    %cst = arith.constant dense<0.000000e+00> : vector<256x512xf32>
    %3 = tpu.matmul %1, %2, %cst {dimension_numbers = #tpu.dot_dimension_numbers<[1], [0], [0], [1], [0, 0, 1, 1], [], []>} : vector<256x3200xbf16>, vector<3200x512xbf16>, vector<256x512xf32> -> vector<256x512xf32>
    %c0_3 = arith.constant 0 : index
    %c0_4 = arith.constant 0 : index
    %4 = vector.load %arg3[%c0_3, %c0_4] : memref<1x512xf32, #tpu.memory_space<vmem>>, vector<1x512xf32>
    %5 = vector.broadcast %4 : vector<1x512xf32> to vector<256x512xf32>
    %6 = arith.addf %3, %5 : vector<256x512xf32>
    %cst_5 = arith.constant 0.000000e+00 : f32
    %7 = vector.broadcast %cst_5 : f32 to vector<256x512xf32>
    %8 = arith.maximumf %6, %7 : vector<256x512xf32>
    %c0_6 = arith.constant 0 : index
    %c0_7 = arith.constant 0 : index
    %9 = vector.load %arg4[%c0_6, %c0_7] : memref<512x128xf32, #tpu.memory_space<vmem>>, vector<512x128xf32>
    %cst_8 = arith.constant dense<0.000000e+00> : vector<256x128xf32>
    %10 = tpu.matmul %8, %9, %cst_8 {dimension_numbers = #tpu.dot_dimension_numbers<[1], [0], [0], [1], [0, 0, 1, 1], [], []>} : vector<256x512xf32>, vector<512x128xf32>, vector<256x128xf32> -> vector<256x128xf32>
    %c0_9 = arith.constant 0 : index
    %c0_10 = arith.constant 0 : index
    %11 = vector.load %arg5[%c0_9, %c0_10] : memref<1x128xf32, #tpu.memory_space<vmem>>, vector<1x128xf32>
    %12 = vector.broadcast %11 : vector<1x128xf32> to vector<256x128xf32>
    %13 = arith.addf %10, %12 : vector<256x128xf32>
    %cst_11 = arith.constant 0.000000e+00 : f32
    %14 = vector.broadcast %cst_11 : f32 to vector<256x128xf32>
    %15 = arith.maximumf %13, %14 : vector<256x128xf32>
    %c0_12 = arith.constant 0 : index
    %c0_13 = arith.constant 0 : index
    %16 = vector.load %arg6[%c0_12, %c0_13] : memref<128x32xf32, #tpu.memory_space<vmem>>, vector<128x32xf32>
    %cst_14 = arith.constant dense<0.000000e+00> : vector<256x32xf32>
    %17 = tpu.matmul %15, %16, %cst_14 {dimension_numbers = #tpu.dot_dimension_numbers<[1], [0], [0], [1], [0, 0, 1, 1], [], []>} : vector<256x128xf32>, vector<128x32xf32>, vector<256x32xf32> -> vector<256x32xf32>
    %c0_15 = arith.constant 0 : index
    %c0_16 = arith.constant 0 : index
    %18 = vector.load %arg7[%c0_15, %c0_16] : memref<1x32xf32, #tpu.memory_space<vmem>>, vector<1x32xf32>
    %19 = vector.broadcast %18 : vector<1x32xf32> to vector<256x32xf32>
    %20 = arith.addf %17, %19 : vector<256x32xf32>
    %cst_17 = arith.constant 0.000000e+00 : f32
    %21 = vector.broadcast %cst_17 : f32 to vector<256x32xf32>
    %22 = arith.maximumf %20, %21 : vector<256x32xf32>
    %c0_18 = arith.constant 0 : index
    %c0_19 = arith.constant 0 : index
    %23 = vector.load %arg8[%c0_18, %c0_19] : memref<32x8xf32, #tpu.memory_space<vmem>>, vector<32x8xf32>
    %cst_20 = arith.constant dense<0.000000e+00> : vector<256x8xf32>
    %24 = tpu.matmul %22, %23, %cst_20 {dimension_numbers = #tpu.dot_dimension_numbers<[1], [0], [0], [1], [0, 0, 1, 1], [], []>} : vector<256x32xf32>, vector<32x8xf32>, vector<256x8xf32> -> vector<256x8xf32>
    %c0_21 = arith.constant 0 : index
    %c0_22 = arith.constant 0 : index
    %25 = vector.load %arg9[%c0_21, %c0_22] : memref<256x8xf32, #tpu.memory_space<vmem>>, vector<256x8xf32>
    tpu.vector_store %arg9[%c0_21, %c0_22], %24 {strides = array<i32>} : memref<256x8xf32, #tpu.memory_space<vmem>>, vector<256x8xf32>,
    return
  }
  func.func @transform_0(%arg0: i32) -> (i32, i32) {
    %c0_i32 = arith.constant 0 : i32
    %c0_i32_0 = arith.constant 0 : i32
    return %arg0, %c0_i32 : i32, i32
  }
  func.func @transform_1(%arg0: i32) -> (i32, i32) {
    %c0_i32 = arith.constant 0 : i32
    %c0_i32_0 = arith.constant 0 : i32
    %c0_i32_1 = arith.constant 0 : i32
    return %c0_i32, %c0_i32_0 : i32, i32
  }
  func.func @transform_2(%arg0: i32) -> (i32, i32) {
    %c0_i32 = arith.constant 0 : i32
    %c0_i32_0 = arith.constant 0 : i32
    %c0_i32_1 = arith.constant 0 : i32
    return %c0_i32, %c0_i32_0 : i32, i32
  }
  func.func @transform_3(%arg0: i32) -> (i32, i32) {
    %c0_i32 = arith.constant 0 : i32
    %c0_i32_0 = arith.constant 0 : i32
    %c0_i32_1 = arith.constant 0 : i32
    return %c0_i32, %c0_i32_0 : i32, i32
  }
  func.func @transform_4(%arg0: i32) -> (i32, i32) {
    %c0_i32 = arith.constant 0 : i32
    %c0_i32_0 = arith.constant 0 : i32
    %c0_i32_1 = arith.constant 0 : i32
    return %c0_i32, %c0_i32_0 : i32, i32
  }
  func.func @transform_5(%arg0: i32) -> (i32, i32) {
    %c0_i32 = arith.constant 0 : i32
    %c0_i32_0 = arith.constant 0 : i32
    %c0_i32_1 = arith.constant 0 : i32
    return %c0_i32, %c0_i32_0 : i32, i32
  }
  func.func @transform_6(%arg0: i32) -> (i32, i32) {
    %c0_i32 = arith.constant 0 : i32
    %c0_i32_0 = arith.constant 0 : i32
    %c0_i32_1 = arith.constant 0 : i32
    return %c0_i32, %c0_i32_0 : i32, i32
  }
  func.func @transform_7(%arg0: i32) -> (i32, i32) {
    %c0_i32 = arith.constant 0 : i32
    %c0_i32_0 = arith.constant 0 : i32
    %c0_i32_1 = arith.constant 0 : i32
    return %c0_i32, %c0_i32_0 : i32, i32
  }
  func.func @transform_8(%arg0: i32) -> (i32, i32) {
    %c0_i32 = arith.constant 0 : i32
    %c0_i32_0 = arith.constant 0 : i32
    return %arg0, %c0_i32 : i32, i32
  }
}

</mosaic_0001>

<bundles_post_ra>
// kernel: tpu_custom_call.1
= control target key start
LH: loop header
LB: loop body
LE: loop exit
PB: predicated region body
PF: predicated region fallthrough
CT: control target
= control target key end

     0   :  { %13 = vsyncpa [#allocation3], 0  ;;  %s20643_s0 = inlined_call_operand.hbm [shape: f32[512,3200], index: 0, kind: input, shape index: {}]   ;;  %s20644_s1 = inlined_call_operand.hbm [shape: bf16[3200,512], index: 1, kind: input, shape index: {}]   ;;  %s20645_s2 = inlined_call_operand.hbm [shape: f32[1,512], index: 2, kind: input, shape index: {}]   ;;  %s20646_s3 = inlined_call_operand.hbm [shape: f32[512,128], index: 3, kind: input, shape index: {}]   ;;  %s20647_s4 = inlined_call_operand.hbm [shape: f32[1,128], index: 4, kind: input, shape index: {}]   ;;  %s20648_s5 = inlined_call_operand.vmem [shape: f32[128,32], index: 5, kind: input, shape index: {}]   ;;  %s20649_s6 = inlined_call_operand.hbm [shape: f32[1,32], index: 6, kind: input, shape index: {}]   ;;  %s20650_s7 = inlined_call_operand.vmem [shape: f32[32,8], index: 7, kind: input, shape index: {}]   ;;  %s20651_s8 = inlined_call_operand.vmem [shape: f32[512,8], index: 8, kind: output, shape index: {}]  }
   0x1   :  { %15 = vsyncpa [#allocation3 + $0x1], 0 }
   0x2   :  { %16 = vsyncpa [#allocation5], 0 }
   0x3   :  { %17 = vsyncpa [#allocation8], 0 }
   0x4   :  { %18 = vsyncpa [#allocation11], 0  ;;  %s17454_s27 = smov 0   ;;  %s17456_s28 = smov 0  }
   0x5   :  { %s17458_s29 = smov 0   ;;  %s17460_s30 = smov 0  }
   0x6 LB: > { %s17395_s9 = smov [#allocation4]   ;;  %s20652_s11 = sadd.s32 4294967295, %s17393_s30   ;;  %s17393_s30 = sphi %s17460_s30, %s20705_s30   ;;  %s17389_s29 = sphi %s17458_s29, %s20704_s29   ;;  %s17385_s28 = sphi %s17456_s28, %s20703_s28   ;;  %s17381_s27 = sphi %s17454_s27, %s20702_s27  }
   0x7   : > { %s240_s10 = sshll.u32 %s17395_s9, 4  ;;  %p12874_p0 = scmp.ge.s32.totalorder %s17393_s30, 1  ;;  %s17483_s10 = int_to_ptr.vmem [resolvable:$true] %s240_s10 }
   0x8   : > { %p17478_p1 = scmp.eq.s32.totalorder %s20652_s11, 0  ;;  %p228_p2 = scmp.lt.s32.totalorder %s17393_s30, 3 }
   0x9   : > { %s17396_s14 = smov [#allocation7]   ;;  %s17397_s17 = smov [#allocation6]  }
   0xa   : > { %s20656_s12 = scalar_select %p17478_p1, 1, 0 }
   0xb   : > { %p17485_p3 = pnand %p12874_p0, %p228_p2  ;;  %s264_s15 = sshll.u32 %s17396_s14, 4  ;;  %s17497_s15 = int_to_ptr.vmem [resolvable:$true] %s264_s15 }
   0xc   : > { %s17499_s18 = sshll.u32 %s17397_s17, 4  ;;  %s17177_s21 = scalar_lea.hbm %s20644_s1, 102400  ;;  %s255_s18 = int_to_ptr.vmem [resolvable:$true] %s17499_s18 }
   0xd   : > { %s20657_s13 = scalar_select %p17485_p3, 1, 0 }
   0xe   : > { %p15901_p4 = pneg %p17485_p3  ;;  %p17178_p6 = scmp.ne.s32.totalorder %s20644_s1, %s17177_s21 }
   0xf   : > { %p17184_p10 = scmp.lt.u32.totalorder %s17177_s21, %s20644_s1 }
  0x10   : > { %p17493_p5 = pnand %p15901_p4, %p17478_p1 }
  0x12   : > { %p17509_p7 = pneg %p17493_p5 }
  0x14   : > { %p17180_p8 = pnand %p17509_p7, %p17178_p6 }
  0x16   : > { %p17181_p9 = pneg %p17180_p8 }
  0x18   : > { %p17186_p11 = pnand %p17184_p10, %p17181_p9 }
  0x1a   : > { %17189 = shalt.err (!%p17186_p11)
}
  0x1b   : > { %s17190_s9 = scalar_lea.vmem %s17483_s10, 102400  ;;  %p17198_p2 = scmp.lt.s32.totalorder %s17483_s10, %s17483_s10 }
  0x1c   : > { %p17191_p12 = scmp.ne.s32.totalorder %s17483_s10, %s17190_s9  ;;  %p17199_p4 = scmp.lt.s32.totalorder %s17190_s9, %s17190_s9 }
  0x1e   : > { %p17193_p13 = pnand %p17191_p12, %p17509_p7  ;;  %p17200_p6 = por %p17199_p4, %p17198_p2 }
  0x20   : > { %p17194_p0 = pneg %p17193_p13 }
  0x22   : > { %p17201_p8 = pnand %p17200_p6, %p17194_p0 }
  0x24   : > { %17204 = shalt.err (!%p17201_p8)
}
  0x25   : > { %s17398_s14 = smov 256   ;;  %s17399_s17 = smov 16  }
  0x26   : > { %15904 = dma.hbm_to_vmem [thread:$0]  (!%p17493_p5), %s20644_s1, 102400, %s17483_s10, [#allocation5], %s17398_s14, %s17398_s14, %s17399_s17  }
  0x27   : > { %s17205_s23 = scalar_lea.hbm %s20646_s3, 8192 }
  0x28   : > { %p17206_p9 = scmp.ne.s32.totalorder %s20646_s3, %s17205_s23  ;;  %p17212_p12 = scmp.lt.u32.totalorder %s17205_s23, %s20646_s3 }
  0x2a   : > { %p17208_p10 = pnand %p17206_p9, %p17509_p7 }
  0x2c   : > { %p17209_p11 = pneg %p17208_p10 }
  0x2e   : > { %p17214_p13 = pnand %p17212_p12, %p17209_p11 }
  0x30   : > { %17217 = shalt.err (!%p17214_p13)
}
  0x31   : > { %s17218_s10 = scalar_lea.vmem %s17497_s15, 8192  ;;  %p17226_p6 = scmp.lt.s32.totalorder %s17497_s15, %s17497_s15 }
  0x32   : > { %p17219_p0 = scmp.ne.s32.totalorder %s17497_s15, %s17218_s10  ;;  %p17227_p8 = scmp.lt.s32.totalorder %s17218_s10, %s17218_s10 }
  0x34   : > { %p17221_p2 = pnand %p17219_p0, %p17509_p7  ;;  %p17228_p9 = por %p17227_p8, %p17226_p6 }
  0x36   : > { %p17222_p4 = pneg %p17221_p2 }
  0x38   : > { %p17229_p10 = pnand %p17228_p9, %p17222_p4 }
  0x3a   : > { %17232 = shalt.err (!%p17229_p10)
}
  0x3b   : > { %s17400_s14 = smov 128   ;;  %s17401_s11 = smov 8  }
  0x3c   : > { %15910 = dma.hbm_to_vmem [thread:$0]  (!%p17493_p5), %s20646_s3, 8192, %s17497_s15, [#allocation8], %s17400_s14, %s17400_s14, %s17401_s11  }
  0x3d   : > { %s17233_s22 = scalar_lea.hbm %s20645_s2, 64 }
  0x3e   : > { %p17234_p11 = scmp.ne.s32.totalorder %s20645_s2, %s17233_s22  ;;  %p17240_p0 = scmp.lt.u32.totalorder %s17233_s22, %s20645_s2 }
  0x40   : > { %p17236_p12 = pnand %p17234_p11, %p17509_p7 }
  0x42   : > { %p17237_p13 = pneg %p17236_p12 }
  0x44   : > { %p17242_p2 = pnand %p17240_p0, %p17237_p13 }
  0x46   : > { %17245 = shalt.err (!%p17242_p2)
}
  0x47   : > { %s17246_s10 = scalar_lea.vmem %s255_s18, 64  ;;  %p17254_p9 = scmp.lt.s32.totalorder %s255_s18, %s255_s18 }
  0x48   : > { %p17247_p4 = scmp.ne.s32.totalorder %s255_s18, %s17246_s10  ;;  %p17255_p10 = scmp.lt.s32.totalorder %s17246_s10, %s17246_s10 }
  0x4a   : > { %p17249_p6 = pnand %p17247_p4, %p17509_p7  ;;  %p17256_p3 = por %p17255_p10, %p17254_p9 }
  0x4c   : > { %p17250_p8 = pneg %p17249_p6 }
  0x4e   : > { %p17257_p1 = pnand %p17256_p3, %p17250_p8 }
  0x50   : > { %17260 = shalt.err (!%p17257_p1)
}
  0x51   : > { %15907 = dma.hbm_to_vmem [thread:$0]  (!%p17493_p5), %s20645_s2, 64, %s255_s18, [#allocation5]  }
  0x52   : > { %s17402_s11 = smov [#allocation9]   ;;  %s17403_s19 = smov [#allocation10]  }
  0x53   : > { %s278_s17 = sshll.u32 %s17402_s11, 4  ;;  %s292_s20 = sshll.u32 %s17403_s19, 4  ;;  %s279_s17 = int_to_ptr.vmem [resolvable:$true] %s278_s17  ;;  %s293_s20 = int_to_ptr.vmem [resolvable:$true] %s292_s20 }
  0x54   : > { %s17261_s23 = scalar_lea.hbm %s20647_s4, 16 }
  0x55   : > { %p17262_p1 = scmp.ne.s32.totalorder %s20647_s4, %s17261_s23  ;;  %p17268_p12 = scmp.lt.u32.totalorder %s17261_s23, %s20647_s4 }
  0x57   : > { %p17264_p3 = pnand %p17262_p1, %p17509_p7 }
  0x59   : > { %p17265_p11 = pneg %p17264_p3 }
  0x5b   : > { %p17270_p13 = pnand %p17268_p12, %p17265_p11 }
  0x5d   : > { %17273 = shalt.err (!%p17270_p13)
}
  0x5e   : > { %s17274_s18 = scalar_lea.vmem %s279_s17, 16  ;;  %s17281_s15 = scalar_lea.vmem %s279_s17, 32 }
  0x5f   : > { %p17275_p0 = scmp.ne.s32.totalorder %s279_s17, %s17274_s18  ;;  %p17282_p6 = scmp.lt.s32.totalorder %s279_s17, %s279_s17 }
  0x60   : > { %p17283_p8 = scmp.lt.s32.totalorder %s17281_s15, %s17274_s18 }
  0x61   : > { %p17277_p2 = pnand %p17275_p0, %p17509_p7 }
  0x62   : > { %p17284_p9 = por %p17283_p8, %p17282_p6 }
  0x63   : > { %p17278_p4 = pneg %p17277_p2 }
  0x65   : > { %p17285_p10 = pnand %p17284_p9, %p17278_p4 }
  0x67   : > { %17288 = shalt.err (!%p17285_p10)
}
  0x68   : > { %15913 = dma.hbm_to_vmem [thread:$0]  (!%p17493_p5), %s20647_s4, 16, %s279_s17, [#allocation8]  }
  0x69   : > { %s17289_s22 = scalar_lea.hbm %s20649_s6, 16 }
  0x6a   : > { %p17290_p1 = scmp.ne.s32.totalorder %s20649_s6, %s17289_s22  ;;  %p17296_p12 = scmp.lt.u32.totalorder %s17289_s22, %s20649_s6 }
  0x6c   : > { %p17292_p3 = pnand %p17290_p1, %p17509_p7 }
  0x6e   : > { %p17293_p11 = pneg %p17292_p3 }
  0x70   : > { %p17298_p13 = pnand %p17296_p12, %p17293_p11 }
  0x72   : > { %17301 = shalt.err (!%p17298_p13)
}
  0x73   : > { %s17302_s10 = scalar_lea.vmem %s293_s20, 16  ;;  %s17309_s17 = scalar_lea.vmem %s293_s20, 32 }
  0x74   : > { %p17303_p0 = scmp.ne.s32.totalorder %s293_s20, %s17302_s10  ;;  %p17310_p6 = scmp.lt.s32.totalorder %s293_s20, %s293_s20 }
  0x75   : > { %p17311_p8 = scmp.lt.s32.totalorder %s17309_s17, %s17302_s10 }
  0x76   : > { %p17305_p2 = pnand %p17303_p0, %p17509_p7 }
  0x77   : > { %p17312_p9 = por %p17311_p8, %p17310_p6 }
  0x78   : > { %p17306_p4 = pneg %p17305_p2 }
  0x7a   : > { %p17313_p10 = pnand %p17312_p9, %p17306_p4 }
  0x7c   : > { %17316 = shalt.err (!%p17313_p10)
}
  0x7d   : > { %15916 = dma.hbm_to_vmem [thread:$0]  (!%p17493_p5), %s20649_s6, 16, %s293_s20, [#allocation11]  }
  0x7e   : > { %s17609_s24 = sadd.s32 1, %s17393_s30   ;;  %s31_s14 = sadd.s32 1, %s17389_s29 }
  0x7f   : > { %s28_s16 = ssub.s32 %s17393_s30, %s17609_s24  ;;  %p38_p1 = scmp.ne.s32.totalorder %s17389_s29, %s17385_s28 }
  0x80   : > { %p29_p7 = scmp.eq.s32.totalorder %s28_s16, 0  ;;  %p39_p3 = scmp.eq.s32.totalorder %s17393_s30, 0 }
  0x81   : > { %p44_p11 = scmp.ne.s32.totalorder %s17385_s28, %s17381_s27  ;;  %p20660_p13 = scmp.ne.s32.totalorder %s20656_s12, 0 }
  0x82   : > { %s17620_s11 = scalar_select %p29_p7, %s17389_s29, %s31_s14  }
  0x83   : > { %p40_p12 = por %p39_p3, %p38_p1  ;;  %p17624_p0 = por %p20660_p13, %p44_p11 }
  0x84   : > { %p15926_p2 = scmp.lt.s32.totalorder %s17393_s30, 2  ;;  %s306_s21 = sand.u32 1, %s17389_s29  }
  0x85   : > { %s15876_s20 = smul.u32 6400, %s306_s21  ;;  %s17642_s17 = scalar_lea.sflag [#allocation3], %s306_s21 }
  0x86   : > { %s15877_s22 = smul.u32 102400, %s17393_s30  ;;  %p17631_p5 = pnand %p15926_p2, %p40_p12 }
  0x87   : > { %s310_s9 = scalar_lea.vmem [#allocation2], %s15876_s20  ;;  %s17322_s14 = scalar_lea.hbm %s20643_s0, 204800 }
  0x88   : > { %s17638_s27 = scalar_lea.hbm %s20643_s0, %s15877_s22  ;;  %s318_s10 = sshll.u32 %s310_s9, 4  ;;  %s17640_s10 = int_to_ptr.vmem [resolvable:$true] %s318_s10 }
  0x89   : > { %s17317_s18 = scalar_lea.hbm %s17638_s27, 102400  ;;  %p17319_p6 = pneg %p17631_p5 }
  0x8a   : > { %p17318_p4 = scmp.ne.s32.totalorder %s17638_s27, %s17317_s18  ;;  %p17323_p10 = scmp.lt.u32.totalorder %s17638_s27, %s20643_s0 }
  0x8b   : > { %p17324_p7 = scmp.lt.u32.totalorder %s17322_s14, %s17317_s18  ;;  %p17326_p3 = scmp.lt.u32.totalorder %s17317_s18, %s17638_s27 }
  0x8c   : > { %p17320_p8 = pnand %p17319_p6, %p17318_p4 }
  0x8d   : > { %p17325_p1 = por %p17324_p7, %p17323_p10 }
  0x8e   : > { %p17321_p9 = pneg %p17320_p8 }
  0x8f   : > { %p17327_p11 = por %p17326_p3, %p17325_p1 }
  0x91   : > { %p17328_p12 = pnand %p17327_p11, %p17321_p9 }
  0x93   : > { %17331 = shalt.err (!%p17328_p12)
}
  0x94   : > { %s17332_s21 = scalar_lea.vmem %s17640_s10, 102400  ;;  %s17404_s20 = smov [#allocation2]  }
  0x95   : > { %p17333_p13 = scmp.ne.s32.totalorder %s17640_s10, %s17332_s21  ;;  %s17337_s26 = sshll.u32 %s17404_s20, 4  ;;  %s17338_s26 = int_to_ptr.vmem [resolvable:$false] %s17337_s26 }
  0x96   : > { %s17339_s9 = scalar_lea.vmem %s17338_s26, 204800  ;;  %p17340_p8 = scmp.lt.s32.totalorder %s17640_s10, %s17338_s26 }
  0x97   : > { %p17335_p2 = pnand %p17333_p13, %p17319_p6  ;;  %p17341_p10 = scmp.lt.s32.totalorder %s17339_s9, %s17332_s21 }
  0x99   : > { %p17336_p4 = pneg %p17335_p2  ;;  %p17342_p7 = por %p17341_p10, %p17340_p8 }
  0x9b   : > { %p17343_p1 = pnand %p17342_p7, %p17336_p4 }
  0x9d   : > { %17346 = shalt.err (!%p17343_p1)
}
  0x9e   : > { %s17405_s18 = smov 3200   ;;  %s17406_s15 = smov 200  }
  0x9f   : > { %15920 = dma.hbm_to_vmem [thread:$0]  (!%p17631_p5), %s17638_s27, 102400, %s17640_s10, %s17642_s17, %s17405_s18, %s17405_s18, %s17406_s15  }
  0xa0   : > { %p20663_p6 = scmp.ne.s32.totalorder %s20657_s13, 0 }
  0xa2   : > { %330 = sbr.rel (%p20663_p6) target bundleno = 2836 (0xb14), region = 52 }
  0xa9   : > { %s332_s16 = sand.u32 1, %s17385_s28  }
  0xaa   : > { %s15878_s14 = smul.u32 6400, %s332_s16  ;;  %s333_s22 = scalar_lea.sflag [#allocation3], %s332_s16 }
  0xac   : > { %s17673_s25 = scalar_lea.vmem [#allocation2], %s15878_s14 }
  0xad   : > { %17364 = dma.done.wait (%p17624_p0), %s333_s22, 102400  }
  0xae   : > { %17366 = vsyncadd (%p17624_p0), %s333_s22, 4294864896  ;;  %p20664_p9 = scmp.ne.s32.totalorder %s20656_s12, 0 }
  0xb0   : > { %17368 = dma.done.wait (%p20664_p9), [#allocation5], 102464  }
  0xb1   : > { %17370 = vsyncadd (%p20664_p9), [#allocation5], 4294864832 }
  0xb2   : > { %17372 = dma.done.wait (%p20664_p9), [#allocation8], 8208  }
  0xb3   : > { %17374 = vsyncadd (%p20664_p9), [#allocation8], 4294959088 }
  0xb4   : > { %17376 = dma.done.wait (%p20664_p9), [#allocation11], 16  }
  0xb5   : > { %17378 = vsyncadd (%p20664_p9), [#allocation11], 4294967280  ;;  %v15977_v0 = vld [vmem:[#allocation4 + $0x4] ss:$16 sps:$4 sm:$0xff]   ;;  %v15979_v1 = vld [vmem:[#allocation4] ss:$16 sps:$4 sm:$0xff]  }
  0xb6   : > { %6419 = vmatprep.subr.bf16.mxu0 %v15977_v0  ;;  %14084 = vmatprep.subr.bf16.mxu1 %v15977_v0  ;;  %v15980_v2 = vld [vmem:[#allocation4 + $0x24] ss:$16 sps:$4 sm:$0xff]   ;;  %v15982_v3 = vld [vmem:[#allocation4 + $0x20] ss:$16 sps:$4 sm:$0xff]   ;;  %v398_v13 = vld [vmem:[%s17673_s25 + $0x8] sm:$0xff]  ;;  %vm12402_vm0 = vcmask 261120  }
  0xb7   : > { %6420 = vmatpush1.bf16.msra.mxu0 %v15979_v1  ;;  %14100 = vmatpush1.bf16.msra.mxu1 %v15979_v1  ;;  %v15983_v4 = vld [vmem:[#allocation4 + $0x44] ss:$16 sps:$4 sm:$0xff]   ;;  %v15985_v5 = vld [vmem:[#allocation4 + $0x40] ss:$16 sps:$4 sm:$0xff]   ;;  %v798_v16 = vld [vmem:[%s17673_s25 + $0xc88] sm:$0xff]  ;;  %s20701_s17 = sadd.s32 4294967295, %s17393_s30  }
  0xb8   : > { %6421 = vmatprep.subr.bf16.mxu0 %v15980_v2  ;;  %14085 = vmatprep.subr.bf16.mxu1 %v15980_v2  ;;  %v15986_v6 = vld [vmem:[#allocation4 + $0x64] ss:$16 sps:$4 sm:$0xff]   ;;  %v15988_v7 = vld [vmem:[#allocation4 + $0x60] ss:$16 sps:$4 sm:$0xff]   ;;  %v422_v39 = vld [vmem:[%s17673_s25 + $0xc8] sm:$0xff]  ;;  %s12890_s21 = sshll.u32 %s20701_s17, 5 }
  0xb9   : > { %v15989_v8 = vld [vmem:[#allocation4 + $0x84] ss:$16 sps:$4 sm:$0xff]   ;;  %v15991_v9 = vld [vmem:[#allocation4 + $0x80] ss:$16 sps:$4 sm:$0xff]   ;;  %v822_v41 = vld [vmem:[%s17673_s25 + $0xd48] sm:$0xff]  ;;  %p391_p0 = scmp.lt.s32.totalorder %s12890_s21, 63 }
  0xba   : > { %v15992_v10 = vld [vmem:[#allocation4 + $0xa4] ss:$16 sps:$4 sm:$0xff]   ;;  %v15994_v11 = vld [vmem:[#allocation4 + $0xa0] ss:$16 sps:$4 sm:$0xff]   ;;  %v16030_v43 = vld [vmem:[#allocation4 + $0xc] ss:$16 sps:$4 sm:$0xff]  }
  0xbb   : > { %6422 = vmatpush1.bf16.msra.mxu0 %v15982_v3  ;;  %14101 = vmatpush1.bf16.msra.mxu1 %v15982_v3  ;;  %v15995_v12 = vld [vmem:[#allocation4 + $0xc4] ss:$16 sps:$4 sm:$0xff]   ;;  %v15997_v18 = vld [vmem:[#allocation4 + $0xc0] ss:$16 sps:$4 sm:$0xff]   ;;  %v448_v44 = vld [vmem:[%s17673_s25 + $0x198] sm:$0xff]  ;;  %s20707_s21 = smov (!%p391_p0, %s12890_s21), 63 }
  0xbc   : > { %6423 = vmatprep.subr.bf16.mxu0 %v15983_v4  ;;  %14086 = vmatprep.subr.bf16.mxu1 %v15983_v4  ;;  %v423_v14 = vld [vmem:[%s17673_s25 + $0xd0] sm:$0xff]  ;;  %v397_v38 = vld [vmem:[%s17673_s25] sm:$0xff]  ;;  %v848_v48 = vld [vmem:[%s17673_s25 + $0xe18] sm:$0xff]  ;;  %s12891_s20 = sshll.u32 %s20707_s21, 3  ;;  %vm12724_vm1 = vcmask 64512  }
  0xbd   : > { %v17693_v15 = vpack.c.bf16 %v423_v14, %v398_v13  ;;  %v823_v17 = vld [vmem:[%s17673_s25 + $0xd50] sm:$0xff]  ;;  %v797_v40 = vld [vmem:[%s17673_s25 + $0xc80] sm:$0xff]  ;;  %v17706_v45 = vpack.c.bf16 %v422_v39, %v397_v38  ;;  %v16028_v51 = vld [vmem:[#allocation4 + $0x8] ss:$16 sps:$4 sm:$0xff]   ;;  %s20564_s18 = scalar_lea.vmem %s20651_s8, %s12891_s20 }
  0xbe   : > { %v17697_v19 = vpack.c.bf16 %v823_v17, %v798_v16  ;;  %v15998_v20 = vld [vmem:[#allocation4 + $0xe4] ss:$16 sps:$4 sm:$0xff]   ;;  %v16000_v21 = vld [vmem:[#allocation4 + $0xe0] ss:$16 sps:$4 sm:$0xff]   ;;  %v17708_v46 = vpack.c.bf16 %v822_v41, %v797_v40  ;;  %v16036_v53 = vld [vmem:[#allocation4 + $0x2c] ss:$16 sps:$4 sm:$0xff]  }
  0xbf   : > { %6424 = vmatpush1.bf16.msra.mxu0 %v15985_v5  ;;  %14102 = vmatpush1.bf16.msra.mxu1 %v15985_v5  ;;  %v16001_v22 = vld [vmem:[#allocation4 + $0x104] ss:$16 sps:$4 sm:$0xff]   ;;  %v16003_v23 = vld [vmem:[#allocation4 + $0x100] ss:$16 sps:$4 sm:$0xff]   ;;  %v16034_v55 = vld [vmem:[#allocation4 + $0x28] ss:$16 sps:$4 sm:$0xff]  }
  0xc0   : > { %6425 = vmatprep.subr.bf16.mxu0 %v15986_v6  ;;  %14087 = vmatprep.subr.bf16.mxu1 %v15986_v6  ;;  %v16004_v24 = vld [vmem:[#allocation4 + $0x124] ss:$16 sps:$4 sm:$0xff]   ;;  %v16006_v25 = vld [vmem:[#allocation4 + $0x120] ss:$16 sps:$4 sm:$0xff]   ;;  %v472_v59 = vld [vmem:[%s17673_s25 + $0x258] sm:$0xff] }
  0xc1   : > { %6451 = vmatprep.mubr.bf16.mxu0 %v17693_v15  ;;  %6531 = vmatprep.mubr.bf16.mxu1 %v17697_v19  ;;  %v16007_v26 = vld [vmem:[#allocation4 + $0x144] ss:$16 sps:$4 sm:$0xff]   ;;  %v16009_v27 = vld [vmem:[#allocation4 + $0x140] ss:$16 sps:$4 sm:$0xff]   ;;  %v872_v61 = vld [vmem:[%s17673_s25 + $0xed8] sm:$0xff] }
  0xc2   : > { %v16010_v28 = vld [vmem:[#allocation4 + $0x164] ss:$16 sps:$4 sm:$0xff]   ;;  %v16012_v29 = vld [vmem:[#allocation4 + $0x160] ss:$16 sps:$4 sm:$0xff]   ;;  %v16042_v63 = vld [vmem:[#allocation4 + $0x4c] ss:$16 sps:$4 sm:$0xff]  }
  0xc3   : > { %6426 = vmatpush1.bf16.msra.mxu0 %v15988_v7  ;;  %14103 = vmatpush1.bf16.msra.mxu1 %v15988_v7  ;;  %v16013_v30 = vld [vmem:[#allocation4 + $0x184] ss:$16 sps:$4 sm:$0xff]   ;;  %v16015_v31 = vld [vmem:[#allocation4 + $0x180] ss:$16 sps:$4 sm:$0xff]   ;;  %v498_v0 = vld [vmem:[%s17673_s25 + $0x328] sm:$0xff] }
  0xc4   : > { %6427 = vmatprep.subr.bf16.mxu0 %v15989_v8  ;;  %14088 = vmatprep.subr.bf16.mxu1 %v15989_v8  ;;  %v16016_v32 = vld [vmem:[#allocation4 + $0x1a4] ss:$16 sps:$4 sm:$0xff]   ;;  %v16018_v33 = vld [vmem:[#allocation4 + $0x1a0] ss:$16 sps:$4 sm:$0xff]   ;;  %v898_v4 = vld [vmem:[%s17673_s25 + $0xfa8] sm:$0xff] }
  0xc5   : > { %v16019_v34 = vld [vmem:[#allocation4 + $0x1c4] ss:$16 sps:$4 sm:$0xff]   ;;  %v16021_v35 = vld [vmem:[#allocation4 + $0x1c0] ss:$16 sps:$4 sm:$0xff]   ;;  %v16040_v7 = vld [vmem:[#allocation4 + $0x48] ss:$16 sps:$4 sm:$0xff]  }
  0xc6   : > { %v16022_v36 = vld [vmem:[#allocation4 + $0x1e4] ss:$16 sps:$4 sm:$0xff]   ;;  %v16024_v37 = vld [vmem:[#allocation4 + $0x1e0] ss:$16 sps:$4 sm:$0xff]   ;;  %v522_v16 = vld [vmem:[%s17673_s25 + $0x3e8] sm:$0xff] }
  0xc7   : > { %6428 = vmatpush1.bf16.msra.mxu0 %v15991_v9  ;;  %14104 = vmatpush1.bf16.msra.mxu1 %v15991_v9  ;;  %v16027_v42 = vld [vmem:[#allocation4 + $0x204] ss:$16 sps:$4 sm:$0xff]   ;;  %v16025_v50 = vld [vmem:[#allocation4 + $0x200] ss:$16 sps:$4 sm:$0xff]   ;;  %v16048_v9 = vld [vmem:[#allocation4 + $0x6c] ss:$16 sps:$4 sm:$0xff]  }
  0xc8   : > { %6429 = vmatprep.subr.bf16.mxu0 %v15992_v10  ;;  %14089 = vmatprep.subr.bf16.mxu1 %v15992_v10  ;;  %v473_v47 = vld [vmem:[%s17673_s25 + $0x260] sm:$0xff]  ;;  %v447_v58 = vld [vmem:[%s17673_s25 + $0x190] sm:$0xff]  ;;  %v972_v39 = vld [vmem:[%s17673_s25 + $0x11f8] sm:$0xff] }
  0xc9   : > { %v873_v49 = vld [vmem:[%s17673_s25 + $0xee0] sm:$0xff]  ;;  %v17713_v56 = vpack.c.bf16 %v473_v47, %v448_v44  ;;  %v847_v60 = vld [vmem:[%s17673_s25 + $0xe10] sm:$0xff]  ;;  %v17726_v1 = vpack.c.bf16 %v472_v59, %v447_v58  ;;  %v16066_v41 = vld [vmem:[#allocation4 + $0xcc] ss:$16 sps:$4 sm:$0xff]  }
  0xca   : > { %v16033_v52 = vld [vmem:[#allocation4 + $0x224] ss:$16 sps:$4 sm:$0xff]   ;;  %v16031_v54 = vld [vmem:[#allocation4 + $0x220] ss:$16 sps:$4 sm:$0xff]   ;;  %v17715_v57 = vpack.c.bf16 %v873_v49, %v848_v48  ;;  %v17728_v2 = vpack.c.bf16 %v872_v61, %v847_v60  ;;  %v998_v49 = vld [vmem:[%s17673_s25 + $0x12c8] sm:$0xff] }
  0xcb   : > { %6430 = vmatpush1.bf16.msra.mxu0 %v15994_v11  ;;  %14105 = vmatpush1.bf16.msra.mxu1 %v15994_v11  ;;  %v16039_v62 = vld [vmem:[#allocation4 + $0x244] ss:$16 sps:$4 sm:$0xff]   ;;  %v16037_v6 = vld [vmem:[#allocation4 + $0x240] ss:$16 sps:$4 sm:$0xff]   ;;  %v16046_v11 = vld [vmem:[#allocation4 + $0x68] ss:$16 sps:$4 sm:$0xff]  }
  0xcc   : > { %6431 = vmatprep.subr.bf16.mxu0 %v15995_v12  ;;  %14090 = vmatprep.subr.bf16.mxu1 %v15995_v12  ;;  %v523_v3 = vld [vmem:[%s17673_s25 + $0x3f0] sm:$0xff]  ;;  %v497_v14 = vld [vmem:[%s17673_s25 + $0x320] sm:$0xff]  ;;  %v622_v61 = vld [vmem:[%s17673_s25 + $0x708] sm:$0xff] }
  0xcd   : > { %v923_v5 = vld [vmem:[%s17673_s25 + $0x1070] sm:$0xff]  ;;  %v17733_v12 = vpack.c.bf16 %v523_v3, %v498_v0  ;;  %v897_v17 = vld [vmem:[%s17673_s25 + $0xfa0] sm:$0xff]  ;;  %v16078_v3 = vld [vmem:[#allocation4 + $0x10c] ss:$16 sps:$4 sm:$0xff]  }
  0xce   : > { %v16045_v8 = vld [vmem:[#allocation4 + $0x264] ss:$16 sps:$4 sm:$0xff]   ;;  %v16043_v10 = vld [vmem:[#allocation4 + $0x260] ss:$16 sps:$4 sm:$0xff]   ;;  %v17735_v13 = vpack.c.bf16 %v923_v5, %v898_v4  ;;  %v648_v5 = vld [vmem:[%s17673_s25 + $0x7d8] sm:$0xff] }
  0xcf   : > { %6432 = vmatpush1.bf16.msra.mxu0 %v15997_v18  ;;  %14106 = vmatpush1.bf16.msra.mxu1 %v15997_v18  ;;  %v922_v18 = vld [vmem:[%s17673_s25 + $0x1068] sm:$0xff]  ;;  %v947_v38 = vld [vmem:[%s17673_s25 + $0x1130] sm:$0xff]  ;;  %v597_v60 = vld [vmem:[%s17673_s25 + $0x640] sm:$0xff] }
  0xd0   : > { %6433 = vmatprep.subr.bf16.mxu0 %v15998_v20  ;;  %14091 = vmatprep.subr.bf16.mxu1 %v15998_v20  ;;  %v16051_v20 = vld [vmem:[#allocation4 + $0x284] ss:$16 sps:$4 sm:$0xff]   ;;  %v17769_v48 = vpack.c.bf16 %v972_v39, %v947_v38  ;;  %v16073_v4 = vld [vmem:[#allocation4 + $0x300] ss:$16 sps:$4 sm:$0xff]   ;;  %v16088_v39 = vld [vmem:[#allocation4 + $0x148] ss:$16 sps:$4 sm:$0xff]  }
  0xd1   : > { %v16063_v40 = vld [vmem:[#allocation4 + $0x2c4] ss:$16 sps:$4 sm:$0xff]  }
  0xd2   : > { %v623_v44 = vld [vmem:[%s17673_s25 + $0x710] sm:$0xff] }
  0xd3   : > { %6434 = vmatpush1.bf16.msra.mxu0 %v16000_v21  ;;  %14107 = vmatpush1.bf16.msra.mxu1 %v16000_v21  ;;  %v16054_v21 = vld [vmem:[#allocation4 + $0x8c] ss:$16 sps:$4 sm:$0xff]   ;;  %v16075_v0 = vld [vmem:[#allocation4 + $0x304] ss:$16 sps:$4 sm:$0xff]  }
  0xd4   : > { %6435 = vmatprep.subr.bf16.mxu0 %v16001_v22  ;;  %14092 = vmatprep.subr.bf16.mxu1 %v16001_v22  ;;  %v548_v22 = vld [vmem:[%s17673_s25 + $0x4b8] sm:$0xff]  ;;  %v1123_v38 = vld [vmem:[%s17673_s25 + $0x16b0] sm:$0xff] }
  0xd7   : > { %6436 = vmatpush1.bf16.msra.mxu0 %v16003_v23  ;;  %14108 = vmatpush1.bf16.msra.mxu1 %v16003_v23  ;;  %v17746_v23 = vpack.c.bf16 %v522_v16, %v497_v14  ;;  %v16081_v14 = vld [vmem:[#allocation4 + $0x324] ss:$16 sps:$4 sm:$0xff]   ;;  %v16084_v16 = vld [vmem:[#allocation4 + $0x12c] ss:$16 sps:$4 sm:$0xff]  }
  0xd8   : > { %6437 = vmatprep.subr.bf16.mxu0 %v16004_v24  ;;  %14093 = vmatprep.subr.bf16.mxu1 %v16004_v24  ;;  %v17748_v24 = vpack.c.bf16 %v922_v18, %v897_v17  ;;  %v16079_v17 = vld [vmem:[#allocation4 + $0x320] ss:$16 sps:$4 sm:$0xff]   ;;  %v16082_v18 = vld [vmem:[#allocation4 + $0x128] ss:$16 sps:$4 sm:$0xff]  }
  0xdb   : > { %6438 = vmatpush1.bf16.msra.mxu0 %v16006_v25  ;;  %14109 = vmatpush1.bf16.msra.mxu1 %v16006_v25  ;;  %v573_v25 = vld [vmem:[%s17673_s25 + $0x580] sm:$0xff] }
  0xdc   : > { %6439 = vmatprep.subr.bf16.mxu0 %v16007_v26  ;;  %14094 = vmatprep.subr.bf16.mxu1 %v16007_v26  ;;  %v948_v26 = vld [vmem:[%s17673_s25 + $0x1138] sm:$0xff] }
  0xdf   : > { %6440 = vmatpush1.bf16.msra.mxu0 %v16009_v27  ;;  %14110 = vmatpush1.bf16.msra.mxu1 %v16009_v27  ;;  %v973_v27 = vld [vmem:[%s17673_s25 + $0x1200] sm:$0xff] }
  0xe0   : > { %6441 = vmatprep.subr.bf16.mxu0 %v16010_v28  ;;  %14095 = vmatprep.subr.bf16.mxu1 %v16010_v28  ;;  %v16049_v28 = vld [vmem:[#allocation4 + $0x280] ss:$16 sps:$4 sm:$0xff]  }
  0xe3   : > { %6442 = vmatpush1.bf16.msra.mxu0 %v16012_v29  ;;  %14111 = vmatpush1.bf16.msra.mxu1 %v16012_v29  ;;  %v16052_v29 = vld [vmem:[#allocation4 + $0x88] ss:$16 sps:$4 sm:$0xff]  }
  0xe4   : > { %6443 = vmatprep.subr.bf16.mxu0 %v16013_v30  ;;  %14096 = vmatprep.subr.bf16.mxu1 %v16013_v30  ;;  %v16057_v30 = vld [vmem:[#allocation4 + $0x2a4] ss:$16 sps:$4 sm:$0xff]  }
  0xe7   : > { %6444 = vmatpush1.bf16.msra.mxu0 %v16015_v31  ;;  %14112 = vmatpush1.bf16.msra.mxu1 %v16015_v31  ;;  %v16060_v31 = vld [vmem:[#allocation4 + $0xac] ss:$16 sps:$4 sm:$0xff]  }
  0xe8   : > { %6445 = vmatprep.subr.bf16.mxu0 %v16016_v32  ;;  %14097 = vmatprep.subr.bf16.mxu1 %v16016_v32  ;;  %v16055_v32 = vld [vmem:[#allocation4 + $0x2a0] ss:$16 sps:$4 sm:$0xff]  }
  0xeb   : > { %6446 = vmatpush1.bf16.msra.mxu0 %v16018_v33  ;;  %14113 = vmatpush1.bf16.msra.mxu1 %v16018_v33  ;;  %v16058_v33 = vld [vmem:[#allocation4 + $0xa8] ss:$16 sps:$4 sm:$0xff]  }
  0xec   : > { %6447 = vmatprep.subr.bf16.mxu0 %v16019_v34  ;;  %14098 = vmatprep.subr.bf16.mxu1 %v16019_v34  ;;  %v17753_v34 = vpack.c.bf16 %v573_v25, %v548_v22  ;;  %v647_v22 = vld [vmem:[%s17673_s25 + $0x7d0] sm:$0xff]  ;;  %v672_v25 = vld [vmem:[%s17673_s25 + $0x898] sm:$0xff] }
  0xef   : > { %6448 = vmatpush1.bf16.msra.mxu0 %v16021_v35  ;;  %14114 = vmatpush1.bf16.msra.mxu1 %v16021_v35  ;;  %v17755_v35 = vpack.c.bf16 %v973_v27, %v948_v26  ;;  %v1047_v26 = vld [vmem:[%s17673_s25 + $0x1450] sm:$0xff]  ;;  %v1072_v27 = vld [vmem:[%s17673_s25 + $0x1518] sm:$0xff] }
  0xf0   : > { %6449 = vmatprep.subr.bf16.mxu0 %v16022_v36  ;;  %14099 = vmatprep.subr.bf16.mxu1 %v16022_v36  ;;  %v547_v36 = vld [vmem:[%s17673_s25 + $0x4b0] sm:$0xff] }
  0xf3   : > { %6450 = vmatpush1.bf16.msra.mxu0 %v16024_v37  ;;  %14115 = vmatpush1.bf16.msra.mxu1 %v16024_v37  ;;  %v572_v37 = vld [vmem:[%s17673_s25 + $0x578] sm:$0xff] }
  0xf4   : > { %6612 = vmatprep.subr.bf16.mxu0 %v16027_v42  ;;  %8928 = vmatprep.subr.bf16.mxu1 %v16030_v43  ;;  %v16061_v42 = vld [vmem:[#allocation4 + $0x2c0] ss:$16 sps:$4 sm:$0xff]   ;;  %v598_v43 = vld [vmem:[%s17673_s25 + $0x648] sm:$0xff]  ;;  %v17767_v47 = vpack.c.bf16 %v572_v37, %v547_v36  ;;  %v17809_v36 = vpack.c.bf16 %v1072_v27, %v1047_v26  ;;  %v16111_v26 = vld [vmem:[#allocation4 + $0x3c4] ss:$16 sps:$4 sm:$0xff]  }
  0xf5   : > { %v17773_v58 = vpack.c.bf16 %v623_v44, %v598_v43  ;;  %v1098_v37 = vld [vmem:[%s17673_s25 + $0x15e8] sm:$0xff] }
  0xf6   : > { %6452 = vmatmul.mubr.bf16.vlgmr.msra.gmra.mrb[0].mxu0 %v17706_v45  ;;  %6532 = vmatmul.mubr.bf16.vlgmr.msra.gmra.mrb[0].mxu1 %v17708_v46  ;;  %v16094_v43 = vld [vmem:[#allocation4 + $0x168] ss:$16 sps:$4 sm:$0xff]   ;;  %v16114_v27 = vld [vmem:[#allocation4 + $0x1cc] ss:$16 sps:$4 sm:$0xff]  }
  0xf7   : > { %6613 = vmatpush1.bf16.msra.mxu0 %v16025_v50  ;;  %8929 = vmatpush1.bf16.msra.mxu1 %v16028_v51  ;;  %v1023_v50 = vld [vmem:[%s17673_s25 + $0x1390] sm:$0xff]  ;;  %v16064_v51 = vld [vmem:[#allocation4 + $0xc8] ss:$16 sps:$4 sm:$0xff]  }
  0xf8   : > { %6614 = vmatprep.subr.bf16.mxu0 %v16033_v52  ;;  %8930 = vmatprep.subr.bf16.mxu1 %v16036_v53  ;;  %v16069_v52 = vld [vmem:[#allocation4 + $0x2e4] ss:$16 sps:$4 sm:$0xff]   ;;  %v16072_v53 = vld [vmem:[#allocation4 + $0xec] ss:$16 sps:$4 sm:$0xff]   ;;  %v17775_v59 = vpack.c.bf16 %v1023_v50, %v998_v49  ;;  %v17815_v49 = vpack.c.bf16 %v1123_v38, %v1098_v37  ;;  %v16112_v37 = vld [vmem:[#allocation4 + $0x1c8] ss:$16 sps:$4 sm:$0xff]  }
  0xf9   : > { %6461 = vmatprep.mubr.bf16.mxu0 %v17713_v56  ;;  %6541 = vmatprep.mubr.bf16.mxu1 %v17715_v57  ;;  %v697_v50 = vld [vmem:[%s17673_s25 + $0x960] sm:$0xff] }
  0xfa   : > { %v16117_v38 = vld [vmem:[#allocation4 + $0x3e4] ss:$16 sps:$4 sm:$0xff]  }
  0xfb   : > { %6615 = vmatpush1.bf16.msra.mxu0 %v16031_v54  ;;  %8931 = vmatpush1.bf16.msra.mxu1 %v16034_v55  ;;  %v16067_v54 = vld [vmem:[#allocation4 + $0x2e0] ss:$16 sps:$4 sm:$0xff]   ;;  %v16070_v55 = vld [vmem:[#allocation4 + $0xe8] ss:$16 sps:$4 sm:$0xff]  }
  0xfc   : > { %6616 = vmatprep.subr.bf16.mxu0 %v16039_v62  ;;  %8932 = vmatprep.subr.bf16.mxu1 %v16042_v63  ;;  %v997_v62 = vld [vmem:[%s17673_s25 + $0x12c0] sm:$0xff]  ;;  %v1022_v63 = vld [vmem:[%s17673_s25 + $0x1388] sm:$0xff] }
  0xfe   : > { %6462 = vmatmul.mubr.bf16.gmra.mrb[4].mxu0 %v17726_v1  ;;  %6542 = vmatmul.mubr.bf16.gmra.mrb[4].mxu1 %v17728_v2 }
  0xff   : > { %6617 = vmatpush1.bf16.msra.mxu0 %v16037_v6  ;;  %8933 = vmatpush1.bf16.msra.mxu1 %v16040_v7  ;;  %v673_v6 = vld [vmem:[%s17673_s25 + $0x8a0] sm:$0xff]  ;;  %v17787_v7 = vpack.c.bf16 %v622_v61, %v597_v60  ;;  %v748_v61 = vld [vmem:[%s17673_s25 + $0xaf8] sm:$0xff] }
 0x100   : > { %6618 = vmatprep.subr.bf16.mxu0 %v16045_v8  ;;  %8934 = vmatprep.subr.bf16.mxu1 %v16048_v9  ;;  %v17789_v8 = vpack.c.bf16 %v1022_v63, %v997_v62  ;;  %v1048_v9 = vld [vmem:[%s17673_s25 + $0x1458] sm:$0xff]  ;;  %v16097_v60 = vld [vmem:[#allocation4 + $0x380] ss:$16 sps:$4 sm:$0xff]  }
 0x101   : > { %6471 = vmatprep.mubr.bf16.mxu0 %v17733_v12  ;;  %6551 = vmatprep.mubr.bf16.mxu1 %v17735_v13  ;;  %v773_v62 = vld [vmem:[%s17673_s25 + $0xbc0] sm:$0xff] }
 0x103   : > { %6619 = vmatpush1.bf16.msra.mxu0 %v16043_v10  ;;  %8935 = vmatpush1.bf16.msra.mxu1 %v16046_v11  ;;  %v1073_v10 = vld [vmem:[%s17673_s25 + $0x1520] sm:$0xff]  ;;  %v16076_v11 = vld [vmem:[#allocation4 + $0x108] ss:$16 sps:$4 sm:$0xff]  }
 0x104   : > { %6620 = vmatprep.subr.bf16.mxu0 %v16051_v20  ;;  %8936 = vmatprep.subr.bf16.mxu1 %v16054_v21  ;;  %v17793_v20 = vpack.c.bf16 %v673_v6, %v648_v5  ;;  %v17795_v21 = vpack.c.bf16 %v1073_v10, %v1048_v9  ;;  %v16100_v5 = vld [vmem:[#allocation4 + $0x188] ss:$16 sps:$4 sm:$0xff]   ;;  %v16105_v6 = vld [vmem:[#allocation4 + $0x3a4] ss:$16 sps:$4 sm:$0xff]   ;;  %v16108_v9 = vld [vmem:[#allocation4 + $0x1ac] ss:$16 sps:$4 sm:$0xff]  }
 0x105   : > { %v16103_v10 = vld [vmem:[#allocation4 + $0x3a0] ss:$16 sps:$4 sm:$0xff]  }
 0x106   : > { %6472 = vmatmul.mubr.bf16.gmra.mrb[8].mxu0 %v17746_v23  ;;  %6552 = vmatmul.mubr.bf16.gmra.mrb[8].mxu1 %v17748_v24 }
 0x107   : > { %6621 = vmatpush1.bf16.msra.mxu0 %v16049_v28  ;;  %8937 = vmatpush1.bf16.msra.mxu1 %v16052_v29  ;;  %v16087_v28 = vld [vmem:[#allocation4 + $0x344] ss:$16 sps:$4 sm:$0xff]   ;;  %v16090_v29 = vld [vmem:[#allocation4 + $0x14c] ss:$16 sps:$4 sm:$0xff]  }
 0x108   : > { %6622 = vmatprep.subr.bf16.mxu0 %v16057_v30  ;;  %8938 = vmatprep.subr.bf16.mxu1 %v16060_v31  ;;  %v16085_v30 = vld [vmem:[#allocation4 + $0x340] ss:$16 sps:$4 sm:$0xff]   ;;  %v698_v31 = vld [vmem:[%s17673_s25 + $0x968] sm:$0xff] }
 0x109   : > { %6481 = vmatprep.mubr.bf16.mxu0 %v17753_v34  ;;  %6561 = vmatprep.mubr.bf16.mxu1 %v17755_v35 }
 0x10b   : > { %6623 = vmatpush1.bf16.msra.mxu0 %v16055_v32  ;;  %8939 = vmatpush1.bf16.msra.mxu1 %v16058_v33  ;;  %v723_v32 = vld [vmem:[%s17673_s25 + $0xa30] sm:$0xff]  ;;  %v17807_v33 = vpack.c.bf16 %v672_v25, %v647_v22  ;;  %v1172_v25 = vld [vmem:[%s17673_s25 + $0x1838] sm:$0xff] }
 0x10c   : > { %6624 = vmatprep.subr.bf16.mxu0 %v16063_v40  ;;  %8940 = vmatprep.subr.bf16.mxu1 %v16066_v41  ;;  %v16093_v40 = vld [vmem:[#allocation4 + $0x364] ss:$16 sps:$4 sm:$0xff]   ;;  %v16096_v41 = vld [vmem:[#allocation4 + $0x16c] ss:$16 sps:$4 sm:$0xff]   ;;  %v17813_v44 = vpack.c.bf16 %v723_v32, %v698_v31 }
 0x10d   : > { %v1147_v22 = vld [vmem:[%s17673_s25 + $0x1770] sm:$0xff]  ;;  %v400_v31 = vld [vmem:[%s17673_s25 + $0x18] sm:$0xff]  ;;  %v425_v32 = vld [vmem:[%s17673_s25 + $0xe0] sm:$0xff] }
 0x10e   : > { %6482 = vmatmul.mubr.bf16.gmra.mrb[12].mxu0 %v17767_v47  ;;  %6562 = vmatmul.mubr.bf16.gmra.mrb[12].mxu1 %v17769_v48 }
 0x10f   : > { %6625 = vmatpush1.bf16.msra.mxu0 %v16061_v42  ;;  %8941 = vmatpush1.bf16.msra.mxu1 %v16064_v51  ;;  %v16091_v42 = vld [vmem:[#allocation4 + $0x360] ss:$16 sps:$4 sm:$0xff]   ;;  %v722_v51 = vld [vmem:[%s17673_s25 + $0xa28] sm:$0xff] }
 0x110   : > { %6626 = vmatprep.subr.bf16.mxu0 %v16069_v52  ;;  %8942 = vmatprep.subr.bf16.mxu1 %v16072_v53  ;;  %v1097_v52 = vld [vmem:[%s17673_s25 + $0x15e0] sm:$0xff]  ;;  %v1122_v53 = vld [vmem:[%s17673_s25 + $0x16a8] sm:$0xff]  ;;  %v17827_v63 = vpack.c.bf16 %v722_v51, %v697_v50  ;;  %v424_v50 = vld [vmem:[%s17673_s25 + $0xd8] sm:$0xff] }
 0x111   : > { %6491 = vmatprep.mubr.bf16.mxu0 %v17773_v58  ;;  %6571 = vmatprep.mubr.bf16.mxu1 %v17775_v59  ;;  %v16123_v51 = vld [vmem:[#allocation4 + $0x404] ss:$16 sps:$4 sm:$0xff]  }
 0x113   : > { %6627 = vmatpush1.bf16.msra.mxu0 %v16067_v54  ;;  %8943 = vmatpush1.bf16.msra.mxu1 %v16070_v55  ;;  %v16099_v54 = vld [vmem:[#allocation4 + $0x384] ss:$16 sps:$4 sm:$0xff]   ;;  %v16102_v55 = vld [vmem:[#allocation4 + $0x18c] ss:$16 sps:$4 sm:$0xff]  }
 0x114   : > { %6628 = vmatprep.subr.bf16.mxu0 %v16075_v0  ;;  %8944 = vmatprep.subr.bf16.mxu1 %v16078_v3  ;;  %v17829_v0 = vpack.c.bf16 %v1122_v53, %v1097_v52  ;;  %v1148_v3 = vld [vmem:[%s17673_s25 + $0x1778] sm:$0xff]  ;;  %v450_v53 = vld [vmem:[%s17673_s25 + $0x1a8] sm:$0xff] }
 0x115   : > { %v16126_v52 = vld [vmem:[#allocation4 + $0x20c] ss:$16 sps:$4 sm:$0xff]  }
 0x116   : > { %6492 = vmatmul.mubr.bf16.gmra.mrb[16].mxu0 %v17787_v7  ;;  %6572 = vmatmul.mubr.bf16.gmra.mrb[16].mxu1 %v17789_v8 }
 0x117   : > { %6629 = vmatpush1.bf16.msra.mxu0 %v16073_v4  ;;  %8945 = vmatpush1.bf16.msra.mxu1 %v16076_v11  ;;  %v1173_v4 = vld [vmem:[%s17673_s25 + $0x1840] sm:$0xff]  ;;  %v16106_v11 = vld [vmem:[#allocation4 + $0x1a8] ss:$16 sps:$4 sm:$0xff]  }
 0x118   : > { %6630 = vmatprep.subr.bf16.mxu0 %v16081_v14  ;;  %8946 = vmatprep.subr.bf16.mxu1 %v16084_v16  ;;  %v17833_v14 = vpack.c.bf16 %v773_v62, %v748_v61  ;;  %v17835_v16 = vpack.c.bf16 %v1173_v4, %v1148_v3  ;;  %v16124_v61 = vld [vmem:[#allocation4 + $0x208] ss:$16 sps:$4 sm:$0xff]   ;;  %v449_v3 = vld [vmem:[%s17673_s25 + $0x1a0] sm:$0xff] }
 0x119   : > { %6501 = vmatprep.mubr.bf16.mxu0 %v17793_v20  ;;  %6581 = vmatprep.mubr.bf16.mxu1 %v17795_v21  ;;  %v474_v4 = vld [vmem:[%s17673_s25 + $0x268] sm:$0xff] }
 0x11b   : > { %6631 = vmatpush1.bf16.msra.mxu0 %v16079_v17  ;;  %8947 = vmatpush1.bf16.msra.mxu1 %v16082_v18  ;;  %v747_v17 = vld [vmem:[%s17673_s25 + $0xaf0] sm:$0xff]  ;;  %v772_v18 = vld [vmem:[%s17673_s25 + $0xbb8] sm:$0xff] }
 0x11c   : > { %6632 = vmatprep.subr.bf16.mxu0 %v16087_v28  ;;  %8948 = vmatprep.subr.bf16.mxu1 %v16090_v29  ;;  %v16109_v28 = vld [vmem:[#allocation4 + $0x3c0] ss:$16 sps:$4 sm:$0xff]   ;;  %v17845_v29 = vpack.c.bf16 %v772_v18, %v747_v17  ;;  %v16135_v17 = vld [vmem:[#allocation4 + $0x444] ss:$16 sps:$4 sm:$0xff]   ;;  %v16138_v18 = vld [vmem:[#allocation4 + $0x24c] ss:$16 sps:$4 sm:$0xff]  }
 0x11e   : > { %6502 = vmatmul.mubr.bf16.gmra.mrb[20].mxu0 %v17807_v33  ;;  %6582 = vmatmul.mubr.bf16.gmra.mrb[20].mxu1 %v17809_v36 }
 0x11f   : > { %6633 = vmatpush1.bf16.msra.mxu0 %v16085_v30  ;;  %8949 = vmatpush1.bf16.msra.mxu1 %v16088_v39  ;;  %v17847_v30 = vpack.c.bf16 %v1172_v25, %v1147_v22  ;;  %v16120_v39 = vld [vmem:[#allocation4 + $0x1ec] ss:$16 sps:$4 sm:$0xff]   ;;  %v17873_v22 = vpack.c.bf16 %v474_v4, %v449_v3  ;;  %v16133_v25 = vld [vmem:[#allocation4 + $0x440] ss:$16 sps:$4 sm:$0xff]   ;;  %v16154_v4 = vld [vmem:[#allocation4 + $0x2a8] ss:$16 sps:$4 sm:$0xff]  }
 0x120   : > { %6634 = vmatprep.subr.bf16.mxu0 %v16093_v40  ;;  %8950 = vmatprep.subr.bf16.mxu1 %v16096_v41  ;;  %v16115_v40 = vld [vmem:[#allocation4 + $0x3e0] ss:$16 sps:$4 sm:$0xff]   ;;  %v17851_v41 = vpack.c.bf16 %v425_v32, %v400_v31  ;;  %v16144_v31 = vld [vmem:[#allocation4 + $0x26c] ss:$16 sps:$4 sm:$0xff]  }
 0x121   : > { %6511 = vmatprep.mubr.bf16.mxu0 %v17813_v44  ;;  %6591 = vmatprep.mubr.bf16.mxu1 %v17815_v49  ;;  %v550_v32 = vld [vmem:[%s17673_s25 + $0x4c8] sm:$0xff]  ;;  %v16151_v3 = vld [vmem:[#allocation4 + $0x4a0] ss:$16 sps:$4 sm:$0xff]  }
 0x123   : > { %6635 = vmatpush1.bf16.msra.mxu0 %v16091_v42  ;;  %8951 = vmatpush1.bf16.msra.mxu1 %v16094_v43  ;;  %v16118_v42 = vld [vmem:[#allocation4 + $0x1e8] ss:$16 sps:$4 sm:$0xff]   ;;  %v399_v43 = vld [vmem:[%s17673_s25 + $0x10] sm:$0xff] }
 0x124   : > { %6636 = vmatprep.subr.bf16.mxu0 %v16099_v54  ;;  %8952 = vmatprep.subr.bf16.mxu1 %v16102_v55  ;;  %v475_v54 = vld [vmem:[%s17673_s25 + $0x270] sm:$0xff]  ;;  %v17861_v55 = vpack.c.bf16 %v424_v50, %v399_v43 }
 0x125   : > { %v17863_v62 = vpack.c.bf16 %v475_v54, %v450_v53  ;;  %v16145_v50 = vld [vmem:[#allocation4 + $0x480] ss:$16 sps:$4 sm:$0xff]   ;;  %v16156_v53 = vld [vmem:[#allocation4 + $0x2ac] ss:$16 sps:$4 sm:$0xff]  }
 0x126   : > { %6512 = vmatmul.mubr.bf16.gmra.mrb[24].mxu0 %v17827_v63  ;;  %6592 = vmatmul.mubr.bf16.gmra.mrb[24].mxu1 %v17829_v0  ;;  %v574_v54 = vld [vmem:[%s17673_s25 + $0x588] sm:$0xff] }
 0x127   : > { %6637 = vmatpush1.bf16.msra.mxu0 %v16097_v60  ;;  %8953 = vmatpush1.bf16.msra.mxu1 %v16100_v5  ;;  %v16121_v60 = vld [vmem:[#allocation4 + $0x400] ss:$16 sps:$4 sm:$0xff]  }
 0x128   : > { %6638 = vmatprep.subr.bf16.mxu0 %v16105_v6  ;;  %8954 = vmatprep.subr.bf16.mxu1 %v16108_v9  ;;  %v16127_v5 = vld [vmem:[#allocation4 + $0x420] ss:$16 sps:$4 sm:$0xff]   ;;  %v16129_v6 = vld [vmem:[#allocation4 + $0x424] ss:$16 sps:$4 sm:$0xff]   ;;  %v16132_v9 = vld [vmem:[#allocation4 + $0x22c] ss:$16 sps:$4 sm:$0xff]  }
 0x129   : > { %6521 = vmatprep.mubr.bf16.mxu0 %v17833_v14  ;;  %6601 = vmatprep.mubr.bf16.mxu1 %v17835_v16 }
 0x12b   : > { %6639 = vmatpush1.bf16.msra.mxu0 %v16103_v10  ;;  %8955 = vmatpush1.bf16.msra.mxu1 %v16106_v11  ;;  %v500_v10 = vld [vmem:[%s17673_s25 + $0x338] sm:$0xff]  ;;  %v525_v11 = vld [vmem:[%s17673_s25 + $0x400] sm:$0xff] }
 0x12c   : > { %6640 = vmatprep.subr.bf16.mxu0 %v16111_v26  ;;  %8956 = vmatprep.subr.bf16.mxu1 %v16114_v27  ;;  %v16136_v26 = vld [vmem:[#allocation4 + $0x248] ss:$16 sps:$4 sm:$0xff]   ;;  %v499_v27 = vld [vmem:[%s17673_s25 + $0x330] sm:$0xff] }
 0x12e   : > { %6522 = vmatmul.mubr.bf16.gmra.mrb[28].mxu0 %v17845_v29  ;;  %6602 = vmatmul.mubr.bf16.gmra.mrb[28].mxu1 %v17847_v30 }
 0x12f   : > { %6641 = vmatpush1.bf16.msra.mxu0 %v16109_v28  ;;  %8957 = vmatpush1.bf16.msra.mxu1 %v16112_v37  ;;  %v16141_v28 = vld [vmem:[#allocation4 + $0x464] ss:$16 sps:$4 sm:$0xff]  }
 0x130   : > { %6642 = vmatprep.subr.bf16.mxu0 %v16117_v38  ;;  %8958 = vmatprep.subr.bf16.mxu1 %v16120_v39  ;;  %v575_v37 = vld [vmem:[%s17673_s25 + $0x590] sm:$0xff]  ;;  %v16142_v39 = vld [vmem:[#allocation4 + $0x268] ss:$16 sps:$4 sm:$0xff]  }
 0x131   : > { %6644 = vmatprep.mubr.bf16.mxu0 %v17851_v41  ;;  %8960 = vmatprep.mubr.bf16.mxu1 %v17693_v15  ;;  %v16130_v15 = vld [vmem:[#allocation4 + $0x228] ss:$16 sps:$4 sm:$0xff]   ;;  %v16139_v38 = vld [vmem:[#allocation4 + $0x460] ss:$16 sps:$4 sm:$0xff]  }
 0x133   : > { %6643 = vmatpush1.bf16.msra.mxu0 %v16115_v40  ;;  %8959 = vmatpush1.bf16.msra.mxu1 %v16118_v42  ;;  %v16147_v40 = vld [vmem:[#allocation4 + $0x484] ss:$16 sps:$4 sm:$0xff]   ;;  %v16150_v42 = vld [vmem:[#allocation4 + $0x28c] ss:$16 sps:$4 sm:$0xff]  }
 0x134   : > { %6805 = vmatprep.subr.bf16.mxu0 %v16123_v51  ;;  %9121 = vmatprep.subr.bf16.mxu1 %v16126_v52  ;;  %v549_v51 = vld [vmem:[%s17673_s25 + $0x4c0] sm:$0xff] }
 0x135   : > { %v16153_v52 = vld [vmem:[#allocation4 + $0x4a4] ss:$16 sps:$4 sm:$0xff]  }
 0x136   : > { %6645 = vmatmul.mubr.bf16.vlgmr.msra.gmra.mrb[0].mxu0 %v17861_v55  ;;  %8961 = vmatmul.mubr.bf16.vlgmr.msra.gmra.mrb[32].mxu1 %v17706_v45  ;;  %v17875_v45 = vpack.c.bf16 %v525_v11, %v500_v10  ;;  %v599_v10 = vld [vmem:[%s17673_s25 + $0x650] sm:$0xff] }
 0x137   : > { %6806 = vmatpush1.bf16.msra.mxu0 %v16121_v60  ;;  %9122 = vmatpush1.bf16.msra.mxu1 %v16124_v61  ;;  %v600_v60 = vld [vmem:[%s17673_s25 + $0x658] sm:$0xff]  ;;  %v625_v61 = vld [vmem:[%s17673_s25 + $0x720] sm:$0xff] }
 0x138   : > { %6654 = vmatprep.mubr.bf16.mxu0 %v17863_v62  ;;  %8970 = vmatprep.mubr.bf16.mxu1 %v17713_v56  ;;  %v524_v56 = vld [vmem:[%s17673_s25 + $0x3f8] sm:$0xff]  ;;  %v16165_v11 = vld [vmem:[#allocation4 + $0x4e4] ss:$16 sps:$4 sm:$0xff]  }
 0x139   : > { %6807 = vmatprep.subr.bf16.mxu0 %v16129_v6  ;;  %9123 = vmatprep.subr.bf16.mxu1 %v16132_v9  ;;  %v17885_v43 = vpack.c.bf16 %v524_v56, %v499_v27  ;;  %v16162_v6 = vld [vmem:[#allocation4 + $0x2cc] ss:$16 sps:$4 sm:$0xff]   ;;  %v17897_v9 = vpack.c.bf16 %v574_v54, %v549_v51  ;;  %v16163_v27 = vld [vmem:[#allocation4 + $0x4e0] ss:$16 sps:$4 sm:$0xff]  }
 0x13a   : > { %v16174_v56 = vld [vmem:[#allocation4 + $0x30c] ss:$16 sps:$4 sm:$0xff]   ;;  %v16175_v51 = vld [vmem:[#allocation4 + $0x520] ss:$16 sps:$4 sm:$0xff]  }
 0x13b   : > { %6808 = vmatpush1.bf16.msra.mxu0 %v16127_v5  ;;  %9124 = vmatpush1.bf16.msra.mxu1 %v16130_v15  ;;  %v16159_v5 = vld [vmem:[#allocation4 + $0x4c4] ss:$16 sps:$4 sm:$0xff]   ;;  %v16157_v15 = vld [vmem:[#allocation4 + $0x4c0] ss:$16 sps:$4 sm:$0xff]   ;;  %v16186_v54 = vld [vmem:[#allocation4 + $0x34c] ss:$16 sps:$4 sm:$0xff]  }
 0x13c   : > { %6809 = vmatprep.subr.bf16.mxu0 %v16135_v17  ;;  %9125 = vmatprep.subr.bf16.mxu1 %v16138_v18  ;;  %v16168_v17 = vld [vmem:[#allocation4 + $0x2ec] ss:$16 sps:$4 sm:$0xff]  }
 0x13d   : > { %v624_v18 = vld [vmem:[%s17673_s25 + $0x718] sm:$0xff] }
 0x13e   : > { %6655 = vmatmul.mubr.bf16.gmra.mrb[4].mxu0 %v17873_v22  ;;  %8971 = vmatmul.mubr.bf16.gmra.mrb[36].mxu1 %v17726_v1  ;;  %v17887_v1 = vpack.c.bf16 %v575_v37, %v550_v32  ;;  %v16169_v37 = vld [vmem:[#allocation4 + $0x500] ss:$16 sps:$4 sm:$0xff]  }
 0x13f   : > { %6664 = vmatprep.mubr.bf16.mxu0 %v17875_v45  ;;  %8980 = vmatprep.mubr.bf16.mxu1 %v17733_v12  ;;  %v16148_v12 = vld [vmem:[#allocation4 + $0x288] ss:$16 sps:$4 sm:$0xff]  }
 0x140   : > { %6810 = vmatpush1.bf16.msra.mxu0 %v16133_v25  ;;  %9126 = vmatpush1.bf16.msra.mxu1 %v16136_v26  ;;  %v650_v25 = vld [vmem:[%s17673_s25 + $0x7e8] sm:$0xff]  ;;  %v675_v26 = vld [vmem:[%s17673_s25 + $0x8b0] sm:$0xff] }
 0x141   : > { %6811 = vmatprep.subr.bf16.mxu0 %v16141_v28  ;;  %9127 = vmatprep.subr.bf16.mxu1 %v16144_v31  ;;  %v16166_v28 = vld [vmem:[#allocation4 + $0x2e8] ss:$16 sps:$4 sm:$0xff]   ;;  %v16171_v31 = vld [vmem:[#allocation4 + $0x504] ss:$16 sps:$4 sm:$0xff]   ;;  %v17911_v32 = vpack.c.bf16 %v675_v26, %v650_v25  ;;  %v16193_v25 = vld [vmem:[#allocation4 + $0x580] ss:$16 sps:$4 sm:$0xff]  }
 0x142   : > { %v16196_v26 = vld [vmem:[#allocation4 + $0x388] ss:$16 sps:$4 sm:$0xff]  }
 0x144   : > { %6812 = vmatpush1.bf16.msra.mxu0 %v16139_v38  ;;  %9128 = vmatpush1.bf16.msra.mxu1 %v16142_v39  ;;  %v649_v38 = vld [vmem:[%s17673_s25 + $0x7e0] sm:$0xff] }
 0x145   : > { %6813 = vmatprep.subr.bf16.mxu0 %v16147_v40  ;;  %9129 = vmatprep.subr.bf16.mxu1 %v16150_v42  ;;  %v16177_v39 = vld [vmem:[#allocation4 + $0x524] ss:$16 sps:$4 sm:$0xff]   ;;  %v16180_v40 = vld [vmem:[#allocation4 + $0x32c] ss:$16 sps:$4 sm:$0xff]  }
 0x146   : > { %6665 = vmatmul.mubr.bf16.gmra.mrb[8].mxu0 %v17885_v43  ;;  %8981 = vmatmul.mubr.bf16.gmra.mrb[40].mxu1 %v17746_v23  ;;  %v17899_v23 = vpack.c.bf16 %v625_v61, %v600_v60  ;;  %v674_v42 = vld [vmem:[%s17673_s25 + $0x8a8] sm:$0xff]  ;;  %v16181_v61 = vld [vmem:[#allocation4 + $0x540] ss:$16 sps:$4 sm:$0xff]  }
 0x147   : > { %6674 = vmatprep.mubr.bf16.mxu0 %v17887_v1  ;;  %8990 = vmatprep.mubr.bf16.mxu1 %v17753_v34  ;;  %v16160_v34 = vld [vmem:[#allocation4 + $0x2c8] ss:$16 sps:$4 sm:$0xff]  }
 0x148   : > { %6814 = vmatpush1.bf16.msra.mxu0 %v16145_v50  ;;  %9130 = vmatpush1.bf16.msra.mxu1 %v16148_v12  ;;  %v700_v50 = vld [vmem:[%s17673_s25 + $0x978] sm:$0xff]  ;;  %v725_v12 = vld [vmem:[%s17673_s25 + $0xa40] sm:$0xff] }
 0x149   : > { %6815 = vmatprep.subr.bf16.mxu0 %v16153_v52  ;;  %9131 = vmatprep.subr.bf16.mxu1 %v16156_v53  ;;  %v16178_v52 = vld [vmem:[#allocation4 + $0x328] ss:$16 sps:$4 sm:$0xff]   ;;  %v16183_v53 = vld [vmem:[#allocation4 + $0x544] ss:$16 sps:$4 sm:$0xff]   ;;  %v17923_v60 = vpack.c.bf16 %v725_v12, %v700_v50 }
 0x14a   : > { %v16208_v12 = vld [vmem:[#allocation4 + $0x3c8] ss:$16 sps:$4 sm:$0xff]  }
 0x14c   : > { %6816 = vmatpush1.bf16.msra.mxu0 %v16151_v3  ;;  %9132 = vmatpush1.bf16.msra.mxu1 %v16154_v4  ;;  %v16184_v3 = vld [vmem:[#allocation4 + $0x348] ss:$16 sps:$4 sm:$0xff]   ;;  %v16189_v4 = vld [vmem:[#allocation4 + $0x564] ss:$16 sps:$4 sm:$0xff]  }
 0x14d   : > { %6817 = vmatprep.subr.bf16.mxu0 %v16159_v5  ;;  %9133 = vmatprep.subr.bf16.mxu1 %v16162_v6  ;;  %v16192_v5 = vld [vmem:[#allocation4 + $0x36c] ss:$16 sps:$4 sm:$0xff]  }
 0x14e   : > { %6675 = vmatmul.mubr.bf16.gmra.mrb[12].mxu0 %v17897_v9  ;;  %8991 = vmatmul.mubr.bf16.gmra.mrb[44].mxu1 %v17767_v47  ;;  %v17909_v47 = vpack.c.bf16 %v624_v18, %v599_v10  ;;  %v724_v6 = vld [vmem:[%s17673_s25 + $0xa38] sm:$0xff]  ;;  %v16187_v10 = vld [vmem:[#allocation4 + $0x560] ss:$16 sps:$4 sm:$0xff]  }
 0x14f   : > { %6684 = vmatprep.mubr.bf16.mxu0 %v17899_v23  ;;  %9000 = vmatprep.mubr.bf16.mxu1 %v17773_v58  ;;  %v16172_v58 = vld [vmem:[#allocation4 + $0x308] ss:$16 sps:$4 sm:$0xff]   ;;  %v16198_v18 = vld [vmem:[#allocation4 + $0x38c] ss:$16 sps:$4 sm:$0xff]  }
 0x150   : > { %6818 = vmatpush1.bf16.msra.mxu0 %v16157_v15  ;;  %9134 = vmatpush1.bf16.msra.mxu1 %v16160_v34  ;;  %v750_v15 = vld [vmem:[%s17673_s25 + $0xb08] sm:$0xff]  ;;  %v775_v34 = vld [vmem:[%s17673_s25 + $0xbd0] sm:$0xff] }
 0x151   : > { %6819 = vmatprep.subr.bf16.mxu0 %v16165_v11  ;;  %9135 = vmatprep.subr.bf16.mxu1 %v16168_v17  ;;  %v16190_v11 = vld [vmem:[#allocation4 + $0x368] ss:$16 sps:$4 sm:$0xff]   ;;  %v16195_v17 = vld [vmem:[#allocation4 + $0x584] ss:$16 sps:$4 sm:$0xff]  }
 0x154   : > { %6820 = vmatpush1.bf16.msra.mxu0 %v16163_v27  ;;  %9136 = vmatpush1.bf16.msra.mxu1 %v16166_v28  ;;  %v17935_v27 = vpack.c.bf16 %v775_v34, %v750_v15  ;;  %v16201_v28 = vld [vmem:[#allocation4 + $0x5a4] ss:$16 sps:$4 sm:$0xff]   ;;  %v874_v34 = vld [vmem:[%s17673_s25 + $0xee8] sm:$0xff] }
 0x155   : > { %6821 = vmatprep.subr.bf16.mxu0 %v16171_v31  ;;  %9137 = vmatprep.subr.bf16.mxu1 %v16174_v56  ;;  %v749_v31 = vld [vmem:[%s17673_s25 + $0xb00] sm:$0xff]  ;;  %v774_v56 = vld [vmem:[%s17673_s25 + $0xbc8] sm:$0xff] }
 0x156   : > { %6685 = vmatmul.mubr.bf16.gmra.mrb[16].mxu0 %v17909_v47  ;;  %9001 = vmatmul.mubr.bf16.gmra.mrb[48].mxu1 %v17787_v7  ;;  %v17921_v7 = vpack.c.bf16 %v674_v42, %v649_v38  ;;  %v16199_v38 = vld [vmem:[#allocation4 + $0x5a0] ss:$16 sps:$4 sm:$0xff]   ;;  %v16210_v42 = vld [vmem:[#allocation4 + $0x3cc] ss:$16 sps:$4 sm:$0xff]   ;;  %v17945_v50 = vpack.c.bf16 %v774_v56, %v749_v31 }
 0x157   : > { %6694 = vmatprep.mubr.bf16.mxu0 %v17911_v32  ;;  %9010 = vmatprep.mubr.bf16.mxu1 %v17793_v20  ;;  %v699_v20 = vld [vmem:[%s17673_s25 + $0x970] sm:$0xff]  ;;  %v974_v31 = vld [vmem:[%s17673_s25 + $0x1208] sm:$0xff]  ;;  %v1025_v56 = vld [vmem:[%s17673_s25 + $0x13a0] sm:$0xff] }
 0x158   : > { %6822 = vmatpush1.bf16.msra.mxu0 %v16169_v37  ;;  %9138 = vmatpush1.bf16.msra.mxu1 %v16172_v58  ;;  %v800_v37 = vld [vmem:[%s17673_s25 + $0xc98] sm:$0xff]  ;;  %v825_v58 = vld [vmem:[%s17673_s25 + $0xd60] sm:$0xff] }
 0x159   : > { %6823 = vmatprep.subr.bf16.mxu0 %v16177_v39  ;;  %9139 = vmatprep.subr.bf16.mxu1 %v16180_v40  ;;  %v16202_v39 = vld [vmem:[#allocation4 + $0x3a8] ss:$16 sps:$4 sm:$0xff]   ;;  %v16207_v40 = vld [vmem:[#allocation4 + $0x5c4] ss:$16 sps:$4 sm:$0xff]  }
 0x15c   : > { %6824 = vmatpush1.bf16.msra.mxu0 %v16175_v51  ;;  %9140 = vmatpush1.bf16.msra.mxu1 %v16178_v52  ;;  %v17947_v51 = vpack.c.bf16 %v825_v58, %v800_v37  ;;  %v16213_v52 = vld [vmem:[#allocation4 + $0x5e4] ss:$16 sps:$4 sm:$0xff]  }
 0x15d   : > { %6825 = vmatprep.subr.bf16.mxu0 %v16183_v53  ;;  %9141 = vmatprep.subr.bf16.mxu1 %v16186_v54  ;;  %v16216_v53 = vld [vmem:[#allocation4 + $0x3ec] ss:$16 sps:$4 sm:$0xff]  }
 0x15e   : > { %6695 = vmatmul.mubr.bf16.gmra.mrb[20].mxu0 %v17921_v7  ;;  %9011 = vmatmul.mubr.bf16.gmra.mrb[52].mxu1 %v17807_v33  ;;  %v17933_v33 = vpack.c.bf16 %v724_v6, %v699_v20  ;;  %v824_v54 = vld [vmem:[%s17673_s25 + $0xd58] sm:$0xff]  ;;  %v16211_v20 = vld [vmem:[#allocation4 + $0x5e0] ss:$16 sps:$4 sm:$0xff]  }
 0x15f   : > { %6704 = vmatprep.mubr.bf16.mxu0 %v17923_v60  ;;  %9020 = vmatprep.mubr.bf16.mxu1 %v17813_v44  ;;  %v16204_v44 = vld [vmem:[#allocation4 + $0x3ac] ss:$16 sps:$4 sm:$0xff]  }
 0x160   : > { %6826 = vmatpush1.bf16.msra.mxu0 %v16181_v61  ;;  %9142 = vmatpush1.bf16.msra.mxu1 %v16184_v3  ;;  %v850_v61 = vld [vmem:[%s17673_s25 + $0xe28] sm:$0xff]  ;;  %v875_v3 = vld [vmem:[%s17673_s25 + $0xef0] sm:$0xff] }
 0x161   : > { %6827 = vmatprep.subr.bf16.mxu0 %v16189_v4  ;;  %9143 = vmatprep.subr.bf16.mxu1 %v16192_v5  ;;  %v16214_v4 = vld [vmem:[#allocation4 + $0x3e8] ss:$16 sps:$4 sm:$0xff]   ;;  %v16219_v5 = vld [vmem:[#allocation4 + $0x604] ss:$16 sps:$4 sm:$0xff]   ;;  %v16222_v6 = vld [vmem:[#allocation4 + $0x40c] ss:$16 sps:$4 sm:$0xff]  }
 0x164   : > { %6828 = vmatpush1.bf16.msra.mxu0 %v16187_v10  ;;  %9144 = vmatpush1.bf16.msra.mxu1 %v16190_v11  ;;  %v900_v10 = vld [vmem:[%s17673_s25 + $0xfb8] sm:$0xff]  ;;  %v925_v11 = vld [vmem:[%s17673_s25 + $0x1080] sm:$0xff] }
 0x165   : > { %6829 = vmatprep.subr.bf16.mxu0 %v16195_v17  ;;  %9145 = vmatprep.subr.bf16.mxu1 %v16198_v18  ;;  %v17971_v18 = vpack.c.bf16 %v925_v11, %v900_v10  ;;  %v16217_v10 = vld [vmem:[#allocation4 + $0x600] ss:$16 sps:$4 sm:$0xff]   ;;  %v16220_v11 = vld [vmem:[#allocation4 + $0x408] ss:$16 sps:$4 sm:$0xff]  }
 0x166   : > { %6705 = vmatmul.mubr.bf16.gmra.mrb[24].mxu0 %v17933_v33  ;;  %9021 = vmatmul.mubr.bf16.gmra.mrb[56].mxu1 %v17827_v63  ;;  %v16205_v63 = vld [vmem:[#allocation4 + $0x5c0] ss:$16 sps:$4 sm:$0xff]  }
 0x167   : > { %6714 = vmatprep.mubr.bf16.mxu0 %v17935_v27  ;;  %9030 = vmatprep.mubr.bf16.mxu1 %v17833_v14  ;;  %v799_v14 = vld [vmem:[%s17673_s25 + $0xc90] sm:$0xff] }
 0x168   : > { %6830 = vmatpush1.bf16.msra.mxu0 %v16193_v25  ;;  %9146 = vmatpush1.bf16.msra.mxu1 %v16196_v26  ;;  %v17957_v15 = vpack.c.bf16 %v824_v54, %v799_v14  ;;  %v924_v25 = vld [vmem:[%s17673_s25 + $0x1078] sm:$0xff]  ;;  %v950_v26 = vld [vmem:[%s17673_s25 + $0x1148] sm:$0xff]  ;;  %v1175_v54 = vld [vmem:[%s17673_s25 + $0x1850] sm:$0xff] }
 0x169   : > { %6831 = vmatprep.subr.bf16.mxu0 %v16201_v28  ;;  %9147 = vmatprep.subr.bf16.mxu1 %v16204_v44  ;;  %v1150_v14 = vld [vmem:[%s17673_s25 + $0x1788] sm:$0xff] }
 0x16c   : > { %6832 = vmatpush1.bf16.msra.mxu0 %v16199_v38  ;;  %9148 = vmatpush1.bf16.msra.mxu1 %v16202_v39  ;;  %v1050_v38 = vld [vmem:[%s17673_s25 + $0x1468] sm:$0xff]  ;;  %v1075_v39 = vld [vmem:[%s17673_s25 + $0x1530] sm:$0xff] }
 0x16d   : > { %6833 = vmatprep.subr.bf16.mxu0 %v16207_v40  ;;  %9149 = vmatprep.subr.bf16.mxu1 %v16210_v42  ;;  %v18007_v42 = vpack.c.bf16 %v1075_v39, %v1050_v38  ;;  %v16229_v38 = vld [vmem:[#allocation4 + $0x640] ss:$16 sps:$4 sm:$0xff]   ;;  %v16232_v39 = vld [vmem:[#allocation4 + $0x448] ss:$16 sps:$4 sm:$0xff]  }
 0x16e   : > { %6715 = vmatmul.mubr.bf16.gmra.mrb[28].mxu0 %v17945_v50  ;;  %9031 = vmatmul.mubr.bf16.gmra.mrb[60].mxu1 %v17845_v29  ;;  %v17959_v29 = vpack.c.bf16 %v875_v3, %v850_v61  ;;  %v18031_v3 = vpack.c.bf16 %v1175_v54, %v1150_v14  ;;  %v16235_v14 = vld [vmem:[#allocation4 + $0x660] ss:$16 sps:$4 sm:$0xff]   ;;  %v16238_v54 = vld [vmem:[#allocation4 + $0x468] ss:$16 sps:$4 sm:$0xff]  }
 0x16f   : > { %6724 = vmatprep.mubr.bf16.mxu0 %v17947_v51  ;;  %9040 = vmatprep.mubr.bf16.mxu1 %v17697_v19  ;;  %v849_v19 = vld [vmem:[%s17673_s25 + $0xe20] sm:$0xff] }
 0x170   : > { %6834 = vmatpush1.bf16.msra.mxu0 %v16205_v63  ;;  %9150 = vmatpush1.bf16.msra.mxu1 %v16208_v12  ;;  %v17969_v17 = vpack.c.bf16 %v874_v34, %v849_v19  ;;  %v1100_v63 = vld [vmem:[%s17673_s25 + $0x15f8] sm:$0xff]  ;;  %v1125_v12 = vld [vmem:[%s17673_s25 + $0x16c0] sm:$0xff] }
 0x171   : > { %6835 = vmatprep.subr.bf16.mxu0 %v16213_v52  ;;  %9151 = vmatprep.subr.bf16.mxu1 %v16216_v53  ;;  %v18019_v53 = vpack.c.bf16 %v1125_v12, %v1100_v63  ;;  %v452_v19 = vld [vmem:[%s17673_s25 + $0x1b8] sm:$0xff]  ;;  %v477_v34 = vld [vmem:[%s17673_s25 + $0x280] sm:$0xff]  ;;  %v526_v12 = vld [vmem:[%s17673_s25 + $0x408] sm:$0xff] }
 0x172   : > { %v16240_v63 = vld [vmem:[#allocation4 + $0x46c] ss:$16 sps:$4 sm:$0xff]  }
 0x174   : > { %6836 = vmatpush1.bf16.msra.mxu0 %v16211_v20  ;;  %9152 = vmatpush1.bf16.msra.mxu1 %v16214_v4  ;;  %v402_v20 = vld [vmem:[%s17673_s25 + $0x28] sm:$0xff]  ;;  %v427_v4 = vld [vmem:[%s17673_s25 + $0xf0] sm:$0xff] }
 0x175   : > { %6998 = vmatprep.subr.bf16.mxu0 %v16219_v5  ;;  %9314 = vmatprep.subr.bf16.mxu1 %v16222_v6  ;;  %v18043_v6 = vpack.c.bf16 %v427_v4, %v402_v20  ;;  %v16241_v20 = vld [vmem:[#allocation4 + $0x680] ss:$16 sps:$4 sm:$0xff]   ;;  %v16244_v4 = vld [vmem:[#allocation4 + $0x488] ss:$16 sps:$4 sm:$0xff]  }
 0x176   : > { %6725 = vmatmul.mubr.bf16.gmra.mrb[32].mxu0 %v17957_v15  ;;  %9041 = vmatmul.mubr.bf16.gmra.mrb[64].mxu1 %v17708_v46  ;;  %v899_v46 = vld [vmem:[%s17673_s25 + $0xfb0] sm:$0xff] }
 0x177   : > { %6734 = vmatprep.mubr.bf16.mxu0 %v17959_v29  ;;  %9050 = vmatprep.mubr.bf16.mxu1 %v17715_v57  ;;  %v975_v57 = vld [vmem:[%s17673_s25 + $0x1210] sm:$0xff]  ;;  %v17981_v28 = vpack.c.bf16 %v924_v25, %v899_v46 }
 0x178   : > { %v17983_v44 = vpack.c.bf16 %v975_v57, %v950_v26  ;;  %v16225_v25 = vld [vmem:[#allocation4 + $0x624] ss:$16 sps:$4 sm:$0xff]   ;;  %v16228_v26 = vld [vmem:[#allocation4 + $0x42c] ss:$16 sps:$4 sm:$0xff]   ;;  %v18055_v57 = vpack.c.bf16 %v477_v34, %v452_v19 }
 0x179   : > { %v551_v19 = vld [vmem:[%s17673_s25 + $0x4d0] sm:$0xff]  ;;  %v576_v34 = vld [vmem:[%s17673_s25 + $0x598] sm:$0xff] }
 0x17e   : > { %6735 = vmatmul.mubr.bf16.gmra.mrb[36].mxu0 %v17969_v17  ;;  %9051 = vmatmul.mubr.bf16.gmra.mrb[68].mxu1 %v17728_v2  ;;  %v949_v2 = vld [vmem:[%s17673_s25 + $0x1140] sm:$0xff] }
 0x17f   : > { %6744 = vmatprep.mubr.bf16.mxu0 %v17971_v18  ;;  %9060 = vmatprep.mubr.bf16.mxu1 %v17735_v13  ;;  %v1000_v13 = vld [vmem:[%s17673_s25 + $0x12d8] sm:$0xff]  ;;  %v17993_v37 = vpack.c.bf16 %v974_v31, %v949_v2  ;;  %v16223_v2 = vld [vmem:[#allocation4 + $0x620] ss:$16 sps:$4 sm:$0xff]  }
 0x180   : > { %v17995_v58 = vpack.c.bf16 %v1025_v56, %v1000_v13  ;;  %v16226_v31 = vld [vmem:[#allocation4 + $0x428] ss:$16 sps:$4 sm:$0xff]   ;;  %v527_v56 = vld [vmem:[%s17673_s25 + $0x410] sm:$0xff] }
 0x181   : > { %v502_v13 = vld [vmem:[%s17673_s25 + $0x348] sm:$0xff] }
 0x186   : > { %6745 = vmatmul.mubr.bf16.gmra.mrb[40].mxu0 %v17981_v28  ;;  %9061 = vmatmul.mubr.bf16.gmra.mrb[72].mxu1 %v17748_v24  ;;  %v999_v24 = vld [vmem:[%s17673_s25 + $0x12d0] sm:$0xff] }
 0x187   : > { %6754 = vmatprep.mubr.bf16.mxu0 %v17983_v44  ;;  %9070 = vmatprep.mubr.bf16.mxu1 %v17755_v35  ;;  %v1024_v35 = vld [vmem:[%s17673_s25 + $0x1398] sm:$0xff] }
 0x188   : > { %v18005_v40 = vpack.c.bf16 %v1024_v35, %v999_v24  ;;  %v16231_v24 = vld [vmem:[#allocation4 + $0x644] ss:$16 sps:$4 sm:$0xff]   ;;  %v16234_v35 = vld [vmem:[#allocation4 + $0x44c] ss:$16 sps:$4 sm:$0xff]  }
 0x18e   : > { %6755 = vmatmul.mubr.bf16.gmra.mrb[44].mxu0 %v17993_v37  ;;  %9071 = vmatmul.mubr.bf16.gmra.mrb[76].mxu1 %v17769_v48  ;;  %v1049_v48 = vld [vmem:[%s17673_s25 + $0x1460] sm:$0xff] }
 0x18f   : > { %6764 = vmatprep.mubr.bf16.mxu0 %v17995_v58  ;;  %9080 = vmatprep.mubr.bf16.mxu1 %v17775_v59  ;;  %v1074_v59 = vld [vmem:[%s17673_s25 + $0x1528] sm:$0xff] }
 0x190   : > { %v18017_v52 = vpack.c.bf16 %v1074_v59, %v1049_v48  ;;  %v18067_v48 = vpack.c.bf16 %v527_v56, %v502_v13  ;;  %v16237_v59 = vld [vmem:[#allocation4 + $0x664] ss:$16 sps:$4 sm:$0xff]   ;;  %v16253_v13 = vld [vmem:[#allocation4 + $0x6c0] ss:$16 sps:$4 sm:$0xff]  }
 0x196   : > { %6765 = vmatmul.mubr.bf16.gmra.mrb[48].mxu0 %v18005_v40  ;;  %9081 = vmatmul.mubr.bf16.gmra.mrb[80].mxu1 %v17789_v8  ;;  %v1099_v8 = vld [vmem:[%s17673_s25 + $0x15f0] sm:$0xff] }
 0x197   : > { %6774 = vmatprep.mubr.bf16.mxu0 %v18007_v42  ;;  %9090 = vmatprep.mubr.bf16.mxu1 %v17795_v21  ;;  %v1124_v21 = vld [vmem:[%s17673_s25 + $0x16b8] sm:$0xff] }
 0x198   : > { %v18029_v61 = vpack.c.bf16 %v1124_v21, %v1099_v8  ;;  %v552_v8 = vld [vmem:[%s17673_s25 + $0x4d8] sm:$0xff]  ;;  %v577_v21 = vld [vmem:[%s17673_s25 + $0x5a0] sm:$0xff] }
 0x19e   : > { %6775 = vmatmul.mubr.bf16.gmra.mrb[52].mxu0 %v18017_v52  ;;  %9091 = vmatmul.mubr.bf16.gmra.mrb[84].mxu1 %v17809_v36  ;;  %v1149_v36 = vld [vmem:[%s17673_s25 + $0x1780] sm:$0xff] }
 0x19f   : > { %6784 = vmatprep.mubr.bf16.mxu0 %v18019_v53  ;;  %9100 = vmatprep.mubr.bf16.mxu1 %v17815_v49  ;;  %v1174_v49 = vld [vmem:[%s17673_s25 + $0x1848] sm:$0xff] }
 0x1a0   : > { %v18041_v5 = vpack.c.bf16 %v1174_v49, %v1149_v36  ;;  %v16243_v36 = vld [vmem:[#allocation4 + $0x684] ss:$16 sps:$4 sm:$0xff]   ;;  %v16246_v49 = vld [vmem:[#allocation4 + $0x48c] ss:$16 sps:$4 sm:$0xff]  }
 0x1a6   : > { %6785 = vmatmul.mubr.bf16.gmra.mrb[56].mxu0 %v18029_v61  ;;  %9101 = vmatmul.mubr.bf16.gmra.mrb[88].mxu1 %v17829_v0  ;;  %v401_v0 = vld [vmem:[%s17673_s25 + $0x20] sm:$0xff] }
 0x1a7   : > { %6794 = vmatprep.mubr.bf16.mxu0 %v18031_v3  ;;  %9110 = vmatprep.mubr.bf16.mxu1 %v17835_v16  ;;  %v426_v16 = vld [vmem:[%s17673_s25 + $0xe8] sm:$0xff] }
 0x1a8   : > { %v18053_v46 = vpack.c.bf16 %v426_v16, %v401_v0  ;;  %v18079_v0 = vpack.c.bf16 %v577_v21, %v552_v8  ;;  %v16252_v16 = vld [vmem:[#allocation4 + $0x4ac] ss:$16 sps:$4 sm:$0xff]   ;;  %v16259_v8 = vld [vmem:[#allocation4 + $0x6e0] ss:$16 sps:$4 sm:$0xff]   ;;  %v16262_v21 = vld [vmem:[#allocation4 + $0x4e8] ss:$16 sps:$4 sm:$0xff]  }
 0x1ae   : > { %6795 = vmatmul.mubr.bf16.gmra.mrb[60].mxu0 %v18041_v5  ;;  %9111 = vmatmul.mubr.bf16.gmra.mrb[92].mxu1 %v17847_v30  ;;  %v451_v30 = vld [vmem:[%s17673_s25 + $0x1b0] sm:$0xff] }
 0x1af   : > { %6837 = vmatprep.mubr.bf16.mxu0 %v18043_v6  ;;  %9153 = vmatprep.mubr.bf16.mxu1 %v17851_v41  ;;  %v476_v41 = vld [vmem:[%s17673_s25 + $0x278] sm:$0xff] }
 0x1b6   : > { %6838 = vmatmul.mubr.bf16.vlgmr.msra.gmra.mrb[0].mxu0 %v18053_v46  ;;  %9154 = vmatmul.mubr.bf16.vlgmr.msra.gmra.mrb[32].mxu1 %v17861_v55  ;;  %v18065_v55 = vpack.c.bf16 %v476_v41, %v451_v30  ;;  %v16255_v30 = vld [vmem:[#allocation4 + $0x6c4] ss:$16 sps:$4 sm:$0xff]   ;;  %v16258_v41 = vld [vmem:[#allocation4 + $0x4cc] ss:$16 sps:$4 sm:$0xff]  }
 0x1b7   : > { %6999 = vmatpush1.bf16.msra.mxu0 %v16217_v10  ;;  %9315 = vmatpush1.bf16.msra.mxu1 %v16220_v11  ;;  %v602_v10 = vld [vmem:[%s17673_s25 + $0x668] sm:$0xff]  ;;  %v627_v11 = vld [vmem:[%s17673_s25 + $0x730] sm:$0xff] }
 0x1b8   : > { %6847 = vmatprep.mubr.bf16.mxu0 %v18055_v57  ;;  %9163 = vmatprep.mubr.bf16.mxu1 %v17863_v62  ;;  %v501_v62 = vld [vmem:[%s17673_s25 + $0x340] sm:$0xff] }
 0x1b9   : > { %7000 = vmatprep.subr.bf16.mxu0 %v16225_v25  ;;  %9316 = vmatprep.subr.bf16.mxu1 %v16228_v26  ;;  %v16247_v25 = vld [vmem:[#allocation4 + $0x6a0] ss:$16 sps:$4 sm:$0xff]   ;;  %v16250_v26 = vld [vmem:[#allocation4 + $0x4a8] ss:$16 sps:$4 sm:$0xff]  }
 0x1bb   : > { %7001 = vmatpush1.bf16.msra.mxu0 %v16223_v2  ;;  %9317 = vmatpush1.bf16.msra.mxu1 %v16226_v31  ;;  %v18093_v31 = vpack.c.bf16 %v576_v34, %v551_v19  ;;  %v16276_v19 = vld [vmem:[#allocation4 + $0x52c] ss:$16 sps:$4 sm:$0xff]  }
 0x1bc   : > { %7002 = vmatprep.subr.bf16.mxu0 %v16231_v24  ;;  %9318 = vmatprep.subr.bf16.mxu1 %v16234_v35  ;;  %v18097_v24 = vpack.c.bf16 %v627_v11, %v602_v10  ;;  %v16261_v35 = vld [vmem:[#allocation4 + $0x6e4] ss:$16 sps:$4 sm:$0xff]   ;;  %v676_v11 = vld [vmem:[%s17673_s25 + $0x8b8] sm:$0xff] }
 0x1bd   : > { %v651_v10 = vld [vmem:[%s17673_s25 + $0x7f0] sm:$0xff] }
 0x1be   : > { %6848 = vmatmul.mubr.bf16.gmra.mrb[4].mxu0 %v18065_v55  ;;  %9164 = vmatmul.mubr.bf16.gmra.mrb[36].mxu1 %v17873_v22  ;;  %v18077_v22 = vpack.c.bf16 %v526_v12, %v501_v62  ;;  %v652_v62 = vld [vmem:[%s17673_s25 + $0x7f8] sm:$0xff]  ;;  %v677_v12 = vld [vmem:[%s17673_s25 + $0x8c0] sm:$0xff] }
 0x1bf   : > { %6857 = vmatprep.mubr.bf16.mxu0 %v18067_v48  ;;  %9173 = vmatprep.mubr.bf16.mxu1 %v17875_v45  ;;  %v16249_v45 = vld [vmem:[#allocation4 + $0x6a4] ss:$16 sps:$4 sm:$0xff]  }
 0x1c0   : > { %7003 = vmatpush1.bf16.msra.mxu0 %v16229_v38  ;;  %9319 = vmatpush1.bf16.msra.mxu1 %v16232_v39  ;;  %v16264_v38 = vld [vmem:[#allocation4 + $0x4ec] ss:$16 sps:$4 sm:$0xff]  }
 0x1c1   : > { %7004 = vmatprep.subr.bf16.mxu0 %v16237_v59  ;;  %9320 = vmatprep.subr.bf16.mxu1 %v16240_v63  ;;  %v601_v59 = vld [vmem:[%s17673_s25 + $0x660] sm:$0xff]  ;;  %v626_v63 = vld [vmem:[%s17673_s25 + $0x728] sm:$0xff] }
 0x1c4   : > { %7005 = vmatpush1.bf16.msra.mxu0 %v16235_v14  ;;  %9321 = vmatpush1.bf16.msra.mxu1 %v16238_v54  ;;  %v16267_v14 = vld [vmem:[#allocation4 + $0x704] ss:$16 sps:$4 sm:$0xff]   ;;  %v16270_v54 = vld [vmem:[#allocation4 + $0x50c] ss:$16 sps:$4 sm:$0xff]  }
 0x1c5   : > { %7006 = vmatprep.subr.bf16.mxu0 %v16243_v36  ;;  %9322 = vmatprep.subr.bf16.mxu1 %v16246_v49  ;;  %v18113_v49 = vpack.c.bf16 %v626_v63, %v601_v59  ;;  %v16277_v59 = vld [vmem:[#allocation4 + $0x740] ss:$16 sps:$4 sm:$0xff]  }
 0x1c6   : > { %6858 = vmatmul.mubr.bf16.gmra.mrb[8].mxu0 %v18077_v22  ;;  %9174 = vmatmul.mubr.bf16.gmra.mrb[40].mxu1 %v17885_v43 }
 0x1c7   : > { %6867 = vmatprep.mubr.bf16.mxu0 %v18079_v0  ;;  %9183 = vmatprep.mubr.bf16.mxu1 %v17887_v1  ;;  %v16256_v1 = vld [vmem:[#allocation4 + $0x4c8] ss:$16 sps:$4 sm:$0xff]  }
 0x1c8   : > { %7007 = vmatpush1.bf16.msra.mxu0 %v16241_v20  ;;  %9323 = vmatpush1.bf16.msra.mxu1 %v16244_v4  ;;  %v16265_v20 = vld [vmem:[#allocation4 + $0x700] ss:$16 sps:$4 sm:$0xff]  }
 0x1c9   : > { %v18089_v2 = vpop.f32.mrb[0].mxu1  ;;  %7008 = vmatprep.subr.bf16.mxu0 %v16249_v45  ;;  %9324 = vmatprep.subr.bf16.mxu1 %v16252_v16  ;;  %v18117_v45 = vpack.c.bf16 %v677_v12, %v652_v62  ;;  %v16273_v16 = vld [vmem:[#allocation4 + $0x724] ss:$16 sps:$4 sm:$0xff]  }
 0x1ca   : > { %v18091_v43 = vpop.f32.mrb[1].mxu1  ;;  %v16285_v12 = vld [vmem:[#allocation4 + $0x764] ss:$16 sps:$4 sm:$0xff]  }
 0x1cb   : > { %v18095_v56 = vpop.f32.mrb[2].mxu1 }
 0x1cc   : > { %v18099_v39 = vpop.f32.mrb[3].mxu1  ;;  %7009 = vmatpush1.bf16.msra.mxu0 %v16247_v25  ;;  %9325 = vmatpush1.bf16.msra.mxu1 %v16250_v26  ;;  %v702_v25 = vld [vmem:[%s17673_s25 + $0x988] sm:$0xff]  ;;  %v727_v26 = vld [vmem:[%s17673_s25 + $0xa50] sm:$0xff] }
 0x1cd   : > { %7010 = vmatprep.subr.bf16.mxu0 %v16255_v30  ;;  %9326 = vmatprep.subr.bf16.mxu1 %v16258_v41  ;;  %v16271_v30 = vld [vmem:[#allocation4 + $0x720] ss:$16 sps:$4 sm:$0xff]   ;;  %v16274_v41 = vld [vmem:[#allocation4 + $0x528] ss:$16 sps:$4 sm:$0xff]   ;;  %v18137_v62 = vpack.c.bf16 %v727_v26, %v702_v25 }
 0x1ce   : > { %6868 = vmatmul.mubr.bf16.gmra.mrb[12].mxu0 %v18093_v31  ;;  %9184 = vmatmul.mubr.bf16.gmra.mrb[44].mxu1 %v17897_v9 }
 0x1cf   : > { %6877 = vmatprep.mubr.bf16.mxu0 %v18097_v24  ;;  %9193 = vmatprep.mubr.bf16.mxu1 %v17899_v23  ;;  %v16268_v23 = vld [vmem:[#allocation4 + $0x508] ss:$16 sps:$4 sm:$0xff]  }
 0x1d0   : > { %7011 = vmatpush1.bf16.msra.mxu0 %v16253_v13  ;;  %9327 = vmatpush1.bf16.msra.mxu1 %v16256_v1  ;;  %v16279_v13 = vld [vmem:[#allocation4 + $0x744] ss:$16 sps:$4 sm:$0xff]   ;;  %v16282_v1 = vld [vmem:[#allocation4 + $0x54c] ss:$16 sps:$4 sm:$0xff]  }
 0x1d1   : > { %v18109_v36 = vpop.f32.mrb[4].mxu1  ;;  %7012 = vmatprep.subr.bf16.mxu0 %v16261_v35  ;;  %9328 = vmatprep.subr.bf16.mxu1 %v16264_v38  ;;  %v18133_v38 = vpack.c.bf16 %v676_v11, %v651_v10  ;;  %v16291_v10 = vld [vmem:[#allocation4 + $0x784] ss:$16 sps:$4 sm:$0xff]   ;;  %v16294_v11 = vld [vmem:[#allocation4 + $0x58c] ss:$16 sps:$4 sm:$0xff]  }
 0x1d2   : > { %v18111_v9 = vpop.f32.mrb[5].mxu1 }
 0x1d3   : > { %v18115_v4 = vpop.f32.mrb[6].mxu1 }
 0x1d4   : > { %v18119_v34 = vpop.f32.mrb[7].mxu1  ;;  %7013 = vmatpush1.bf16.msra.mxu0 %v16259_v8  ;;  %9329 = vmatpush1.bf16.msra.mxu1 %v16262_v21  ;;  %v16288_v8 = vld [vmem:[#allocation4 + $0x56c] ss:$16 sps:$4 sm:$0xff]  }
 0x1d5   : > { %7014 = vmatprep.subr.bf16.mxu0 %v16267_v14  ;;  %9330 = vmatprep.subr.bf16.mxu1 %v16270_v54  ;;  %v701_v14 = vld [vmem:[%s17673_s25 + $0x980] sm:$0xff]  ;;  %v726_v54 = vld [vmem:[%s17673_s25 + $0xa48] sm:$0xff] }
 0x1d6   : > { %6878 = vmatmul.mubr.bf16.gmra.mrb[16].mxu0 %v18113_v49  ;;  %9194 = vmatmul.mubr.bf16.gmra.mrb[48].mxu1 %v17909_v47  ;;  %v18153_v26 = vpack.c.bf16 %v726_v54, %v701_v14  ;;  %v802_v14 = vld [vmem:[%s17673_s25 + $0xca8] sm:$0xff]  ;;  %v827_v54 = vld [vmem:[%s17673_s25 + $0xd70] sm:$0xff] }
 0x1d7   : > { %6887 = vmatprep.mubr.bf16.mxu0 %v18117_v45  ;;  %9203 = vmatprep.mubr.bf16.mxu1 %v17911_v32  ;;  %v16280_v32 = vld [vmem:[#allocation4 + $0x548] ss:$16 sps:$4 sm:$0xff]  }
 0x1d8   : > { %7015 = vmatpush1.bf16.msra.mxu0 %v16265_v20  ;;  %9331 = vmatpush1.bf16.msra.mxu1 %v16268_v23  ;;  %v752_v20 = vld [vmem:[%s17673_s25 + $0xb18] sm:$0xff]  ;;  %v777_v23 = vld [vmem:[%s17673_s25 + $0xbe0] sm:$0xff] }
 0x1d9   : > { %v18129_v35 = vpop.f32.mrb[8].mxu1  ;;  %7016 = vmatprep.subr.bf16.mxu0 %v16273_v16  ;;  %9332 = vmatprep.subr.bf16.mxu1 %v16276_v19  ;;  %v16283_v16 = vld [vmem:[#allocation4 + $0x760] ss:$16 sps:$4 sm:$0xff]   ;;  %v16286_v19 = vld [vmem:[#allocation4 + $0x568] ss:$16 sps:$4 sm:$0xff]  }
 0x1da   : > { %v18131_v47 = vpop.f32.mrb[9].mxu1 }
 0x1db   : > { %v18135_v63 = vpop.f32.mrb[10].mxu1 }
 0x1dc   : > { %v18139_v21 = vpop.f32.mrb[11].mxu1  ;;  %7017 = vmatpush1.bf16.msra.mxu0 %v16271_v30  ;;  %9333 = vmatpush1.bf16.msra.mxu1 %v16274_v41  ;;  %v16289_v30 = vld [vmem:[#allocation4 + $0x780] ss:$16 sps:$4 sm:$0xff]  }
 0x1dd   : > { %7018 = vmatprep.subr.bf16.mxu0 %v16279_v13  ;;  %9334 = vmatprep.subr.bf16.mxu1 %v16282_v1  ;;  %v18157_v13 = vpack.c.bf16 %v777_v23, %v752_v20  ;;  %v16297_v1 = vld [vmem:[#allocation4 + $0x7a4] ss:$16 sps:$4 sm:$0xff]   ;;  %v16295_v20 = vld [vmem:[#allocation4 + $0x7a0] ss:$16 sps:$4 sm:$0xff]   ;;  %v16298_v23 = vld [vmem:[#allocation4 + $0x5a8] ss:$16 sps:$4 sm:$0xff]  }
 0x1de   : > { %6888 = vmatmul.mubr.bf16.gmra.mrb[20].mxu0 %v18133_v38  ;;  %9204 = vmatmul.mubr.bf16.gmra.mrb[52].mxu1 %v17921_v7 }
 0x1df   : > { %6897 = vmatprep.mubr.bf16.mxu0 %v18137_v62  ;;  %9213 = vmatprep.mubr.bf16.mxu1 %v17923_v60  ;;  %v16292_v60 = vld [vmem:[#allocation4 + $0x588] ss:$16 sps:$4 sm:$0xff]  }
 0x1e0   : > { %7019 = vmatpush1.bf16.msra.mxu0 %v16277_v59  ;;  %9335 = vmatpush1.bf16.msra.mxu1 %v16280_v32  ;;  %v16300_v59 = vld [vmem:[#allocation4 + $0x5ac] ss:$16 sps:$4 sm:$0xff]  }
 0x1e1   : > { %v18149_v25 = vpop.f32.mrb[12].mxu1  ;;  %7020 = vmatprep.subr.bf16.mxu0 %v16285_v12  ;;  %9336 = vmatprep.subr.bf16.mxu1 %v16288_v8  ;;  %v751_v12 = vld [vmem:[%s17673_s25 + $0xb10] sm:$0xff]  ;;  %v776_v8 = vld [vmem:[%s17673_s25 + $0xbd8] sm:$0xff] }
 0x1e2   : > { %20665 = vst [vmem:[#allocation16_spill] sm:$0xff] %v18149_v25  ;;  %v18151_v7 = vpop.f32.mrb[13].mxu1 }
 0x1e3   : > { %20666 = vst [vmem:[#allocation17_spill] sm:$0xff] %v18151_v7  ;;  %v18155_v41 = vpop.f32.mrb[14].mxu1  ;;  %v16312_v7 = vld [vmem:[#allocation4 + $0x5ec] ss:$16 sps:$4 sm:$0xff]  }
 0x1e4   : > { %20667 = vst [vmem:[#allocation18_spill] sm:$0xff] %v18155_v41  ;;  %v18159_v32 = vpop.f32.mrb[15].mxu1  ;;  %7021 = vmatpush1.bf16.msra.mxu0 %v16283_v16  ;;  %9337 = vmatpush1.bf16.msra.mxu1 %v16286_v19  ;;  %v16303_v16 = vld [vmem:[#allocation4 + $0x7c4] ss:$16 sps:$4 sm:$0xff]   ;;  %v16306_v19 = vld [vmem:[#allocation4 + $0x5cc] ss:$16 sps:$4 sm:$0xff]  }
 0x1e5   : > { %20668 = vst [vmem:[#allocation19_spill] sm:$0xff] %v18159_v32  ;;  %7022 = vmatprep.subr.bf16.mxu0 %v16291_v10  ;;  %9338 = vmatprep.subr.bf16.mxu1 %v16294_v11  ;;  %v18173_v11 = vpack.c.bf16 %v776_v8, %v751_v12  ;;  %v16301_v32 = vld [vmem:[#allocation4 + $0x7c0] ss:$16 sps:$4 sm:$0xff]   ;;  %v852_v12 = vld [vmem:[%s17673_s25 + $0xe38] sm:$0xff] }
 0x1e6   : > { %6898 = vmatmul.mubr.bf16.gmra.mrb[24].mxu0 %v18153_v26  ;;  %9214 = vmatmul.mubr.bf16.gmra.mrb[56].mxu1 %v17933_v33  ;;  %v877_v8 = vld [vmem:[%s17673_s25 + $0xf00] sm:$0xff] }
 0x1e7   : > { %6907 = vmatprep.mubr.bf16.mxu0 %v18157_v13  ;;  %9223 = vmatprep.mubr.bf16.mxu1 %v17935_v27  ;;  %v16304_v27 = vld [vmem:[#allocation4 + $0x5c8] ss:$16 sps:$4 sm:$0xff]  }
 0x1e8   : > { %7023 = vmatpush1.bf16.msra.mxu0 %v16289_v30  ;;  %9339 = vmatpush1.bf16.msra.mxu1 %v16292_v60  ;;  %v18177_v30 = vpack.c.bf16 %v827_v54, %v802_v14  ;;  %v16309_v60 = vld [vmem:[#allocation4 + $0x7e4] ss:$16 sps:$4 sm:$0xff]   ;;  %v16307_v14 = vld [vmem:[#allocation4 + $0x7e0] ss:$16 sps:$4 sm:$0xff]   ;;  %v16310_v54 = vld [vmem:[#allocation4 + $0x5e8] ss:$16 sps:$4 sm:$0xff]  }
 0x1e9   : > { %v18169_v10 = vpop.f32.mrb[16].mxu1  ;;  %7024 = vmatprep.subr.bf16.mxu0 %v16297_v1  ;;  %9340 = vmatprep.subr.bf16.mxu1 %v16300_v59  ;;  %v801_v1 = vld [vmem:[%s17673_s25 + $0xca0] sm:$0xff]  ;;  %v826_v59 = vld [vmem:[%s17673_s25 + $0xd68] sm:$0xff] }
 0x1ea   : > { %v18171_v33 = vpop.f32.mrb[17].mxu1 }
 0x1eb   : > { %v18175_v41 = vpop.f32.mrb[18].mxu1 }
 0x1ec   : > { %20669 = vst [vmem:[#allocation20_spill] sm:$0xff] %v18175_v41  ;;  %v18179_v25 = vpop.f32.mrb[19].mxu1  ;;  %7025 = vmatpush1.bf16.msra.mxu0 %v16295_v20  ;;  %9341 = vmatpush1.bf16.msra.mxu1 %v16298_v23  ;;  %v16315_v20 = vld [vmem:[#allocation4 + $0x804] ss:$16 sps:$4 sm:$0xff]   ;;  %v16318_v23 = vld [vmem:[#allocation4 + $0x60c] ss:$16 sps:$4 sm:$0xff]  }
 0x1ed   : > { %20670 = vst [vmem:[#allocation21_spill] sm:$0xff] %v18179_v25  ;;  %7026 = vmatprep.subr.bf16.mxu0 %v16303_v16  ;;  %9342 = vmatprep.subr.bf16.mxu1 %v16306_v19  ;;  %v18193_v19 = vpack.c.bf16 %v826_v59, %v801_v1  ;;  %v18197_v25 = vpack.c.bf16 %v877_v8, %v852_v12  ;;  %v927_v1 = vld [vmem:[%s17673_s25 + $0x1090] sm:$0xff]  ;;  %v16348_v41 = vld [vmem:[#allocation4 + $0x6ac] ss:$16 sps:$4 sm:$0xff]  }
 0x1ee   : > { %6908 = vmatmul.mubr.bf16.gmra.mrb[28].mxu0 %v18173_v11  ;;  %9224 = vmatmul.mubr.bf16.gmra.mrb[60].mxu1 %v17945_v50 }
 0x1ef   : > { %6917 = vmatprep.mubr.bf16.mxu0 %v18177_v30  ;;  %9233 = vmatprep.mubr.bf16.mxu1 %v17947_v51 }
 0x1f0   : > { %7027 = vmatpush1.bf16.msra.mxu0 %v16301_v32  ;;  %9343 = vmatpush1.bf16.msra.mxu1 %v16304_v27  ;;  %v876_v27 = vld [vmem:[%s17673_s25 + $0xef8] sm:$0xff] }
 0x1f1   : > { %v18189_v16 = vpop.f32.mrb[20].mxu1  ;;  %7028 = vmatprep.subr.bf16.mxu0 %v16309_v60  ;;  %9344 = vmatprep.subr.bf16.mxu1 %v16312_v7  ;;  %v851_v7 = vld [vmem:[%s17673_s25 + $0xe30] sm:$0xff]  ;;  %v902_v60 = vld [vmem:[%s17673_s25 + $0xfc8] sm:$0xff] }
 0x1f2   : > { %20671 = vst [vmem:[#allocation22_spill] sm:$0xff] %v18189_v16  ;;  %v18191_v50 = vpop.f32.mrb[21].mxu1  ;;  %v18213_v8 = vpack.c.bf16 %v876_v27, %v851_v7  ;;  %v977_v7 = vld [vmem:[%s17673_s25 + $0x1220] sm:$0xff]  ;;  %v16336_v16 = vld [vmem:[#allocation4 + $0x66c] ss:$16 sps:$4 sm:$0xff]  }
 0x1f3   : > { %20672 = vst [vmem:[#allocation23_spill] sm:$0xff] %v18191_v50  ;;  %v18195_v51 = vpop.f32.mrb[22].mxu1  ;;  %v529_v50 = vld [vmem:[%s17673_s25 + $0x420] sm:$0xff] }
 0x1f4   : > { %20673 = vst [vmem:[#allocation24_spill] sm:$0xff] %v18195_v51  ;;  %v18199_v32 = vpop.f32.mrb[23].mxu1  ;;  %7029 = vmatpush1.bf16.msra.mxu0 %v16307_v14  ;;  %9345 = vmatpush1.bf16.msra.mxu1 %v16310_v54  ;;  %v504_v51 = vld [vmem:[%s17673_s25 + $0x358] sm:$0xff] }
 0x1f5   : > { %20674 = vst [vmem:[#allocation25_spill] sm:$0xff] %v18199_v32  ;;  %7191 = vmatprep.subr.bf16.mxu0 %v16315_v20  ;;  %9507 = vmatprep.subr.bf16.mxu1 %v16318_v23  ;;  %v926_v20 = vld [vmem:[%s17673_s25 + $0x1088] sm:$0xff]  ;;  %v952_v23 = vld [vmem:[%s17673_s25 + $0x1158] sm:$0xff] }
 0x1f6   : > { %6918 = vmatmul.mubr.bf16.gmra.mrb[32].mxu0 %v18193_v19  ;;  %9234 = vmatmul.mubr.bf16.gmra.mrb[64].mxu1 %v17957_v15  ;;  %v18217_v15 = vpack.c.bf16 %v927_v1, %v902_v60  ;;  %v16322_v32 = vld [vmem:[#allocation4 + $0x628] ss:$16 sps:$4 sm:$0xff]  }
 0x1f7   : > { %6927 = vmatprep.mubr.bf16.mxu0 %v18197_v25  ;;  %9243 = vmatprep.mubr.bf16.mxu1 %v17959_v29  ;;  %v901_v29 = vld [vmem:[%s17673_s25 + $0xfc0] sm:$0xff] }
 0x1f8   : > { %v18233_v1 = vpack.c.bf16 %v926_v20, %v901_v29  ;;  %v976_v29 = vld [vmem:[%s17673_s25 + $0x1218] sm:$0xff]  ;;  %v1002_v20 = vld [vmem:[%s17673_s25 + $0x12e8] sm:$0xff] }
 0x1f9   : > { %v18209_v59 = vpop.f32.mrb[24].mxu1 }
 0x1fa   : > { %20675 = vst [vmem:[#allocation26_spill] sm:$0xff] %v18209_v59  ;;  %v18211_v12 = vpop.f32.mrb[25].mxu1  ;;  %v16319_v59 = vld [vmem:[#allocation4 + $0x820] ss:$16 sps:$4 sm:$0xff]  }
 0x1fb   : > { %20676 = vst [vmem:[#allocation27_spill] sm:$0xff] %v18211_v12  ;;  %v18215_v14 = vpop.f32.mrb[26].mxu1 }
 0x1fc   : > { %20677 = vst [vmem:[#allocation28_spill] sm:$0xff] %v18215_v14  ;;  %v18219_v54 = vpop.f32.mrb[27].mxu1 }
 0x1fd   : > { %20678 = vst [vmem:[#allocation29_spill] sm:$0xff] %v18219_v54 }
 0x1fe   : > { %6928 = vmatmul.mubr.bf16.gmra.mrb[36].mxu0 %v18213_v8  ;;  %9244 = vmatmul.mubr.bf16.gmra.mrb[68].mxu1 %v17969_v17  ;;  %v18237_v17 = vpack.c.bf16 %v977_v7, %v952_v23 }
 0x1ff   : > { %6937 = vmatprep.mubr.bf16.mxu0 %v18217_v15  ;;  %9253 = vmatprep.mubr.bf16.mxu1 %v17971_v18  ;;  %v951_v18 = vld [vmem:[%s17673_s25 + $0x1150] sm:$0xff] }
 0x200   : > { %v18249_v23 = vpack.c.bf16 %v976_v29, %v951_v18  ;;  %v1102_v29 = vld [vmem:[%s17673_s25 + $0x1608] sm:$0xff] }
 0x201   : > { %v18229_v27 = vpop.f32.mrb[28].mxu1 }
 0x202   : > { %20679 = vst [vmem:[#allocation30_spill] sm:$0xff] %v18229_v27  ;;  %v18231_v60 = vpop.f32.mrb[29].mxu1  ;;  %v16324_v27 = vld [vmem:[#allocation4 + $0x62c] ss:$16 sps:$4 sm:$0xff]  }
 0x203   : > { %20680 = vst [vmem:[#allocation31_spill] sm:$0xff] %v18231_v60  ;;  %v18235_v54 = vpop.f32.mrb[30].mxu1  ;;  %v1077_v60 = vld [vmem:[%s17673_s25 + $0x1540] sm:$0xff] }
 0x204   : > { %20681 = vst [vmem:[#allocation32_spill] sm:$0xff] %v18235_v54  ;;  %v18239_v14 = vpop.f32.mrb[31].mxu1  ;;  %v1027_v54 = vld [vmem:[%s17673_s25 + $0x13b0] sm:$0xff] }
 0x205   : > { %20682 = vst [vmem:[#allocation33_spill] sm:$0xff] %v18239_v14  ;;  %v18251_v7 = vpack.c.bf16 %v1027_v54, %v1002_v20  ;;  %v1052_v14 = vld [vmem:[%s17673_s25 + $0x1478] sm:$0xff]  ;;  %v1127_v20 = vld [vmem:[%s17673_s25 + $0x16d0] sm:$0xff] }
 0x206   : > { %6938 = vmatmul.mubr.bf16.gmra.mrb[40].mxu0 %v18233_v1  ;;  %9254 = vmatmul.mubr.bf16.gmra.mrb[72].mxu1 %v17981_v28  ;;  %v1001_v28 = vld [vmem:[%s17673_s25 + $0x12e0] sm:$0xff]  ;;  %v18263_v54 = vpack.c.bf16 %v1077_v60, %v1052_v14  ;;  %v18275_v14 = vpack.c.bf16 %v1127_v20, %v1102_v29  ;;  %v1152_v60 = vld [vmem:[%s17673_s25 + $0x1798] sm:$0xff] }
 0x207   : > { %6947 = vmatprep.mubr.bf16.mxu0 %v18237_v17  ;;  %9263 = vmatprep.mubr.bf16.mxu1 %v17983_v44  ;;  %v1026_v44 = vld [vmem:[%s17673_s25 + $0x13a8] sm:$0xff]  ;;  %v404_v29 = vld [vmem:[%s17673_s25 + $0x38] sm:$0xff]  ;;  %v429_v20 = vld [vmem:[%s17673_s25 + $0x100] sm:$0xff] }
 0x208   : > { %v18261_v18 = vpack.c.bf16 %v1026_v44, %v1001_v28  ;;  %v1177_v44 = vld [vmem:[%s17673_s25 + $0x1860] sm:$0xff] }
 0x20e   : > { %6948 = vmatmul.mubr.bf16.gmra.mrb[44].mxu0 %v18249_v23  ;;  %9264 = vmatmul.mubr.bf16.gmra.mrb[76].mxu1 %v17993_v37  ;;  %v1051_v37 = vld [vmem:[%s17673_s25 + $0x1470] sm:$0xff] }
 0x20f   : > { %6957 = vmatprep.mubr.bf16.mxu0 %v18251_v7  ;;  %9273 = vmatprep.mubr.bf16.mxu1 %v17995_v58  ;;  %v1076_v58 = vld [vmem:[%s17673_s25 + $0x1538] sm:$0xff] }
 0x210   : > { %v18273_v28 = vpack.c.bf16 %v1076_v58, %v1051_v37  ;;  %v18287_v58 = vpack.c.bf16 %v1177_v44, %v1152_v60  ;;  %v454_v60 = vld [vmem:[%s17673_s25 + $0x1c8] sm:$0xff]  ;;  %v479_v44 = vld [vmem:[%s17673_s25 + $0x290] sm:$0xff] }
 0x211   : > { %v18311_v12 = vpack.c.bf16 %v479_v44, %v454_v60  ;;  %v16325_v60 = vld [vmem:[#allocation4 + $0x840] ss:$16 sps:$4 sm:$0xff]   ;;  %v16328_v44 = vld [vmem:[#allocation4 + $0x648] ss:$16 sps:$4 sm:$0xff]  }
 0x216   : > { %6958 = vmatmul.mubr.bf16.gmra.mrb[48].mxu0 %v18261_v18  ;;  %9274 = vmatmul.mubr.bf16.gmra.mrb[80].mxu1 %v18005_v40  ;;  %v1101_v40 = vld [vmem:[%s17673_s25 + $0x1600] sm:$0xff] }
 0x217   : > { %6967 = vmatprep.mubr.bf16.mxu0 %v18263_v54  ;;  %9283 = vmatprep.mubr.bf16.mxu1 %v18007_v42  ;;  %v1126_v42 = vld [vmem:[%s17673_s25 + $0x16c8] sm:$0xff] }
 0x218   : > { %v18285_v37 = vpack.c.bf16 %v1126_v42, %v1101_v40  ;;  %v18299_v42 = vpack.c.bf16 %v429_v20, %v404_v29  ;;  %v16321_v20 = vld [vmem:[#allocation4 + $0x824] ss:$16 sps:$4 sm:$0xff]  }
 0x21e   : > { %6968 = vmatmul.mubr.bf16.gmra.mrb[52].mxu0 %v18273_v28  ;;  %9284 = vmatmul.mubr.bf16.gmra.mrb[84].mxu1 %v18017_v52  ;;  %v1151_v52 = vld [vmem:[%s17673_s25 + $0x1790] sm:$0xff] }
 0x21f   : > { %6977 = vmatprep.mubr.bf16.mxu0 %v18275_v14  ;;  %9293 = vmatprep.mubr.bf16.mxu1 %v18019_v53  ;;  %v1176_v53 = vld [vmem:[%s17673_s25 + $0x1858] sm:$0xff] }
 0x220   : > { %v18297_v40 = vpack.c.bf16 %v1176_v53, %v1151_v52  ;;  %v16313_v52 = vld [vmem:[#allocation4 + $0x800] ss:$16 sps:$4 sm:$0xff]   ;;  %v16316_v53 = vld [vmem:[#allocation4 + $0x608] ss:$16 sps:$4 sm:$0xff]  }
 0x226   : > { %6978 = vmatmul.mubr.bf16.gmra.mrb[56].mxu0 %v18285_v37  ;;  %9294 = vmatmul.mubr.bf16.gmra.mrb[88].mxu1 %v18029_v61  ;;  %v403_v61 = vld [vmem:[%s17673_s25 + $0x30] sm:$0xff] }
 0x227   : > { %6987 = vmatprep.mubr.bf16.mxu0 %v18287_v58  ;;  %9303 = vmatprep.mubr.bf16.mxu1 %v18031_v3  ;;  %v428_v3 = vld [vmem:[%s17673_s25 + $0xf8] sm:$0xff] }
 0x228   : > { %v18309_v29 = vpack.c.bf16 %v428_v3, %v403_v61  ;;  %v16327_v61 = vld [vmem:[#allocation4 + $0x844] ss:$16 sps:$4 sm:$0xff]   ;;  %v16330_v3 = vld [vmem:[#allocation4 + $0x64c] ss:$16 sps:$4 sm:$0xff]  }
 0x22e   : > { %6988 = vmatmul.mubr.bf16.gmra.mrb[60].mxu0 %v18297_v40  ;;  %9304 = vmatmul.mubr.bf16.gmra.mrb[92].mxu1 %v18041_v5  ;;  %v453_v5 = vld [vmem:[%s17673_s25 + $0x1c0] sm:$0xff] }
 0x22f   : > { %7030 = vmatprep.mubr.bf16.mxu0 %v18299_v42  ;;  %9346 = vmatprep.mubr.bf16.mxu1 %v18043_v6  ;;  %v478_v6 = vld [vmem:[%s17673_s25 + $0x288] sm:$0xff] }
 0x236   : > { %7031 = vmatmul.mubr.bf16.vlgmr.msra.gmra.mrb[0].mxu0 %v18309_v29  ;;  %9347 = vmatmul.mubr.bf16.vlgmr.msra.gmra.mrb[32].mxu1 %v18053_v46  ;;  %v18321_v46 = vpack.c.bf16 %v478_v6, %v453_v5  ;;  %v579_v5 = vld [vmem:[%s17673_s25 + $0x5b0] sm:$0xff] }
 0x237   : > { %7192 = vmatpush1.bf16.msra.mxu0 %v16313_v52  ;;  %9508 = vmatpush1.bf16.msra.mxu1 %v16316_v53  ;;  %v18323_v52 = vpack.c.bf16 %v529_v50, %v504_v51  ;;  %v16333_v53 = vld [vmem:[#allocation4 + $0x864] ss:$16 sps:$4 sm:$0xff]   ;;  %v16342_v51 = vld [vmem:[#allocation4 + $0x68c] ss:$16 sps:$4 sm:$0xff]   ;;  %v16337_v6 = vld [vmem:[#allocation4 + $0x880] ss:$16 sps:$4 sm:$0xff]  }
 0x238   : > { %7040 = vmatprep.mubr.bf16.mxu0 %v18311_v12  ;;  %9356 = vmatprep.mubr.bf16.mxu1 %v18055_v57  ;;  %v503_v57 = vld [vmem:[%s17673_s25 + $0x350] sm:$0xff] }
 0x239   : > { %7193 = vmatprep.subr.bf16.mxu0 %v16321_v20  ;;  %9509 = vmatprep.subr.bf16.mxu1 %v16324_v27  ;;  %v528_v20 = vld [vmem:[%s17673_s25 + $0x418] sm:$0xff]  ;;  %v554_v27 = vld [vmem:[%s17673_s25 + $0x4e8] sm:$0xff]  ;;  %v16339_v50 = vld [vmem:[#allocation4 + $0x884] ss:$16 sps:$4 sm:$0xff]  }
 0x23b   : > { %7194 = vmatpush1.bf16.msra.mxu0 %v16319_v59  ;;  %9510 = vmatpush1.bf16.msra.mxu1 %v16322_v32  ;;  %v16331_v59 = vld [vmem:[#allocation4 + $0x860] ss:$16 sps:$4 sm:$0xff]   ;;  %v16334_v32 = vld [vmem:[#allocation4 + $0x668] ss:$16 sps:$4 sm:$0xff]  }
 0x23c   : > { %7195 = vmatprep.subr.bf16.mxu0 %v16327_v61  ;;  %9511 = vmatprep.subr.bf16.mxu1 %v16330_v3  ;;  %v16340_v61 = vld [vmem:[#allocation4 + $0x688] ss:$16 sps:$4 sm:$0xff]   ;;  %v18335_v3 = vpack.c.bf16 %v579_v5, %v554_v27  ;;  %v16351_v27 = vld [vmem:[#allocation4 + $0x8c4] ss:$16 sps:$4 sm:$0xff]   ;;  %v16354_v5 = vld [vmem:[#allocation4 + $0x6cc] ss:$16 sps:$4 sm:$0xff]  }
 0x23e   : > { %7041 = vmatmul.mubr.bf16.gmra.mrb[4].mxu0 %v18321_v46  ;;  %9357 = vmatmul.mubr.bf16.gmra.mrb[36].mxu1 %v18065_v55  ;;  %v18333_v55 = vpack.c.bf16 %v528_v20, %v503_v57  ;;  %v16343_v57 = vld [vmem:[#allocation4 + $0x8a0] ss:$16 sps:$4 sm:$0xff]   ;;  %v16346_v20 = vld [vmem:[#allocation4 + $0x6a8] ss:$16 sps:$4 sm:$0xff]  }
 0x23f   : > { %7050 = vmatprep.mubr.bf16.mxu0 %v18323_v52  ;;  %9366 = vmatprep.mubr.bf16.mxu1 %v18067_v48  ;;  %v16345_v48 = vld [vmem:[#allocation4 + $0x8a4] ss:$16 sps:$4 sm:$0xff]  }
 0x240   : > { %7196 = vmatpush1.bf16.msra.mxu0 %v16325_v60  ;;  %9512 = vmatpush1.bf16.msra.mxu1 %v16328_v44  ;;  %v553_v60 = vld [vmem:[%s17673_s25 + $0x4e0] sm:$0xff]  ;;  %v578_v44 = vld [vmem:[%s17673_s25 + $0x5a8] sm:$0xff] }
 0x241   : > { %7197 = vmatprep.subr.bf16.mxu0 %v16333_v53  ;;  %9513 = vmatprep.subr.bf16.mxu1 %v16336_v16  ;;  %v604_v16 = vld [vmem:[%s17673_s25 + $0x678] sm:$0xff]  ;;  %v629_v53 = vld [vmem:[%s17673_s25 + $0x740] sm:$0xff] }
 0x244   : > { %7198 = vmatpush1.bf16.msra.mxu0 %v16331_v59  ;;  %9514 = vmatpush1.bf16.msra.mxu1 %v16334_v32  ;;  %v16349_v59 = vld [vmem:[#allocation4 + $0x8c0] ss:$16 sps:$4 sm:$0xff]   ;;  %v16352_v32 = vld [vmem:[#allocation4 + $0x6c8] ss:$16 sps:$4 sm:$0xff]  }
 0x245   : > { %7199 = vmatprep.subr.bf16.mxu0 %v16339_v50  ;;  %9515 = vmatprep.subr.bf16.mxu1 %v16342_v51  ;;  %v18347_v50 = vpack.c.bf16 %v629_v53, %v604_v16  ;;  %v16360_v51 = vld [vmem:[#allocation4 + $0x6ec] ss:$16 sps:$4 sm:$0xff]   ;;  %v16363_v16 = vld [vmem:[#allocation4 + $0x904] ss:$16 sps:$4 sm:$0xff]  }
 0x246   : > { %7051 = vmatmul.mubr.bf16.gmra.mrb[8].mxu0 %v18333_v55  ;;  %9367 = vmatmul.mubr.bf16.gmra.mrb[40].mxu1 %v18077_v22  ;;  %v18345_v22 = vpack.c.bf16 %v578_v44, %v553_v60  ;;  %v16355_v60 = vld [vmem:[#allocation4 + $0x8e0] ss:$16 sps:$4 sm:$0xff]   ;;  %v16358_v44 = vld [vmem:[#allocation4 + $0x6e8] ss:$16 sps:$4 sm:$0xff]   ;;  %v16366_v53 = vld [vmem:[#allocation4 + $0x70c] ss:$16 sps:$4 sm:$0xff]  }
 0x247   : > { %7060 = vmatprep.mubr.bf16.mxu0 %v18335_v3  ;;  %9376 = vmatprep.mubr.bf16.mxu1 %v18079_v0  ;;  %v16357_v0 = vld [vmem:[#allocation4 + $0x8e4] ss:$16 sps:$4 sm:$0xff]  }
 0x248   : > { %7200 = vmatpush1.bf16.msra.mxu0 %v16337_v6  ;;  %9516 = vmatpush1.bf16.msra.mxu1 %v16340_v61  ;;  %v603_v6 = vld [vmem:[%s17673_s25 + $0x670] sm:$0xff]  ;;  %v628_v61 = vld [vmem:[%s17673_s25 + $0x738] sm:$0xff] }
 0x249   : > { %7201 = vmatprep.subr.bf16.mxu0 %v16345_v48  ;;  %9517 = vmatprep.subr.bf16.mxu1 %v16348_v41  ;;  %v654_v41 = vld [vmem:[%s17673_s25 + $0x808] sm:$0xff]  ;;  %v679_v48 = vld [vmem:[%s17673_s25 + $0x8d0] sm:$0xff] }
 0x24c   : > { %7202 = vmatpush1.bf16.msra.mxu0 %v16343_v57  ;;  %9518 = vmatpush1.bf16.msra.mxu1 %v16346_v20  ;;  %v16361_v57 = vld [vmem:[#allocation4 + $0x900] ss:$16 sps:$4 sm:$0xff]   ;;  %v16364_v20 = vld [vmem:[#allocation4 + $0x708] ss:$16 sps:$4 sm:$0xff]  }
 0x24d   : > { %7203 = vmatprep.subr.bf16.mxu0 %v16351_v27  ;;  %9519 = vmatprep.subr.bf16.mxu1 %v16354_v5  ;;  %v18359_v27 = vpack.c.bf16 %v679_v48, %v654_v41  ;;  %v16372_v5 = vld [vmem:[#allocation4 + $0x72c] ss:$16 sps:$4 sm:$0xff]   ;;  %v16375_v41 = vld [vmem:[#allocation4 + $0x944] ss:$16 sps:$4 sm:$0xff]  }
 0x24e   : > { %7061 = vmatmul.mubr.bf16.gmra.mrb[12].mxu0 %v18345_v22  ;;  %9377 = vmatmul.mubr.bf16.gmra.mrb[44].mxu1 %v18093_v31  ;;  %v18357_v31 = vpack.c.bf16 %v628_v61, %v603_v6  ;;  %v16367_v6 = vld [vmem:[#allocation4 + $0x920] ss:$16 sps:$4 sm:$0xff]   ;;  %v16370_v61 = vld [vmem:[#allocation4 + $0x728] ss:$16 sps:$4 sm:$0xff]   ;;  %v16378_v48 = vld [vmem:[#allocation4 + $0x74c] ss:$16 sps:$4 sm:$0xff]  }
 0x24f   : > { %7070 = vmatprep.mubr.bf16.mxu0 %v18347_v50  ;;  %9386 = vmatprep.mubr.bf16.mxu1 %v18097_v24  ;;  %v16369_v24 = vld [vmem:[#allocation4 + $0x924] ss:$16 sps:$4 sm:$0xff]  }
 0x250   : > { %7204 = vmatpush1.bf16.msra.mxu0 %v16349_v59  ;;  %9520 = vmatpush1.bf16.msra.mxu1 %v16352_v32  ;;  %v653_v59 = vld [vmem:[%s17673_s25 + $0x800] sm:$0xff]  ;;  %v678_v32 = vld [vmem:[%s17673_s25 + $0x8c8] sm:$0xff] }
 0x251   : > { %7205 = vmatprep.subr.bf16.mxu0 %v16357_v0  ;;  %9521 = vmatprep.subr.bf16.mxu1 %v16360_v51  ;;  %v704_v0 = vld [vmem:[%s17673_s25 + $0x998] sm:$0xff]  ;;  %v729_v51 = vld [vmem:[%s17673_s25 + $0xa60] sm:$0xff] }
 0x254   : > { %7206 = vmatpush1.bf16.msra.mxu0 %v16355_v60  ;;  %9522 = vmatpush1.bf16.msra.mxu1 %v16358_v44  ;;  %v16373_v60 = vld [vmem:[#allocation4 + $0x940] ss:$16 sps:$4 sm:$0xff]   ;;  %v16376_v44 = vld [vmem:[#allocation4 + $0x748] ss:$16 sps:$4 sm:$0xff]  }
 0x255   : > { %7207 = vmatprep.subr.bf16.mxu0 %v16363_v16  ;;  %9523 = vmatprep.subr.bf16.mxu1 %v16366_v53  ;;  %v18371_v16 = vpack.c.bf16 %v729_v51, %v704_v0  ;;  %v16384_v53 = vld [vmem:[#allocation4 + $0x76c] ss:$16 sps:$4 sm:$0xff]   ;;  %v16387_v0 = vld [vmem:[#allocation4 + $0x984] ss:$16 sps:$4 sm:$0xff]  }
 0x256   : > { %7071 = vmatmul.mubr.bf16.gmra.mrb[16].mxu0 %v18357_v31  ;;  %9387 = vmatmul.mubr.bf16.gmra.mrb[48].mxu1 %v18113_v49  ;;  %v18369_v49 = vpack.c.bf16 %v678_v32, %v653_v59  ;;  %v16379_v59 = vld [vmem:[#allocation4 + $0x960] ss:$16 sps:$4 sm:$0xff]   ;;  %v16382_v32 = vld [vmem:[#allocation4 + $0x768] ss:$16 sps:$4 sm:$0xff]   ;;  %v16390_v51 = vld [vmem:[#allocation4 + $0x78c] ss:$16 sps:$4 sm:$0xff]  }
 0x257   : > { %7080 = vmatprep.mubr.bf16.mxu0 %v18359_v27  ;;  %9396 = vmatprep.mubr.bf16.mxu1 %v18117_v45  ;;  %v16381_v45 = vld [vmem:[#allocation4 + $0x964] ss:$16 sps:$4 sm:$0xff]  }
 0x258   : > { %7208 = vmatpush1.bf16.msra.mxu0 %v16361_v57  ;;  %9524 = vmatpush1.bf16.msra.mxu1 %v16364_v20  ;;  %v703_v57 = vld [vmem:[%s17673_s25 + $0x990] sm:$0xff]  ;;  %v728_v20 = vld [vmem:[%s17673_s25 + $0xa58] sm:$0xff] }
 0x259   : > { %7209 = vmatprep.subr.bf16.mxu0 %v16369_v24  ;;  %9525 = vmatprep.subr.bf16.mxu1 %v16372_v5  ;;  %v754_v24 = vld [vmem:[%s17673_s25 + $0xb28] sm:$0xff]  ;;  %v779_v5 = vld [vmem:[%s17673_s25 + $0xbf0] sm:$0xff] }
 0x25c   : > { %7210 = vmatpush1.bf16.msra.mxu0 %v16367_v6  ;;  %9526 = vmatpush1.bf16.msra.mxu1 %v16370_v61  ;;  %v16385_v6 = vld [vmem:[#allocation4 + $0x980] ss:$16 sps:$4 sm:$0xff]   ;;  %v16388_v61 = vld [vmem:[#allocation4 + $0x788] ss:$16 sps:$4 sm:$0xff]  }
 0x25d   : > { %7211 = vmatprep.subr.bf16.mxu0 %v16375_v41  ;;  %9527 = vmatprep.subr.bf16.mxu1 %v16378_v48  ;;  %v18383_v41 = vpack.c.bf16 %v779_v5, %v754_v24  ;;  %v16396_v48 = vld [vmem:[#allocation4 + $0x7ac] ss:$16 sps:$4 sm:$0xff]   ;;  %v16399_v24 = vld [vmem:[#allocation4 + $0x9c4] ss:$16 sps:$4 sm:$0xff]  }
 0x25e   : > { %7081 = vmatmul.mubr.bf16.gmra.mrb[20].mxu0 %v18369_v49  ;;  %9397 = vmatmul.mubr.bf16.gmra.mrb[52].mxu1 %v18133_v38  ;;  %v18381_v38 = vpack.c.bf16 %v728_v20, %v703_v57  ;;  %v16391_v57 = vld [vmem:[#allocation4 + $0x9a0] ss:$16 sps:$4 sm:$0xff]   ;;  %v16394_v20 = vld [vmem:[#allocation4 + $0x7a8] ss:$16 sps:$4 sm:$0xff]   ;;  %v16402_v5 = vld [vmem:[#allocation4 + $0x7cc] ss:$16 sps:$4 sm:$0xff]  }
 0x25f   : > { %7090 = vmatprep.mubr.bf16.mxu0 %v18371_v16  ;;  %9406 = vmatprep.mubr.bf16.mxu1 %v18137_v62  ;;  %v16393_v62 = vld [vmem:[#allocation4 + $0x9a4] ss:$16 sps:$4 sm:$0xff]  }
 0x260   : > { %7212 = vmatpush1.bf16.msra.mxu0 %v16373_v60  ;;  %9528 = vmatpush1.bf16.msra.mxu1 %v16376_v44  ;;  %v753_v60 = vld [vmem:[%s17673_s25 + $0xb20] sm:$0xff]  ;;  %v778_v44 = vld [vmem:[%s17673_s25 + $0xbe8] sm:$0xff] }
 0x261   : > { %7213 = vmatprep.subr.bf16.mxu0 %v16381_v45  ;;  %9529 = vmatprep.subr.bf16.mxu1 %v16384_v53  ;;  %v804_v45 = vld [vmem:[%s17673_s25 + $0xcb8] sm:$0xff]  ;;  %v829_v53 = vld [vmem:[%s17673_s25 + $0xd80] sm:$0xff] }
 0x264   : > { %7214 = vmatpush1.bf16.msra.mxu0 %v16379_v59  ;;  %9530 = vmatpush1.bf16.msra.mxu1 %v16382_v32  ;;  %v16397_v59 = vld [vmem:[#allocation4 + $0x9c0] ss:$16 sps:$4 sm:$0xff]   ;;  %v16400_v32 = vld [vmem:[#allocation4 + $0x7c8] ss:$16 sps:$4 sm:$0xff]  }
 0x265   : > { %7215 = vmatprep.subr.bf16.mxu0 %v16387_v0  ;;  %9531 = vmatprep.subr.bf16.mxu1 %v16390_v51  ;;  %v18395_v0 = vpack.c.bf16 %v829_v53, %v804_v45  ;;  %v16408_v51 = vld [vmem:[#allocation4 + $0x7ec] ss:$16 sps:$4 sm:$0xff]   ;;  %v16411_v45 = vld [vmem:[#allocation4 + $0xa04] ss:$16 sps:$4 sm:$0xff]  }
 0x266   : > { %7091 = vmatmul.mubr.bf16.gmra.mrb[24].mxu0 %v18381_v38  ;;  %9407 = vmatmul.mubr.bf16.gmra.mrb[56].mxu1 %v18153_v26  ;;  %v18393_v26 = vpack.c.bf16 %v778_v44, %v753_v60  ;;  %v16403_v60 = vld [vmem:[#allocation4 + $0x9e0] ss:$16 sps:$4 sm:$0xff]   ;;  %v16406_v44 = vld [vmem:[#allocation4 + $0x7e8] ss:$16 sps:$4 sm:$0xff]   ;;  %v16414_v53 = vld [vmem:[#allocation4 + $0x80c] ss:$16 sps:$4 sm:$0xff]  }
 0x267   : > { %7100 = vmatprep.mubr.bf16.mxu0 %v18383_v41  ;;  %9416 = vmatprep.mubr.bf16.mxu1 %v18157_v13  ;;  %v16405_v13 = vld [vmem:[#allocation4 + $0x9e4] ss:$16 sps:$4 sm:$0xff]  }
 0x268   : > { %7216 = vmatpush1.bf16.msra.mxu0 %v16385_v6  ;;  %9532 = vmatpush1.bf16.msra.mxu1 %v16388_v61  ;;  %v803_v6 = vld [vmem:[%s17673_s25 + $0xcb0] sm:$0xff]  ;;  %v828_v61 = vld [vmem:[%s17673_s25 + $0xd78] sm:$0xff] }
 0x269   : > { %7217 = vmatprep.subr.bf16.mxu0 %v16393_v62  ;;  %9533 = vmatprep.subr.bf16.mxu1 %v16396_v48  ;;  %v854_v62 = vld [vmem:[%s17673_s25 + $0xe48] sm:$0xff]  ;;  %v879_v48 = vld [vmem:[%s17673_s25 + $0xf10] sm:$0xff] }
 0x26c   : > { %7218 = vmatpush1.bf16.msra.mxu0 %v16391_v57  ;;  %9534 = vmatpush1.bf16.msra.mxu1 %v16394_v20  ;;  %v18407_v57 = vpack.c.bf16 %v879_v48, %v854_v62  ;;  %v878_v20 = vld [vmem:[%s17673_s25 + $0xf08] sm:$0xff]  ;;  %v1004_v62 = vld [vmem:[%s17673_s25 + $0x12f8] sm:$0xff]  ;;  %v1029_v48 = vld [vmem:[%s17673_s25 + $0x13c0] sm:$0xff] }
 0x26d   : > { %7219 = vmatprep.subr.bf16.mxu0 %v16399_v24  ;;  %9535 = vmatprep.subr.bf16.mxu1 %v16402_v5  ;;  %v904_v24 = vld [vmem:[%s17673_s25 + $0xfd8] sm:$0xff]  ;;  %v929_v5 = vld [vmem:[%s17673_s25 + $0x10a0] sm:$0xff] }
 0x26e   : > { %7101 = vmatmul.mubr.bf16.gmra.mrb[28].mxu0 %v18393_v26  ;;  %9417 = vmatmul.mubr.bf16.gmra.mrb[60].mxu1 %v18173_v11  ;;  %v18405_v11 = vpack.c.bf16 %v828_v61, %v803_v6 }
 0x26f   : > { %7110 = vmatprep.mubr.bf16.mxu0 %v18395_v0  ;;  %9426 = vmatprep.mubr.bf16.mxu1 %v18177_v30  ;;  %v853_v30 = vld [vmem:[%s17673_s25 + $0xe40] sm:$0xff] }
 0x270   : > { %7220 = vmatpush1.bf16.msra.mxu0 %v16397_v59  ;;  %9536 = vmatpush1.bf16.msra.mxu1 %v16400_v32  ;;  %v18417_v59 = vpack.c.bf16 %v878_v20, %v853_v30  ;;  %v18419_v32 = vpack.c.bf16 %v929_v5, %v904_v24  ;;  %v1104_v24 = vld [vmem:[%s17673_s25 + $0x1618] sm:$0xff]  ;;  %v1129_v5 = vld [vmem:[%s17673_s25 + $0x16e0] sm:$0xff] }
 0x271   : > { %7221 = vmatprep.subr.bf16.mxu0 %v16405_v13  ;;  %9537 = vmatprep.subr.bf16.mxu1 %v16408_v51  ;;  %v954_v13 = vld [vmem:[%s17673_s25 + $0x1168] sm:$0xff]  ;;  %v979_v51 = vld [vmem:[%s17673_s25 + $0x1230] sm:$0xff] }
 0x272   : > { %v18431_v61 = vpack.c.bf16 %v979_v51, %v954_v13  ;;  %v1154_v13 = vld [vmem:[%s17673_s25 + $0x17a8] sm:$0xff]  ;;  %v1179_v51 = vld [vmem:[%s17673_s25 + $0x1870] sm:$0xff] }
 0x274   : > { %7222 = vmatpush1.bf16.msra.mxu0 %v16403_v60  ;;  %9538 = vmatpush1.bf16.msra.mxu1 %v16406_v44  ;;  %v18443_v44 = vpack.c.bf16 %v1029_v48, %v1004_v62  ;;  %v406_v62 = vld [vmem:[%s17673_s25 + $0x48] sm:$0xff]  ;;  %v431_v48 = vld [vmem:[%s17673_s25 + $0x110] sm:$0xff] }
 0x275   : > { %7384 = vmatprep.subr.bf16.mxu0 %v16411_v45  ;;  %9700 = vmatprep.subr.bf16.mxu1 %v16414_v53  ;;  %v1054_v45 = vld [vmem:[%s17673_s25 + $0x1488] sm:$0xff]  ;;  %v1079_v53 = vld [vmem:[%s17673_s25 + $0x1550] sm:$0xff] }
 0x276   : > { %7111 = vmatmul.mubr.bf16.gmra.mrb[32].mxu0 %v18405_v11  ;;  %9427 = vmatmul.mubr.bf16.gmra.mrb[64].mxu1 %v18193_v19  ;;  %v928_v19 = vld [vmem:[%s17673_s25 + $0x1098] sm:$0xff]  ;;  %v18455_v20 = vpack.c.bf16 %v1079_v53, %v1054_v45  ;;  %v481_v53 = vld [vmem:[%s17673_s25 + $0x2a0] sm:$0xff] }
 0x277   : > { %7120 = vmatprep.mubr.bf16.mxu0 %v18407_v57  ;;  %9436 = vmatprep.mubr.bf16.mxu1 %v18197_v25  ;;  %v903_v25 = vld [vmem:[%s17673_s25 + $0xfd0] sm:$0xff]  ;;  %v456_v45 = vld [vmem:[%s17673_s25 + $0x1d8] sm:$0xff] }
 0x278   : > { %v18429_v6 = vpack.c.bf16 %v928_v19, %v903_v25  ;;  %v18467_v19 = vpack.c.bf16 %v1129_v5, %v1104_v24  ;;  %v16412_v24 = vld [vmem:[#allocation4 + $0x808] ss:$16 sps:$4 sm:$0xff]   ;;  %v18503_v5 = vpack.c.bf16 %v481_v53, %v456_v45  ;;  %v16432_v53 = vld [vmem:[#allocation4 + $0x86c] ss:$16 sps:$4 sm:$0xff]  }
 0x279   : > { %v16424_v45 = vld [vmem:[#allocation4 + $0x848] ss:$16 sps:$4 sm:$0xff]  }
 0x27e   : > { %7121 = vmatmul.mubr.bf16.gmra.mrb[36].mxu0 %v18417_v59  ;;  %9437 = vmatmul.mubr.bf16.gmra.mrb[68].mxu1 %v18213_v8  ;;  %v953_v8 = vld [vmem:[%s17673_s25 + $0x1160] sm:$0xff] }
 0x27f   : > { %7130 = vmatprep.mubr.bf16.mxu0 %v18419_v32  ;;  %9446 = vmatprep.mubr.bf16.mxu1 %v18217_v15  ;;  %v978_v15 = vld [vmem:[%s17673_s25 + $0x1228] sm:$0xff] }
 0x280   : > { %v18441_v60 = vpack.c.bf16 %v978_v15, %v953_v8  ;;  %v18479_v15 = vpack.c.bf16 %v1179_v51, %v1154_v13  ;;  %v16415_v13 = vld [vmem:[#allocation4 + $0xa20] ss:$16 sps:$4 sm:$0xff]   ;;  %v16418_v51 = vld [vmem:[#allocation4 + $0x828] ss:$16 sps:$4 sm:$0xff]  }
 0x286   : > { %7131 = vmatmul.mubr.bf16.gmra.mrb[40].mxu0 %v18429_v6  ;;  %9447 = vmatmul.mubr.bf16.gmra.mrb[72].mxu1 %v18233_v1  ;;  %v1003_v1 = vld [vmem:[%s17673_s25 + $0x12f0] sm:$0xff] }
 0x287   : > { %7140 = vmatprep.mubr.bf16.mxu0 %v18431_v61  ;;  %9456 = vmatprep.mubr.bf16.mxu1 %v18237_v17  ;;  %v1028_v17 = vld [vmem:[%s17673_s25 + $0x13b8] sm:$0xff] }
 0x288   : > { %v18453_v30 = vpack.c.bf16 %v1028_v17, %v1003_v1  ;;  %v18491_v17 = vpack.c.bf16 %v431_v48, %v406_v62  ;;  %v16423_v62 = vld [vmem:[#allocation4 + $0xa44] ss:$16 sps:$4 sm:$0xff]   ;;  %v16426_v48 = vld [vmem:[#allocation4 + $0x84c] ss:$16 sps:$4 sm:$0xff]  }
 0x28e   : > { %7141 = vmatmul.mubr.bf16.gmra.mrb[44].mxu0 %v18441_v60  ;;  %9457 = vmatmul.mubr.bf16.gmra.mrb[76].mxu1 %v18249_v23  ;;  %v1053_v23 = vld [vmem:[%s17673_s25 + $0x1480] sm:$0xff] }
 0x28f   : > { %7150 = vmatprep.mubr.bf16.mxu0 %v18443_v44  ;;  %9466 = vmatprep.mubr.bf16.mxu1 %v18251_v7  ;;  %v1078_v7 = vld [vmem:[%s17673_s25 + $0x1548] sm:$0xff] }
 0x290   : > { %v18465_v25 = vpack.c.bf16 %v1078_v7, %v1053_v23  ;;  %v16409_v7 = vld [vmem:[#allocation4 + $0xa00] ss:$16 sps:$4 sm:$0xff]  }
 0x296   : > { %7151 = vmatmul.mubr.bf16.gmra.mrb[48].mxu0 %v18453_v30  ;;  %9467 = vmatmul.mubr.bf16.gmra.mrb[80].mxu1 %v18261_v18  ;;  %v1103_v18 = vld [vmem:[%s17673_s25 + $0x1610] sm:$0xff] }
 0x297   : > { %7160 = vmatprep.mubr.bf16.mxu0 %v18455_v20  ;;  %9476 = vmatprep.mubr.bf16.mxu1 %v18263_v54  ;;  %v1128_v54 = vld [vmem:[%s17673_s25 + $0x16d8] sm:$0xff] }
 0x298   : > { %v18477_v8 = vpack.c.bf16 %v1128_v54, %v1103_v18  ;;  %v16417_v18 = vld [vmem:[#allocation4 + $0xa24] ss:$16 sps:$4 sm:$0xff]   ;;  %v16420_v54 = vld [vmem:[#allocation4 + $0x82c] ss:$16 sps:$4 sm:$0xff]  }
 0x29e   : > { %7161 = vmatmul.mubr.bf16.gmra.mrb[52].mxu0 %v18465_v25  ;;  %9477 = vmatmul.mubr.bf16.gmra.mrb[84].mxu1 %v18273_v28  ;;  %v1153_v28 = vld [vmem:[%s17673_s25 + $0x17a0] sm:$0xff] }
 0x29f   : > { %7170 = vmatprep.mubr.bf16.mxu0 %v18467_v19  ;;  %9486 = vmatprep.mubr.bf16.mxu1 %v18275_v14  ;;  %v1178_v14 = vld [vmem:[%s17673_s25 + $0x1868] sm:$0xff] }
 0x2a0   : > { %v18489_v1 = vpack.c.bf16 %v1178_v14, %v1153_v28  ;;  %v506_v28 = vld [vmem:[%s17673_s25 + $0x368] sm:$0xff]  ;;  %v531_v14 = vld [vmem:[%s17673_s25 + $0x430] sm:$0xff] }
 0x2a6   : > { %7171 = vmatmul.mubr.bf16.gmra.mrb[56].mxu0 %v18477_v8  ;;  %9487 = vmatmul.mubr.bf16.gmra.mrb[88].mxu1 %v18285_v37  ;;  %v405_v37 = vld [vmem:[%s17673_s25 + $0x40] sm:$0xff] }
 0x2a7   : > { %7180 = vmatprep.mubr.bf16.mxu0 %v18479_v15  ;;  %9496 = vmatprep.mubr.bf16.mxu1 %v18287_v58  ;;  %v430_v58 = vld [vmem:[%s17673_s25 + $0x108] sm:$0xff] }
 0x2a8   : > { %v18501_v23 = vpack.c.bf16 %v430_v58, %v405_v37  ;;  %v16421_v58 = vld [vmem:[#allocation4 + $0xa40] ss:$16 sps:$4 sm:$0xff]  }
 0x2ae   : > { %7181 = vmatmul.mubr.bf16.gmra.mrb[60].mxu0 %v18489_v1  ;;  %9497 = vmatmul.mubr.bf16.gmra.mrb[92].mxu1 %v18297_v40  ;;  %v455_v40 = vld [vmem:[%s17673_s25 + $0x1d0] sm:$0xff] }
 0x2af   : > { %7223 = vmatprep.mubr.bf16.mxu0 %v18491_v17  ;;  %9539 = vmatprep.mubr.bf16.mxu1 %v18299_v42  ;;  %v480_v42 = vld [vmem:[%s17673_s25 + $0x298] sm:$0xff] }
 0x2b0   : > { %v18513_v37 = vpack.c.bf16 %v480_v42, %v455_v40  ;;  %v16427_v40 = vld [vmem:[#allocation4 + $0xa60] ss:$16 sps:$4 sm:$0xff]   ;;  %v16430_v42 = vld [vmem:[#allocation4 + $0x868] ss:$16 sps:$4 sm:$0xff]  }
 0x2b6   : > { %7224 = vmatmul.mubr.bf16.vlgmr.msra.gmra.mrb[0].mxu0 %v18501_v23  ;;  %9540 = vmatmul.mubr.bf16.vlgmr.msra.gmra.mrb[32].mxu1 %v18309_v29  ;;  %v18515_v29 = vpack.c.bf16 %v531_v14, %v506_v28  ;;  %v16436_v14 = vld [vmem:[#allocation4 + $0x888] ss:$16 sps:$4 sm:$0xff]  }
 0x2b7   : > { %7385 = vmatpush1.bf16.msra.mxu0 %v16409_v7  ;;  %9701 = vmatpush1.bf16.msra.mxu1 %v16412_v24  ;;  %v505_v7 = vld [vmem:[%s17673_s25 + $0x360] sm:$0xff]  ;;  %v530_v24 = vld [vmem:[%s17673_s25 + $0x428] sm:$0xff] }
 0x2b8   : > { %7233 = vmatprep.mubr.bf16.mxu0 %v18503_v5  ;;  %9549 = vmatprep.mubr.bf16.mxu1 %v18311_v12  ;;  %v16429_v12 = vld [vmem:[#allocation4 + $0xa64] ss:$16 sps:$4 sm:$0xff]   ;;  %v18525_v28 = vpack.c.bf16 %v530_v24, %v505_v7  ;;  %v16439_v7 = vld [vmem:[#allocation4 + $0xaa0] ss:$16 sps:$4 sm:$0xff]   ;;  %v16442_v24 = vld [vmem:[#allocation4 + $0x8a8] ss:$16 sps:$4 sm:$0xff]  }
 0x2b9   : > { %7386 = vmatprep.subr.bf16.mxu0 %v16417_v18  ;;  %9702 = vmatprep.subr.bf16.mxu1 %v16420_v54  ;;  %v556_v18 = vld [vmem:[%s17673_s25 + $0x4f8] sm:$0xff]  ;;  %v581_v54 = vld [vmem:[%s17673_s25 + $0x5c0] sm:$0xff] }
 0x2bb   : > { %7387 = vmatpush1.bf16.msra.mxu0 %v16415_v13  ;;  %9703 = vmatpush1.bf16.msra.mxu1 %v16418_v51  ;;  %v16435_v13 = vld [vmem:[#allocation4 + $0xa84] ss:$16 sps:$4 sm:$0xff]   ;;  %v16438_v51 = vld [vmem:[#allocation4 + $0x88c] ss:$16 sps:$4 sm:$0xff]  }
 0x2bc   : > { %7388 = vmatprep.subr.bf16.mxu0 %v16423_v62  ;;  %9704 = vmatprep.subr.bf16.mxu1 %v16426_v48  ;;  %v16441_v62 = vld [vmem:[#allocation4 + $0xaa4] ss:$16 sps:$4 sm:$0xff]   ;;  %v16444_v48 = vld [vmem:[#allocation4 + $0x8ac] ss:$16 sps:$4 sm:$0xff]  }
 0x2be   : > { %7234 = vmatmul.mubr.bf16.gmra.mrb[4].mxu0 %v18513_v37  ;;  %9550 = vmatmul.mubr.bf16.gmra.mrb[36].mxu1 %v18321_v46  ;;  %v18527_v46 = vpack.c.bf16 %v581_v54, %v556_v18  ;;  %v16447_v18 = vld [vmem:[#allocation4 + $0xac4] ss:$16 sps:$4 sm:$0xff]   ;;  %v16450_v54 = vld [vmem:[#allocation4 + $0x8cc] ss:$16 sps:$4 sm:$0xff]  }
 0x2bf   : > { %7243 = vmatprep.mubr.bf16.mxu0 %v18515_v29  ;;  %9559 = vmatprep.mubr.bf16.mxu1 %v18323_v52  ;;  %v16433_v52 = vld [vmem:[#allocation4 + $0xa80] ss:$16 sps:$4 sm:$0xff]  }
 0x2c0   : > { %7389 = vmatpush1.bf16.msra.mxu0 %v16421_v58  ;;  %9705 = vmatpush1.bf16.msra.mxu1 %v16424_v45  ;;  %v555_v58 = vld [vmem:[%s17673_s25 + $0x4f0] sm:$0xff]  ;;  %v580_v45 = vld [vmem:[%s17673_s25 + $0x5b8] sm:$0xff] }
 0x2c1   : > { %7390 = vmatprep.subr.bf16.mxu0 %v16429_v12  ;;  %9706 = vmatprep.subr.bf16.mxu1 %v16432_v53  ;;  %v606_v12 = vld [vmem:[%s17673_s25 + $0x688] sm:$0xff]  ;;  %v631_v53 = vld [vmem:[%s17673_s25 + $0x750] sm:$0xff] }
 0x2c4   : > { %7391 = vmatpush1.bf16.msra.mxu0 %v16427_v40  ;;  %9707 = vmatpush1.bf16.msra.mxu1 %v16430_v42  ;;  %v18537_v40 = vpack.c.bf16 %v580_v45, %v555_v58  ;;  %v16448_v42 = vld [vmem:[#allocation4 + $0x8c8] ss:$16 sps:$4 sm:$0xff]   ;;  %v16451_v58 = vld [vmem:[#allocation4 + $0xae0] ss:$16 sps:$4 sm:$0xff]  }
 0x2c5   : > { %7392 = vmatprep.subr.bf16.mxu0 %v16435_v13  ;;  %9708 = vmatprep.subr.bf16.mxu1 %v16438_v51  ;;  %v16453_v13 = vld [vmem:[#allocation4 + $0xae4] ss:$16 sps:$4 sm:$0xff]   ;;  %v16456_v51 = vld [vmem:[#allocation4 + $0x8ec] ss:$16 sps:$4 sm:$0xff]   ;;  %v16454_v45 = vld [vmem:[#allocation4 + $0x8e8] ss:$16 sps:$4 sm:$0xff]  }
 0x2c6   : > { %7244 = vmatmul.mubr.bf16.gmra.mrb[8].mxu0 %v18525_v28  ;;  %9560 = vmatmul.mubr.bf16.gmra.mrb[40].mxu1 %v18333_v55  ;;  %v18539_v55 = vpack.c.bf16 %v631_v53, %v606_v12  ;;  %v16459_v12 = vld [vmem:[#allocation4 + $0xb04] ss:$16 sps:$4 sm:$0xff]   ;;  %v16462_v53 = vld [vmem:[#allocation4 + $0x90c] ss:$16 sps:$4 sm:$0xff]  }
 0x2c7   : > { %7253 = vmatprep.mubr.bf16.mxu0 %v18527_v46  ;;  %9569 = vmatprep.mubr.bf16.mxu1 %v18335_v3  ;;  %v16445_v3 = vld [vmem:[#allocation4 + $0xac0] ss:$16 sps:$4 sm:$0xff]  }
 0x2c8   : > { %7393 = vmatpush1.bf16.msra.mxu0 %v16433_v52  ;;  %9709 = vmatpush1.bf16.msra.mxu1 %v16436_v14  ;;  %v605_v52 = vld [vmem:[%s17673_s25 + $0x680] sm:$0xff]  ;;  %v630_v14 = vld [vmem:[%s17673_s25 + $0x748] sm:$0xff] }
 0x2c9   : > { %7394 = vmatprep.subr.bf16.mxu0 %v16441_v62  ;;  %9710 = vmatprep.subr.bf16.mxu1 %v16444_v48  ;;  %v656_v62 = vld [vmem:[%s17673_s25 + $0x818] sm:$0xff]  ;;  %v681_v48 = vld [vmem:[%s17673_s25 + $0x8e0] sm:$0xff] }
 0x2cc   : > { %7395 = vmatpush1.bf16.msra.mxu0 %v16439_v7  ;;  %9711 = vmatpush1.bf16.msra.mxu1 %v16442_v24  ;;  %v18549_v7 = vpack.c.bf16 %v630_v14, %v605_v52  ;;  %v16460_v24 = vld [vmem:[#allocation4 + $0x908] ss:$16 sps:$4 sm:$0xff]   ;;  %v16463_v52 = vld [vmem:[#allocation4 + $0xb20] ss:$16 sps:$4 sm:$0xff]  }
 0x2cd   : > { %7396 = vmatprep.subr.bf16.mxu0 %v16447_v18  ;;  %9712 = vmatprep.subr.bf16.mxu1 %v16450_v54  ;;  %v16465_v18 = vld [vmem:[#allocation4 + $0xb24] ss:$16 sps:$4 sm:$0xff]   ;;  %v16468_v54 = vld [vmem:[#allocation4 + $0x92c] ss:$16 sps:$4 sm:$0xff]   ;;  %v16466_v14 = vld [vmem:[#allocation4 + $0x928] ss:$16 sps:$4 sm:$0xff]  }
 0x2ce   : > { %7254 = vmatmul.mubr.bf16.gmra.mrb[12].mxu0 %v18537_v40  ;;  %9570 = vmatmul.mubr.bf16.gmra.mrb[44].mxu1 %v18345_v22  ;;  %v18551_v22 = vpack.c.bf16 %v681_v48, %v656_v62  ;;  %v16471_v62 = vld [vmem:[#allocation4 + $0xb44] ss:$16 sps:$4 sm:$0xff]   ;;  %v16474_v48 = vld [vmem:[#allocation4 + $0x94c] ss:$16 sps:$4 sm:$0xff]  }
 0x2cf   : > { %7263 = vmatprep.mubr.bf16.mxu0 %v18539_v55  ;;  %9579 = vmatprep.mubr.bf16.mxu1 %v18347_v50  ;;  %v16457_v50 = vld [vmem:[#allocation4 + $0xb00] ss:$16 sps:$4 sm:$0xff]  }
 0x2d0   : > { %7397 = vmatpush1.bf16.msra.mxu0 %v16445_v3  ;;  %9713 = vmatpush1.bf16.msra.mxu1 %v16448_v42  ;;  %v655_v3 = vld [vmem:[%s17673_s25 + $0x810] sm:$0xff]  ;;  %v680_v42 = vld [vmem:[%s17673_s25 + $0x8d8] sm:$0xff] }
 0x2d1   : > { %7398 = vmatprep.subr.bf16.mxu0 %v16453_v13  ;;  %9714 = vmatprep.subr.bf16.mxu1 %v16456_v51  ;;  %v706_v13 = vld [vmem:[%s17673_s25 + $0x9a8] sm:$0xff]  ;;  %v731_v51 = vld [vmem:[%s17673_s25 + $0xa70] sm:$0xff] }
 0x2d4   : > { %7399 = vmatpush1.bf16.msra.mxu0 %v16451_v58  ;;  %9715 = vmatpush1.bf16.msra.mxu1 %v16454_v45  ;;  %v18561_v58 = vpack.c.bf16 %v680_v42, %v655_v3  ;;  %v16472_v45 = vld [vmem:[#allocation4 + $0x948] ss:$16 sps:$4 sm:$0xff]   ;;  %v16475_v3 = vld [vmem:[#allocation4 + $0xb60] ss:$16 sps:$4 sm:$0xff]  }
 0x2d5   : > { %7400 = vmatprep.subr.bf16.mxu0 %v16459_v12  ;;  %9716 = vmatprep.subr.bf16.mxu1 %v16462_v53  ;;  %v16477_v12 = vld [vmem:[#allocation4 + $0xb64] ss:$16 sps:$4 sm:$0xff]   ;;  %v16480_v53 = vld [vmem:[#allocation4 + $0x96c] ss:$16 sps:$4 sm:$0xff]   ;;  %v16478_v42 = vld [vmem:[#allocation4 + $0x968] ss:$16 sps:$4 sm:$0xff]  }
 0x2d6   : > { %7264 = vmatmul.mubr.bf16.gmra.mrb[16].mxu0 %v18549_v7  ;;  %9580 = vmatmul.mubr.bf16.gmra.mrb[48].mxu1 %v18357_v31  ;;  %v18563_v31 = vpack.c.bf16 %v731_v51, %v706_v13  ;;  %v16483_v13 = vld [vmem:[#allocation4 + $0xb84] ss:$16 sps:$4 sm:$0xff]   ;;  %v16486_v51 = vld [vmem:[#allocation4 + $0x98c] ss:$16 sps:$4 sm:$0xff]  }
 0x2d7   : > { %7273 = vmatprep.mubr.bf16.mxu0 %v18551_v22  ;;  %9589 = vmatprep.mubr.bf16.mxu1 %v18359_v27  ;;  %v16469_v27 = vld [vmem:[#allocation4 + $0xb40] ss:$16 sps:$4 sm:$0xff]  }
 0x2d8   : > { %7401 = vmatpush1.bf16.msra.mxu0 %v16457_v50  ;;  %9717 = vmatpush1.bf16.msra.mxu1 %v16460_v24  ;;  %v705_v50 = vld [vmem:[%s17673_s25 + $0x9a0] sm:$0xff]  ;;  %v730_v24 = vld [vmem:[%s17673_s25 + $0xa68] sm:$0xff] }
 0x2d9   : > { %7402 = vmatprep.subr.bf16.mxu0 %v16465_v18  ;;  %9718 = vmatprep.subr.bf16.mxu1 %v16468_v54  ;;  %v756_v18 = vld [vmem:[%s17673_s25 + $0xb38] sm:$0xff]  ;;  %v781_v54 = vld [vmem:[%s17673_s25 + $0xc00] sm:$0xff] }
 0x2dc   : > { %7403 = vmatpush1.bf16.msra.mxu0 %v16463_v52  ;;  %9719 = vmatpush1.bf16.msra.mxu1 %v16466_v14  ;;  %v18573_v52 = vpack.c.bf16 %v730_v24, %v705_v50  ;;  %v16484_v14 = vld [vmem:[#allocation4 + $0x988] ss:$16 sps:$4 sm:$0xff]   ;;  %v16487_v50 = vld [vmem:[#allocation4 + $0xba0] ss:$16 sps:$4 sm:$0xff]  }
 0x2dd   : > { %7404 = vmatprep.subr.bf16.mxu0 %v16471_v62  ;;  %9720 = vmatprep.subr.bf16.mxu1 %v16474_v48  ;;  %v16489_v62 = vld [vmem:[#allocation4 + $0xba4] ss:$16 sps:$4 sm:$0xff]   ;;  %v16492_v48 = vld [vmem:[#allocation4 + $0x9ac] ss:$16 sps:$4 sm:$0xff]   ;;  %v16490_v24 = vld [vmem:[#allocation4 + $0x9a8] ss:$16 sps:$4 sm:$0xff]  }
 0x2de   : > { %7274 = vmatmul.mubr.bf16.gmra.mrb[20].mxu0 %v18561_v58  ;;  %9590 = vmatmul.mubr.bf16.gmra.mrb[52].mxu1 %v18369_v49  ;;  %v18575_v49 = vpack.c.bf16 %v781_v54, %v756_v18  ;;  %v16495_v18 = vld [vmem:[#allocation4 + $0xbc4] ss:$16 sps:$4 sm:$0xff]   ;;  %v16498_v54 = vld [vmem:[#allocation4 + $0x9cc] ss:$16 sps:$4 sm:$0xff]  }
 0x2df   : > { %7283 = vmatprep.mubr.bf16.mxu0 %v18563_v31  ;;  %9599 = vmatprep.mubr.bf16.mxu1 %v18371_v16  ;;  %v16481_v16 = vld [vmem:[#allocation4 + $0xb80] ss:$16 sps:$4 sm:$0xff]  }
 0x2e0   : > { %7405 = vmatpush1.bf16.msra.mxu0 %v16469_v27  ;;  %9721 = vmatpush1.bf16.msra.mxu1 %v16472_v45  ;;  %v755_v27 = vld [vmem:[%s17673_s25 + $0xb30] sm:$0xff]  ;;  %v780_v45 = vld [vmem:[%s17673_s25 + $0xbf8] sm:$0xff] }
 0x2e1   : > { %7406 = vmatprep.subr.bf16.mxu0 %v16477_v12  ;;  %9722 = vmatprep.subr.bf16.mxu1 %v16480_v53  ;;  %v806_v12 = vld [vmem:[%s17673_s25 + $0xcc8] sm:$0xff]  ;;  %v831_v53 = vld [vmem:[%s17673_s25 + $0xd90] sm:$0xff] }
 0x2e4   : > { %7407 = vmatpush1.bf16.msra.mxu0 %v16475_v3  ;;  %9723 = vmatpush1.bf16.msra.mxu1 %v16478_v42  ;;  %v18585_v3 = vpack.c.bf16 %v780_v45, %v755_v27  ;;  %v16496_v42 = vld [vmem:[#allocation4 + $0x9c8] ss:$16 sps:$4 sm:$0xff]   ;;  %v16499_v27 = vld [vmem:[#allocation4 + $0xbe0] ss:$16 sps:$4 sm:$0xff]  }
 0x2e5   : > { %7408 = vmatprep.subr.bf16.mxu0 %v16483_v13  ;;  %9724 = vmatprep.subr.bf16.mxu1 %v16486_v51  ;;  %v16501_v13 = vld [vmem:[#allocation4 + $0xbe4] ss:$16 sps:$4 sm:$0xff]   ;;  %v16504_v51 = vld [vmem:[#allocation4 + $0x9ec] ss:$16 sps:$4 sm:$0xff]   ;;  %v16502_v45 = vld [vmem:[#allocation4 + $0x9e8] ss:$16 sps:$4 sm:$0xff]  }
 0x2e6   : > { %7284 = vmatmul.mubr.bf16.gmra.mrb[24].mxu0 %v18573_v52  ;;  %9600 = vmatmul.mubr.bf16.gmra.mrb[56].mxu1 %v18381_v38  ;;  %v18587_v38 = vpack.c.bf16 %v831_v53, %v806_v12  ;;  %v16507_v12 = vld [vmem:[#allocation4 + $0xc04] ss:$16 sps:$4 sm:$0xff]  }
 0x2e7   : > { %7293 = vmatprep.mubr.bf16.mxu0 %v18575_v49  ;;  %9609 = vmatprep.mubr.bf16.mxu1 %v18383_v41  ;;  %v16493_v41 = vld [vmem:[#allocation4 + $0xbc0] ss:$16 sps:$4 sm:$0xff]  }
 0x2e8   : > { %7409 = vmatpush1.bf16.msra.mxu0 %v16481_v16  ;;  %9725 = vmatpush1.bf16.msra.mxu1 %v16484_v14  ;;  %v805_v16 = vld [vmem:[%s17673_s25 + $0xcc0] sm:$0xff]  ;;  %v830_v14 = vld [vmem:[%s17673_s25 + $0xd88] sm:$0xff] }
 0x2e9   : > { %7410 = vmatprep.subr.bf16.mxu0 %v16489_v62  ;;  %9726 = vmatprep.subr.bf16.mxu1 %v16492_v48  ;;  %v856_v62 = vld [vmem:[%s17673_s25 + $0xe58] sm:$0xff]  ;;  %v881_v48 = vld [vmem:[%s17673_s25 + $0xf20] sm:$0xff]  ;;  %v18597_v53 = vpack.c.bf16 %v830_v14, %v805_v16 }
 0x2ec   : > { %7411 = vmatpush1.bf16.msra.mxu0 %v16487_v50  ;;  %9727 = vmatpush1.bf16.msra.mxu1 %v16490_v24  ;;  %v18599_v50 = vpack.c.bf16 %v881_v48, %v856_v62  ;;  %v880_v24 = vld [vmem:[%s17673_s25 + $0xf18] sm:$0xff]  ;;  %v1006_v62 = vld [vmem:[%s17673_s25 + $0x1308] sm:$0xff]  ;;  %v1031_v48 = vld [vmem:[%s17673_s25 + $0x13d0] sm:$0xff] }
 0x2ed   : > { %7412 = vmatprep.subr.bf16.mxu0 %v16495_v18  ;;  %9728 = vmatprep.subr.bf16.mxu1 %v16498_v54  ;;  %v906_v18 = vld [vmem:[%s17673_s25 + $0xfe8] sm:$0xff]  ;;  %v931_v54 = vld [vmem:[%s17673_s25 + $0x10b0] sm:$0xff] }
 0x2ee   : > { %7294 = vmatmul.mubr.bf16.gmra.mrb[28].mxu0 %v18585_v3  ;;  %9610 = vmatmul.mubr.bf16.gmra.mrb[60].mxu1 %v18393_v26  ;;  %v16510_v26 = vld [vmem:[#allocation4 + $0xa0c] ss:$16 sps:$4 sm:$0xff]  }
 0x2ef   : > { %7303 = vmatprep.mubr.bf16.mxu0 %v18587_v38  ;;  %9619 = vmatprep.mubr.bf16.mxu1 %v18395_v0  ;;  %v855_v0 = vld [vmem:[%s17673_s25 + $0xe50] sm:$0xff] }
 0x2f0   : > { %7413 = vmatpush1.bf16.msra.mxu0 %v16493_v41  ;;  %9729 = vmatpush1.bf16.msra.mxu1 %v16496_v42  ;;  %v18609_v41 = vpack.c.bf16 %v880_v24, %v855_v0  ;;  %v18611_v42 = vpack.c.bf16 %v931_v54, %v906_v18  ;;  %v1106_v18 = vld [vmem:[%s17673_s25 + $0x1628] sm:$0xff]  ;;  %v1131_v54 = vld [vmem:[%s17673_s25 + $0x16f0] sm:$0xff] }
 0x2f1   : > { %7414 = vmatprep.subr.bf16.mxu0 %v16501_v13  ;;  %9730 = vmatprep.subr.bf16.mxu1 %v16504_v51  ;;  %v956_v13 = vld [vmem:[%s17673_s25 + $0x1178] sm:$0xff]  ;;  %v981_v51 = vld [vmem:[%s17673_s25 + $0x1240] sm:$0xff] }
 0x2f2   : > { %v18623_v14 = vpack.c.bf16 %v981_v51, %v956_v13  ;;  %v1156_v13 = vld [vmem:[%s17673_s25 + $0x17b8] sm:$0xff]  ;;  %v1181_v51 = vld [vmem:[%s17673_s25 + $0x1880] sm:$0xff] }
 0x2f4   : > { %7415 = vmatpush1.bf16.msra.mxu0 %v16499_v27  ;;  %9731 = vmatpush1.bf16.msra.mxu1 %v16502_v45  ;;  %v18635_v45 = vpack.c.bf16 %v1031_v48, %v1006_v62  ;;  %v408_v62 = vld [vmem:[%s17673_s25 + $0x58] sm:$0xff]  ;;  %v433_v48 = vld [vmem:[%s17673_s25 + $0x120] sm:$0xff] }
 0x2f5   : > { %7577 = vmatprep.subr.bf16.mxu0 %v16507_v12  ;;  %9893 = vmatprep.subr.bf16.mxu1 %v16510_v26  ;;  %v1056_v12 = vld [vmem:[%s17673_s25 + $0x1498] sm:$0xff]  ;;  %v1081_v26 = vld [vmem:[%s17673_s25 + $0x1560] sm:$0xff] }
 0x2f6   : > { %7304 = vmatmul.mubr.bf16.gmra.mrb[32].mxu0 %v18597_v53  ;;  %9620 = vmatmul.mubr.bf16.gmra.mrb[64].mxu1 %v18405_v11  ;;  %v905_v11 = vld [vmem:[%s17673_s25 + $0xfe0] sm:$0xff]  ;;  %v18647_v24 = vpack.c.bf16 %v1081_v26, %v1056_v12  ;;  %v458_v12 = vld [vmem:[%s17673_s25 + $0x1e8] sm:$0xff]  ;;  %v483_v26 = vld [vmem:[%s17673_s25 + $0x2b0] sm:$0xff] }
 0x2f7   : > { %7313 = vmatprep.mubr.bf16.mxu0 %v18599_v50  ;;  %9629 = vmatprep.mubr.bf16.mxu1 %v18407_v57  ;;  %v930_v57 = vld [vmem:[%s17673_s25 + $0x10a8] sm:$0xff] }
 0x2f8   : > { %v18621_v16 = vpack.c.bf16 %v930_v57, %v905_v11  ;;  %v18659_v57 = vpack.c.bf16 %v1131_v54, %v1106_v18  ;;  %v16508_v18 = vld [vmem:[#allocation4 + $0xa08] ss:$16 sps:$4 sm:$0xff]   ;;  %v18695_v54 = vpack.c.bf16 %v483_v26, %v458_v12  ;;  %v16528_v26 = vld [vmem:[#allocation4 + $0xa6c] ss:$16 sps:$4 sm:$0xff]  }
 0x2f9   : > { %v16520_v12 = vld [vmem:[#allocation4 + $0xa48] ss:$16 sps:$4 sm:$0xff]  }
 0x2fe   : > { %7314 = vmatmul.mubr.bf16.gmra.mrb[36].mxu0 %v18609_v41  ;;  %9630 = vmatmul.mubr.bf16.gmra.mrb[68].mxu1 %v18417_v59  ;;  %v955_v59 = vld [vmem:[%s17673_s25 + $0x1170] sm:$0xff] }
 0x2ff   : > { %7323 = vmatprep.mubr.bf16.mxu0 %v18611_v42  ;;  %9639 = vmatprep.mubr.bf16.mxu1 %v18419_v32  ;;  %v980_v32 = vld [vmem:[%s17673_s25 + $0x1238] sm:$0xff] }
 0x300   : > { %v18633_v27 = vpack.c.bf16 %v980_v32, %v955_v59  ;;  %v18671_v32 = vpack.c.bf16 %v1181_v51, %v1156_v13  ;;  %v16511_v13 = vld [vmem:[#allocation4 + $0xc20] ss:$16 sps:$4 sm:$0xff]   ;;  %v16514_v51 = vld [vmem:[#allocation4 + $0xa28] ss:$16 sps:$4 sm:$0xff]  }
 0x306   : > { %7324 = vmatmul.mubr.bf16.gmra.mrb[40].mxu0 %v18621_v16  ;;  %9640 = vmatmul.mubr.bf16.gmra.mrb[72].mxu1 %v18429_v6  ;;  %v1005_v6 = vld [vmem:[%s17673_s25 + $0x1300] sm:$0xff] }
 0x307   : > { %7333 = vmatprep.mubr.bf16.mxu0 %v18623_v14  ;;  %9649 = vmatprep.mubr.bf16.mxu1 %v18431_v61  ;;  %v1030_v61 = vld [vmem:[%s17673_s25 + $0x13c8] sm:$0xff] }
 0x308   : > { %v18645_v0 = vpack.c.bf16 %v1030_v61, %v1005_v6  ;;  %v18683_v61 = vpack.c.bf16 %v433_v48, %v408_v62  ;;  %v16519_v62 = vld [vmem:[#allocation4 + $0xc44] ss:$16 sps:$4 sm:$0xff]   ;;  %v16522_v48 = vld [vmem:[#allocation4 + $0xa4c] ss:$16 sps:$4 sm:$0xff]  }
 0x30e   : > { %7334 = vmatmul.mubr.bf16.gmra.mrb[44].mxu0 %v18633_v27  ;;  %9650 = vmatmul.mubr.bf16.gmra.mrb[76].mxu1 %v18441_v60  ;;  %v1055_v60 = vld [vmem:[%s17673_s25 + $0x1490] sm:$0xff] }
 0x30f   : > { %7343 = vmatprep.mubr.bf16.mxu0 %v18635_v45  ;;  %9659 = vmatprep.mubr.bf16.mxu1 %v18443_v44  ;;  %v1080_v44 = vld [vmem:[%s17673_s25 + $0x1558] sm:$0xff] }
 0x310   : > { %v18657_v11 = vpack.c.bf16 %v1080_v44, %v1055_v60  ;;  %v16505_v44 = vld [vmem:[#allocation4 + $0xc00] ss:$16 sps:$4 sm:$0xff]  }
 0x316   : > { %7344 = vmatmul.mubr.bf16.gmra.mrb[48].mxu0 %v18645_v0  ;;  %9660 = vmatmul.mubr.bf16.gmra.mrb[80].mxu1 %v18453_v30  ;;  %v1105_v30 = vld [vmem:[%s17673_s25 + $0x1620] sm:$0xff] }
 0x317   : > { %7353 = vmatprep.mubr.bf16.mxu0 %v18647_v24  ;;  %9669 = vmatprep.mubr.bf16.mxu1 %v18455_v20  ;;  %v1130_v20 = vld [vmem:[%s17673_s25 + $0x16e8] sm:$0xff] }
 0x318   : > { %v18669_v59 = vpack.c.bf16 %v1130_v20, %v1105_v30  ;;  %v16513_v30 = vld [vmem:[#allocation4 + $0xc24] ss:$16 sps:$4 sm:$0xff]   ;;  %v16516_v20 = vld [vmem:[#allocation4 + $0xa2c] ss:$16 sps:$4 sm:$0xff]  }
 0x31e   : > { %7354 = vmatmul.mubr.bf16.gmra.mrb[52].mxu0 %v18657_v11  ;;  %9670 = vmatmul.mubr.bf16.gmra.mrb[84].mxu1 %v18465_v25  ;;  %v1155_v25 = vld [vmem:[%s17673_s25 + $0x17b0] sm:$0xff] }
 0x31f   : > { %7363 = vmatprep.mubr.bf16.mxu0 %v18659_v57  ;;  %9679 = vmatprep.mubr.bf16.mxu1 %v18467_v19  ;;  %v1180_v19 = vld [vmem:[%s17673_s25 + $0x1878] sm:$0xff] }
 0x320   : > { %v18681_v6 = vpack.c.bf16 %v1180_v19, %v1155_v25  ;;  %v508_v25 = vld [vmem:[%s17673_s25 + $0x378] sm:$0xff]  ;;  %v533_v19 = vld [vmem:[%s17673_s25 + $0x440] sm:$0xff] }
 0x326   : > { %7364 = vmatmul.mubr.bf16.gmra.mrb[56].mxu0 %v18669_v59  ;;  %9680 = vmatmul.mubr.bf16.gmra.mrb[88].mxu1 %v18477_v8  ;;  %v407_v8 = vld [vmem:[%s17673_s25 + $0x50] sm:$0xff] }
 0x327   : > { %7373 = vmatprep.mubr.bf16.mxu0 %v18671_v32  ;;  %9689 = vmatprep.mubr.bf16.mxu1 %v18479_v15  ;;  %v432_v15 = vld [vmem:[%s17673_s25 + $0x118] sm:$0xff] }
 0x328   : > { %v18693_v60 = vpack.c.bf16 %v432_v15, %v407_v8  ;;  %v16517_v15 = vld [vmem:[#allocation4 + $0xc40] ss:$16 sps:$4 sm:$0xff]  }
 0x32e   : > { %7374 = vmatmul.mubr.bf16.gmra.mrb[60].mxu0 %v18681_v6  ;;  %9690 = vmatmul.mubr.bf16.gmra.mrb[92].mxu1 %v18489_v1  ;;  %v457_v1 = vld [vmem:[%s17673_s25 + $0x1e0] sm:$0xff] }
 0x32f   : > { %7416 = vmatprep.mubr.bf16.mxu0 %v18683_v61  ;;  %9732 = vmatprep.mubr.bf16.mxu1 %v18491_v17  ;;  %v482_v17 = vld [vmem:[%s17673_s25 + $0x2a8] sm:$0xff] }
 0x330   : > { %v18705_v8 = vpack.c.bf16 %v482_v17, %v457_v1  ;;  %v16523_v1 = vld [vmem:[#allocation4 + $0xc60] ss:$16 sps:$4 sm:$0xff]   ;;  %v16526_v17 = vld [vmem:[#allocation4 + $0xa68] ss:$16 sps:$4 sm:$0xff]  }
 0x336   : > { %7417 = vmatmul.mubr.bf16.vlgmr.msra.gmra.mrb[0].mxu0 %v18693_v60  ;;  %9733 = vmatmul.mubr.bf16.vlgmr.msra.gmra.mrb[32].mxu1 %v18501_v23  ;;  %v18707_v23 = vpack.c.bf16 %v533_v19, %v508_v25  ;;  %v16532_v19 = vld [vmem:[#allocation4 + $0xa88] ss:$16 sps:$4 sm:$0xff]  }
 0x337   : > { %7578 = vmatpush1.bf16.msra.mxu0 %v16505_v44  ;;  %9894 = vmatpush1.bf16.msra.mxu1 %v16508_v18  ;;  %v507_v44 = vld [vmem:[%s17673_s25 + $0x370] sm:$0xff]  ;;  %v532_v18 = vld [vmem:[%s17673_s25 + $0x438] sm:$0xff] }
 0x338   : > { %7426 = vmatprep.mubr.bf16.mxu0 %v18695_v54  ;;  %9742 = vmatprep.mubr.bf16.mxu1 %v18503_v5  ;;  %v16525_v5 = vld [vmem:[#allocation4 + $0xc64] ss:$16 sps:$4 sm:$0xff]   ;;  %v18717_v25 = vpack.c.bf16 %v532_v18, %v507_v44  ;;  %v16535_v44 = vld [vmem:[#allocation4 + $0xca0] ss:$16 sps:$4 sm:$0xff]   ;;  %v16538_v18 = vld [vmem:[#allocation4 + $0xaa8] ss:$16 sps:$4 sm:$0xff]  }
 0x339   : > { %7579 = vmatprep.subr.bf16.mxu0 %v16513_v30  ;;  %9895 = vmatprep.subr.bf16.mxu1 %v16516_v20  ;;  %v558_v30 = vld [vmem:[%s17673_s25 + $0x508] sm:$0xff]  ;;  %v583_v20 = vld [vmem:[%s17673_s25 + $0x5d0] sm:$0xff] }
 0x33b   : > { %7580 = vmatpush1.bf16.msra.mxu0 %v16511_v13  ;;  %9896 = vmatpush1.bf16.msra.mxu1 %v16514_v51  ;;  %v16531_v13 = vld [vmem:[#allocation4 + $0xc84] ss:$16 sps:$4 sm:$0xff]   ;;  %v16534_v51 = vld [vmem:[#allocation4 + $0xa8c] ss:$16 sps:$4 sm:$0xff]  }
 0x33c   : > { %7581 = vmatprep.subr.bf16.mxu0 %v16519_v62  ;;  %9897 = vmatprep.subr.bf16.mxu1 %v16522_v48  ;;  %v16537_v62 = vld [vmem:[#allocation4 + $0xca4] ss:$16 sps:$4 sm:$0xff]   ;;  %v16540_v48 = vld [vmem:[#allocation4 + $0xaac] ss:$16 sps:$4 sm:$0xff]  }
 0x33e   : > { %7427 = vmatmul.mubr.bf16.gmra.mrb[4].mxu0 %v18705_v8  ;;  %9743 = vmatmul.mubr.bf16.gmra.mrb[36].mxu1 %v18513_v37  ;;  %v18719_v37 = vpack.c.bf16 %v583_v20, %v558_v30  ;;  %v16543_v30 = vld [vmem:[#allocation4 + $0xcc4] ss:$16 sps:$4 sm:$0xff]   ;;  %v16546_v20 = vld [vmem:[#allocation4 + $0xacc] ss:$16 sps:$4 sm:$0xff]  }
 0x33f   : > { %7436 = vmatprep.mubr.bf16.mxu0 %v18707_v23  ;;  %9752 = vmatprep.mubr.bf16.mxu1 %v18515_v29  ;;  %v16529_v29 = vld [vmem:[#allocation4 + $0xc80] ss:$16 sps:$4 sm:$0xff]  }
 0x340   : > { %7582 = vmatpush1.bf16.msra.mxu0 %v16517_v15  ;;  %9898 = vmatpush1.bf16.msra.mxu1 %v16520_v12  ;;  %v557_v15 = vld [vmem:[%s17673_s25 + $0x500] sm:$0xff]  ;;  %v582_v12 = vld [vmem:[%s17673_s25 + $0x5c8] sm:$0xff] }
 0x341   : > { %7583 = vmatprep.subr.bf16.mxu0 %v16525_v5  ;;  %9899 = vmatprep.subr.bf16.mxu1 %v16528_v26  ;;  %v608_v5 = vld [vmem:[%s17673_s25 + $0x698] sm:$0xff]  ;;  %v633_v26 = vld [vmem:[%s17673_s25 + $0x760] sm:$0xff] }
 0x344   : > { %7584 = vmatpush1.bf16.msra.mxu0 %v16523_v1  ;;  %9900 = vmatpush1.bf16.msra.mxu1 %v16526_v17  ;;  %v18729_v1 = vpack.c.bf16 %v582_v12, %v557_v15  ;;  %v16544_v17 = vld [vmem:[#allocation4 + $0xac8] ss:$16 sps:$4 sm:$0xff]   ;;  %v16547_v15 = vld [vmem:[#allocation4 + $0xce0] ss:$16 sps:$4 sm:$0xff]  }
 0x345   : > { %7585 = vmatprep.subr.bf16.mxu0 %v16531_v13  ;;  %9901 = vmatprep.subr.bf16.mxu1 %v16534_v51  ;;  %v16549_v13 = vld [vmem:[#allocation4 + $0xce4] ss:$16 sps:$4 sm:$0xff]   ;;  %v16552_v51 = vld [vmem:[#allocation4 + $0xaec] ss:$16 sps:$4 sm:$0xff]   ;;  %v16550_v12 = vld [vmem:[#allocation4 + $0xae8] ss:$16 sps:$4 sm:$0xff]  }
 0x346   : > { %7437 = vmatmul.mubr.bf16.gmra.mrb[8].mxu0 %v18717_v25  ;;  %9753 = vmatmul.mubr.bf16.gmra.mrb[40].mxu1 %v18525_v28  ;;  %v18731_v28 = vpack.c.bf16 %v633_v26, %v608_v5  ;;  %v16555_v5 = vld [vmem:[#allocation4 + $0xd04] ss:$16 sps:$4 sm:$0xff]   ;;  %v16558_v26 = vld [vmem:[#allocation4 + $0xb0c] ss:$16 sps:$4 sm:$0xff]  }
 0x347   : > { %7446 = vmatprep.mubr.bf16.mxu0 %v18719_v37  ;;  %9762 = vmatprep.mubr.bf16.mxu1 %v18527_v46  ;;  %v16541_v46 = vld [vmem:[#allocation4 + $0xcc0] ss:$16 sps:$4 sm:$0xff]  }
 0x348   : > { %7586 = vmatpush1.bf16.msra.mxu0 %v16529_v29  ;;  %9902 = vmatpush1.bf16.msra.mxu1 %v16532_v19  ;;  %v607_v29 = vld [vmem:[%s17673_s25 + $0x690] sm:$0xff]  ;;  %v632_v19 = vld [vmem:[%s17673_s25 + $0x758] sm:$0xff] }
 0x349   : > { %7587 = vmatprep.subr.bf16.mxu0 %v16537_v62  ;;  %9903 = vmatprep.subr.bf16.mxu1 %v16540_v48  ;;  %v658_v62 = vld [vmem:[%s17673_s25 + $0x828] sm:$0xff]  ;;  %v683_v48 = vld [vmem:[%s17673_s25 + $0x8f0] sm:$0xff] }
 0x34c   : > { %7588 = vmatpush1.bf16.msra.mxu0 %v16535_v44  ;;  %9904 = vmatpush1.bf16.msra.mxu1 %v16538_v18  ;;  %v18741_v44 = vpack.c.bf16 %v632_v19, %v607_v29  ;;  %v16556_v18 = vld [vmem:[#allocation4 + $0xb08] ss:$16 sps:$4 sm:$0xff]   ;;  %v16559_v29 = vld [vmem:[#allocation4 + $0xd20] ss:$16 sps:$4 sm:$0xff]  }
 0x34d   : > { %7589 = vmatprep.subr.bf16.mxu0 %v16543_v30  ;;  %9905 = vmatprep.subr.bf16.mxu1 %v16546_v20  ;;  %v16561_v30 = vld [vmem:[#allocation4 + $0xd24] ss:$16 sps:$4 sm:$0xff]   ;;  %v16564_v20 = vld [vmem:[#allocation4 + $0xb2c] ss:$16 sps:$4 sm:$0xff]   ;;  %v16562_v19 = vld [vmem:[#allocation4 + $0xb28] ss:$16 sps:$4 sm:$0xff]  }
 0x34e   : > { %7447 = vmatmul.mubr.bf16.gmra.mrb[12].mxu0 %v18729_v1  ;;  %9763 = vmatmul.mubr.bf16.gmra.mrb[44].mxu1 %v18537_v40  ;;  %v18743_v40 = vpack.c.bf16 %v683_v48, %v658_v62  ;;  %v16567_v62 = vld [vmem:[#allocation4 + $0xd44] ss:$16 sps:$4 sm:$0xff]   ;;  %v16570_v48 = vld [vmem:[#allocation4 + $0xb4c] ss:$16 sps:$4 sm:$0xff]  }
 0x34f   : > { %7456 = vmatprep.mubr.bf16.mxu0 %v18731_v28  ;;  %9772 = vmatprep.mubr.bf16.mxu1 %v18539_v55  ;;  %v16553_v55 = vld [vmem:[#allocation4 + $0xd00] ss:$16 sps:$4 sm:$0xff]  }
 0x350   : > { %7590 = vmatpush1.bf16.msra.mxu0 %v16541_v46  ;;  %9906 = vmatpush1.bf16.msra.mxu1 %v16544_v17  ;;  %v657_v46 = vld [vmem:[%s17673_s25 + $0x820] sm:$0xff]  ;;  %v682_v17 = vld [vmem:[%s17673_s25 + $0x8e8] sm:$0xff] }
 0x351   : > { %7591 = vmatprep.subr.bf16.mxu0 %v16549_v13  ;;  %9907 = vmatprep.subr.bf16.mxu1 %v16552_v51  ;;  %v708_v13 = vld [vmem:[%s17673_s25 + $0x9b8] sm:$0xff]  ;;  %v733_v51 = vld [vmem:[%s17673_s25 + $0xa80] sm:$0xff] }
 0x354   : > { %7592 = vmatpush1.bf16.msra.mxu0 %v16547_v15  ;;  %9908 = vmatpush1.bf16.msra.mxu1 %v16550_v12  ;;  %v18753_v15 = vpack.c.bf16 %v682_v17, %v657_v46  ;;  %v16568_v12 = vld [vmem:[#allocation4 + $0xb48] ss:$16 sps:$4 sm:$0xff]   ;;  %v16571_v46 = vld [vmem:[#allocation4 + $0xd60] ss:$16 sps:$4 sm:$0xff]  }
 0x355   : > { %7593 = vmatprep.subr.bf16.mxu0 %v16555_v5  ;;  %9909 = vmatprep.subr.bf16.mxu1 %v16558_v26  ;;  %v16573_v5 = vld [vmem:[#allocation4 + $0xd64] ss:$16 sps:$4 sm:$0xff]   ;;  %v16576_v26 = vld [vmem:[#allocation4 + $0xb6c] ss:$16 sps:$4 sm:$0xff]   ;;  %v16574_v17 = vld [vmem:[#allocation4 + $0xb68] ss:$16 sps:$4 sm:$0xff]  }
 0x356   : > { %7457 = vmatmul.mubr.bf16.gmra.mrb[16].mxu0 %v18741_v44  ;;  %9773 = vmatmul.mubr.bf16.gmra.mrb[48].mxu1 %v18549_v7  ;;  %v18755_v7 = vpack.c.bf16 %v733_v51, %v708_v13  ;;  %v16579_v13 = vld [vmem:[#allocation4 + $0xd84] ss:$16 sps:$4 sm:$0xff]   ;;  %v16582_v51 = vld [vmem:[#allocation4 + $0xb8c] ss:$16 sps:$4 sm:$0xff]  }
 0x357   : > { %7466 = vmatprep.mubr.bf16.mxu0 %v18743_v40  ;;  %9782 = vmatprep.mubr.bf16.mxu1 %v18551_v22  ;;  %v16565_v22 = vld [vmem:[#allocation4 + $0xd40] ss:$16 sps:$4 sm:$0xff]  }
 0x358   : > { %7594 = vmatpush1.bf16.msra.mxu0 %v16553_v55  ;;  %9910 = vmatpush1.bf16.msra.mxu1 %v16556_v18  ;;  %v707_v55 = vld [vmem:[%s17673_s25 + $0x9b0] sm:$0xff]  ;;  %v732_v18 = vld [vmem:[%s17673_s25 + $0xa78] sm:$0xff] }
 0x359   : > { %7595 = vmatprep.subr.bf16.mxu0 %v16561_v30  ;;  %9911 = vmatprep.subr.bf16.mxu1 %v16564_v20  ;;  %v758_v30 = vld [vmem:[%s17673_s25 + $0xb48] sm:$0xff]  ;;  %v783_v20 = vld [vmem:[%s17673_s25 + $0xc10] sm:$0xff] }
 0x35c   : > { %7596 = vmatpush1.bf16.msra.mxu0 %v16559_v29  ;;  %9912 = vmatpush1.bf16.msra.mxu1 %v16562_v19  ;;  %v18765_v29 = vpack.c.bf16 %v732_v18, %v707_v55  ;;  %v16580_v19 = vld [vmem:[#allocation4 + $0xb88] ss:$16 sps:$4 sm:$0xff]   ;;  %v16583_v55 = vld [vmem:[#allocation4 + $0xda0] ss:$16 sps:$4 sm:$0xff]  }
 0x35d   : > { %7597 = vmatprep.subr.bf16.mxu0 %v16567_v62  ;;  %9913 = vmatprep.subr.bf16.mxu1 %v16570_v48  ;;  %v16585_v62 = vld [vmem:[#allocation4 + $0xda4] ss:$16 sps:$4 sm:$0xff]   ;;  %v16588_v48 = vld [vmem:[#allocation4 + $0xbac] ss:$16 sps:$4 sm:$0xff]   ;;  %v16586_v18 = vld [vmem:[#allocation4 + $0xba8] ss:$16 sps:$4 sm:$0xff]  }
 0x35e   : > { %7467 = vmatmul.mubr.bf16.gmra.mrb[20].mxu0 %v18753_v15  ;;  %9783 = vmatmul.mubr.bf16.gmra.mrb[52].mxu1 %v18561_v58  ;;  %v18767_v58 = vpack.c.bf16 %v783_v20, %v758_v30  ;;  %v16591_v30 = vld [vmem:[#allocation4 + $0xdc4] ss:$16 sps:$4 sm:$0xff]   ;;  %v16594_v20 = vld [vmem:[#allocation4 + $0xbcc] ss:$16 sps:$4 sm:$0xff]  }
 0x35f   : > { %7476 = vmatprep.mubr.bf16.mxu0 %v18755_v7  ;;  %9792 = vmatprep.mubr.bf16.mxu1 %v18563_v31  ;;  %v16577_v31 = vld [vmem:[#allocation4 + $0xd80] ss:$16 sps:$4 sm:$0xff]  }
 0x360   : > { %7598 = vmatpush1.bf16.msra.mxu0 %v16565_v22  ;;  %9914 = vmatpush1.bf16.msra.mxu1 %v16568_v12  ;;  %v757_v22 = vld [vmem:[%s17673_s25 + $0xb40] sm:$0xff]  ;;  %v782_v12 = vld [vmem:[%s17673_s25 + $0xc08] sm:$0xff] }
 0x361   : > { %7599 = vmatprep.subr.bf16.mxu0 %v16573_v5  ;;  %9915 = vmatprep.subr.bf16.mxu1 %v16576_v26  ;;  %v808_v5 = vld [vmem:[%s17673_s25 + $0xcd8] sm:$0xff]  ;;  %v833_v26 = vld [vmem:[%s17673_s25 + $0xda0] sm:$0xff] }
 0x364   : > { %7600 = vmatpush1.bf16.msra.mxu0 %v16571_v46  ;;  %9916 = vmatpush1.bf16.msra.mxu1 %v16574_v17  ;;  %v18777_v46 = vpack.c.bf16 %v782_v12, %v757_v22  ;;  %v16592_v17 = vld [vmem:[#allocation4 + $0xbc8] ss:$16 sps:$4 sm:$0xff]   ;;  %v16595_v22 = vld [vmem:[#allocation4 + $0xde0] ss:$16 sps:$4 sm:$0xff]  }
 0x365   : > { %7601 = vmatprep.subr.bf16.mxu0 %v16579_v13  ;;  %9917 = vmatprep.subr.bf16.mxu1 %v16582_v51  ;;  %v16597_v13 = vld [vmem:[#allocation4 + $0xde4] ss:$16 sps:$4 sm:$0xff]   ;;  %v16600_v51 = vld [vmem:[#allocation4 + $0xbec] ss:$16 sps:$4 sm:$0xff]   ;;  %v16598_v12 = vld [vmem:[#allocation4 + $0xbe8] ss:$16 sps:$4 sm:$0xff]  }
 0x366   : > { %7477 = vmatmul.mubr.bf16.gmra.mrb[24].mxu0 %v18765_v29  ;;  %9793 = vmatmul.mubr.bf16.gmra.mrb[56].mxu1 %v18573_v52  ;;  %v18779_v52 = vpack.c.bf16 %v833_v26, %v808_v5  ;;  %v16603_v5 = vld [vmem:[#allocation4 + $0xe04] ss:$16 sps:$4 sm:$0xff]  }
 0x367   : > { %7486 = vmatprep.mubr.bf16.mxu0 %v18767_v58  ;;  %9802 = vmatprep.mubr.bf16.mxu1 %v18575_v49  ;;  %v16589_v49 = vld [vmem:[#allocation4 + $0xdc0] ss:$16 sps:$4 sm:$0xff]  }
 0x368   : > { %7602 = vmatpush1.bf16.msra.mxu0 %v16577_v31  ;;  %9918 = vmatpush1.bf16.msra.mxu1 %v16580_v19  ;;  %v807_v31 = vld [vmem:[%s17673_s25 + $0xcd0] sm:$0xff]  ;;  %v832_v19 = vld [vmem:[%s17673_s25 + $0xd98] sm:$0xff] }
 0x369   : > { %7603 = vmatprep.subr.bf16.mxu0 %v16585_v62  ;;  %9919 = vmatprep.subr.bf16.mxu1 %v16588_v48  ;;  %v858_v62 = vld [vmem:[%s17673_s25 + $0xe68] sm:$0xff]  ;;  %v883_v48 = vld [vmem:[%s17673_s25 + $0xf30] sm:$0xff]  ;;  %v18789_v26 = vpack.c.bf16 %v832_v19, %v807_v31 }
 0x36c   : > { %7604 = vmatpush1.bf16.msra.mxu0 %v16583_v55  ;;  %9920 = vmatpush1.bf16.msra.mxu1 %v16586_v18  ;;  %v18791_v55 = vpack.c.bf16 %v883_v48, %v858_v62  ;;  %v882_v18 = vld [vmem:[%s17673_s25 + $0xf28] sm:$0xff]  ;;  %v1008_v62 = vld [vmem:[%s17673_s25 + $0x1318] sm:$0xff]  ;;  %v1033_v48 = vld [vmem:[%s17673_s25 + $0x13e0] sm:$0xff] }
 0x36d   : > { %7605 = vmatprep.subr.bf16.mxu0 %v16591_v30  ;;  %9921 = vmatprep.subr.bf16.mxu1 %v16594_v20  ;;  %v908_v30 = vld [vmem:[%s17673_s25 + $0xff8] sm:$0xff]  ;;  %v933_v20 = vld [vmem:[%s17673_s25 + $0x10c0] sm:$0xff] }
 0x36e   : > { %7487 = vmatmul.mubr.bf16.gmra.mrb[28].mxu0 %v18777_v46  ;;  %9803 = vmatmul.mubr.bf16.gmra.mrb[60].mxu1 %v18585_v3  ;;  %v16606_v3 = vld [vmem:[#allocation4 + $0xc0c] ss:$16 sps:$4 sm:$0xff]  }
 0x36f   : > { %7496 = vmatprep.mubr.bf16.mxu0 %v18779_v52  ;;  %9812 = vmatprep.mubr.bf16.mxu1 %v18587_v38  ;;  %v857_v38 = vld [vmem:[%s17673_s25 + $0xe60] sm:$0xff] }
 0x370   : > { %7606 = vmatpush1.bf16.msra.mxu0 %v16589_v49  ;;  %9922 = vmatpush1.bf16.msra.mxu1 %v16592_v17  ;;  %v18801_v49 = vpack.c.bf16 %v882_v18, %v857_v38  ;;  %v18803_v17 = vpack.c.bf16 %v933_v20, %v908_v30  ;;  %v1108_v30 = vld [vmem:[%s17673_s25 + $0x1638] sm:$0xff]  ;;  %v1133_v20 = vld [vmem:[%s17673_s25 + $0x1700] sm:$0xff] }
 0x371   : > { %7607 = vmatprep.subr.bf16.mxu0 %v16597_v13  ;;  %9923 = vmatprep.subr.bf16.mxu1 %v16600_v51  ;;  %v958_v13 = vld [vmem:[%s17673_s25 + $0x1188] sm:$0xff]  ;;  %v983_v51 = vld [vmem:[%s17673_s25 + $0x1250] sm:$0xff] }
 0x372   : > { %v18815_v19 = vpack.c.bf16 %v983_v51, %v958_v13  ;;  %v1158_v13 = vld [vmem:[%s17673_s25 + $0x17c8] sm:$0xff]  ;;  %v1183_v51 = vld [vmem:[%s17673_s25 + $0x1890] sm:$0xff] }
 0x374   : > { %7608 = vmatpush1.bf16.msra.mxu0 %v16595_v22  ;;  %9924 = vmatpush1.bf16.msra.mxu1 %v16598_v12  ;;  %v18827_v12 = vpack.c.bf16 %v1033_v48, %v1008_v62  ;;  %v410_v62 = vld [vmem:[%s17673_s25 + $0x68] sm:$0xff]  ;;  %v435_v48 = vld [vmem:[%s17673_s25 + $0x130] sm:$0xff] }
 0x375   : > { %7770 = vmatprep.subr.bf16.mxu0 %v16603_v5  ;;  %10086 = vmatprep.subr.bf16.mxu1 %v16606_v3  ;;  %v1058_v5 = vld [vmem:[%s17673_s25 + $0x14a8] sm:$0xff]  ;;  %v1083_v3 = vld [vmem:[%s17673_s25 + $0x1570] sm:$0xff] }
 0x376   : > { %7497 = vmatmul.mubr.bf16.gmra.mrb[32].mxu0 %v18789_v26  ;;  %9813 = vmatmul.mubr.bf16.gmra.mrb[64].mxu1 %v18597_v53  ;;  %v907_v53 = vld [vmem:[%s17673_s25 + $0xff0] sm:$0xff]  ;;  %v18839_v18 = vpack.c.bf16 %v1083_v3, %v1058_v5  ;;  %v460_v5 = vld [vmem:[%s17673_s25 + $0x1f8] sm:$0xff]  ;;  %v485_v3 = vld [vmem:[%s17673_s25 + $0x2c0] sm:$0xff] }
 0x377   : > { %7506 = vmatprep.mubr.bf16.mxu0 %v18791_v55  ;;  %9822 = vmatprep.mubr.bf16.mxu1 %v18599_v50  ;;  %v932_v50 = vld [vmem:[%s17673_s25 + $0x10b8] sm:$0xff] }
 0x378   : > { %v18813_v31 = vpack.c.bf16 %v932_v50, %v907_v53  ;;  %v18851_v50 = vpack.c.bf16 %v1133_v20, %v1108_v30  ;;  %v16604_v30 = vld [vmem:[#allocation4 + $0xc08] ss:$16 sps:$4 sm:$0xff]   ;;  %v18887_v20 = vpack.c.bf16 %v485_v3, %v460_v5  ;;  %v16624_v3 = vld [vmem:[#allocation4 + $0xc6c] ss:$16 sps:$4 sm:$0xff]  }
 0x379   : > { %v16616_v5 = vld [vmem:[#allocation4 + $0xc48] ss:$16 sps:$4 sm:$0xff]  }
 0x37e   : > { %7507 = vmatmul.mubr.bf16.gmra.mrb[36].mxu0 %v18801_v49  ;;  %9823 = vmatmul.mubr.bf16.gmra.mrb[68].mxu1 %v18609_v41  ;;  %v957_v41 = vld [vmem:[%s17673_s25 + $0x1180] sm:$0xff] }
 0x37f   : > { %7516 = vmatprep.mubr.bf16.mxu0 %v18803_v17  ;;  %9832 = vmatprep.mubr.bf16.mxu1 %v18611_v42  ;;  %v982_v42 = vld [vmem:[%s17673_s25 + $0x1248] sm:$0xff] }
 0x380   : > { %v18825_v22 = vpack.c.bf16 %v982_v42, %v957_v41  ;;  %v18863_v42 = vpack.c.bf16 %v1183_v51, %v1158_v13  ;;  %v16607_v13 = vld [vmem:[#allocation4 + $0xe20] ss:$16 sps:$4 sm:$0xff]   ;;  %v16610_v51 = vld [vmem:[#allocation4 + $0xc28] ss:$16 sps:$4 sm:$0xff]  }
 0x386   : > { %7517 = vmatmul.mubr.bf16.gmra.mrb[40].mxu0 %v18813_v31  ;;  %9833 = vmatmul.mubr.bf16.gmra.mrb[72].mxu1 %v18621_v16  ;;  %v1007_v16 = vld [vmem:[%s17673_s25 + $0x1310] sm:$0xff] }
 0x387   : > { %7526 = vmatprep.mubr.bf16.mxu0 %v18815_v19  ;;  %9842 = vmatprep.mubr.bf16.mxu1 %v18623_v14  ;;  %v1032_v14 = vld [vmem:[%s17673_s25 + $0x13d8] sm:$0xff] }
 0x388   : > { %v18837_v38 = vpack.c.bf16 %v1032_v14, %v1007_v16  ;;  %v18875_v14 = vpack.c.bf16 %v435_v48, %v410_v62  ;;  %v16615_v62 = vld [vmem:[#allocation4 + $0xe44] ss:$16 sps:$4 sm:$0xff]   ;;  %v16618_v48 = vld [vmem:[#allocation4 + $0xc4c] ss:$16 sps:$4 sm:$0xff]  }
 0x38e   : > { %7527 = vmatmul.mubr.bf16.gmra.mrb[44].mxu0 %v18825_v22  ;;  %9843 = vmatmul.mubr.bf16.gmra.mrb[76].mxu1 %v18633_v27  ;;  %v1057_v27 = vld [vmem:[%s17673_s25 + $0x14a0] sm:$0xff] }
 0x38f   : > { %7536 = vmatprep.mubr.bf16.mxu0 %v18827_v12  ;;  %9852 = vmatprep.mubr.bf16.mxu1 %v18635_v45  ;;  %v1082_v45 = vld [vmem:[%s17673_s25 + $0x1568] sm:$0xff] }
 0x390   : > { %v18849_v53 = vpack.c.bf16 %v1082_v45, %v1057_v27  ;;  %v16601_v45 = vld [vmem:[#allocation4 + $0xe00] ss:$16 sps:$4 sm:$0xff]  }
 0x396   : > { %7537 = vmatmul.mubr.bf16.gmra.mrb[48].mxu0 %v18837_v38  ;;  %9853 = vmatmul.mubr.bf16.gmra.mrb[80].mxu1 %v18645_v0  ;;  %v1107_v0 = vld [vmem:[%s17673_s25 + $0x1630] sm:$0xff] }
 0x397   : > { %7546 = vmatprep.mubr.bf16.mxu0 %v18839_v18  ;;  %9862 = vmatprep.mubr.bf16.mxu1 %v18647_v24  ;;  %v1132_v24 = vld [vmem:[%s17673_s25 + $0x16f8] sm:$0xff] }
 0x398   : > { %v18861_v41 = vpack.c.bf16 %v1132_v24, %v1107_v0  ;;  %v16609_v0 = vld [vmem:[#allocation4 + $0xe24] ss:$16 sps:$4 sm:$0xff]   ;;  %v16612_v24 = vld [vmem:[#allocation4 + $0xc2c] ss:$16 sps:$4 sm:$0xff]  }
 0x39e   : > { %7547 = vmatmul.mubr.bf16.gmra.mrb[52].mxu0 %v18849_v53  ;;  %9863 = vmatmul.mubr.bf16.gmra.mrb[84].mxu1 %v18657_v11  ;;  %v1157_v11 = vld [vmem:[%s17673_s25 + $0x17c0] sm:$0xff] }
 0x39f   : > { %7556 = vmatprep.mubr.bf16.mxu0 %v18851_v50  ;;  %9872 = vmatprep.mubr.bf16.mxu1 %v18659_v57  ;;  %v1182_v57 = vld [vmem:[%s17673_s25 + $0x1888] sm:$0xff] }
 0x3a0   : > { %v18873_v16 = vpack.c.bf16 %v1182_v57, %v1157_v11  ;;  %v510_v11 = vld [vmem:[%s17673_s25 + $0x388] sm:$0xff]  ;;  %v535_v57 = vld [vmem:[%s17673_s25 + $0x450] sm:$0xff] }
 0x3a6   : > { %7557 = vmatmul.mubr.bf16.gmra.mrb[56].mxu0 %v18861_v41  ;;  %9873 = vmatmul.mubr.bf16.gmra.mrb[88].mxu1 %v18669_v59  ;;  %v409_v59 = vld [vmem:[%s17673_s25 + $0x60] sm:$0xff] }
 0x3a7   : > { %7566 = vmatprep.mubr.bf16.mxu0 %v18863_v42  ;;  %9882 = vmatprep.mubr.bf16.mxu1 %v18671_v32  ;;  %v434_v32 = vld [vmem:[%s17673_s25 + $0x128] sm:$0xff] }
 0x3a8   : > { %v18885_v27 = vpack.c.bf16 %v434_v32, %v409_v59  ;;  %v16613_v32 = vld [vmem:[#allocation4 + $0xe40] ss:$16 sps:$4 sm:$0xff]  }
 0x3ae   : > { %7567 = vmatmul.mubr.bf16.gmra.mrb[60].mxu0 %v18873_v16  ;;  %9883 = vmatmul.mubr.bf16.gmra.mrb[92].mxu1 %v18681_v6  ;;  %v459_v6 = vld [vmem:[%s17673_s25 + $0x1f0] sm:$0xff] }
 0x3af   : > { %7609 = vmatprep.mubr.bf16.mxu0 %v18875_v14  ;;  %9925 = vmatprep.mubr.bf16.mxu1 %v18683_v61  ;;  %v484_v61 = vld [vmem:[%s17673_s25 + $0x2b8] sm:$0xff] }
 0x3b0   : > { %v18897_v59 = vpack.c.bf16 %v484_v61, %v459_v6  ;;  %v16619_v6 = vld [vmem:[#allocation4 + $0xe60] ss:$16 sps:$4 sm:$0xff]   ;;  %v16622_v61 = vld [vmem:[#allocation4 + $0xc68] ss:$16 sps:$4 sm:$0xff]  }
 0x3b6   : > { %7610 = vmatmul.mubr.bf16.vlgmr.msra.gmra.mrb[0].mxu0 %v18885_v27  ;;  %9926 = vmatmul.mubr.bf16.vlgmr.msra.gmra.mrb[32].mxu1 %v18693_v60  ;;  %v18899_v60 = vpack.c.bf16 %v535_v57, %v510_v11  ;;  %v16628_v57 = vld [vmem:[#allocation4 + $0xc88] ss:$16 sps:$4 sm:$0xff]  }
 0x3b7   : > { %7771 = vmatpush1.bf16.msra.mxu0 %v16601_v45  ;;  %10087 = vmatpush1.bf16.msra.mxu1 %v16604_v30  ;;  %v509_v45 = vld [vmem:[%s17673_s25 + $0x380] sm:$0xff]  ;;  %v534_v30 = vld [vmem:[%s17673_s25 + $0x448] sm:$0xff] }
 0x3b8   : > { %7619 = vmatprep.mubr.bf16.mxu0 %v18887_v20  ;;  %9935 = vmatprep.mubr.bf16.mxu1 %v18695_v54  ;;  %v16621_v54 = vld [vmem:[#allocation4 + $0xe64] ss:$16 sps:$4 sm:$0xff]   ;;  %v18909_v11 = vpack.c.bf16 %v534_v30, %v509_v45  ;;  %v16631_v45 = vld [vmem:[#allocation4 + $0xea0] ss:$16 sps:$4 sm:$0xff]   ;;  %v16634_v30 = vld [vmem:[#allocation4 + $0xca8] ss:$16 sps:$4 sm:$0xff]  }
 0x3b9   : > { %7772 = vmatprep.subr.bf16.mxu0 %v16609_v0  ;;  %10088 = vmatprep.subr.bf16.mxu1 %v16612_v24  ;;  %v560_v0 = vld [vmem:[%s17673_s25 + $0x518] sm:$0xff]  ;;  %v585_v24 = vld [vmem:[%s17673_s25 + $0x5e0] sm:$0xff] }
 0x3bb   : > { %7773 = vmatpush1.bf16.msra.mxu0 %v16607_v13  ;;  %10089 = vmatpush1.bf16.msra.mxu1 %v16610_v51  ;;  %v16627_v13 = vld [vmem:[#allocation4 + $0xe84] ss:$16 sps:$4 sm:$0xff]   ;;  %v16630_v51 = vld [vmem:[#allocation4 + $0xc8c] ss:$16 sps:$4 sm:$0xff]  }
 0x3bc   : > { %7774 = vmatprep.subr.bf16.mxu0 %v16615_v62  ;;  %10090 = vmatprep.subr.bf16.mxu1 %v16618_v48  ;;  %v16633_v62 = vld [vmem:[#allocation4 + $0xea4] ss:$16 sps:$4 sm:$0xff]   ;;  %v16636_v48 = vld [vmem:[#allocation4 + $0xcac] ss:$16 sps:$4 sm:$0xff]  }
 0x3be   : > { %7620 = vmatmul.mubr.bf16.gmra.mrb[4].mxu0 %v18897_v59  ;;  %9936 = vmatmul.mubr.bf16.gmra.mrb[36].mxu1 %v18705_v8  ;;  %v18911_v8 = vpack.c.bf16 %v585_v24, %v560_v0  ;;  %v16639_v0 = vld [vmem:[#allocation4 + $0xec4] ss:$16 sps:$4 sm:$0xff]   ;;  %v16642_v24 = vld [vmem:[#allocation4 + $0xccc] ss:$16 sps:$4 sm:$0xff]  }
 0x3bf   : > { %7629 = vmatprep.mubr.bf16.mxu0 %v18899_v60  ;;  %9945 = vmatprep.mubr.bf16.mxu1 %v18707_v23  ;;  %v16625_v23 = vld [vmem:[#allocation4 + $0xe80] ss:$16 sps:$4 sm:$0xff]  }
 0x3c0   : > { %7775 = vmatpush1.bf16.msra.mxu0 %v16613_v32  ;;  %10091 = vmatpush1.bf16.msra.mxu1 %v16616_v5  ;;  %v559_v32 = vld [vmem:[%s17673_s25 + $0x510] sm:$0xff]  ;;  %v584_v5 = vld [vmem:[%s17673_s25 + $0x5d8] sm:$0xff] }
 0x3c1   : > { %7776 = vmatprep.subr.bf16.mxu0 %v16621_v54  ;;  %10092 = vmatprep.subr.bf16.mxu1 %v16624_v3  ;;  %v610_v54 = vld [vmem:[%s17673_s25 + $0x6a8] sm:$0xff]  ;;  %v635_v3 = vld [vmem:[%s17673_s25 + $0x770] sm:$0xff] }
 0x3c4   : > { %7777 = vmatpush1.bf16.msra.mxu0 %v16619_v6  ;;  %10093 = vmatpush1.bf16.msra.mxu1 %v16622_v61  ;;  %v18921_v6 = vpack.c.bf16 %v584_v5, %v559_v32  ;;  %v16640_v61 = vld [vmem:[#allocation4 + $0xcc8] ss:$16 sps:$4 sm:$0xff]   ;;  %v16643_v32 = vld [vmem:[#allocation4 + $0xee0] ss:$16 sps:$4 sm:$0xff]  }
 0x3c5   : > { %7778 = vmatprep.subr.bf16.mxu0 %v16627_v13  ;;  %10094 = vmatprep.subr.bf16.mxu1 %v16630_v51  ;;  %v16645_v13 = vld [vmem:[#allocation4 + $0xee4] ss:$16 sps:$4 sm:$0xff]   ;;  %v16648_v51 = vld [vmem:[#allocation4 + $0xcec] ss:$16 sps:$4 sm:$0xff]   ;;  %v16646_v5 = vld [vmem:[#allocation4 + $0xce8] ss:$16 sps:$4 sm:$0xff]  }
 0x3c6   : > { %7630 = vmatmul.mubr.bf16.gmra.mrb[8].mxu0 %v18909_v11  ;;  %9946 = vmatmul.mubr.bf16.gmra.mrb[40].mxu1 %v18717_v25  ;;  %v18923_v25 = vpack.c.bf16 %v635_v3, %v610_v54  ;;  %v16651_v54 = vld [vmem:[#allocation4 + $0xf04] ss:$16 sps:$4 sm:$0xff]   ;;  %v16654_v3 = vld [vmem:[#allocation4 + $0xd0c] ss:$16 sps:$4 sm:$0xff]  }
 0x3c7   : > { %7639 = vmatprep.mubr.bf16.mxu0 %v18911_v8  ;;  %9955 = vmatprep.mubr.bf16.mxu1 %v18719_v37  ;;  %v16637_v37 = vld [vmem:[#allocation4 + $0xec0] ss:$16 sps:$4 sm:$0xff]  }
 0x3c8   : > { %7779 = vmatpush1.bf16.msra.mxu0 %v16625_v23  ;;  %10095 = vmatpush1.bf16.msra.mxu1 %v16628_v57  ;;  %v609_v23 = vld [vmem:[%s17673_s25 + $0x6a0] sm:$0xff]  ;;  %v634_v57 = vld [vmem:[%s17673_s25 + $0x768] sm:$0xff] }
 0x3c9   : > { %7780 = vmatprep.subr.bf16.mxu0 %v16633_v62  ;;  %10096 = vmatprep.subr.bf16.mxu1 %v16636_v48  ;;  %v660_v62 = vld [vmem:[%s17673_s25 + $0x838] sm:$0xff]  ;;  %v685_v48 = vld [vmem:[%s17673_s25 + $0x900] sm:$0xff] }
 0x3cc   : > { %7781 = vmatpush1.bf16.msra.mxu0 %v16631_v45  ;;  %10097 = vmatpush1.bf16.msra.mxu1 %v16634_v30  ;;  %v18933_v45 = vpack.c.bf16 %v634_v57, %v609_v23  ;;  %v16652_v30 = vld [vmem:[#allocation4 + $0xd08] ss:$16 sps:$4 sm:$0xff]   ;;  %v16655_v23 = vld [vmem:[#allocation4 + $0xf20] ss:$16 sps:$4 sm:$0xff]  }
 0x3cd   : > { %7782 = vmatprep.subr.bf16.mxu0 %v16639_v0  ;;  %10098 = vmatprep.subr.bf16.mxu1 %v16642_v24  ;;  %v16657_v0 = vld [vmem:[#allocation4 + $0xf24] ss:$16 sps:$4 sm:$0xff]   ;;  %v16660_v24 = vld [vmem:[#allocation4 + $0xd2c] ss:$16 sps:$4 sm:$0xff]   ;;  %v16658_v57 = vld [vmem:[#allocation4 + $0xd28] ss:$16 sps:$4 sm:$0xff]  }
 0x3ce   : > { %7640 = vmatmul.mubr.bf16.gmra.mrb[12].mxu0 %v18921_v6  ;;  %9956 = vmatmul.mubr.bf16.gmra.mrb[44].mxu1 %v18729_v1  ;;  %v18935_v1 = vpack.c.bf16 %v685_v48, %v660_v62  ;;  %v16663_v62 = vld [vmem:[#allocation4 + $0xf44] ss:$16 sps:$4 sm:$0xff]   ;;  %v16666_v48 = vld [vmem:[#allocation4 + $0xd4c] ss:$16 sps:$4 sm:$0xff]  }
 0x3cf   : > { %7649 = vmatprep.mubr.bf16.mxu0 %v18923_v25  ;;  %9965 = vmatprep.mubr.bf16.mxu1 %v18731_v28  ;;  %v16649_v28 = vld [vmem:[#allocation4 + $0xf00] ss:$16 sps:$4 sm:$0xff]  }
 0x3d0   : > { %7783 = vmatpush1.bf16.msra.mxu0 %v16637_v37  ;;  %10099 = vmatpush1.bf16.msra.mxu1 %v16640_v61  ;;  %v659_v37 = vld [vmem:[%s17673_s25 + $0x830] sm:$0xff]  ;;  %v684_v61 = vld [vmem:[%s17673_s25 + $0x8f8] sm:$0xff] }
 0x3d1   : > { %7784 = vmatprep.subr.bf16.mxu0 %v16645_v13  ;;  %10100 = vmatprep.subr.bf16.mxu1 %v16648_v51  ;;  %v710_v13 = vld [vmem:[%s17673_s25 + $0x9c8] sm:$0xff]  ;;  %v735_v51 = vld [vmem:[%s17673_s25 + $0xa90] sm:$0xff] }
 0x3d4   : > { %7785 = vmatpush1.bf16.msra.mxu0 %v16643_v32  ;;  %10101 = vmatpush1.bf16.msra.mxu1 %v16646_v5  ;;  %v18945_v32 = vpack.c.bf16 %v684_v61, %v659_v37  ;;  %v16664_v5 = vld [vmem:[#allocation4 + $0xd48] ss:$16 sps:$4 sm:$0xff]   ;;  %v16667_v37 = vld [vmem:[#allocation4 + $0xf60] ss:$16 sps:$4 sm:$0xff]  }
 0x3d5   : > { %7786 = vmatprep.subr.bf16.mxu0 %v16651_v54  ;;  %10102 = vmatprep.subr.bf16.mxu1 %v16654_v3  ;;  %v16669_v54 = vld [vmem:[#allocation4 + $0xf64] ss:$16 sps:$4 sm:$0xff]   ;;  %v16672_v3 = vld [vmem:[#allocation4 + $0xd6c] ss:$16 sps:$4 sm:$0xff]   ;;  %v16670_v61 = vld [vmem:[#allocation4 + $0xd68] ss:$16 sps:$4 sm:$0xff]  }
 0x3d6   : > { %7650 = vmatmul.mubr.bf16.gmra.mrb[16].mxu0 %v18933_v45  ;;  %9966 = vmatmul.mubr.bf16.gmra.mrb[48].mxu1 %v18741_v44  ;;  %v18947_v44 = vpack.c.bf16 %v735_v51, %v710_v13  ;;  %v16675_v13 = vld [vmem:[#allocation4 + $0xf84] ss:$16 sps:$4 sm:$0xff]   ;;  %v16678_v51 = vld [vmem:[#allocation4 + $0xd8c] ss:$16 sps:$4 sm:$0xff]  }
 0x3d7   : > { %7659 = vmatprep.mubr.bf16.mxu0 %v18935_v1  ;;  %9975 = vmatprep.mubr.bf16.mxu1 %v18743_v40  ;;  %v16661_v40 = vld [vmem:[#allocation4 + $0xf40] ss:$16 sps:$4 sm:$0xff]  }
 0x3d8   : > { %7787 = vmatpush1.bf16.msra.mxu0 %v16649_v28  ;;  %10103 = vmatpush1.bf16.msra.mxu1 %v16652_v30  ;;  %v709_v28 = vld [vmem:[%s17673_s25 + $0x9c0] sm:$0xff]  ;;  %v734_v30 = vld [vmem:[%s17673_s25 + $0xa88] sm:$0xff] }
 0x3d9   : > { %7788 = vmatprep.subr.bf16.mxu0 %v16657_v0  ;;  %10104 = vmatprep.subr.bf16.mxu1 %v16660_v24  ;;  %v760_v0 = vld [vmem:[%s17673_s25 + $0xb58] sm:$0xff]  ;;  %v785_v24 = vld [vmem:[%s17673_s25 + $0xc20] sm:$0xff] }
 0x3dc   : > { %7789 = vmatpush1.bf16.msra.mxu0 %v16655_v23  ;;  %10105 = vmatpush1.bf16.msra.mxu1 %v16658_v57  ;;  %v18957_v23 = vpack.c.bf16 %v734_v30, %v709_v28  ;;  %v16676_v57 = vld [vmem:[#allocation4 + $0xd88] ss:$16 sps:$4 sm:$0xff]   ;;  %v16679_v28 = vld [vmem:[#allocation4 + $0xfa0] ss:$16 sps:$4 sm:$0xff]  }
 0x3dd   : > { %7790 = vmatprep.subr.bf16.mxu0 %v16663_v62  ;;  %10106 = vmatprep.subr.bf16.mxu1 %v16666_v48  ;;  %v16681_v62 = vld [vmem:[#allocation4 + $0xfa4] ss:$16 sps:$4 sm:$0xff]   ;;  %v16684_v48 = vld [vmem:[#allocation4 + $0xdac] ss:$16 sps:$4 sm:$0xff]   ;;  %v16682_v30 = vld [vmem:[#allocation4 + $0xda8] ss:$16 sps:$4 sm:$0xff]  }
 0x3de   : > { %7660 = vmatmul.mubr.bf16.gmra.mrb[20].mxu0 %v18945_v32  ;;  %9976 = vmatmul.mubr.bf16.gmra.mrb[52].mxu1 %v18753_v15  ;;  %v18959_v15 = vpack.c.bf16 %v785_v24, %v760_v0  ;;  %v16687_v0 = vld [vmem:[#allocation4 + $0xfc4] ss:$16 sps:$4 sm:$0xff]   ;;  %v16690_v24 = vld [vmem:[#allocation4 + $0xdcc] ss:$16 sps:$4 sm:$0xff]  }
 0x3df   : > { %7669 = vmatprep.mubr.bf16.mxu0 %v18947_v44  ;;  %9985 = vmatprep.mubr.bf16.mxu1 %v18755_v7  ;;  %v16673_v7 = vld [vmem:[#allocation4 + $0xf80] ss:$16 sps:$4 sm:$0xff]  }
 0x3e0   : > { %7791 = vmatpush1.bf16.msra.mxu0 %v16661_v40  ;;  %10107 = vmatpush1.bf16.msra.mxu1 %v16664_v5  ;;  %v759_v40 = vld [vmem:[%s17673_s25 + $0xb50] sm:$0xff]  ;;  %v784_v5 = vld [vmem:[%s17673_s25 + $0xc18] sm:$0xff] }
 0x3e1   : > { %7792 = vmatprep.subr.bf16.mxu0 %v16669_v54  ;;  %10108 = vmatprep.subr.bf16.mxu1 %v16672_v3  ;;  %v810_v54 = vld [vmem:[%s17673_s25 + $0xce8] sm:$0xff]  ;;  %v835_v3 = vld [vmem:[%s17673_s25 + $0xdb0] sm:$0xff] }
 0x3e4   : > { %7793 = vmatpush1.bf16.msra.mxu0 %v16667_v37  ;;  %10109 = vmatpush1.bf16.msra.mxu1 %v16670_v61  ;;  %v18969_v37 = vpack.c.bf16 %v784_v5, %v759_v40  ;;  %v16688_v61 = vld [vmem:[#allocation4 + $0xdc8] ss:$16 sps:$4 sm:$0xff]   ;;  %v16691_v40 = vld [vmem:[#allocation4 + $0xfe0] ss:$16 sps:$4 sm:$0xff]  }
 0x3e5   : > { %7794 = vmatprep.subr.bf16.mxu0 %v16675_v13  ;;  %10110 = vmatprep.subr.bf16.mxu1 %v16678_v51  ;;  %v16693_v13 = vld [vmem:[#allocation4 + $0xfe4] ss:$16 sps:$4 sm:$0xff]   ;;  %v16696_v51 = vld [vmem:[#allocation4 + $0xdec] ss:$16 sps:$4 sm:$0xff]   ;;  %v16694_v5 = vld [vmem:[#allocation4 + $0xde8] ss:$16 sps:$4 sm:$0xff]  }
 0x3e6   : > { %7670 = vmatmul.mubr.bf16.gmra.mrb[24].mxu0 %v18957_v23  ;;  %9986 = vmatmul.mubr.bf16.gmra.mrb[56].mxu1 %v18765_v29  ;;  %v18971_v29 = vpack.c.bf16 %v835_v3, %v810_v54  ;;  %v16699_v54 = vld [vmem:[#allocation4 + $0x1004] ss:$16 sps:$4 sm:$0xff]  }
 0x3e7   : > { %7679 = vmatprep.mubr.bf16.mxu0 %v18959_v15  ;;  %9995 = vmatprep.mubr.bf16.mxu1 %v18767_v58  ;;  %v16685_v58 = vld [vmem:[#allocation4 + $0xfc0] ss:$16 sps:$4 sm:$0xff]  }
 0x3e8   : > { %7795 = vmatpush1.bf16.msra.mxu0 %v16673_v7  ;;  %10111 = vmatpush1.bf16.msra.mxu1 %v16676_v57  ;;  %v809_v7 = vld [vmem:[%s17673_s25 + $0xce0] sm:$0xff]  ;;  %v834_v57 = vld [vmem:[%s17673_s25 + $0xda8] sm:$0xff] }
 0x3e9   : > { %7796 = vmatprep.subr.bf16.mxu0 %v16681_v62  ;;  %10112 = vmatprep.subr.bf16.mxu1 %v16684_v48  ;;  %v860_v62 = vld [vmem:[%s17673_s25 + $0xe78] sm:$0xff]  ;;  %v885_v48 = vld [vmem:[%s17673_s25 + $0xf40] sm:$0xff]  ;;  %v18981_v3 = vpack.c.bf16 %v834_v57, %v809_v7 }
 0x3ec   : > { %7797 = vmatpush1.bf16.msra.mxu0 %v16679_v28  ;;  %10113 = vmatpush1.bf16.msra.mxu1 %v16682_v30  ;;  %v18983_v28 = vpack.c.bf16 %v885_v48, %v860_v62  ;;  %v884_v30 = vld [vmem:[%s17673_s25 + $0xf38] sm:$0xff]  ;;  %v1010_v62 = vld [vmem:[%s17673_s25 + $0x1328] sm:$0xff]  ;;  %v1035_v48 = vld [vmem:[%s17673_s25 + $0x13f0] sm:$0xff] }
 0x3ed   : > { %7798 = vmatprep.subr.bf16.mxu0 %v16687_v0  ;;  %10114 = vmatprep.subr.bf16.mxu1 %v16690_v24  ;;  %v910_v0 = vld [vmem:[%s17673_s25 + $0x1008] sm:$0xff]  ;;  %v935_v24 = vld [vmem:[%s17673_s25 + $0x10d0] sm:$0xff] }
 0x3ee   : > { %7680 = vmatmul.mubr.bf16.gmra.mrb[28].mxu0 %v18969_v37  ;;  %9996 = vmatmul.mubr.bf16.gmra.mrb[60].mxu1 %v18777_v46  ;;  %v16702_v46 = vld [vmem:[#allocation4 + $0xe0c] ss:$16 sps:$4 sm:$0xff]  }
 0x3ef   : > { %7689 = vmatprep.mubr.bf16.mxu0 %v18971_v29  ;;  %10005 = vmatprep.mubr.bf16.mxu1 %v18779_v52  ;;  %v859_v52 = vld [vmem:[%s17673_s25 + $0xe70] sm:$0xff] }
 0x3f0   : > { %7799 = vmatpush1.bf16.msra.mxu0 %v16685_v58  ;;  %10115 = vmatpush1.bf16.msra.mxu1 %v16688_v61  ;;  %v18993_v58 = vpack.c.bf16 %v884_v30, %v859_v52  ;;  %v18995_v61 = vpack.c.bf16 %v935_v24, %v910_v0  ;;  %v1110_v0 = vld [vmem:[%s17673_s25 + $0x1648] sm:$0xff]  ;;  %v1135_v24 = vld [vmem:[%s17673_s25 + $0x1710] sm:$0xff] }
 0x3f1   : > { %7800 = vmatprep.subr.bf16.mxu0 %v16693_v13  ;;  %10116 = vmatprep.subr.bf16.mxu1 %v16696_v51  ;;  %v960_v13 = vld [vmem:[%s17673_s25 + $0x1198] sm:$0xff]  ;;  %v985_v51 = vld [vmem:[%s17673_s25 + $0x1260] sm:$0xff] }
 0x3f2   : > { %v19007_v57 = vpack.c.bf16 %v985_v51, %v960_v13  ;;  %v1160_v13 = vld [vmem:[%s17673_s25 + $0x17d8] sm:$0xff]  ;;  %v1185_v51 = vld [vmem:[%s17673_s25 + $0x18a0] sm:$0xff] }
 0x3f4   : > { %7801 = vmatpush1.bf16.msra.mxu0 %v16691_v40  ;;  %10117 = vmatpush1.bf16.msra.mxu1 %v16694_v5  ;;  %v19019_v5 = vpack.c.bf16 %v1035_v48, %v1010_v62  ;;  %v412_v62 = vld [vmem:[%s17673_s25 + $0x78] sm:$0xff]  ;;  %v437_v48 = vld [vmem:[%s17673_s25 + $0x140] sm:$0xff] }
 0x3f5   : > { %7963 = vmatprep.subr.bf16.mxu0 %v16699_v54  ;;  %10279 = vmatprep.subr.bf16.mxu1 %v16702_v46  ;;  %v1060_v54 = vld [vmem:[%s17673_s25 + $0x14b8] sm:$0xff]  ;;  %v1085_v46 = vld [vmem:[%s17673_s25 + $0x1580] sm:$0xff] }
 0x3f6   : > { %7690 = vmatmul.mubr.bf16.gmra.mrb[32].mxu0 %v18981_v3  ;;  %10006 = vmatmul.mubr.bf16.gmra.mrb[64].mxu1 %v18789_v26  ;;  %v909_v26 = vld [vmem:[%s17673_s25 + $0x1000] sm:$0xff]  ;;  %v19031_v30 = vpack.c.bf16 %v1085_v46, %v1060_v54  ;;  %v462_v54 = vld [vmem:[%s17673_s25 + $0x208] sm:$0xff]  ;;  %v487_v46 = vld [vmem:[%s17673_s25 + $0x2d0] sm:$0xff] }
 0x3f7   : > { %7699 = vmatprep.mubr.bf16.mxu0 %v18983_v28  ;;  %10015 = vmatprep.mubr.bf16.mxu1 %v18791_v55  ;;  %v934_v55 = vld [vmem:[%s17673_s25 + $0x10c8] sm:$0xff] }
 0x3f8   : > { %v19005_v7 = vpack.c.bf16 %v934_v55, %v909_v26  ;;  %v19043_v55 = vpack.c.bf16 %v1135_v24, %v1110_v0  ;;  %v16700_v0 = vld [vmem:[#allocation4 + $0xe08] ss:$16 sps:$4 sm:$0xff]   ;;  %v19079_v24 = vpack.c.bf16 %v487_v46, %v462_v54  ;;  %v16720_v46 = vld [vmem:[#allocation4 + $0xe6c] ss:$16 sps:$4 sm:$0xff]  }
 0x3f9   : > { %v16712_v54 = vld [vmem:[#allocation4 + $0xe48] ss:$16 sps:$4 sm:$0xff]  }
 0x3fe   : > { %7700 = vmatmul.mubr.bf16.gmra.mrb[36].mxu0 %v18993_v58  ;;  %10016 = vmatmul.mubr.bf16.gmra.mrb[68].mxu1 %v18801_v49  ;;  %v959_v49 = vld [vmem:[%s17673_s25 + $0x1190] sm:$0xff] }
 0x3ff   : > { %7709 = vmatprep.mubr.bf16.mxu0 %v18995_v61  ;;  %10025 = vmatprep.mubr.bf16.mxu1 %v18803_v17  ;;  %v984_v17 = vld [vmem:[%s17673_s25 + $0x1258] sm:$0xff] }
 0x400   : > { %v19017_v40 = vpack.c.bf16 %v984_v17, %v959_v49  ;;  %v19055_v17 = vpack.c.bf16 %v1185_v51, %v1160_v13  ;;  %v16703_v13 = vld [vmem:[#allocation4 + $0x1020] ss:$16 sps:$4 sm:$0xff]   ;;  %v16706_v51 = vld [vmem:[#allocation4 + $0xe28] ss:$16 sps:$4 sm:$0xff]  }
 0x406   : > { %7710 = vmatmul.mubr.bf16.gmra.mrb[40].mxu0 %v19005_v7  ;;  %10026 = vmatmul.mubr.bf16.gmra.mrb[72].mxu1 %v18813_v31  ;;  %v1009_v31 = vld [vmem:[%s17673_s25 + $0x1320] sm:$0xff] }
 0x407   : > { %7719 = vmatprep.mubr.bf16.mxu0 %v19007_v57  ;;  %10035 = vmatprep.mubr.bf16.mxu1 %v18815_v19  ;;  %v1034_v19 = vld [vmem:[%s17673_s25 + $0x13e8] sm:$0xff] }
 0x408   : > { %v19029_v52 = vpack.c.bf16 %v1034_v19, %v1009_v31  ;;  %v19067_v19 = vpack.c.bf16 %v437_v48, %v412_v62  ;;  %v16711_v62 = vld [vmem:[#allocation4 + $0x1044] ss:$16 sps:$4 sm:$0xff]   ;;  %v16714_v48 = vld [vmem:[#allocation4 + $0xe4c] ss:$16 sps:$4 sm:$0xff]  }
 0x40e   : > { %7720 = vmatmul.mubr.bf16.gmra.mrb[44].mxu0 %v19017_v40  ;;  %10036 = vmatmul.mubr.bf16.gmra.mrb[76].mxu1 %v18825_v22  ;;  %v1059_v22 = vld [vmem:[%s17673_s25 + $0x14b0] sm:$0xff] }
 0x40f   : > { %7729 = vmatprep.mubr.bf16.mxu0 %v19019_v5  ;;  %10045 = vmatprep.mubr.bf16.mxu1 %v18827_v12  ;;  %v1084_v12 = vld [vmem:[%s17673_s25 + $0x1578] sm:$0xff] }
 0x410   : > { %v19041_v26 = vpack.c.bf16 %v1084_v12, %v1059_v22  ;;  %v16697_v12 = vld [vmem:[#allocation4 + $0x1000] ss:$16 sps:$4 sm:$0xff]  }
 0x416   : > { %7730 = vmatmul.mubr.bf16.gmra.mrb[48].mxu0 %v19029_v52  ;;  %10046 = vmatmul.mubr.bf16.gmra.mrb[80].mxu1 %v18837_v38  ;;  %v1109_v38 = vld [vmem:[%s17673_s25 + $0x1640] sm:$0xff] }
 0x417   : > { %7739 = vmatprep.mubr.bf16.mxu0 %v19031_v30  ;;  %10055 = vmatprep.mubr.bf16.mxu1 %v18839_v18  ;;  %v1134_v18 = vld [vmem:[%s17673_s25 + $0x1708] sm:$0xff] }
 0x418   : > { %v19053_v49 = vpack.c.bf16 %v1134_v18, %v1109_v38  ;;  %v16705_v38 = vld [vmem:[#allocation4 + $0x1024] ss:$16 sps:$4 sm:$0xff]   ;;  %v16708_v18 = vld [vmem:[#allocation4 + $0xe2c] ss:$16 sps:$4 sm:$0xff]  }
 0x41e   : > { %7740 = vmatmul.mubr.bf16.gmra.mrb[52].mxu0 %v19041_v26  ;;  %10056 = vmatmul.mubr.bf16.gmra.mrb[84].mxu1 %v18849_v53  ;;  %v1159_v53 = vld [vmem:[%s17673_s25 + $0x17d0] sm:$0xff] }
 0x41f   : > { %7749 = vmatprep.mubr.bf16.mxu0 %v19043_v55  ;;  %10065 = vmatprep.mubr.bf16.mxu1 %v18851_v50  ;;  %v1184_v50 = vld [vmem:[%s17673_s25 + $0x1898] sm:$0xff] }
 0x420   : > { %v19065_v31 = vpack.c.bf16 %v1184_v50, %v1159_v53  ;;  %v512_v53 = vld [vmem:[%s17673_s25 + $0x398] sm:$0xff]  ;;  %v537_v50 = vld [vmem:[%s17673_s25 + $0x460] sm:$0xff] }
 0x426   : > { %7750 = vmatmul.mubr.bf16.gmra.mrb[56].mxu0 %v19053_v49  ;;  %10066 = vmatmul.mubr.bf16.gmra.mrb[88].mxu1 %v18861_v41  ;;  %v411_v41 = vld [vmem:[%s17673_s25 + $0x70] sm:$0xff] }
 0x427   : > { %7759 = vmatprep.mubr.bf16.mxu0 %v19055_v17  ;;  %10075 = vmatprep.mubr.bf16.mxu1 %v18863_v42  ;;  %v436_v42 = vld [vmem:[%s17673_s25 + $0x138] sm:$0xff] }
 0x428   : > { %v19077_v22 = vpack.c.bf16 %v436_v42, %v411_v41  ;;  %v16709_v42 = vld [vmem:[#allocation4 + $0x1040] ss:$16 sps:$4 sm:$0xff]  }
 0x42e   : > { %7760 = vmatmul.mubr.bf16.gmra.mrb[60].mxu0 %v19065_v31  ;;  %10076 = vmatmul.mubr.bf16.gmra.mrb[92].mxu1 %v18873_v16  ;;  %v461_v16 = vld [vmem:[%s17673_s25 + $0x200] sm:$0xff] }
 0x42f   : > { %7802 = vmatprep.mubr.bf16.mxu0 %v19067_v19  ;;  %10118 = vmatprep.mubr.bf16.mxu1 %v18875_v14  ;;  %v486_v14 = vld [vmem:[%s17673_s25 + $0x2c8] sm:$0xff] }
 0x430   : > { %v19089_v41 = vpack.c.bf16 %v486_v14, %v461_v16  ;;  %v16715_v16 = vld [vmem:[#allocation4 + $0x1060] ss:$16 sps:$4 sm:$0xff]   ;;  %v16718_v14 = vld [vmem:[#allocation4 + $0xe68] ss:$16 sps:$4 sm:$0xff]  }
 0x436   : > { %7803 = vmatmul.mubr.bf16.vlgmr.msra.gmra.mrb[0].mxu0 %v19077_v22  ;;  %10119 = vmatmul.mubr.bf16.vlgmr.msra.gmra.mrb[32].mxu1 %v18885_v27  ;;  %v19091_v27 = vpack.c.bf16 %v537_v50, %v512_v53  ;;  %v16724_v50 = vld [vmem:[#allocation4 + $0xe88] ss:$16 sps:$4 sm:$0xff]  }
 0x437   : > { %7964 = vmatpush1.bf16.msra.mxu0 %v16697_v12  ;;  %10280 = vmatpush1.bf16.msra.mxu1 %v16700_v0  ;;  %v511_v12 = vld [vmem:[%s17673_s25 + $0x390] sm:$0xff]  ;;  %v536_v0 = vld [vmem:[%s17673_s25 + $0x458] sm:$0xff] }
 0x438   : > { %7812 = vmatprep.mubr.bf16.mxu0 %v19079_v24  ;;  %10128 = vmatprep.mubr.bf16.mxu1 %v18887_v20  ;;  %v16717_v20 = vld [vmem:[#allocation4 + $0x1064] ss:$16 sps:$4 sm:$0xff]   ;;  %v19101_v53 = vpack.c.bf16 %v536_v0, %v511_v12  ;;  %v16727_v12 = vld [vmem:[#allocation4 + $0x10a0] ss:$16 sps:$4 sm:$0xff]   ;;  %v16730_v0 = vld [vmem:[#allocation4 + $0xea8] ss:$16 sps:$4 sm:$0xff]  }
 0x439   : > { %7965 = vmatprep.subr.bf16.mxu0 %v16705_v38  ;;  %10281 = vmatprep.subr.bf16.mxu1 %v16708_v18  ;;  %v562_v38 = vld [vmem:[%s17673_s25 + $0x528] sm:$0xff]  ;;  %v587_v18 = vld [vmem:[%s17673_s25 + $0x5f0] sm:$0xff] }
 0x43b   : > { %7966 = vmatpush1.bf16.msra.mxu0 %v16703_v13  ;;  %10282 = vmatpush1.bf16.msra.mxu1 %v16706_v51  ;;  %v16723_v13 = vld [vmem:[#allocation4 + $0x1084] ss:$16 sps:$4 sm:$0xff]   ;;  %v16726_v51 = vld [vmem:[#allocation4 + $0xe8c] ss:$16 sps:$4 sm:$0xff]  }
 0x43c   : > { %7967 = vmatprep.subr.bf16.mxu0 %v16711_v62  ;;  %10283 = vmatprep.subr.bf16.mxu1 %v16714_v48  ;;  %v16729_v62 = vld [vmem:[#allocation4 + $0x10a4] ss:$16 sps:$4 sm:$0xff]   ;;  %v16732_v48 = vld [vmem:[#allocation4 + $0xeac] ss:$16 sps:$4 sm:$0xff]  }
 0x43e   : > { %7813 = vmatmul.mubr.bf16.gmra.mrb[4].mxu0 %v19089_v41  ;;  %10129 = vmatmul.mubr.bf16.gmra.mrb[36].mxu1 %v18897_v59  ;;  %v19103_v59 = vpack.c.bf16 %v587_v18, %v562_v38  ;;  %v16735_v38 = vld [vmem:[#allocation4 + $0x10c4] ss:$16 sps:$4 sm:$0xff]   ;;  %v16738_v18 = vld [vmem:[#allocation4 + $0xecc] ss:$16 sps:$4 sm:$0xff]  }
 0x43f   : > { %7822 = vmatprep.mubr.bf16.mxu0 %v19091_v27  ;;  %10138 = vmatprep.mubr.bf16.mxu1 %v18899_v60  ;;  %v16721_v60 = vld [vmem:[#allocation4 + $0x1080] ss:$16 sps:$4 sm:$0xff]  }
 0x440   : > { %7968 = vmatpush1.bf16.msra.mxu0 %v16709_v42  ;;  %10284 = vmatpush1.bf16.msra.mxu1 %v16712_v54  ;;  %v561_v42 = vld [vmem:[%s17673_s25 + $0x520] sm:$0xff]  ;;  %v586_v54 = vld [vmem:[%s17673_s25 + $0x5e8] sm:$0xff] }
 0x441   : > { %7969 = vmatprep.subr.bf16.mxu0 %v16717_v20  ;;  %10285 = vmatprep.subr.bf16.mxu1 %v16720_v46  ;;  %v612_v20 = vld [vmem:[%s17673_s25 + $0x6b8] sm:$0xff]  ;;  %v637_v46 = vld [vmem:[%s17673_s25 + $0x780] sm:$0xff] }
 0x444   : > { %7970 = vmatpush1.bf16.msra.mxu0 %v16715_v16  ;;  %10286 = vmatpush1.bf16.msra.mxu1 %v16718_v14  ;;  %v19113_v16 = vpack.c.bf16 %v586_v54, %v561_v42  ;;  %v16736_v14 = vld [vmem:[#allocation4 + $0xec8] ss:$16 sps:$4 sm:$0xff]   ;;  %v16739_v42 = vld [vmem:[#allocation4 + $0x10e0] ss:$16 sps:$4 sm:$0xff]  }
 0x445   : > { %7971 = vmatprep.subr.bf16.mxu0 %v16723_v13  ;;  %10287 = vmatprep.subr.bf16.mxu1 %v16726_v51  ;;  %v16741_v13 = vld [vmem:[#allocation4 + $0x10e4] ss:$16 sps:$4 sm:$0xff]   ;;  %v16744_v51 = vld [vmem:[#allocation4 + $0xeec] ss:$16 sps:$4 sm:$0xff]   ;;  %v16742_v54 = vld [vmem:[#allocation4 + $0xee8] ss:$16 sps:$4 sm:$0xff]  }
 0x446   : > { %7823 = vmatmul.mubr.bf16.gmra.mrb[8].mxu0 %v19101_v53  ;;  %10139 = vmatmul.mubr.bf16.gmra.mrb[40].mxu1 %v18909_v11  ;;  %v19115_v11 = vpack.c.bf16 %v637_v46, %v612_v20  ;;  %v16747_v20 = vld [vmem:[#allocation4 + $0x1104] ss:$16 sps:$4 sm:$0xff]   ;;  %v16750_v46 = vld [vmem:[#allocation4 + $0xf0c] ss:$16 sps:$4 sm:$0xff]  }
 0x447   : > { %7832 = vmatprep.mubr.bf16.mxu0 %v19103_v59  ;;  %10148 = vmatprep.mubr.bf16.mxu1 %v18911_v8  ;;  %v16733_v8 = vld [vmem:[#allocation4 + $0x10c0] ss:$16 sps:$4 sm:$0xff]  }
 0x448   : > { %7972 = vmatpush1.bf16.msra.mxu0 %v16721_v60  ;;  %10288 = vmatpush1.bf16.msra.mxu1 %v16724_v50  ;;  %v611_v60 = vld [vmem:[%s17673_s25 + $0x6b0] sm:$0xff]  ;;  %v636_v50 = vld [vmem:[%s17673_s25 + $0x778] sm:$0xff] }
 0x449   : > { %7973 = vmatprep.subr.bf16.mxu0 %v16729_v62  ;;  %10289 = vmatprep.subr.bf16.mxu1 %v16732_v48  ;;  %v662_v62 = vld [vmem:[%s17673_s25 + $0x848] sm:$0xff]  ;;  %v687_v48 = vld [vmem:[%s17673_s25 + $0x910] sm:$0xff] }
 0x44c   : > { %7974 = vmatpush1.bf16.msra.mxu0 %v16727_v12  ;;  %10290 = vmatpush1.bf16.msra.mxu1 %v16730_v0  ;;  %v19125_v12 = vpack.c.bf16 %v636_v50, %v611_v60  ;;  %v16748_v0 = vld [vmem:[#allocation4 + $0xf08] ss:$16 sps:$4 sm:$0xff]   ;;  %v16751_v60 = vld [vmem:[#allocation4 + $0x1120] ss:$16 sps:$4 sm:$0xff]  }
 0x44d   : > { %7975 = vmatprep.subr.bf16.mxu0 %v16735_v38  ;;  %10291 = vmatprep.subr.bf16.mxu1 %v16738_v18  ;;  %v16753_v38 = vld [vmem:[#allocation4 + $0x1124] ss:$16 sps:$4 sm:$0xff]   ;;  %v16756_v18 = vld [vmem:[#allocation4 + $0xf2c] ss:$16 sps:$4 sm:$0xff]   ;;  %v16754_v50 = vld [vmem:[#allocation4 + $0xf28] ss:$16 sps:$4 sm:$0xff]  }
 0x44e   : > { %7833 = vmatmul.mubr.bf16.gmra.mrb[12].mxu0 %v19113_v16  ;;  %10149 = vmatmul.mubr.bf16.gmra.mrb[44].mxu1 %v18921_v6  ;;  %v19127_v6 = vpack.c.bf16 %v687_v48, %v662_v62  ;;  %v16759_v62 = vld [vmem:[#allocation4 + $0x1144] ss:$16 sps:$4 sm:$0xff]   ;;  %v16762_v48 = vld [vmem:[#allocation4 + $0xf4c] ss:$16 sps:$4 sm:$0xff]  }
 0x44f   : > { %7842 = vmatprep.mubr.bf16.mxu0 %v19115_v11  ;;  %10158 = vmatprep.mubr.bf16.mxu1 %v18923_v25  ;;  %v16745_v25 = vld [vmem:[#allocation4 + $0x1100] ss:$16 sps:$4 sm:$0xff]  }
 0x450   : > { %7976 = vmatpush1.bf16.msra.mxu0 %v16733_v8  ;;  %10292 = vmatpush1.bf16.msra.mxu1 %v16736_v14  ;;  %v661_v8 = vld [vmem:[%s17673_s25 + $0x840] sm:$0xff]  ;;  %v686_v14 = vld [vmem:[%s17673_s25 + $0x908] sm:$0xff] }
 0x451   : > { %7977 = vmatprep.subr.bf16.mxu0 %v16741_v13  ;;  %10293 = vmatprep.subr.bf16.mxu1 %v16744_v51  ;;  %v712_v13 = vld [vmem:[%s17673_s25 + $0x9d8] sm:$0xff]  ;;  %v737_v51 = vld [vmem:[%s17673_s25 + $0xaa0] sm:$0xff] }
 0x454   : > { %7978 = vmatpush1.bf16.msra.mxu0 %v16739_v42  ;;  %10294 = vmatpush1.bf16.msra.mxu1 %v16742_v54  ;;  %v19137_v42 = vpack.c.bf16 %v686_v14, %v661_v8  ;;  %v16760_v54 = vld [vmem:[#allocation4 + $0xf48] ss:$16 sps:$4 sm:$0xff]   ;;  %v16763_v8 = vld [vmem:[#allocation4 + $0x1160] ss:$16 sps:$4 sm:$0xff]  }
 0x455   : > { %7979 = vmatprep.subr.bf16.mxu0 %v16747_v20  ;;  %10295 = vmatprep.subr.bf16.mxu1 %v16750_v46  ;;  %v16765_v20 = vld [vmem:[#allocation4 + $0x1164] ss:$16 sps:$4 sm:$0xff]   ;;  %v16768_v46 = vld [vmem:[#allocation4 + $0xf6c] ss:$16 sps:$4 sm:$0xff]   ;;  %v16766_v14 = vld [vmem:[#allocation4 + $0xf68] ss:$16 sps:$4 sm:$0xff]  }
 0x456   : > { %7843 = vmatmul.mubr.bf16.gmra.mrb[16].mxu0 %v19125_v12  ;;  %10159 = vmatmul.mubr.bf16.gmra.mrb[48].mxu1 %v18933_v45  ;;  %v19139_v45 = vpack.c.bf16 %v737_v51, %v712_v13  ;;  %v16771_v13 = vld [vmem:[#allocation4 + $0x1184] ss:$16 sps:$4 sm:$0xff]   ;;  %v16774_v51 = vld [vmem:[#allocation4 + $0xf8c] ss:$16 sps:$4 sm:$0xff]  }
 0x457   : > { %7852 = vmatprep.mubr.bf16.mxu0 %v19127_v6  ;;  %10168 = vmatprep.mubr.bf16.mxu1 %v18935_v1  ;;  %v16757_v1 = vld [vmem:[#allocation4 + $0x1140] ss:$16 sps:$4 sm:$0xff]  }
 0x458   : > { %7980 = vmatpush1.bf16.msra.mxu0 %v16745_v25  ;;  %10296 = vmatpush1.bf16.msra.mxu1 %v16748_v0  ;;  %v711_v25 = vld [vmem:[%s17673_s25 + $0x9d0] sm:$0xff]  ;;  %v736_v0 = vld [vmem:[%s17673_s25 + $0xa98] sm:$0xff] }
 0x459   : > { %7981 = vmatprep.subr.bf16.mxu0 %v16753_v38  ;;  %10297 = vmatprep.subr.bf16.mxu1 %v16756_v18  ;;  %v762_v38 = vld [vmem:[%s17673_s25 + $0xb68] sm:$0xff]  ;;  %v787_v18 = vld [vmem:[%s17673_s25 + $0xc30] sm:$0xff] }
 0x45c   : > { %7982 = vmatpush1.bf16.msra.mxu0 %v16751_v60  ;;  %10298 = vmatpush1.bf16.msra.mxu1 %v16754_v50  ;;  %v19149_v60 = vpack.c.bf16 %v736_v0, %v711_v25  ;;  %v16772_v50 = vld [vmem:[#allocation4 + $0xf88] ss:$16 sps:$4 sm:$0xff]   ;;  %v16775_v25 = vld [vmem:[#allocation4 + $0x11a0] ss:$16 sps:$4 sm:$0xff]  }
 0x45d   : > { %7983 = vmatprep.subr.bf16.mxu0 %v16759_v62  ;;  %10299 = vmatprep.subr.bf16.mxu1 %v16762_v48  ;;  %v16777_v62 = vld [vmem:[#allocation4 + $0x11a4] ss:$16 sps:$4 sm:$0xff]   ;;  %v16780_v48 = vld [vmem:[#allocation4 + $0xfac] ss:$16 sps:$4 sm:$0xff]   ;;  %v16778_v0 = vld [vmem:[#allocation4 + $0xfa8] ss:$16 sps:$4 sm:$0xff]  }
 0x45e   : > { %7853 = vmatmul.mubr.bf16.gmra.mrb[20].mxu0 %v19137_v42  ;;  %10169 = vmatmul.mubr.bf16.gmra.mrb[52].mxu1 %v18945_v32  ;;  %v19151_v32 = vpack.c.bf16 %v787_v18, %v762_v38  ;;  %v16783_v38 = vld [vmem:[#allocation4 + $0x11c4] ss:$16 sps:$4 sm:$0xff]   ;;  %v16786_v18 = vld [vmem:[#allocation4 + $0xfcc] ss:$16 sps:$4 sm:$0xff]  }
 0x45f   : > { %7862 = vmatprep.mubr.bf16.mxu0 %v19139_v45  ;;  %10178 = vmatprep.mubr.bf16.mxu1 %v18947_v44  ;;  %v16769_v44 = vld [vmem:[#allocation4 + $0x1180] ss:$16 sps:$4 sm:$0xff]  }
 0x460   : > { %7984 = vmatpush1.bf16.msra.mxu0 %v16757_v1  ;;  %10300 = vmatpush1.bf16.msra.mxu1 %v16760_v54  ;;  %v761_v1 = vld [vmem:[%s17673_s25 + $0xb60] sm:$0xff]  ;;  %v786_v54 = vld [vmem:[%s17673_s25 + $0xc28] sm:$0xff] }
 0x461   : > { %7985 = vmatprep.subr.bf16.mxu0 %v16765_v20  ;;  %10301 = vmatprep.subr.bf16.mxu1 %v16768_v46  ;;  %v812_v20 = vld [vmem:[%s17673_s25 + $0xcf8] sm:$0xff]  ;;  %v837_v46 = vld [vmem:[%s17673_s25 + $0xdc0] sm:$0xff] }
 0x464   : > { %7986 = vmatpush1.bf16.msra.mxu0 %v16763_v8  ;;  %10302 = vmatpush1.bf16.msra.mxu1 %v16766_v14  ;;  %v19161_v8 = vpack.c.bf16 %v786_v54, %v761_v1  ;;  %v16784_v14 = vld [vmem:[#allocation4 + $0xfc8] ss:$16 sps:$4 sm:$0xff]   ;;  %v16787_v1 = vld [vmem:[#allocation4 + $0x11e0] ss:$16 sps:$4 sm:$0xff]  }
 0x465   : > { %7987 = vmatprep.subr.bf16.mxu0 %v16771_v13  ;;  %10303 = vmatprep.subr.bf16.mxu1 %v16774_v51  ;;  %v16789_v13 = vld [vmem:[#allocation4 + $0x11e4] ss:$16 sps:$4 sm:$0xff]   ;;  %v16792_v51 = vld [vmem:[#allocation4 + $0xfec] ss:$16 sps:$4 sm:$0xff]   ;;  %v16790_v54 = vld [vmem:[#allocation4 + $0xfe8] ss:$16 sps:$4 sm:$0xff]  }
 0x466   : > { %7863 = vmatmul.mubr.bf16.gmra.mrb[24].mxu0 %v19149_v60  ;;  %10179 = vmatmul.mubr.bf16.gmra.mrb[56].mxu1 %v18957_v23  ;;  %v19163_v23 = vpack.c.bf16 %v837_v46, %v812_v20  ;;  %v16795_v20 = vld [vmem:[#allocation4 + $0x1204] ss:$16 sps:$4 sm:$0xff]  }
 0x467   : > { %7872 = vmatprep.mubr.bf16.mxu0 %v19151_v32  ;;  %10188 = vmatprep.mubr.bf16.mxu1 %v18959_v15  ;;  %v16781_v15 = vld [vmem:[#allocation4 + $0x11c0] ss:$16 sps:$4 sm:$0xff]  }
 0x468   : > { %7988 = vmatpush1.bf16.msra.mxu0 %v16769_v44  ;;  %10304 = vmatpush1.bf16.msra.mxu1 %v16772_v50  ;;  %v811_v44 = vld [vmem:[%s17673_s25 + $0xcf0] sm:$0xff]  ;;  %v836_v50 = vld [vmem:[%s17673_s25 + $0xdb8] sm:$0xff] }
 0x469   : > { %7989 = vmatprep.subr.bf16.mxu0 %v16777_v62  ;;  %10305 = vmatprep.subr.bf16.mxu1 %v16780_v48  ;;  %v862_v62 = vld [vmem:[%s17673_s25 + $0xe88] sm:$0xff]  ;;  %v887_v48 = vld [vmem:[%s17673_s25 + $0xf50] sm:$0xff]  ;;  %v19173_v46 = vpack.c.bf16 %v836_v50, %v811_v44 }
 0x46c   : > { %7990 = vmatpush1.bf16.msra.mxu0 %v16775_v25  ;;  %10306 = vmatpush1.bf16.msra.mxu1 %v16778_v0  ;;  %v19175_v25 = vpack.c.bf16 %v887_v48, %v862_v62  ;;  %v886_v0 = vld [vmem:[%s17673_s25 + $0xf48] sm:$0xff]  ;;  %v1012_v62 = vld [vmem:[%s17673_s25 + $0x1338] sm:$0xff]  ;;  %v1037_v48 = vld [vmem:[%s17673_s25 + $0x1400] sm:$0xff] }
 0x46d   : > { %7991 = vmatprep.subr.bf16.mxu0 %v16783_v38  ;;  %10307 = vmatprep.subr.bf16.mxu1 %v16786_v18  ;;  %v912_v38 = vld [vmem:[%s17673_s25 + $0x1018] sm:$0xff]  ;;  %v937_v18 = vld [vmem:[%s17673_s25 + $0x10e0] sm:$0xff] }
 0x46e   : > { %7873 = vmatmul.mubr.bf16.gmra.mrb[28].mxu0 %v19161_v8  ;;  %10189 = vmatmul.mubr.bf16.gmra.mrb[60].mxu1 %v18969_v37  ;;  %v16798_v37 = vld [vmem:[#allocation4 + $0x100c] ss:$16 sps:$4 sm:$0xff]  }
 0x46f   : > { %7882 = vmatprep.mubr.bf16.mxu0 %v19163_v23  ;;  %10198 = vmatprep.mubr.bf16.mxu1 %v18971_v29  ;;  %v861_v29 = vld [vmem:[%s17673_s25 + $0xe80] sm:$0xff] }
 0x470   : > { %7992 = vmatpush1.bf16.msra.mxu0 %v16781_v15  ;;  %10308 = vmatpush1.bf16.msra.mxu1 %v16784_v14  ;;  %v19185_v15 = vpack.c.bf16 %v886_v0, %v861_v29  ;;  %v19187_v14 = vpack.c.bf16 %v937_v18, %v912_v38  ;;  %v1112_v38 = vld [vmem:[%s17673_s25 + $0x1658] sm:$0xff]  ;;  %v1137_v18 = vld [vmem:[%s17673_s25 + $0x1720] sm:$0xff] }
 0x471   : > { %7993 = vmatprep.subr.bf16.mxu0 %v16789_v13  ;;  %10309 = vmatprep.subr.bf16.mxu1 %v16792_v51  ;;  %v962_v13 = vld [vmem:[%s17673_s25 + $0x11a8] sm:$0xff]  ;;  %v987_v51 = vld [vmem:[%s17673_s25 + $0x1270] sm:$0xff] }
 0x472   : > { %v19199_v50 = vpack.c.bf16 %v987_v51, %v962_v13  ;;  %v1162_v13 = vld [vmem:[%s17673_s25 + $0x17e8] sm:$0xff]  ;;  %v1187_v51 = vld [vmem:[%s17673_s25 + $0x18b0] sm:$0xff] }
 0x474   : > { %7994 = vmatpush1.bf16.msra.mxu0 %v16787_v1  ;;  %10310 = vmatpush1.bf16.msra.mxu1 %v16790_v54  ;;  %v19211_v54 = vpack.c.bf16 %v1037_v48, %v1012_v62  ;;  %v414_v62 = vld [vmem:[%s17673_s25 + $0x88] sm:$0xff]  ;;  %v439_v48 = vld [vmem:[%s17673_s25 + $0x150] sm:$0xff] }
 0x475   : > { %8156 = vmatprep.subr.bf16.mxu0 %v16795_v20  ;;  %10472 = vmatprep.subr.bf16.mxu1 %v16798_v37  ;;  %v1062_v20 = vld [vmem:[%s17673_s25 + $0x14c8] sm:$0xff]  ;;  %v1087_v37 = vld [vmem:[%s17673_s25 + $0x1590] sm:$0xff] }
 0x476   : > { %7883 = vmatmul.mubr.bf16.gmra.mrb[32].mxu0 %v19173_v46  ;;  %10199 = vmatmul.mubr.bf16.gmra.mrb[64].mxu1 %v18981_v3  ;;  %v911_v3 = vld [vmem:[%s17673_s25 + $0x1010] sm:$0xff]  ;;  %v19223_v0 = vpack.c.bf16 %v1087_v37, %v1062_v20  ;;  %v464_v20 = vld [vmem:[%s17673_s25 + $0x218] sm:$0xff]  ;;  %v489_v37 = vld [vmem:[%s17673_s25 + $0x2e0] sm:$0xff] }
 0x477   : > { %7892 = vmatprep.mubr.bf16.mxu0 %v19175_v25  ;;  %10208 = vmatprep.mubr.bf16.mxu1 %v18983_v28  ;;  %v936_v28 = vld [vmem:[%s17673_s25 + $0x10d8] sm:$0xff] }
 0x478   : > { %v19197_v44 = vpack.c.bf16 %v936_v28, %v911_v3  ;;  %v19235_v28 = vpack.c.bf16 %v1137_v18, %v1112_v38  ;;  %v16796_v38 = vld [vmem:[#allocation4 + $0x1008] ss:$16 sps:$4 sm:$0xff]   ;;  %v19271_v18 = vpack.c.bf16 %v489_v37, %v464_v20  ;;  %v16816_v37 = vld [vmem:[#allocation4 + $0x106c] ss:$16 sps:$4 sm:$0xff]  }
 0x479   : > { %v16808_v20 = vld [vmem:[#allocation4 + $0x1048] ss:$16 sps:$4 sm:$0xff]  }
 0x47e   : > { %7893 = vmatmul.mubr.bf16.gmra.mrb[36].mxu0 %v19185_v15  ;;  %10209 = vmatmul.mubr.bf16.gmra.mrb[68].mxu1 %v18993_v58  ;;  %v961_v58 = vld [vmem:[%s17673_s25 + $0x11a0] sm:$0xff] }
 0x47f   : > { %7902 = vmatprep.mubr.bf16.mxu0 %v19187_v14  ;;  %10218 = vmatprep.mubr.bf16.mxu1 %v18995_v61  ;;  %v986_v61 = vld [vmem:[%s17673_s25 + $0x1268] sm:$0xff] }
 0x480   : > { %v19209_v1 = vpack.c.bf16 %v986_v61, %v961_v58  ;;  %v19247_v61 = vpack.c.bf16 %v1187_v51, %v1162_v13  ;;  %v16799_v13 = vld [vmem:[#allocation4 + $0x1220] ss:$16 sps:$4 sm:$0xff]   ;;  %v16802_v51 = vld [vmem:[#allocation4 + $0x1028] ss:$16 sps:$4 sm:$0xff]  }
 0x486   : > { %7903 = vmatmul.mubr.bf16.gmra.mrb[40].mxu0 %v19197_v44  ;;  %10219 = vmatmul.mubr.bf16.gmra.mrb[72].mxu1 %v19005_v7  ;;  %v1011_v7 = vld [vmem:[%s17673_s25 + $0x1330] sm:$0xff] }
 0x487   : > { %7912 = vmatprep.mubr.bf16.mxu0 %v19199_v50  ;;  %10228 = vmatprep.mubr.bf16.mxu1 %v19007_v57  ;;  %v1036_v57 = vld [vmem:[%s17673_s25 + $0x13f8] sm:$0xff] }
 0x488   : > { %v19221_v29 = vpack.c.bf16 %v1036_v57, %v1011_v7  ;;  %v19259_v57 = vpack.c.bf16 %v439_v48, %v414_v62  ;;  %v16807_v62 = vld [vmem:[#allocation4 + $0x1244] ss:$16 sps:$4 sm:$0xff]   ;;  %v16810_v48 = vld [vmem:[#allocation4 + $0x104c] ss:$16 sps:$4 sm:$0xff]  }
 0x48e   : > { %7913 = vmatmul.mubr.bf16.gmra.mrb[44].mxu0 %v19209_v1  ;;  %10229 = vmatmul.mubr.bf16.gmra.mrb[76].mxu1 %v19017_v40  ;;  %v1061_v40 = vld [vmem:[%s17673_s25 + $0x14c0] sm:$0xff] }
 0x48f   : > { %7922 = vmatprep.mubr.bf16.mxu0 %v19211_v54  ;;  %10238 = vmatprep.mubr.bf16.mxu1 %v19019_v5  ;;  %v1086_v5 = vld [vmem:[%s17673_s25 + $0x1588] sm:$0xff] }
 0x490   : > { %v19233_v3 = vpack.c.bf16 %v1086_v5, %v1061_v40  ;;  %v16793_v5 = vld [vmem:[#allocation4 + $0x1200] ss:$16 sps:$4 sm:$0xff]  }
 0x496   : > { %7923 = vmatmul.mubr.bf16.gmra.mrb[48].mxu0 %v19221_v29  ;;  %10239 = vmatmul.mubr.bf16.gmra.mrb[80].mxu1 %v19029_v52  ;;  %v1111_v52 = vld [vmem:[%s17673_s25 + $0x1650] sm:$0xff] }
 0x497   : > { %7932 = vmatprep.mubr.bf16.mxu0 %v19223_v0  ;;  %10248 = vmatprep.mubr.bf16.mxu1 %v19031_v30  ;;  %v1136_v30 = vld [vmem:[%s17673_s25 + $0x1718] sm:$0xff] }
 0x498   : > { %v19245_v58 = vpack.c.bf16 %v1136_v30, %v1111_v52  ;;  %v16801_v52 = vld [vmem:[#allocation4 + $0x1224] ss:$16 sps:$4 sm:$0xff]   ;;  %v16804_v30 = vld [vmem:[#allocation4 + $0x102c] ss:$16 sps:$4 sm:$0xff]  }
 0x49e   : > { %7933 = vmatmul.mubr.bf16.gmra.mrb[52].mxu0 %v19233_v3  ;;  %10249 = vmatmul.mubr.bf16.gmra.mrb[84].mxu1 %v19041_v26  ;;  %v1161_v26 = vld [vmem:[%s17673_s25 + $0x17e0] sm:$0xff] }
 0x49f   : > { %7942 = vmatprep.mubr.bf16.mxu0 %v19235_v28  ;;  %10258 = vmatprep.mubr.bf16.mxu1 %v19043_v55  ;;  %v1186_v55 = vld [vmem:[%s17673_s25 + $0x18a8] sm:$0xff] }
 0x4a0   : > { %v19257_v7 = vpack.c.bf16 %v1186_v55, %v1161_v26  ;;  %v514_v26 = vld [vmem:[%s17673_s25 + $0x3a8] sm:$0xff]  ;;  %v539_v55 = vld [vmem:[%s17673_s25 + $0x470] sm:$0xff] }
 0x4a6   : > { %7943 = vmatmul.mubr.bf16.gmra.mrb[56].mxu0 %v19245_v58  ;;  %10259 = vmatmul.mubr.bf16.gmra.mrb[88].mxu1 %v19053_v49  ;;  %v413_v49 = vld [vmem:[%s17673_s25 + $0x80] sm:$0xff] }
 0x4a7   : > { %7952 = vmatprep.mubr.bf16.mxu0 %v19247_v61  ;;  %10268 = vmatprep.mubr.bf16.mxu1 %v19055_v17  ;;  %v438_v17 = vld [vmem:[%s17673_s25 + $0x148] sm:$0xff] }
 0x4a8   : > { %v19269_v40 = vpack.c.bf16 %v438_v17, %v413_v49  ;;  %v16805_v17 = vld [vmem:[#allocation4 + $0x1240] ss:$16 sps:$4 sm:$0xff]  }
 0x4ae   : > { %7953 = vmatmul.mubr.bf16.gmra.mrb[60].mxu0 %v19257_v7  ;;  %10269 = vmatmul.mubr.bf16.gmra.mrb[92].mxu1 %v19065_v31  ;;  %v463_v31 = vld [vmem:[%s17673_s25 + $0x210] sm:$0xff] }
 0x4af   : > { %7995 = vmatprep.mubr.bf16.mxu0 %v19259_v57  ;;  %10311 = vmatprep.mubr.bf16.mxu1 %v19067_v19  ;;  %v488_v19 = vld [vmem:[%s17673_s25 + $0x2d8] sm:$0xff] }
 0x4b0   : > { %v19281_v49 = vpack.c.bf16 %v488_v19, %v463_v31  ;;  %v16811_v31 = vld [vmem:[#allocation4 + $0x1260] ss:$16 sps:$4 sm:$0xff]   ;;  %v16814_v19 = vld [vmem:[#allocation4 + $0x1068] ss:$16 sps:$4 sm:$0xff]  }
 0x4b6   : > { %7996 = vmatmul.mubr.bf16.vlgmr.msra.gmra.mrb[0].mxu0 %v19269_v40  ;;  %10312 = vmatmul.mubr.bf16.vlgmr.msra.gmra.mrb[32].mxu1 %v19077_v22  ;;  %v19283_v22 = vpack.c.bf16 %v539_v55, %v514_v26  ;;  %v16820_v55 = vld [vmem:[#allocation4 + $0x1088] ss:$16 sps:$4 sm:$0xff]  }
 0x4b7   : > { %8157 = vmatpush1.bf16.msra.mxu0 %v16793_v5  ;;  %10473 = vmatpush1.bf16.msra.mxu1 %v16796_v38  ;;  %v513_v5 = vld [vmem:[%s17673_s25 + $0x3a0] sm:$0xff]  ;;  %v538_v38 = vld [vmem:[%s17673_s25 + $0x468] sm:$0xff] }
 0x4b8   : > { %8005 = vmatprep.mubr.bf16.mxu0 %v19271_v18  ;;  %10321 = vmatprep.mubr.bf16.mxu1 %v19079_v24  ;;  %v16813_v24 = vld [vmem:[#allocation4 + $0x1264] ss:$16 sps:$4 sm:$0xff]   ;;  %v19293_v26 = vpack.c.bf16 %v538_v38, %v513_v5  ;;  %v16823_v5 = vld [vmem:[#allocation4 + $0x12a0] ss:$16 sps:$4 sm:$0xff]   ;;  %v16826_v38 = vld [vmem:[#allocation4 + $0x10a8] ss:$16 sps:$4 sm:$0xff]  }
 0x4b9   : > { %8158 = vmatprep.subr.bf16.mxu0 %v16801_v52  ;;  %10474 = vmatprep.subr.bf16.mxu1 %v16804_v30  ;;  %v564_v52 = vld [vmem:[%s17673_s25 + $0x538] sm:$0xff]  ;;  %v589_v30 = vld [vmem:[%s17673_s25 + $0x600] sm:$0xff] }
 0x4bb   : > { %8159 = vmatpush1.bf16.msra.mxu0 %v16799_v13  ;;  %10475 = vmatpush1.bf16.msra.mxu1 %v16802_v51  ;;  %v16819_v13 = vld [vmem:[#allocation4 + $0x1284] ss:$16 sps:$4 sm:$0xff]   ;;  %v16822_v51 = vld [vmem:[#allocation4 + $0x108c] ss:$16 sps:$4 sm:$0xff]  }
 0x4bc   : > { %8160 = vmatprep.subr.bf16.mxu0 %v16807_v62  ;;  %10476 = vmatprep.subr.bf16.mxu1 %v16810_v48  ;;  %v16825_v62 = vld [vmem:[#allocation4 + $0x12a4] ss:$16 sps:$4 sm:$0xff]   ;;  %v16828_v48 = vld [vmem:[#allocation4 + $0x10ac] ss:$16 sps:$4 sm:$0xff]  }
 0x4be   : > { %8006 = vmatmul.mubr.bf16.gmra.mrb[4].mxu0 %v19281_v49  ;;  %10322 = vmatmul.mubr.bf16.gmra.mrb[36].mxu1 %v19089_v41  ;;  %v19295_v41 = vpack.c.bf16 %v589_v30, %v564_v52  ;;  %v16831_v52 = vld [vmem:[#allocation4 + $0x12c4] ss:$16 sps:$4 sm:$0xff]   ;;  %v16834_v30 = vld [vmem:[#allocation4 + $0x10cc] ss:$16 sps:$4 sm:$0xff]  }
 0x4bf   : > { %8015 = vmatprep.mubr.bf16.mxu0 %v19283_v22  ;;  %10331 = vmatprep.mubr.bf16.mxu1 %v19091_v27  ;;  %v16817_v27 = vld [vmem:[#allocation4 + $0x1280] ss:$16 sps:$4 sm:$0xff]  }
 0x4c0   : > { %8161 = vmatpush1.bf16.msra.mxu0 %v16805_v17  ;;  %10477 = vmatpush1.bf16.msra.mxu1 %v16808_v20  ;;  %v563_v17 = vld [vmem:[%s17673_s25 + $0x530] sm:$0xff]  ;;  %v588_v20 = vld [vmem:[%s17673_s25 + $0x5f8] sm:$0xff] }
 0x4c1   : > { %8162 = vmatprep.subr.bf16.mxu0 %v16813_v24  ;;  %10478 = vmatprep.subr.bf16.mxu1 %v16816_v37  ;;  %v614_v24 = vld [vmem:[%s17673_s25 + $0x6c8] sm:$0xff]  ;;  %v639_v37 = vld [vmem:[%s17673_s25 + $0x790] sm:$0xff] }
 0x4c4   : > { %8163 = vmatpush1.bf16.msra.mxu0 %v16811_v31  ;;  %10479 = vmatpush1.bf16.msra.mxu1 %v16814_v19  ;;  %v19305_v31 = vpack.c.bf16 %v588_v20, %v563_v17  ;;  %v16832_v19 = vld [vmem:[#allocation4 + $0x10c8] ss:$16 sps:$4 sm:$0xff]   ;;  %v16835_v17 = vld [vmem:[#allocation4 + $0x12e0] ss:$16 sps:$4 sm:$0xff]  }
 0x4c5   : > { %8164 = vmatprep.subr.bf16.mxu0 %v16819_v13  ;;  %10480 = vmatprep.subr.bf16.mxu1 %v16822_v51  ;;  %v16837_v13 = vld [vmem:[#allocation4 + $0x12e4] ss:$16 sps:$4 sm:$0xff]   ;;  %v16840_v51 = vld [vmem:[#allocation4 + $0x10ec] ss:$16 sps:$4 sm:$0xff]   ;;  %v16838_v20 = vld [vmem:[#allocation4 + $0x10e8] ss:$16 sps:$4 sm:$0xff]  }
 0x4c6   : > { %8016 = vmatmul.mubr.bf16.gmra.mrb[8].mxu0 %v19293_v26  ;;  %10332 = vmatmul.mubr.bf16.gmra.mrb[40].mxu1 %v19101_v53  ;;  %v19307_v53 = vpack.c.bf16 %v639_v37, %v614_v24  ;;  %v16843_v24 = vld [vmem:[#allocation4 + $0x1304] ss:$16 sps:$4 sm:$0xff]   ;;  %v16846_v37 = vld [vmem:[#allocation4 + $0x110c] ss:$16 sps:$4 sm:$0xff]  }
 0x4c7   : > { %8025 = vmatprep.mubr.bf16.mxu0 %v19295_v41  ;;  %10341 = vmatprep.mubr.bf16.mxu1 %v19103_v59  ;;  %v16829_v59 = vld [vmem:[#allocation4 + $0x12c0] ss:$16 sps:$4 sm:$0xff]  }
 0x4c8   : > { %8165 = vmatpush1.bf16.msra.mxu0 %v16817_v27  ;;  %10481 = vmatpush1.bf16.msra.mxu1 %v16820_v55  ;;  %v613_v27 = vld [vmem:[%s17673_s25 + $0x6c0] sm:$0xff]  ;;  %v638_v55 = vld [vmem:[%s17673_s25 + $0x788] sm:$0xff] }
 0x4c9   : > { %8166 = vmatprep.subr.bf16.mxu0 %v16825_v62  ;;  %10482 = vmatprep.subr.bf16.mxu1 %v16828_v48  ;;  %v664_v62 = vld [vmem:[%s17673_s25 + $0x858] sm:$0xff]  ;;  %v689_v48 = vld [vmem:[%s17673_s25 + $0x920] sm:$0xff] }
 0x4cc   : > { %8167 = vmatpush1.bf16.msra.mxu0 %v16823_v5  ;;  %10483 = vmatpush1.bf16.msra.mxu1 %v16826_v38  ;;  %v19317_v5 = vpack.c.bf16 %v638_v55, %v613_v27  ;;  %v16844_v38 = vld [vmem:[#allocation4 + $0x1108] ss:$16 sps:$4 sm:$0xff]   ;;  %v16847_v27 = vld [vmem:[#allocation4 + $0x1320] ss:$16 sps:$4 sm:$0xff]  }
 0x4cd   : > { %8168 = vmatprep.subr.bf16.mxu0 %v16831_v52  ;;  %10484 = vmatprep.subr.bf16.mxu1 %v16834_v30  ;;  %v16849_v52 = vld [vmem:[#allocation4 + $0x1324] ss:$16 sps:$4 sm:$0xff]   ;;  %v16852_v30 = vld [vmem:[#allocation4 + $0x112c] ss:$16 sps:$4 sm:$0xff]   ;;  %v16850_v55 = vld [vmem:[#allocation4 + $0x1128] ss:$16 sps:$4 sm:$0xff]  }
 0x4ce   : > { %8026 = vmatmul.mubr.bf16.gmra.mrb[12].mxu0 %v19305_v31  ;;  %10342 = vmatmul.mubr.bf16.gmra.mrb[44].mxu1 %v19113_v16  ;;  %v19319_v16 = vpack.c.bf16 %v689_v48, %v664_v62  ;;  %v16855_v62 = vld [vmem:[#allocation4 + $0x1344] ss:$16 sps:$4 sm:$0xff]   ;;  %v16858_v48 = vld [vmem:[#allocation4 + $0x114c] ss:$16 sps:$4 sm:$0xff]  }
 0x4cf   : > { %8035 = vmatprep.mubr.bf16.mxu0 %v19307_v53  ;;  %10351 = vmatprep.mubr.bf16.mxu1 %v19115_v11  ;;  %v16841_v11 = vld [vmem:[#allocation4 + $0x1300] ss:$16 sps:$4 sm:$0xff]  }
 0x4d0   : > { %8169 = vmatpush1.bf16.msra.mxu0 %v16829_v59  ;;  %10485 = vmatpush1.bf16.msra.mxu1 %v16832_v19  ;;  %v663_v59 = vld [vmem:[%s17673_s25 + $0x850] sm:$0xff]  ;;  %v688_v19 = vld [vmem:[%s17673_s25 + $0x918] sm:$0xff] }
 0x4d1   : > { %8170 = vmatprep.subr.bf16.mxu0 %v16837_v13  ;;  %10486 = vmatprep.subr.bf16.mxu1 %v16840_v51  ;;  %v714_v13 = vld [vmem:[%s17673_s25 + $0x9e8] sm:$0xff]  ;;  %v739_v51 = vld [vmem:[%s17673_s25 + $0xab0] sm:$0xff] }
 0x4d4   : > { %8171 = vmatpush1.bf16.msra.mxu0 %v16835_v17  ;;  %10487 = vmatpush1.bf16.msra.mxu1 %v16838_v20  ;;  %v19329_v17 = vpack.c.bf16 %v688_v19, %v663_v59  ;;  %v16856_v20 = vld [vmem:[#allocation4 + $0x1148] ss:$16 sps:$4 sm:$0xff]   ;;  %v16859_v59 = vld [vmem:[#allocation4 + $0x1360] ss:$16 sps:$4 sm:$0xff]  }
 0x4d5   : > { %8172 = vmatprep.subr.bf16.mxu0 %v16843_v24  ;;  %10488 = vmatprep.subr.bf16.mxu1 %v16846_v37  ;;  %v16861_v24 = vld [vmem:[#allocation4 + $0x1364] ss:$16 sps:$4 sm:$0xff]   ;;  %v16864_v37 = vld [vmem:[#allocation4 + $0x116c] ss:$16 sps:$4 sm:$0xff]   ;;  %v16862_v19 = vld [vmem:[#allocation4 + $0x1168] ss:$16 sps:$4 sm:$0xff]  }
 0x4d6   : > { %8036 = vmatmul.mubr.bf16.gmra.mrb[16].mxu0 %v19317_v5  ;;  %10352 = vmatmul.mubr.bf16.gmra.mrb[48].mxu1 %v19125_v12  ;;  %v19331_v12 = vpack.c.bf16 %v739_v51, %v714_v13  ;;  %v16867_v13 = vld [vmem:[#allocation4 + $0x1384] ss:$16 sps:$4 sm:$0xff]   ;;  %v16870_v51 = vld [vmem:[#allocation4 + $0x118c] ss:$16 sps:$4 sm:$0xff]  }
 0x4d7   : > { %8045 = vmatprep.mubr.bf16.mxu0 %v19319_v16  ;;  %10361 = vmatprep.mubr.bf16.mxu1 %v19127_v6  ;;  %v16853_v6 = vld [vmem:[#allocation4 + $0x1340] ss:$16 sps:$4 sm:$0xff]  }
 0x4d8   : > { %8173 = vmatpush1.bf16.msra.mxu0 %v16841_v11  ;;  %10489 = vmatpush1.bf16.msra.mxu1 %v16844_v38  ;;  %v713_v11 = vld [vmem:[%s17673_s25 + $0x9e0] sm:$0xff]  ;;  %v738_v38 = vld [vmem:[%s17673_s25 + $0xaa8] sm:$0xff] }
 0x4d9   : > { %8174 = vmatprep.subr.bf16.mxu0 %v16849_v52  ;;  %10490 = vmatprep.subr.bf16.mxu1 %v16852_v30  ;;  %v764_v52 = vld [vmem:[%s17673_s25 + $0xb78] sm:$0xff]  ;;  %v789_v30 = vld [vmem:[%s17673_s25 + $0xc40] sm:$0xff] }
 0x4dc   : > { %8175 = vmatpush1.bf16.msra.mxu0 %v16847_v27  ;;  %10491 = vmatpush1.bf16.msra.mxu1 %v16850_v55  ;;  %v19341_v27 = vpack.c.bf16 %v738_v38, %v713_v11  ;;  %v16868_v55 = vld [vmem:[#allocation4 + $0x1188] ss:$16 sps:$4 sm:$0xff]   ;;  %v16871_v11 = vld [vmem:[#allocation4 + $0x13a0] ss:$16 sps:$4 sm:$0xff]  }
 0x4dd   : > { %8176 = vmatprep.subr.bf16.mxu0 %v16855_v62  ;;  %10492 = vmatprep.subr.bf16.mxu1 %v16858_v48  ;;  %v16873_v62 = vld [vmem:[#allocation4 + $0x13a4] ss:$16 sps:$4 sm:$0xff]   ;;  %v16876_v48 = vld [vmem:[#allocation4 + $0x11ac] ss:$16 sps:$4 sm:$0xff]   ;;  %v16874_v38 = vld [vmem:[#allocation4 + $0x11a8] ss:$16 sps:$4 sm:$0xff]  }
 0x4de   : > { %8046 = vmatmul.mubr.bf16.gmra.mrb[20].mxu0 %v19329_v17  ;;  %10362 = vmatmul.mubr.bf16.gmra.mrb[52].mxu1 %v19137_v42  ;;  %v19343_v42 = vpack.c.bf16 %v789_v30, %v764_v52  ;;  %v16879_v52 = vld [vmem:[#allocation4 + $0x13c4] ss:$16 sps:$4 sm:$0xff]   ;;  %v16882_v30 = vld [vmem:[#allocation4 + $0x11cc] ss:$16 sps:$4 sm:$0xff]  }
 0x4df   : > { %8055 = vmatprep.mubr.bf16.mxu0 %v19331_v12  ;;  %10371 = vmatprep.mubr.bf16.mxu1 %v19139_v45  ;;  %v16865_v45 = vld [vmem:[#allocation4 + $0x1380] ss:$16 sps:$4 sm:$0xff]  }
 0x4e0   : > { %8177 = vmatpush1.bf16.msra.mxu0 %v16853_v6  ;;  %10493 = vmatpush1.bf16.msra.mxu1 %v16856_v20  ;;  %v763_v6 = vld [vmem:[%s17673_s25 + $0xb70] sm:$0xff]  ;;  %v788_v20 = vld [vmem:[%s17673_s25 + $0xc38] sm:$0xff] }
 0x4e1   : > { %8178 = vmatprep.subr.bf16.mxu0 %v16861_v24  ;;  %10494 = vmatprep.subr.bf16.mxu1 %v16864_v37  ;;  %v814_v24 = vld [vmem:[%s17673_s25 + $0xd08] sm:$0xff]  ;;  %v839_v37 = vld [vmem:[%s17673_s25 + $0xdd0] sm:$0xff] }
 0x4e4   : > { %8179 = vmatpush1.bf16.msra.mxu0 %v16859_v59  ;;  %10495 = vmatpush1.bf16.msra.mxu1 %v16862_v19  ;;  %v19353_v59 = vpack.c.bf16 %v788_v20, %v763_v6  ;;  %v16880_v19 = vld [vmem:[#allocation4 + $0x11c8] ss:$16 sps:$4 sm:$0xff]   ;;  %v16883_v6 = vld [vmem:[#allocation4 + $0x13e0] ss:$16 sps:$4 sm:$0xff]  }
 0x4e5   : > { %8180 = vmatprep.subr.bf16.mxu0 %v16867_v13  ;;  %10496 = vmatprep.subr.bf16.mxu1 %v16870_v51  ;;  %v16885_v13 = vld [vmem:[#allocation4 + $0x13e4] ss:$16 sps:$4 sm:$0xff]   ;;  %v16888_v51 = vld [vmem:[#allocation4 + $0x11ec] ss:$16 sps:$4 sm:$0xff]   ;;  %v16886_v20 = vld [vmem:[#allocation4 + $0x11e8] ss:$16 sps:$4 sm:$0xff]  }
 0x4e6   : > { %8056 = vmatmul.mubr.bf16.gmra.mrb[24].mxu0 %v19341_v27  ;;  %10372 = vmatmul.mubr.bf16.gmra.mrb[56].mxu1 %v19149_v60  ;;  %v19355_v60 = vpack.c.bf16 %v839_v37, %v814_v24  ;;  %v16891_v24 = vld [vmem:[#allocation4 + $0x1404] ss:$16 sps:$4 sm:$0xff]  }
 0x4e7   : > { %8065 = vmatprep.mubr.bf16.mxu0 %v19343_v42  ;;  %10381 = vmatprep.mubr.bf16.mxu1 %v19151_v32  ;;  %v16877_v32 = vld [vmem:[#allocation4 + $0x13c0] ss:$16 sps:$4 sm:$0xff]  }
 0x4e8   : > { %8181 = vmatpush1.bf16.msra.mxu0 %v16865_v45  ;;  %10497 = vmatpush1.bf16.msra.mxu1 %v16868_v55  ;;  %v813_v45 = vld [vmem:[%s17673_s25 + $0xd00] sm:$0xff]  ;;  %v838_v55 = vld [vmem:[%s17673_s25 + $0xdc8] sm:$0xff] }
 0x4e9   : > { %8182 = vmatprep.subr.bf16.mxu0 %v16873_v62  ;;  %10498 = vmatprep.subr.bf16.mxu1 %v16876_v48  ;;  %v864_v62 = vld [vmem:[%s17673_s25 + $0xe98] sm:$0xff]  ;;  %v889_v48 = vld [vmem:[%s17673_s25 + $0xf60] sm:$0xff]  ;;  %v19365_v37 = vpack.c.bf16 %v838_v55, %v813_v45 }
 0x4ec   : > { %8183 = vmatpush1.bf16.msra.mxu0 %v16871_v11  ;;  %10499 = vmatpush1.bf16.msra.mxu1 %v16874_v38  ;;  %v19367_v11 = vpack.c.bf16 %v889_v48, %v864_v62  ;;  %v888_v38 = vld [vmem:[%s17673_s25 + $0xf58] sm:$0xff]  ;;  %v1014_v62 = vld [vmem:[%s17673_s25 + $0x1348] sm:$0xff]  ;;  %v1039_v48 = vld [vmem:[%s17673_s25 + $0x1410] sm:$0xff] }
 0x4ed   : > { %8184 = vmatprep.subr.bf16.mxu0 %v16879_v52  ;;  %10500 = vmatprep.subr.bf16.mxu1 %v16882_v30  ;;  %v914_v52 = vld [vmem:[%s17673_s25 + $0x1028] sm:$0xff]  ;;  %v939_v30 = vld [vmem:[%s17673_s25 + $0x10f0] sm:$0xff] }
 0x4ee   : > { %8066 = vmatmul.mubr.bf16.gmra.mrb[28].mxu0 %v19353_v59  ;;  %10382 = vmatmul.mubr.bf16.gmra.mrb[60].mxu1 %v19161_v8  ;;  %v16894_v8 = vld [vmem:[#allocation4 + $0x120c] ss:$16 sps:$4 sm:$0xff]  }
 0x4ef   : > { %8075 = vmatprep.mubr.bf16.mxu0 %v19355_v60  ;;  %10391 = vmatprep.mubr.bf16.mxu1 %v19163_v23  ;;  %v863_v23 = vld [vmem:[%s17673_s25 + $0xe90] sm:$0xff] }
 0x4f0   : > { %8185 = vmatpush1.bf16.msra.mxu0 %v16877_v32  ;;  %10501 = vmatpush1.bf16.msra.mxu1 %v16880_v19  ;;  %v19377_v32 = vpack.c.bf16 %v888_v38, %v863_v23  ;;  %v19379_v19 = vpack.c.bf16 %v939_v30, %v914_v52  ;;  %v1114_v52 = vld [vmem:[%s17673_s25 + $0x1668] sm:$0xff]  ;;  %v1139_v30 = vld [vmem:[%s17673_s25 + $0x1730] sm:$0xff] }
 0x4f1   : > { %8186 = vmatprep.subr.bf16.mxu0 %v16885_v13  ;;  %10502 = vmatprep.subr.bf16.mxu1 %v16888_v51  ;;  %v964_v13 = vld [vmem:[%s17673_s25 + $0x11b8] sm:$0xff]  ;;  %v989_v51 = vld [vmem:[%s17673_s25 + $0x1280] sm:$0xff] }
 0x4f2   : > { %v19391_v55 = vpack.c.bf16 %v989_v51, %v964_v13  ;;  %v1164_v13 = vld [vmem:[%s17673_s25 + $0x17f8] sm:$0xff]  ;;  %v1189_v51 = vld [vmem:[%s17673_s25 + $0x18c0] sm:$0xff] }
 0x4f4   : > { %8187 = vmatpush1.bf16.msra.mxu0 %v16883_v6  ;;  %10503 = vmatpush1.bf16.msra.mxu1 %v16886_v20  ;;  %v19403_v20 = vpack.c.bf16 %v1039_v48, %v1014_v62  ;;  %v416_v62 = vld [vmem:[%s17673_s25 + $0x98] sm:$0xff]  ;;  %v441_v48 = vld [vmem:[%s17673_s25 + $0x160] sm:$0xff] }
 0x4f5   : > { %8349 = vmatprep.subr.bf16.mxu0 %v16891_v24  ;;  %10665 = vmatprep.subr.bf16.mxu1 %v16894_v8  ;;  %v1064_v24 = vld [vmem:[%s17673_s25 + $0x14d8] sm:$0xff]  ;;  %v1089_v8 = vld [vmem:[%s17673_s25 + $0x15a0] sm:$0xff] }
 0x4f6   : > { %8076 = vmatmul.mubr.bf16.gmra.mrb[32].mxu0 %v19365_v37  ;;  %10392 = vmatmul.mubr.bf16.gmra.mrb[64].mxu1 %v19173_v46  ;;  %v913_v46 = vld [vmem:[%s17673_s25 + $0x1020] sm:$0xff]  ;;  %v19415_v38 = vpack.c.bf16 %v1089_v8, %v1064_v24  ;;  %v466_v24 = vld [vmem:[%s17673_s25 + $0x228] sm:$0xff]  ;;  %v491_v8 = vld [vmem:[%s17673_s25 + $0x2f0] sm:$0xff] }
 0x4f7   : > { %8085 = vmatprep.mubr.bf16.mxu0 %v19367_v11  ;;  %10401 = vmatprep.mubr.bf16.mxu1 %v19175_v25  ;;  %v938_v25 = vld [vmem:[%s17673_s25 + $0x10e8] sm:$0xff] }
 0x4f8   : > { %v19389_v45 = vpack.c.bf16 %v938_v25, %v913_v46  ;;  %v19427_v25 = vpack.c.bf16 %v1139_v30, %v1114_v52  ;;  %v16892_v52 = vld [vmem:[#allocation4 + $0x1208] ss:$16 sps:$4 sm:$0xff]   ;;  %v19463_v30 = vpack.c.bf16 %v491_v8, %v466_v24  ;;  %v16912_v8 = vld [vmem:[#allocation4 + $0x126c] ss:$16 sps:$4 sm:$0xff]  }
 0x4f9   : > { %v16904_v24 = vld [vmem:[#allocation4 + $0x1248] ss:$16 sps:$4 sm:$0xff]  }
 0x4fe   : > { %8086 = vmatmul.mubr.bf16.gmra.mrb[36].mxu0 %v19377_v32  ;;  %10402 = vmatmul.mubr.bf16.gmra.mrb[68].mxu1 %v19185_v15  ;;  %v963_v15 = vld [vmem:[%s17673_s25 + $0x11b0] sm:$0xff] }
 0x4ff   : > { %8095 = vmatprep.mubr.bf16.mxu0 %v19379_v19  ;;  %10411 = vmatprep.mubr.bf16.mxu1 %v19187_v14  ;;  %v988_v14 = vld [vmem:[%s17673_s25 + $0x1278] sm:$0xff] }
 0x500   : > { %v19401_v6 = vpack.c.bf16 %v988_v14, %v963_v15  ;;  %v19439_v14 = vpack.c.bf16 %v1189_v51, %v1164_v13  ;;  %v16895_v13 = vld [vmem:[#allocation4 + $0x1420] ss:$16 sps:$4 sm:$0xff]   ;;  %v16898_v51 = vld [vmem:[#allocation4 + $0x1228] ss:$16 sps:$4 sm:$0xff]  }
 0x506   : > { %8096 = vmatmul.mubr.bf16.gmra.mrb[40].mxu0 %v19389_v45  ;;  %10412 = vmatmul.mubr.bf16.gmra.mrb[72].mxu1 %v19197_v44  ;;  %v1013_v44 = vld [vmem:[%s17673_s25 + $0x1340] sm:$0xff] }
 0x507   : > { %8105 = vmatprep.mubr.bf16.mxu0 %v19391_v55  ;;  %10421 = vmatprep.mubr.bf16.mxu1 %v19199_v50  ;;  %v1038_v50 = vld [vmem:[%s17673_s25 + $0x1408] sm:$0xff] }
 0x508   : > { %v19413_v23 = vpack.c.bf16 %v1038_v50, %v1013_v44  ;;  %v19451_v50 = vpack.c.bf16 %v441_v48, %v416_v62  ;;  %v16903_v62 = vld [vmem:[#allocation4 + $0x1444] ss:$16 sps:$4 sm:$0xff]   ;;  %v16906_v48 = vld [vmem:[#allocation4 + $0x124c] ss:$16 sps:$4 sm:$0xff]  }
 0x50e   : > { %8106 = vmatmul.mubr.bf16.gmra.mrb[44].mxu0 %v19401_v6  ;;  %10422 = vmatmul.mubr.bf16.gmra.mrb[76].mxu1 %v19209_v1  ;;  %v1063_v1 = vld [vmem:[%s17673_s25 + $0x14d0] sm:$0xff] }
 0x50f   : > { %8115 = vmatprep.mubr.bf16.mxu0 %v19403_v20  ;;  %10431 = vmatprep.mubr.bf16.mxu1 %v19211_v54  ;;  %v1088_v54 = vld [vmem:[%s17673_s25 + $0x1598] sm:$0xff] }
 0x510   : > { %v19425_v46 = vpack.c.bf16 %v1088_v54, %v1063_v1  ;;  %v16889_v54 = vld [vmem:[#allocation4 + $0x1400] ss:$16 sps:$4 sm:$0xff]  }
 0x516   : > { %8116 = vmatmul.mubr.bf16.gmra.mrb[48].mxu0 %v19413_v23  ;;  %10432 = vmatmul.mubr.bf16.gmra.mrb[80].mxu1 %v19221_v29  ;;  %v1113_v29 = vld [vmem:[%s17673_s25 + $0x1660] sm:$0xff] }
 0x517   : > { %8125 = vmatprep.mubr.bf16.mxu0 %v19415_v38  ;;  %10441 = vmatprep.mubr.bf16.mxu1 %v19223_v0  ;;  %v1138_v0 = vld [vmem:[%s17673_s25 + $0x1728] sm:$0xff] }
 0x518   : > { %v19437_v15 = vpack.c.bf16 %v1138_v0, %v1113_v29  ;;  %v16897_v29 = vld [vmem:[#allocation4 + $0x1424] ss:$16 sps:$4 sm:$0xff]   ;;  %v16900_v0 = vld [vmem:[#allocation4 + $0x122c] ss:$16 sps:$4 sm:$0xff]  }
 0x51e   : > { %8126 = vmatmul.mubr.bf16.gmra.mrb[52].mxu0 %v19425_v46  ;;  %10442 = vmatmul.mubr.bf16.gmra.mrb[84].mxu1 %v19233_v3  ;;  %v1163_v3 = vld [vmem:[%s17673_s25 + $0x17f0] sm:$0xff] }
 0x51f   : > { %8135 = vmatprep.mubr.bf16.mxu0 %v19427_v25  ;;  %10451 = vmatprep.mubr.bf16.mxu1 %v19235_v28  ;;  %v1188_v28 = vld [vmem:[%s17673_s25 + $0x18b8] sm:$0xff] }
 0x520   : > { %v19449_v44 = vpack.c.bf16 %v1188_v28, %v1163_v3  ;;  %v516_v3 = vld [vmem:[%s17673_s25 + $0x3b8] sm:$0xff]  ;;  %v541_v28 = vld [vmem:[%s17673_s25 + $0x480] sm:$0xff] }
 0x526   : > { %8136 = vmatmul.mubr.bf16.gmra.mrb[56].mxu0 %v19437_v15  ;;  %10452 = vmatmul.mubr.bf16.gmra.mrb[88].mxu1 %v19245_v58  ;;  %v415_v58 = vld [vmem:[%s17673_s25 + $0x90] sm:$0xff] }
 0x527   : > { %8145 = vmatprep.mubr.bf16.mxu0 %v19439_v14  ;;  %10461 = vmatprep.mubr.bf16.mxu1 %v19247_v61  ;;  %v440_v61 = vld [vmem:[%s17673_s25 + $0x158] sm:$0xff] }
 0x528   : > { %v19461_v1 = vpack.c.bf16 %v440_v61, %v415_v58  ;;  %v16901_v61 = vld [vmem:[#allocation4 + $0x1440] ss:$16 sps:$4 sm:$0xff]  }
 0x52e   : > { %8146 = vmatmul.mubr.bf16.gmra.mrb[60].mxu0 %v19449_v44  ;;  %10462 = vmatmul.mubr.bf16.gmra.mrb[92].mxu1 %v19257_v7  ;;  %v465_v7 = vld [vmem:[%s17673_s25 + $0x220] sm:$0xff] }
 0x52f   : > { %8188 = vmatprep.mubr.bf16.mxu0 %v19451_v50  ;;  %10504 = vmatprep.mubr.bf16.mxu1 %v19259_v57  ;;  %v490_v57 = vld [vmem:[%s17673_s25 + $0x2e8] sm:$0xff] }
 0x530   : > { %v19473_v58 = vpack.c.bf16 %v490_v57, %v465_v7  ;;  %v16907_v7 = vld [vmem:[#allocation4 + $0x1460] ss:$16 sps:$4 sm:$0xff]   ;;  %v16910_v57 = vld [vmem:[#allocation4 + $0x1268] ss:$16 sps:$4 sm:$0xff]  }
 0x536   : > { %8189 = vmatmul.mubr.bf16.vlgmr.msra.gmra.mrb[0].mxu0 %v19461_v1  ;;  %10505 = vmatmul.mubr.bf16.vlgmr.msra.gmra.mrb[32].mxu1 %v19269_v40  ;;  %v19475_v40 = vpack.c.bf16 %v541_v28, %v516_v3  ;;  %v16916_v28 = vld [vmem:[#allocation4 + $0x1288] ss:$16 sps:$4 sm:$0xff]  }
 0x537   : > { %8350 = vmatpush1.bf16.msra.mxu0 %v16889_v54  ;;  %10666 = vmatpush1.bf16.msra.mxu1 %v16892_v52  ;;  %v515_v54 = vld [vmem:[%s17673_s25 + $0x3b0] sm:$0xff]  ;;  %v540_v52 = vld [vmem:[%s17673_s25 + $0x478] sm:$0xff] }
 0x538   : > { %8198 = vmatprep.mubr.bf16.mxu0 %v19463_v30  ;;  %10514 = vmatprep.mubr.bf16.mxu1 %v19271_v18  ;;  %v16909_v18 = vld [vmem:[#allocation4 + $0x1464] ss:$16 sps:$4 sm:$0xff]   ;;  %v19485_v3 = vpack.c.bf16 %v540_v52, %v515_v54  ;;  %v16919_v54 = vld [vmem:[#allocation4 + $0x14a0] ss:$16 sps:$4 sm:$0xff]   ;;  %v16922_v52 = vld [vmem:[#allocation4 + $0x12a8] ss:$16 sps:$4 sm:$0xff]  }
 0x539   : > { %8351 = vmatprep.subr.bf16.mxu0 %v16897_v29  ;;  %10667 = vmatprep.subr.bf16.mxu1 %v16900_v0  ;;  %v566_v29 = vld [vmem:[%s17673_s25 + $0x548] sm:$0xff]  ;;  %v591_v0 = vld [vmem:[%s17673_s25 + $0x610] sm:$0xff] }
 0x53b   : > { %8352 = vmatpush1.bf16.msra.mxu0 %v16895_v13  ;;  %10668 = vmatpush1.bf16.msra.mxu1 %v16898_v51  ;;  %v16915_v13 = vld [vmem:[#allocation4 + $0x1484] ss:$16 sps:$4 sm:$0xff]   ;;  %v16918_v51 = vld [vmem:[#allocation4 + $0x128c] ss:$16 sps:$4 sm:$0xff]  }
 0x53c   : > { %8353 = vmatprep.subr.bf16.mxu0 %v16903_v62  ;;  %10669 = vmatprep.subr.bf16.mxu1 %v16906_v48  ;;  %v16921_v62 = vld [vmem:[#allocation4 + $0x14a4] ss:$16 sps:$4 sm:$0xff]   ;;  %v16924_v48 = vld [vmem:[#allocation4 + $0x12ac] ss:$16 sps:$4 sm:$0xff]  }
 0x53e   : > { %8199 = vmatmul.mubr.bf16.gmra.mrb[4].mxu0 %v19473_v58  ;;  %10515 = vmatmul.mubr.bf16.gmra.mrb[36].mxu1 %v19281_v49  ;;  %v19487_v49 = vpack.c.bf16 %v591_v0, %v566_v29  ;;  %v16927_v29 = vld [vmem:[#allocation4 + $0x14c4] ss:$16 sps:$4 sm:$0xff]   ;;  %v16930_v0 = vld [vmem:[#allocation4 + $0x12cc] ss:$16 sps:$4 sm:$0xff]  }
 0x53f   : > { %8208 = vmatprep.mubr.bf16.mxu0 %v19475_v40  ;;  %10524 = vmatprep.mubr.bf16.mxu1 %v19283_v22  ;;  %v16913_v22 = vld [vmem:[#allocation4 + $0x1480] ss:$16 sps:$4 sm:$0xff]  }
 0x540   : > { %8354 = vmatpush1.bf16.msra.mxu0 %v16901_v61  ;;  %10670 = vmatpush1.bf16.msra.mxu1 %v16904_v24  ;;  %v565_v61 = vld [vmem:[%s17673_s25 + $0x540] sm:$0xff]  ;;  %v590_v24 = vld [vmem:[%s17673_s25 + $0x608] sm:$0xff] }
 0x541   : > { %8355 = vmatprep.subr.bf16.mxu0 %v16909_v18  ;;  %10671 = vmatprep.subr.bf16.mxu1 %v16912_v8  ;;  %v616_v18 = vld [vmem:[%s17673_s25 + $0x6d8] sm:$0xff]  ;;  %v641_v8 = vld [vmem:[%s17673_s25 + $0x7a0] sm:$0xff] }
 0x544   : > { %8356 = vmatpush1.bf16.msra.mxu0 %v16907_v7  ;;  %10672 = vmatpush1.bf16.msra.mxu1 %v16910_v57  ;;  %v19497_v7 = vpack.c.bf16 %v590_v24, %v565_v61  ;;  %v16928_v57 = vld [vmem:[#allocation4 + $0x12c8] ss:$16 sps:$4 sm:$0xff]   ;;  %v16931_v61 = vld [vmem:[#allocation4 + $0x14e0] ss:$16 sps:$4 sm:$0xff]  }
 0x545   : > { %8357 = vmatprep.subr.bf16.mxu0 %v16915_v13  ;;  %10673 = vmatprep.subr.bf16.mxu1 %v16918_v51  ;;  %v16933_v13 = vld [vmem:[#allocation4 + $0x14e4] ss:$16 sps:$4 sm:$0xff]   ;;  %v16936_v51 = vld [vmem:[#allocation4 + $0x12ec] ss:$16 sps:$4 sm:$0xff]   ;;  %v16934_v24 = vld [vmem:[#allocation4 + $0x12e8] ss:$16 sps:$4 sm:$0xff]  }
 0x546   : > { %8209 = vmatmul.mubr.bf16.gmra.mrb[8].mxu0 %v19485_v3  ;;  %10525 = vmatmul.mubr.bf16.gmra.mrb[40].mxu1 %v19293_v26  ;;  %v19499_v26 = vpack.c.bf16 %v641_v8, %v616_v18  ;;  %v16939_v18 = vld [vmem:[#allocation4 + $0x1504] ss:$16 sps:$4 sm:$0xff]   ;;  %v16942_v8 = vld [vmem:[#allocation4 + $0x130c] ss:$16 sps:$4 sm:$0xff]  }
 0x547   : > { %8218 = vmatprep.mubr.bf16.mxu0 %v19487_v49  ;;  %10534 = vmatprep.mubr.bf16.mxu1 %v19295_v41  ;;  %v16925_v41 = vld [vmem:[#allocation4 + $0x14c0] ss:$16 sps:$4 sm:$0xff]  }
 0x548   : > { %8358 = vmatpush1.bf16.msra.mxu0 %v16913_v22  ;;  %10674 = vmatpush1.bf16.msra.mxu1 %v16916_v28  ;;  %v615_v22 = vld [vmem:[%s17673_s25 + $0x6d0] sm:$0xff]  ;;  %v640_v28 = vld [vmem:[%s17673_s25 + $0x798] sm:$0xff] }
 0x549   : > { %8359 = vmatprep.subr.bf16.mxu0 %v16921_v62  ;;  %10675 = vmatprep.subr.bf16.mxu1 %v16924_v48  ;;  %v666_v62 = vld [vmem:[%s17673_s25 + $0x868] sm:$0xff]  ;;  %v691_v48 = vld [vmem:[%s17673_s25 + $0x930] sm:$0xff] }
 0x54c   : > { %8360 = vmatpush1.bf16.msra.mxu0 %v16919_v54  ;;  %10676 = vmatpush1.bf16.msra.mxu1 %v16922_v52  ;;  %v19509_v54 = vpack.c.bf16 %v640_v28, %v615_v22  ;;  %v16940_v52 = vld [vmem:[#allocation4 + $0x1308] ss:$16 sps:$4 sm:$0xff]   ;;  %v16943_v22 = vld [vmem:[#allocation4 + $0x1520] ss:$16 sps:$4 sm:$0xff]  }
 0x54d   : > { %8361 = vmatprep.subr.bf16.mxu0 %v16927_v29  ;;  %10677 = vmatprep.subr.bf16.mxu1 %v16930_v0  ;;  %v16945_v29 = vld [vmem:[#allocation4 + $0x1524] ss:$16 sps:$4 sm:$0xff]   ;;  %v16948_v0 = vld [vmem:[#allocation4 + $0x132c] ss:$16 sps:$4 sm:$0xff]   ;;  %v16946_v28 = vld [vmem:[#allocation4 + $0x1328] ss:$16 sps:$4 sm:$0xff]  }
 0x54e   : > { %8219 = vmatmul.mubr.bf16.gmra.mrb[12].mxu0 %v19497_v7  ;;  %10535 = vmatmul.mubr.bf16.gmra.mrb[44].mxu1 %v19305_v31  ;;  %v19511_v31 = vpack.c.bf16 %v691_v48, %v666_v62  ;;  %v16951_v62 = vld [vmem:[#allocation4 + $0x1544] ss:$16 sps:$4 sm:$0xff]   ;;  %v16954_v48 = vld [vmem:[#allocation4 + $0x134c] ss:$16 sps:$4 sm:$0xff]  }
 0x54f   : > { %8228 = vmatprep.mubr.bf16.mxu0 %v19499_v26  ;;  %10544 = vmatprep.mubr.bf16.mxu1 %v19307_v53  ;;  %v16937_v53 = vld [vmem:[#allocation4 + $0x1500] ss:$16 sps:$4 sm:$0xff]  }
 0x550   : > { %8362 = vmatpush1.bf16.msra.mxu0 %v16925_v41  ;;  %10678 = vmatpush1.bf16.msra.mxu1 %v16928_v57  ;;  %v665_v41 = vld [vmem:[%s17673_s25 + $0x860] sm:$0xff]  ;;  %v690_v57 = vld [vmem:[%s17673_s25 + $0x928] sm:$0xff] }
 0x551   : > { %8363 = vmatprep.subr.bf16.mxu0 %v16933_v13  ;;  %10679 = vmatprep.subr.bf16.mxu1 %v16936_v51  ;;  %v716_v13 = vld [vmem:[%s17673_s25 + $0x9f8] sm:$0xff]  ;;  %v741_v51 = vld [vmem:[%s17673_s25 + $0xac0] sm:$0xff] }
 0x554   : > { %8364 = vmatpush1.bf16.msra.mxu0 %v16931_v61  ;;  %10680 = vmatpush1.bf16.msra.mxu1 %v16934_v24  ;;  %v19521_v61 = vpack.c.bf16 %v690_v57, %v665_v41  ;;  %v16952_v24 = vld [vmem:[#allocation4 + $0x1348] ss:$16 sps:$4 sm:$0xff]   ;;  %v16955_v41 = vld [vmem:[#allocation4 + $0x1560] ss:$16 sps:$4 sm:$0xff]  }
 0x555   : > { %8365 = vmatprep.subr.bf16.mxu0 %v16939_v18  ;;  %10681 = vmatprep.subr.bf16.mxu1 %v16942_v8  ;;  %v16957_v18 = vld [vmem:[#allocation4 + $0x1564] ss:$16 sps:$4 sm:$0xff]   ;;  %v16960_v8 = vld [vmem:[#allocation4 + $0x136c] ss:$16 sps:$4 sm:$0xff]   ;;  %v16958_v57 = vld [vmem:[#allocation4 + $0x1368] ss:$16 sps:$4 sm:$0xff]  }
 0x556   : > { %8229 = vmatmul.mubr.bf16.gmra.mrb[16].mxu0 %v19509_v54  ;;  %10545 = vmatmul.mubr.bf16.gmra.mrb[48].mxu1 %v19317_v5  ;;  %v19523_v5 = vpack.c.bf16 %v741_v51, %v716_v13  ;;  %v16963_v13 = vld [vmem:[#allocation4 + $0x1584] ss:$16 sps:$4 sm:$0xff]   ;;  %v16966_v51 = vld [vmem:[#allocation4 + $0x138c] ss:$16 sps:$4 sm:$0xff]  }
 0x557   : > { %8238 = vmatprep.mubr.bf16.mxu0 %v19511_v31  ;;  %10554 = vmatprep.mubr.bf16.mxu1 %v19319_v16  ;;  %v16949_v16 = vld [vmem:[#allocation4 + $0x1540] ss:$16 sps:$4 sm:$0xff]  }
 0x558   : > { %8366 = vmatpush1.bf16.msra.mxu0 %v16937_v53  ;;  %10682 = vmatpush1.bf16.msra.mxu1 %v16940_v52  ;;  %v715_v53 = vld [vmem:[%s17673_s25 + $0x9f0] sm:$0xff]  ;;  %v740_v52 = vld [vmem:[%s17673_s25 + $0xab8] sm:$0xff] }
 0x559   : > { %8367 = vmatprep.subr.bf16.mxu0 %v16945_v29  ;;  %10683 = vmatprep.subr.bf16.mxu1 %v16948_v0  ;;  %v766_v29 = vld [vmem:[%s17673_s25 + $0xb88] sm:$0xff]  ;;  %v791_v0 = vld [vmem:[%s17673_s25 + $0xc50] sm:$0xff] }
 0x55c   : > { %8368 = vmatpush1.bf16.msra.mxu0 %v16943_v22  ;;  %10684 = vmatpush1.bf16.msra.mxu1 %v16946_v28  ;;  %v19533_v22 = vpack.c.bf16 %v740_v52, %v715_v53  ;;  %v16964_v28 = vld [vmem:[#allocation4 + $0x1388] ss:$16 sps:$4 sm:$0xff]   ;;  %v16967_v53 = vld [vmem:[#allocation4 + $0x15a0] ss:$16 sps:$4 sm:$0xff]  }
 0x55d   : > { %8369 = vmatprep.subr.bf16.mxu0 %v16951_v62  ;;  %10685 = vmatprep.subr.bf16.mxu1 %v16954_v48  ;;  %v16969_v62 = vld [vmem:[#allocation4 + $0x15a4] ss:$16 sps:$4 sm:$0xff]   ;;  %v16972_v48 = vld [vmem:[#allocation4 + $0x13ac] ss:$16 sps:$4 sm:$0xff]   ;;  %v16970_v52 = vld [vmem:[#allocation4 + $0x13a8] ss:$16 sps:$4 sm:$0xff]  }
 0x55e   : > { %8239 = vmatmul.mubr.bf16.gmra.mrb[20].mxu0 %v19521_v61  ;;  %10555 = vmatmul.mubr.bf16.gmra.mrb[52].mxu1 %v19329_v17  ;;  %v19535_v17 = vpack.c.bf16 %v791_v0, %v766_v29  ;;  %v16975_v29 = vld [vmem:[#allocation4 + $0x15c4] ss:$16 sps:$4 sm:$0xff]   ;;  %v16978_v0 = vld [vmem:[#allocation4 + $0x13cc] ss:$16 sps:$4 sm:$0xff]  }
 0x55f   : > { %8248 = vmatprep.mubr.bf16.mxu0 %v19523_v5  ;;  %10564 = vmatprep.mubr.bf16.mxu1 %v19331_v12  ;;  %v16961_v12 = vld [vmem:[#allocation4 + $0x1580] ss:$16 sps:$4 sm:$0xff]  }
 0x560   : > { %8370 = vmatpush1.bf16.msra.mxu0 %v16949_v16  ;;  %10686 = vmatpush1.bf16.msra.mxu1 %v16952_v24  ;;  %v765_v16 = vld [vmem:[%s17673_s25 + $0xb80] sm:$0xff]  ;;  %v790_v24 = vld [vmem:[%s17673_s25 + $0xc48] sm:$0xff] }
 0x561   : > { %8371 = vmatprep.subr.bf16.mxu0 %v16957_v18  ;;  %10687 = vmatprep.subr.bf16.mxu1 %v16960_v8  ;;  %v816_v18 = vld [vmem:[%s17673_s25 + $0xd18] sm:$0xff]  ;;  %v841_v8 = vld [vmem:[%s17673_s25 + $0xde0] sm:$0xff] }
 0x564   : > { %8372 = vmatpush1.bf16.msra.mxu0 %v16955_v41  ;;  %10688 = vmatpush1.bf16.msra.mxu1 %v16958_v57  ;;  %v19545_v41 = vpack.c.bf16 %v790_v24, %v765_v16  ;;  %v16976_v57 = vld [vmem:[#allocation4 + $0x13c8] ss:$16 sps:$4 sm:$0xff]   ;;  %v16979_v16 = vld [vmem:[#allocation4 + $0x15e0] ss:$16 sps:$4 sm:$0xff]  }
 0x565   : > { %8373 = vmatprep.subr.bf16.mxu0 %v16963_v13  ;;  %10689 = vmatprep.subr.bf16.mxu1 %v16966_v51  ;;  %v16981_v13 = vld [vmem:[#allocation4 + $0x15e4] ss:$16 sps:$4 sm:$0xff]   ;;  %v16984_v51 = vld [vmem:[#allocation4 + $0x13ec] ss:$16 sps:$4 sm:$0xff]   ;;  %v16982_v24 = vld [vmem:[#allocation4 + $0x13e8] ss:$16 sps:$4 sm:$0xff]  }
 0x566   : > { %8249 = vmatmul.mubr.bf16.gmra.mrb[24].mxu0 %v19533_v22  ;;  %10565 = vmatmul.mubr.bf16.gmra.mrb[56].mxu1 %v19341_v27  ;;  %v19547_v27 = vpack.c.bf16 %v841_v8, %v816_v18  ;;  %v16987_v18 = vld [vmem:[#allocation4 + $0x1604] ss:$16 sps:$4 sm:$0xff]  }
 0x567   : > { %8258 = vmatprep.mubr.bf16.mxu0 %v19535_v17  ;;  %10574 = vmatprep.mubr.bf16.mxu1 %v19343_v42  ;;  %v16973_v42 = vld [vmem:[#allocation4 + $0x15c0] ss:$16 sps:$4 sm:$0xff]  }
 0x568   : > { %8374 = vmatpush1.bf16.msra.mxu0 %v16961_v12  ;;  %10690 = vmatpush1.bf16.msra.mxu1 %v16964_v28  ;;  %v815_v12 = vld [vmem:[%s17673_s25 + $0xd10] sm:$0xff]  ;;  %v840_v28 = vld [vmem:[%s17673_s25 + $0xdd8] sm:$0xff] }
 0x569   : > { %8375 = vmatprep.subr.bf16.mxu0 %v16969_v62  ;;  %10691 = vmatprep.subr.bf16.mxu1 %v16972_v48  ;;  %v866_v62 = vld [vmem:[%s17673_s25 + $0xea8] sm:$0xff]  ;;  %v891_v48 = vld [vmem:[%s17673_s25 + $0xf70] sm:$0xff]  ;;  %v19557_v8 = vpack.c.bf16 %v840_v28, %v815_v12 }
 0x56c   : > { %8376 = vmatpush1.bf16.msra.mxu0 %v16967_v53  ;;  %10692 = vmatpush1.bf16.msra.mxu1 %v16970_v52  ;;  %v19559_v53 = vpack.c.bf16 %v891_v48, %v866_v62  ;;  %v890_v52 = vld [vmem:[%s17673_s25 + $0xf68] sm:$0xff]  ;;  %v1016_v62 = vld [vmem:[%s17673_s25 + $0x1358] sm:$0xff]  ;;  %v1041_v48 = vld [vmem:[%s17673_s25 + $0x1420] sm:$0xff] }
 0x56d   : > { %8377 = vmatprep.subr.bf16.mxu0 %v16975_v29  ;;  %10693 = vmatprep.subr.bf16.mxu1 %v16978_v0  ;;  %v916_v29 = vld [vmem:[%s17673_s25 + $0x1038] sm:$0xff]  ;;  %v941_v0 = vld [vmem:[%s17673_s25 + $0x1100] sm:$0xff] }
 0x56e   : > { %8259 = vmatmul.mubr.bf16.gmra.mrb[28].mxu0 %v19545_v41  ;;  %10575 = vmatmul.mubr.bf16.gmra.mrb[60].mxu1 %v19353_v59  ;;  %v16990_v59 = vld [vmem:[#allocation4 + $0x140c] ss:$16 sps:$4 sm:$0xff]  }
 0x56f   : > { %8268 = vmatprep.mubr.bf16.mxu0 %v19547_v27  ;;  %10584 = vmatprep.mubr.bf16.mxu1 %v19355_v60  ;;  %v865_v60 = vld [vmem:[%s17673_s25 + $0xea0] sm:$0xff] }
 0x570   : > { %8378 = vmatpush1.bf16.msra.mxu0 %v16973_v42  ;;  %10694 = vmatpush1.bf16.msra.mxu1 %v16976_v57  ;;  %v19569_v42 = vpack.c.bf16 %v890_v52, %v865_v60  ;;  %v19571_v57 = vpack.c.bf16 %v941_v0, %v916_v29  ;;  %v1116_v29 = vld [vmem:[%s17673_s25 + $0x1678] sm:$0xff]  ;;  %v1141_v0 = vld [vmem:[%s17673_s25 + $0x1740] sm:$0xff] }
 0x571   : > { %8379 = vmatprep.subr.bf16.mxu0 %v16981_v13  ;;  %10695 = vmatprep.subr.bf16.mxu1 %v16984_v51  ;;  %v966_v13 = vld [vmem:[%s17673_s25 + $0x11c8] sm:$0xff]  ;;  %v991_v51 = vld [vmem:[%s17673_s25 + $0x1290] sm:$0xff] }
 0x572   : > { %v19583_v28 = vpack.c.bf16 %v991_v51, %v966_v13  ;;  %v1166_v13 = vld [vmem:[%s17673_s25 + $0x1808] sm:$0xff]  ;;  %v1191_v51 = vld [vmem:[%s17673_s25 + $0x18d0] sm:$0xff] }
 0x574   : > { %8380 = vmatpush1.bf16.msra.mxu0 %v16979_v16  ;;  %10696 = vmatpush1.bf16.msra.mxu1 %v16982_v24  ;;  %v19595_v24 = vpack.c.bf16 %v1041_v48, %v1016_v62  ;;  %v418_v62 = vld [vmem:[%s17673_s25 + $0xa8] sm:$0xff]  ;;  %v443_v48 = vld [vmem:[%s17673_s25 + $0x170] sm:$0xff] }
 0x575   : > { %8542 = vmatprep.subr.bf16.mxu0 %v16987_v18  ;;  %10858 = vmatprep.subr.bf16.mxu1 %v16990_v59  ;;  %v1066_v18 = vld [vmem:[%s17673_s25 + $0x14e8] sm:$0xff]  ;;  %v1091_v59 = vld [vmem:[%s17673_s25 + $0x15b0] sm:$0xff] }
 0x576   : > { %8269 = vmatmul.mubr.bf16.gmra.mrb[32].mxu0 %v19557_v8  ;;  %10585 = vmatmul.mubr.bf16.gmra.mrb[64].mxu1 %v19365_v37  ;;  %v915_v37 = vld [vmem:[%s17673_s25 + $0x1030] sm:$0xff]  ;;  %v19607_v52 = vpack.c.bf16 %v1091_v59, %v1066_v18  ;;  %v468_v18 = vld [vmem:[%s17673_s25 + $0x238] sm:$0xff]  ;;  %v493_v59 = vld [vmem:[%s17673_s25 + $0x300] sm:$0xff] }
 0x577   : > { %8278 = vmatprep.mubr.bf16.mxu0 %v19559_v53  ;;  %10594 = vmatprep.mubr.bf16.mxu1 %v19367_v11  ;;  %v940_v11 = vld [vmem:[%s17673_s25 + $0x10f8] sm:$0xff] }
 0x578   : > { %v19581_v12 = vpack.c.bf16 %v940_v11, %v915_v37  ;;  %v19619_v11 = vpack.c.bf16 %v1141_v0, %v1116_v29  ;;  %v16988_v29 = vld [vmem:[#allocation4 + $0x1408] ss:$16 sps:$4 sm:$0xff]   ;;  %v19655_v0 = vpack.c.bf16 %v493_v59, %v468_v18  ;;  %v17008_v59 = vld [vmem:[#allocation4 + $0x146c] ss:$16 sps:$4 sm:$0xff]  }
 0x579   : > { %v17000_v18 = vld [vmem:[#allocation4 + $0x1448] ss:$16 sps:$4 sm:$0xff]  }
 0x57e   : > { %8279 = vmatmul.mubr.bf16.gmra.mrb[36].mxu0 %v19569_v42  ;;  %10595 = vmatmul.mubr.bf16.gmra.mrb[68].mxu1 %v19377_v32  ;;  %v965_v32 = vld [vmem:[%s17673_s25 + $0x11c0] sm:$0xff] }
 0x57f   : > { %8288 = vmatprep.mubr.bf16.mxu0 %v19571_v57  ;;  %10604 = vmatprep.mubr.bf16.mxu1 %v19379_v19  ;;  %v990_v19 = vld [vmem:[%s17673_s25 + $0x1288] sm:$0xff] }
 0x580   : > { %v19593_v16 = vpack.c.bf16 %v990_v19, %v965_v32  ;;  %v19631_v19 = vpack.c.bf16 %v1191_v51, %v1166_v13  ;;  %v16991_v13 = vld [vmem:[#allocation4 + $0x1620] ss:$16 sps:$4 sm:$0xff]   ;;  %v16994_v51 = vld [vmem:[#allocation4 + $0x1428] ss:$16 sps:$4 sm:$0xff]  }
 0x586   : > { %8289 = vmatmul.mubr.bf16.gmra.mrb[40].mxu0 %v19581_v12  ;;  %10605 = vmatmul.mubr.bf16.gmra.mrb[72].mxu1 %v19389_v45  ;;  %v1015_v45 = vld [vmem:[%s17673_s25 + $0x1350] sm:$0xff] }
 0x587   : > { %8298 = vmatprep.mubr.bf16.mxu0 %v19583_v28  ;;  %10614 = vmatprep.mubr.bf16.mxu1 %v19391_v55  ;;  %v1040_v55 = vld [vmem:[%s17673_s25 + $0x1418] sm:$0xff] }
 0x588   : > { %v19605_v60 = vpack.c.bf16 %v1040_v55, %v1015_v45  ;;  %v19643_v55 = vpack.c.bf16 %v443_v48, %v418_v62  ;;  %v16999_v62 = vld [vmem:[#allocation4 + $0x1644] ss:$16 sps:$4 sm:$0xff]   ;;  %v17002_v48 = vld [vmem:[#allocation4 + $0x144c] ss:$16 sps:$4 sm:$0xff]  }
 0x58e   : > { %8299 = vmatmul.mubr.bf16.gmra.mrb[44].mxu0 %v19593_v16  ;;  %10615 = vmatmul.mubr.bf16.gmra.mrb[76].mxu1 %v19401_v6  ;;  %v1065_v6 = vld [vmem:[%s17673_s25 + $0x14e0] sm:$0xff] }
 0x58f   : > { %8308 = vmatprep.mubr.bf16.mxu0 %v19595_v24  ;;  %10624 = vmatprep.mubr.bf16.mxu1 %v19403_v20  ;;  %v1090_v20 = vld [vmem:[%s17673_s25 + $0x15a8] sm:$0xff] }
 0x590   : > { %v19617_v37 = vpack.c.bf16 %v1090_v20, %v1065_v6  ;;  %v16985_v20 = vld [vmem:[#allocation4 + $0x1600] ss:$16 sps:$4 sm:$0xff]  }
 0x596   : > { %8309 = vmatmul.mubr.bf16.gmra.mrb[48].mxu0 %v19605_v60  ;;  %10625 = vmatmul.mubr.bf16.gmra.mrb[80].mxu1 %v19413_v23  ;;  %v1115_v23 = vld [vmem:[%s17673_s25 + $0x1670] sm:$0xff] }
 0x597   : > { %8318 = vmatprep.mubr.bf16.mxu0 %v19607_v52  ;;  %10634 = vmatprep.mubr.bf16.mxu1 %v19415_v38  ;;  %v1140_v38 = vld [vmem:[%s17673_s25 + $0x1738] sm:$0xff] }
 0x598   : > { %v19629_v32 = vpack.c.bf16 %v1140_v38, %v1115_v23  ;;  %v16993_v23 = vld [vmem:[#allocation4 + $0x1624] ss:$16 sps:$4 sm:$0xff]   ;;  %v16996_v38 = vld [vmem:[#allocation4 + $0x142c] ss:$16 sps:$4 sm:$0xff]  }
 0x59e   : > { %8319 = vmatmul.mubr.bf16.gmra.mrb[52].mxu0 %v19617_v37  ;;  %10635 = vmatmul.mubr.bf16.gmra.mrb[84].mxu1 %v19425_v46  ;;  %v1165_v46 = vld [vmem:[%s17673_s25 + $0x1800] sm:$0xff] }
 0x59f   : > { %8328 = vmatprep.mubr.bf16.mxu0 %v19619_v11  ;;  %10644 = vmatprep.mubr.bf16.mxu1 %v19427_v25  ;;  %v1190_v25 = vld [vmem:[%s17673_s25 + $0x18c8] sm:$0xff] }
 0x5a0   : > { %v19641_v45 = vpack.c.bf16 %v1190_v25, %v1165_v46  ;;  %v518_v46 = vld [vmem:[%s17673_s25 + $0x3c8] sm:$0xff]  ;;  %v543_v25 = vld [vmem:[%s17673_s25 + $0x490] sm:$0xff] }
 0x5a6   : > { %8329 = vmatmul.mubr.bf16.gmra.mrb[56].mxu0 %v19629_v32  ;;  %10645 = vmatmul.mubr.bf16.gmra.mrb[88].mxu1 %v19437_v15  ;;  %v417_v15 = vld [vmem:[%s17673_s25 + $0xa0] sm:$0xff] }
 0x5a7   : > { %8338 = vmatprep.mubr.bf16.mxu0 %v19631_v19  ;;  %10654 = vmatprep.mubr.bf16.mxu1 %v19439_v14  ;;  %v442_v14 = vld [vmem:[%s17673_s25 + $0x168] sm:$0xff] }
 0x5a8   : > { %v19653_v6 = vpack.c.bf16 %v442_v14, %v417_v15  ;;  %v16997_v14 = vld [vmem:[#allocation4 + $0x1640] ss:$16 sps:$4 sm:$0xff]  }
 0x5ae   : > { %8339 = vmatmul.mubr.bf16.gmra.mrb[60].mxu0 %v19641_v45  ;;  %10655 = vmatmul.mubr.bf16.gmra.mrb[92].mxu1 %v19449_v44  ;;  %v467_v44 = vld [vmem:[%s17673_s25 + $0x230] sm:$0xff] }
 0x5af   : > { %8381 = vmatprep.mubr.bf16.mxu0 %v19643_v55  ;;  %10697 = vmatprep.mubr.bf16.mxu1 %v19451_v50  ;;  %v492_v50 = vld [vmem:[%s17673_s25 + $0x2f8] sm:$0xff] }
 0x5b0   : > { %v19665_v15 = vpack.c.bf16 %v492_v50, %v467_v44  ;;  %v17003_v44 = vld [vmem:[#allocation4 + $0x1660] ss:$16 sps:$4 sm:$0xff]   ;;  %v17006_v50 = vld [vmem:[#allocation4 + $0x1468] ss:$16 sps:$4 sm:$0xff]  }
 0x5b6   : > { %8382 = vmatmul.mubr.bf16.vlgmr.msra.gmra.mrb[0].mxu0 %v19653_v6  ;;  %10698 = vmatmul.mubr.bf16.vlgmr.msra.gmra.mrb[32].mxu1 %v19461_v1  ;;  %v19667_v1 = vpack.c.bf16 %v543_v25, %v518_v46  ;;  %v17012_v25 = vld [vmem:[#allocation4 + $0x1488] ss:$16 sps:$4 sm:$0xff]  }
 0x5b7   : > { %8543 = vmatpush1.bf16.msra.mxu0 %v16985_v20  ;;  %10859 = vmatpush1.bf16.msra.mxu1 %v16988_v29  ;;  %v517_v20 = vld [vmem:[%s17673_s25 + $0x3c0] sm:$0xff]  ;;  %v542_v29 = vld [vmem:[%s17673_s25 + $0x488] sm:$0xff] }
 0x5b8   : > { %8391 = vmatprep.mubr.bf16.mxu0 %v19655_v0  ;;  %10707 = vmatprep.mubr.bf16.mxu1 %v19463_v30  ;;  %v17005_v30 = vld [vmem:[#allocation4 + $0x1664] ss:$16 sps:$4 sm:$0xff]   ;;  %v19677_v46 = vpack.c.bf16 %v542_v29, %v517_v20  ;;  %v17015_v20 = vld [vmem:[#allocation4 + $0x16a0] ss:$16 sps:$4 sm:$0xff]   ;;  %v17018_v29 = vld [vmem:[#allocation4 + $0x14a8] ss:$16 sps:$4 sm:$0xff]  }
 0x5b9   : > { %8544 = vmatprep.subr.bf16.mxu0 %v16993_v23  ;;  %10860 = vmatprep.subr.bf16.mxu1 %v16996_v38  ;;  %v568_v23 = vld [vmem:[%s17673_s25 + $0x558] sm:$0xff]  ;;  %v593_v38 = vld [vmem:[%s17673_s25 + $0x620] sm:$0xff] }
 0x5bb   : > { %8545 = vmatpush1.bf16.msra.mxu0 %v16991_v13  ;;  %10861 = vmatpush1.bf16.msra.mxu1 %v16994_v51  ;;  %v17011_v13 = vld [vmem:[#allocation4 + $0x1684] ss:$16 sps:$4 sm:$0xff]   ;;  %v17014_v51 = vld [vmem:[#allocation4 + $0x148c] ss:$16 sps:$4 sm:$0xff]  }
 0x5bc   : > { %8546 = vmatprep.subr.bf16.mxu0 %v16999_v62  ;;  %10862 = vmatprep.subr.bf16.mxu1 %v17002_v48  ;;  %v17017_v62 = vld [vmem:[#allocation4 + $0x16a4] ss:$16 sps:$4 sm:$0xff]   ;;  %v17020_v48 = vld [vmem:[#allocation4 + $0x14ac] ss:$16 sps:$4 sm:$0xff]  }
 0x5be   : > { %8392 = vmatmul.mubr.bf16.gmra.mrb[4].mxu0 %v19665_v15  ;;  %10708 = vmatmul.mubr.bf16.gmra.mrb[36].mxu1 %v19473_v58  ;;  %v19679_v58 = vpack.c.bf16 %v593_v38, %v568_v23  ;;  %v17023_v23 = vld [vmem:[#allocation4 + $0x16c4] ss:$16 sps:$4 sm:$0xff]   ;;  %v17026_v38 = vld [vmem:[#allocation4 + $0x14cc] ss:$16 sps:$4 sm:$0xff]  }
 0x5bf   : > { %8401 = vmatprep.mubr.bf16.mxu0 %v19667_v1  ;;  %10717 = vmatprep.mubr.bf16.mxu1 %v19475_v40  ;;  %v17009_v40 = vld [vmem:[#allocation4 + $0x1680] ss:$16 sps:$4 sm:$0xff]  }
 0x5c0   : > { %8547 = vmatpush1.bf16.msra.mxu0 %v16997_v14  ;;  %10863 = vmatpush1.bf16.msra.mxu1 %v17000_v18  ;;  %v567_v14 = vld [vmem:[%s17673_s25 + $0x550] sm:$0xff]  ;;  %v592_v18 = vld [vmem:[%s17673_s25 + $0x618] sm:$0xff] }
 0x5c1   : > { %8548 = vmatprep.subr.bf16.mxu0 %v17005_v30  ;;  %10864 = vmatprep.subr.bf16.mxu1 %v17008_v59  ;;  %v618_v30 = vld [vmem:[%s17673_s25 + $0x6e8] sm:$0xff]  ;;  %v643_v59 = vld [vmem:[%s17673_s25 + $0x7b0] sm:$0xff] }
 0x5c4   : > { %8549 = vmatpush1.bf16.msra.mxu0 %v17003_v44  ;;  %10865 = vmatpush1.bf16.msra.mxu1 %v17006_v50  ;;  %v19689_v44 = vpack.c.bf16 %v592_v18, %v567_v14  ;;  %v17024_v50 = vld [vmem:[#allocation4 + $0x14c8] ss:$16 sps:$4 sm:$0xff]   ;;  %v17027_v14 = vld [vmem:[#allocation4 + $0x16e0] ss:$16 sps:$4 sm:$0xff]  }
 0x5c5   : > { %8550 = vmatprep.subr.bf16.mxu0 %v17011_v13  ;;  %10866 = vmatprep.subr.bf16.mxu1 %v17014_v51  ;;  %v17029_v13 = vld [vmem:[#allocation4 + $0x16e4] ss:$16 sps:$4 sm:$0xff]   ;;  %v17032_v51 = vld [vmem:[#allocation4 + $0x14ec] ss:$16 sps:$4 sm:$0xff]   ;;  %v17030_v18 = vld [vmem:[#allocation4 + $0x14e8] ss:$16 sps:$4 sm:$0xff]  }
 0x5c6   : > { %8402 = vmatmul.mubr.bf16.gmra.mrb[8].mxu0 %v19677_v46  ;;  %10718 = vmatmul.mubr.bf16.gmra.mrb[40].mxu1 %v19485_v3  ;;  %v19691_v3 = vpack.c.bf16 %v643_v59, %v618_v30  ;;  %v17035_v30 = vld [vmem:[#allocation4 + $0x1704] ss:$16 sps:$4 sm:$0xff]   ;;  %v17038_v59 = vld [vmem:[#allocation4 + $0x150c] ss:$16 sps:$4 sm:$0xff]  }
 0x5c7   : > { %8411 = vmatprep.mubr.bf16.mxu0 %v19679_v58  ;;  %10727 = vmatprep.mubr.bf16.mxu1 %v19487_v49  ;;  %v17021_v49 = vld [vmem:[#allocation4 + $0x16c0] ss:$16 sps:$4 sm:$0xff]  }
 0x5c8   : > { %8551 = vmatpush1.bf16.msra.mxu0 %v17009_v40  ;;  %10867 = vmatpush1.bf16.msra.mxu1 %v17012_v25  ;;  %v617_v40 = vld [vmem:[%s17673_s25 + $0x6e0] sm:$0xff]  ;;  %v642_v25 = vld [vmem:[%s17673_s25 + $0x7a8] sm:$0xff] }
 0x5c9   : > { %8552 = vmatprep.subr.bf16.mxu0 %v17017_v62  ;;  %10868 = vmatprep.subr.bf16.mxu1 %v17020_v48  ;;  %v668_v62 = vld [vmem:[%s17673_s25 + $0x878] sm:$0xff]  ;;  %v693_v48 = vld [vmem:[%s17673_s25 + $0x940] sm:$0xff] }
 0x5cc   : > { %8553 = vmatpush1.bf16.msra.mxu0 %v17015_v20  ;;  %10869 = vmatpush1.bf16.msra.mxu1 %v17018_v29  ;;  %v19701_v20 = vpack.c.bf16 %v642_v25, %v617_v40  ;;  %v17036_v29 = vld [vmem:[#allocation4 + $0x1508] ss:$16 sps:$4 sm:$0xff]   ;;  %v17039_v40 = vld [vmem:[#allocation4 + $0x1720] ss:$16 sps:$4 sm:$0xff]  }
 0x5cd   : > { %8554 = vmatprep.subr.bf16.mxu0 %v17023_v23  ;;  %10870 = vmatprep.subr.bf16.mxu1 %v17026_v38  ;;  %v17041_v23 = vld [vmem:[#allocation4 + $0x1724] ss:$16 sps:$4 sm:$0xff]   ;;  %v17044_v38 = vld [vmem:[#allocation4 + $0x152c] ss:$16 sps:$4 sm:$0xff]   ;;  %v17042_v25 = vld [vmem:[#allocation4 + $0x1528] ss:$16 sps:$4 sm:$0xff]  }
 0x5ce   : > { %8412 = vmatmul.mubr.bf16.gmra.mrb[12].mxu0 %v19689_v44  ;;  %10728 = vmatmul.mubr.bf16.gmra.mrb[44].mxu1 %v19497_v7  ;;  %v19703_v7 = vpack.c.bf16 %v693_v48, %v668_v62  ;;  %v17047_v62 = vld [vmem:[#allocation4 + $0x1744] ss:$16 sps:$4 sm:$0xff]   ;;  %v17050_v48 = vld [vmem:[#allocation4 + $0x154c] ss:$16 sps:$4 sm:$0xff]  }
 0x5cf   : > { %8421 = vmatprep.mubr.bf16.mxu0 %v19691_v3  ;;  %10737 = vmatprep.mubr.bf16.mxu1 %v19499_v26  ;;  %v17033_v26 = vld [vmem:[#allocation4 + $0x1700] ss:$16 sps:$4 sm:$0xff]  }
 0x5d0   : > { %8555 = vmatpush1.bf16.msra.mxu0 %v17021_v49  ;;  %10871 = vmatpush1.bf16.msra.mxu1 %v17024_v50  ;;  %v667_v49 = vld [vmem:[%s17673_s25 + $0x870] sm:$0xff]  ;;  %v692_v50 = vld [vmem:[%s17673_s25 + $0x938] sm:$0xff] }
 0x5d1   : > { %8556 = vmatprep.subr.bf16.mxu0 %v17029_v13  ;;  %10872 = vmatprep.subr.bf16.mxu1 %v17032_v51  ;;  %v718_v13 = vld [vmem:[%s17673_s25 + $0xa08] sm:$0xff]  ;;  %v743_v51 = vld [vmem:[%s17673_s25 + $0xad0] sm:$0xff] }
 0x5d4   : > { %8557 = vmatpush1.bf16.msra.mxu0 %v17027_v14  ;;  %10873 = vmatpush1.bf16.msra.mxu1 %v17030_v18  ;;  %v19713_v14 = vpack.c.bf16 %v692_v50, %v667_v49  ;;  %v17048_v18 = vld [vmem:[#allocation4 + $0x1548] ss:$16 sps:$4 sm:$0xff]   ;;  %v17051_v49 = vld [vmem:[#allocation4 + $0x1760] ss:$16 sps:$4 sm:$0xff]  }
 0x5d5   : > { %8558 = vmatprep.subr.bf16.mxu0 %v17035_v30  ;;  %10874 = vmatprep.subr.bf16.mxu1 %v17038_v59  ;;  %v17053_v30 = vld [vmem:[#allocation4 + $0x1764] ss:$16 sps:$4 sm:$0xff]   ;;  %v17056_v59 = vld [vmem:[#allocation4 + $0x156c] ss:$16 sps:$4 sm:$0xff]   ;;  %v17054_v50 = vld [vmem:[#allocation4 + $0x1568] ss:$16 sps:$4 sm:$0xff]  }
 0x5d6   : > { %8422 = vmatmul.mubr.bf16.gmra.mrb[16].mxu0 %v19701_v20  ;;  %10738 = vmatmul.mubr.bf16.gmra.mrb[48].mxu1 %v19509_v54  ;;  %v19715_v54 = vpack.c.bf16 %v743_v51, %v718_v13  ;;  %v17059_v13 = vld [vmem:[#allocation4 + $0x1784] ss:$16 sps:$4 sm:$0xff]   ;;  %v17062_v51 = vld [vmem:[#allocation4 + $0x158c] ss:$16 sps:$4 sm:$0xff]  }
 0x5d7   : > { %8431 = vmatprep.mubr.bf16.mxu0 %v19703_v7  ;;  %10747 = vmatprep.mubr.bf16.mxu1 %v19511_v31  ;;  %v17045_v31 = vld [vmem:[#allocation4 + $0x1740] ss:$16 sps:$4 sm:$0xff]  }
 0x5d8   : > { %8559 = vmatpush1.bf16.msra.mxu0 %v17033_v26  ;;  %10875 = vmatpush1.bf16.msra.mxu1 %v17036_v29  ;;  %v717_v26 = vld [vmem:[%s17673_s25 + $0xa00] sm:$0xff]  ;;  %v742_v29 = vld [vmem:[%s17673_s25 + $0xac8] sm:$0xff] }
 0x5d9   : > { %8560 = vmatprep.subr.bf16.mxu0 %v17041_v23  ;;  %10876 = vmatprep.subr.bf16.mxu1 %v17044_v38  ;;  %v768_v23 = vld [vmem:[%s17673_s25 + $0xb98] sm:$0xff]  ;;  %v793_v38 = vld [vmem:[%s17673_s25 + $0xc60] sm:$0xff] }
 0x5dc   : > { %8561 = vmatpush1.bf16.msra.mxu0 %v17039_v40  ;;  %10877 = vmatpush1.bf16.msra.mxu1 %v17042_v25  ;;  %v19725_v40 = vpack.c.bf16 %v742_v29, %v717_v26  ;;  %v17060_v25 = vld [vmem:[#allocation4 + $0x1588] ss:$16 sps:$4 sm:$0xff]   ;;  %v17063_v26 = vld [vmem:[#allocation4 + $0x17a0] ss:$16 sps:$4 sm:$0xff]  }
 0x5dd   : > { %8562 = vmatprep.subr.bf16.mxu0 %v17047_v62  ;;  %10878 = vmatprep.subr.bf16.mxu1 %v17050_v48  ;;  %v17065_v62 = vld [vmem:[#allocation4 + $0x17a4] ss:$16 sps:$4 sm:$0xff]   ;;  %v17068_v48 = vld [vmem:[#allocation4 + $0x15ac] ss:$16 sps:$4 sm:$0xff]   ;;  %v17066_v29 = vld [vmem:[#allocation4 + $0x15a8] ss:$16 sps:$4 sm:$0xff]  }
 0x5de   : > { %8432 = vmatmul.mubr.bf16.gmra.mrb[20].mxu0 %v19713_v14  ;;  %10748 = vmatmul.mubr.bf16.gmra.mrb[52].mxu1 %v19521_v61  ;;  %v19727_v61 = vpack.c.bf16 %v793_v38, %v768_v23  ;;  %v17071_v23 = vld [vmem:[#allocation4 + $0x17c4] ss:$16 sps:$4 sm:$0xff]   ;;  %v17074_v38 = vld [vmem:[#allocation4 + $0x15cc] ss:$16 sps:$4 sm:$0xff]  }
 0x5df   : > { %8441 = vmatprep.mubr.bf16.mxu0 %v19715_v54  ;;  %10757 = vmatprep.mubr.bf16.mxu1 %v19523_v5  ;;  %v17057_v5 = vld [vmem:[#allocation4 + $0x1780] ss:$16 sps:$4 sm:$0xff]  }
 0x5e0   : > { %8563 = vmatpush1.bf16.msra.mxu0 %v17045_v31  ;;  %10879 = vmatpush1.bf16.msra.mxu1 %v17048_v18  ;;  %v767_v31 = vld [vmem:[%s17673_s25 + $0xb90] sm:$0xff]  ;;  %v792_v18 = vld [vmem:[%s17673_s25 + $0xc58] sm:$0xff] }
 0x5e1   : > { %8564 = vmatprep.subr.bf16.mxu0 %v17053_v30  ;;  %10880 = vmatprep.subr.bf16.mxu1 %v17056_v59  ;;  %v818_v30 = vld [vmem:[%s17673_s25 + $0xd28] sm:$0xff]  ;;  %v843_v59 = vld [vmem:[%s17673_s25 + $0xdf0] sm:$0xff] }
 0x5e4   : > { %8565 = vmatpush1.bf16.msra.mxu0 %v17051_v49  ;;  %10881 = vmatpush1.bf16.msra.mxu1 %v17054_v50  ;;  %v19737_v49 = vpack.c.bf16 %v792_v18, %v767_v31  ;;  %v17072_v50 = vld [vmem:[#allocation4 + $0x15c8] ss:$16 sps:$4 sm:$0xff]   ;;  %v17075_v31 = vld [vmem:[#allocation4 + $0x17e0] ss:$16 sps:$4 sm:$0xff]  }
 0x5e5   : > { %8566 = vmatprep.subr.bf16.mxu0 %v17059_v13  ;;  %10882 = vmatprep.subr.bf16.mxu1 %v17062_v51  ;;  %v17077_v13 = vld [vmem:[#allocation4 + $0x17e4] ss:$16 sps:$4 sm:$0xff]   ;;  %v17080_v51 = vld [vmem:[#allocation4 + $0x15ec] ss:$16 sps:$4 sm:$0xff]   ;;  %v17078_v18 = vld [vmem:[#allocation4 + $0x15e8] ss:$16 sps:$4 sm:$0xff]  }
 0x5e6   : > { %8442 = vmatmul.mubr.bf16.gmra.mrb[24].mxu0 %v19725_v40  ;;  %10758 = vmatmul.mubr.bf16.gmra.mrb[56].mxu1 %v19533_v22  ;;  %v19739_v22 = vpack.c.bf16 %v843_v59, %v818_v30  ;;  %v17083_v30 = vld [vmem:[#allocation4 + $0x1804] ss:$16 sps:$4 sm:$0xff]  }
 0x5e7   : > { %8451 = vmatprep.mubr.bf16.mxu0 %v19727_v61  ;;  %10767 = vmatprep.mubr.bf16.mxu1 %v19535_v17  ;;  %v17069_v17 = vld [vmem:[#allocation4 + $0x17c0] ss:$16 sps:$4 sm:$0xff]  }
 0x5e8   : > { %8567 = vmatpush1.bf16.msra.mxu0 %v17057_v5  ;;  %10883 = vmatpush1.bf16.msra.mxu1 %v17060_v25  ;;  %v817_v5 = vld [vmem:[%s17673_s25 + $0xd20] sm:$0xff]  ;;  %v842_v25 = vld [vmem:[%s17673_s25 + $0xde8] sm:$0xff] }
 0x5e9   : > { %8568 = vmatprep.subr.bf16.mxu0 %v17065_v62  ;;  %10884 = vmatprep.subr.bf16.mxu1 %v17068_v48  ;;  %v868_v62 = vld [vmem:[%s17673_s25 + $0xeb8] sm:$0xff]  ;;  %v893_v48 = vld [vmem:[%s17673_s25 + $0xf80] sm:$0xff]  ;;  %v19749_v59 = vpack.c.bf16 %v842_v25, %v817_v5 }
 0x5ec   : > { %8569 = vmatpush1.bf16.msra.mxu0 %v17063_v26  ;;  %10885 = vmatpush1.bf16.msra.mxu1 %v17066_v29  ;;  %v19751_v26 = vpack.c.bf16 %v893_v48, %v868_v62  ;;  %v892_v29 = vld [vmem:[%s17673_s25 + $0xf78] sm:$0xff]  ;;  %v1018_v62 = vld [vmem:[%s17673_s25 + $0x1368] sm:$0xff]  ;;  %v1043_v48 = vld [vmem:[%s17673_s25 + $0x1430] sm:$0xff] }
 0x5ed   : > { %8570 = vmatprep.subr.bf16.mxu0 %v17071_v23  ;;  %10886 = vmatprep.subr.bf16.mxu1 %v17074_v38  ;;  %v918_v23 = vld [vmem:[%s17673_s25 + $0x1048] sm:$0xff]  ;;  %v943_v38 = vld [vmem:[%s17673_s25 + $0x1110] sm:$0xff] }
 0x5ee   : > { %8452 = vmatmul.mubr.bf16.gmra.mrb[28].mxu0 %v19737_v49  ;;  %10768 = vmatmul.mubr.bf16.gmra.mrb[60].mxu1 %v19545_v41  ;;  %v17086_v41 = vld [vmem:[#allocation4 + $0x160c] ss:$16 sps:$4 sm:$0xff]  }
 0x5ef   : > { %8461 = vmatprep.mubr.bf16.mxu0 %v19739_v22  ;;  %10777 = vmatprep.mubr.bf16.mxu1 %v19547_v27  ;;  %v867_v27 = vld [vmem:[%s17673_s25 + $0xeb0] sm:$0xff] }
 0x5f0   : > { %8571 = vmatpush1.bf16.msra.mxu0 %v17069_v17  ;;  %10887 = vmatpush1.bf16.msra.mxu1 %v17072_v50  ;;  %v19761_v17 = vpack.c.bf16 %v892_v29, %v867_v27  ;;  %v19763_v50 = vpack.c.bf16 %v943_v38, %v918_v23  ;;  %v1118_v23 = vld [vmem:[%s17673_s25 + $0x1688] sm:$0xff]  ;;  %v1143_v38 = vld [vmem:[%s17673_s25 + $0x1750] sm:$0xff] }
 0x5f1   : > { %8572 = vmatprep.subr.bf16.mxu0 %v17077_v13  ;;  %10888 = vmatprep.subr.bf16.mxu1 %v17080_v51  ;;  %v968_v13 = vld [vmem:[%s17673_s25 + $0x11d8] sm:$0xff]  ;;  %v993_v51 = vld [vmem:[%s17673_s25 + $0x12a0] sm:$0xff] }
 0x5f2   : > { %v19775_v25 = vpack.c.bf16 %v993_v51, %v968_v13  ;;  %v1168_v13 = vld [vmem:[%s17673_s25 + $0x1818] sm:$0xff]  ;;  %v1193_v51 = vld [vmem:[%s17673_s25 + $0x18e0] sm:$0xff] }
 0x5f4   : > { %8573 = vmatpush1.bf16.msra.mxu0 %v17075_v31  ;;  %10889 = vmatpush1.bf16.msra.mxu1 %v17078_v18  ;;  %v19787_v18 = vpack.c.bf16 %v1043_v48, %v1018_v62  ;;  %v420_v62 = vld [vmem:[%s17673_s25 + $0xb8] sm:$0xff]  ;;  %v445_v48 = vld [vmem:[%s17673_s25 + $0x180] sm:$0xff] }
 0x5f5   : > { %8735 = vmatprep.subr.bf16.mxu0 %v17083_v30  ;;  %11051 = vmatprep.subr.bf16.mxu1 %v17086_v41  ;;  %v1068_v30 = vld [vmem:[%s17673_s25 + $0x14f8] sm:$0xff]  ;;  %v1093_v41 = vld [vmem:[%s17673_s25 + $0x15c0] sm:$0xff] }
 0x5f6   : > { %8462 = vmatmul.mubr.bf16.gmra.mrb[32].mxu0 %v19749_v59  ;;  %10778 = vmatmul.mubr.bf16.gmra.mrb[64].mxu1 %v19557_v8  ;;  %v917_v8 = vld [vmem:[%s17673_s25 + $0x1040] sm:$0xff]  ;;  %v19799_v29 = vpack.c.bf16 %v1093_v41, %v1068_v30  ;;  %v470_v30 = vld [vmem:[%s17673_s25 + $0x248] sm:$0xff]  ;;  %v495_v41 = vld [vmem:[%s17673_s25 + $0x310] sm:$0xff] }
 0x5f7   : > { %8471 = vmatprep.mubr.bf16.mxu0 %v19751_v26  ;;  %10787 = vmatprep.mubr.bf16.mxu1 %v19559_v53  ;;  %v942_v53 = vld [vmem:[%s17673_s25 + $0x1108] sm:$0xff] }
 0x5f8   : > { %v19773_v5 = vpack.c.bf16 %v942_v53, %v917_v8  ;;  %v19811_v53 = vpack.c.bf16 %v1143_v38, %v1118_v23  ;;  %v17084_v23 = vld [vmem:[#allocation4 + $0x1608] ss:$16 sps:$4 sm:$0xff]   ;;  %v19847_v38 = vpack.c.bf16 %v495_v41, %v470_v30  ;;  %v17099_v30 = vld [vmem:[#allocation4 + $0x1840] ss:$16 sps:$4 sm:$0xff]   ;;  %v17110_v41 = vld [vmem:[#allocation4 + $0x1864] ss:$16 sps:$4 sm:$0xff]  }
 0x5fe   : > { %8472 = vmatmul.mubr.bf16.gmra.mrb[36].mxu0 %v19761_v17  ;;  %10788 = vmatmul.mubr.bf16.gmra.mrb[68].mxu1 %v19569_v42  ;;  %v967_v42 = vld [vmem:[%s17673_s25 + $0x11d0] sm:$0xff] }
 0x5ff   : > { %8481 = vmatprep.mubr.bf16.mxu0 %v19763_v50  ;;  %10797 = vmatprep.mubr.bf16.mxu1 %v19571_v57  ;;  %v992_v57 = vld [vmem:[%s17673_s25 + $0x1298] sm:$0xff] }
 0x600   : > { %v19785_v31 = vpack.c.bf16 %v992_v57, %v967_v42  ;;  %v19823_v57 = vpack.c.bf16 %v1193_v51, %v1168_v13  ;;  %v17087_v13 = vld [vmem:[#allocation4 + $0x1628] ss:$16 sps:$4 sm:$0xff]  }
 0x601   : > { %v520_v51 = vld [vmem:[%s17673_s25 + $0x3d8] sm:$0xff] }
 0x606   : > { %8482 = vmatmul.mubr.bf16.gmra.mrb[40].mxu0 %v19773_v5  ;;  %10798 = vmatmul.mubr.bf16.gmra.mrb[72].mxu1 %v19581_v12  ;;  %v1017_v12 = vld [vmem:[%s17673_s25 + $0x1360] sm:$0xff] }
 0x607   : > { %8491 = vmatprep.mubr.bf16.mxu0 %v19775_v25  ;;  %10807 = vmatprep.mubr.bf16.mxu1 %v19583_v28  ;;  %v1042_v28 = vld [vmem:[%s17673_s25 + $0x1428] sm:$0xff] }
 0x608   : > { %v19797_v27 = vpack.c.bf16 %v1042_v28, %v1017_v12  ;;  %v19835_v28 = vpack.c.bf16 %v445_v48, %v420_v62  ;;  %v17095_v62 = vld [vmem:[#allocation4 + $0x164c] ss:$16 sps:$4 sm:$0xff]   ;;  %v17101_v48 = vld [vmem:[#allocation4 + $0x1844] ss:$16 sps:$4 sm:$0xff]  }
 0x60e   : > { %8492 = vmatmul.mubr.bf16.gmra.mrb[44].mxu0 %v19785_v31  ;;  %10808 = vmatmul.mubr.bf16.gmra.mrb[76].mxu1 %v19593_v16  ;;  %v1067_v16 = vld [vmem:[%s17673_s25 + $0x14f0] sm:$0xff] }
 0x60f   : > { %8501 = vmatprep.mubr.bf16.mxu0 %v19787_v18  ;;  %10817 = vmatprep.mubr.bf16.mxu1 %v19595_v24  ;;  %v1092_v24 = vld [vmem:[%s17673_s25 + $0x15b8] sm:$0xff] }
 0x610   : > { %v19809_v8 = vpack.c.bf16 %v1092_v24, %v1067_v16  ;;  %v17081_v24 = vld [vmem:[#allocation4 + $0x1800] ss:$16 sps:$4 sm:$0xff]  }
 0x616   : > { %8502 = vmatmul.mubr.bf16.gmra.mrb[48].mxu0 %v19797_v27  ;;  %10818 = vmatmul.mubr.bf16.gmra.mrb[80].mxu1 %v19605_v60  ;;  %v1117_v60 = vld [vmem:[%s17673_s25 + $0x1680] sm:$0xff] }
 0x617   : > { %8511 = vmatprep.mubr.bf16.mxu0 %v19799_v29  ;;  %10827 = vmatprep.mubr.bf16.mxu1 %v19607_v52  ;;  %v1142_v52 = vld [vmem:[%s17673_s25 + $0x1748] sm:$0xff] }
 0x618   : > { %v19821_v42 = vpack.c.bf16 %v1142_v52, %v1117_v60  ;;  %v17089_v60 = vld [vmem:[#allocation4 + $0x162c] ss:$16 sps:$4 sm:$0xff]   ;;  %v17092_v52 = vld [vmem:[#allocation4 + $0x1824] ss:$16 sps:$4 sm:$0xff]  }
 0x61e   : > { %8512 = vmatmul.mubr.bf16.gmra.mrb[52].mxu0 %v19809_v8  ;;  %10828 = vmatmul.mubr.bf16.gmra.mrb[84].mxu1 %v19617_v37  ;;  %v1167_v37 = vld [vmem:[%s17673_s25 + $0x1810] sm:$0xff] }
 0x61f   : > { %8521 = vmatprep.mubr.bf16.mxu0 %v19811_v53  ;;  %10837 = vmatprep.mubr.bf16.mxu1 %v19619_v11  ;;  %v1192_v11 = vld [vmem:[%s17673_s25 + $0x18d8] sm:$0xff] }
 0x620   : > { %v19833_v12 = vpack.c.bf16 %v1192_v11, %v1167_v37  ;;  %v17090_v37 = vld [vmem:[#allocation4 + $0x1820] ss:$16 sps:$4 sm:$0xff]  }
 0x621   : > { %v545_v11 = vld [vmem:[%s17673_s25 + $0x4a0] sm:$0xff] }
 0x626   : > { %8522 = vmatmul.mubr.bf16.gmra.mrb[56].mxu0 %v19821_v42  ;;  %10838 = vmatmul.mubr.bf16.gmra.mrb[88].mxu1 %v19629_v32  ;;  %v419_v32 = vld [vmem:[%s17673_s25 + $0xb0] sm:$0xff] }
 0x627   : > { %8531 = vmatprep.mubr.bf16.mxu0 %v19823_v57  ;;  %10847 = vmatprep.mubr.bf16.mxu1 %v19631_v19  ;;  %v444_v19 = vld [vmem:[%s17673_s25 + $0x178] sm:$0xff] }
 0x628   : > { %v19845_v16 = vpack.c.bf16 %v444_v19, %v419_v32  ;;  %v17093_v19 = vld [vmem:[#allocation4 + $0x1648] ss:$16 sps:$4 sm:$0xff]  }
 0x62e   : > { %8532 = vmatmul.mubr.bf16.gmra.mrb[60].mxu0 %v19833_v12  ;;  %10848 = vmatmul.mubr.bf16.gmra.mrb[92].mxu1 %v19641_v45  ;;  %v469_v45 = vld [vmem:[%s17673_s25 + $0x240] sm:$0xff] }
 0x62f   : > { %8574 = vmatprep.mubr.bf16.mxu0 %v19835_v28  ;;  %10890 = vmatprep.mubr.bf16.mxu1 %v19643_v55  ;;  %v494_v55 = vld [vmem:[%s17673_s25 + $0x308] sm:$0xff] }
 0x630   : > { %v19857_v32 = vpack.c.bf16 %v494_v55, %v469_v45  ;;  %v17096_v45 = vld [vmem:[#allocation4 + $0x1668] ss:$16 sps:$4 sm:$0xff]   ;;  %v17108_v55 = vld [vmem:[#allocation4 + $0x1860] ss:$16 sps:$4 sm:$0xff]  }
 0x636   : > { %8575 = vmatmul.mubr.bf16.vlgmr.msra.gmra.mrb[0].mxu0 %v19845_v16  ;;  %10891 = vmatmul.mubr.bf16.vlgmr.msra.gmra.mrb[32].mxu1 %v19653_v6  ;;  %v19859_v6 = vpack.c.bf16 %v545_v11, %v520_v51  ;;  %v17119_v51 = vld [vmem:[#allocation4 + $0x1884] ss:$16 sps:$4 sm:$0xff]   ;;  %v17117_v11 = vld [vmem:[#allocation4 + $0x1880] ss:$16 sps:$4 sm:$0xff]  }
 0x637   : > { %8736 = vmatpush1.bf16.msra.mxu0 %v17081_v24  ;;  %11052 = vmatpush1.bf16.msra.mxu1 %v17084_v23  ;;  %v519_v24 = vld [vmem:[%s17673_s25 + $0x3d0] sm:$0xff]  ;;  %v544_v23 = vld [vmem:[%s17673_s25 + $0x498] sm:$0xff] }
 0x638   : > { %8584 = vmatprep.mubr.bf16.mxu0 %v19847_v38  ;;  %10900 = vmatprep.mubr.bf16.mxu1 %v19655_v0  ;;  %v17098_v0 = vld [vmem:[#allocation4 + $0x166c] ss:$16 sps:$4 sm:$0xff]  }
 0x639   : > { %11053 = vmatprep.subr.bf16.mxu1 %v17089_v60  ;;  %8737 = vmatprep.subr.bf16.mxu0 %v17092_v52  ;;  %v570_v60 = vld [vmem:[%s17673_s25 + $0x568] sm:$0xff]  ;;  %v595_v52 = vld [vmem:[%s17673_s25 + $0x630] sm:$0xff] }
 0x63b   : > { %11054 = vmatpush1.bf16.msra.mxu1 %v17087_v13  ;;  %8738 = vmatpush1.bf16.msra.mxu0 %v17090_v37  ;;  %v17104_v13 = vld [vmem:[#allocation4 + $0x168c] ss:$16 sps:$4 sm:$0xff]   ;;  %v19869_v37 = vpack.c.bf16 %v544_v23, %v519_v24  ;;  %v17105_v24 = vld [vmem:[#allocation4 + $0x16a8] ss:$16 sps:$4 sm:$0xff]   ;;  %v17126_v23 = vld [vmem:[#allocation4 + $0x18a0] ss:$16 sps:$4 sm:$0xff]  }
 0x63c   : > { %11055 = vmatprep.subr.bf16.mxu1 %v17095_v62  ;;  %8739 = vmatprep.subr.bf16.mxu0 %v17101_v48  ;;  %v17107_v62 = vld [vmem:[#allocation4 + $0x16ac] ss:$16 sps:$4 sm:$0xff]   ;;  %v17128_v48 = vld [vmem:[#allocation4 + $0x18a4] ss:$16 sps:$4 sm:$0xff]  }
 0x63e   : > { %8585 = vmatmul.mubr.bf16.gmra.mrb[4].mxu0 %v19857_v32  ;;  %10901 = vmatmul.mubr.bf16.gmra.mrb[36].mxu1 %v19665_v15  ;;  %v19871_v15 = vpack.c.bf16 %v595_v52, %v570_v60  ;;  %v17113_v60 = vld [vmem:[#allocation4 + $0x16cc] ss:$16 sps:$4 sm:$0xff]   ;;  %v17137_v52 = vld [vmem:[#allocation4 + $0x18c4] ss:$16 sps:$4 sm:$0xff]  }
 0x63f   : > { %8594 = vmatprep.mubr.bf16.mxu0 %v19859_v6  ;;  %10910 = vmatprep.mubr.bf16.mxu1 %v19667_v1  ;;  %v17102_v1 = vld [vmem:[#allocation4 + $0x1688] ss:$16 sps:$4 sm:$0xff]  }
 0x640   : > { %11056 = vmatpush1.bf16.msra.mxu1 %v17093_v19  ;;  %8740 = vmatpush1.bf16.msra.mxu0 %v17099_v30  ;;  %v569_v19 = vld [vmem:[%s17673_s25 + $0x560] sm:$0xff]  ;;  %v594_v30 = vld [vmem:[%s17673_s25 + $0x628] sm:$0xff] }
 0x641   : > { %11057 = vmatprep.subr.bf16.mxu1 %v17098_v0  ;;  %8741 = vmatprep.subr.bf16.mxu0 %v17110_v41  ;;  %v620_v0 = vld [vmem:[%s17673_s25 + $0x6f8] sm:$0xff]  ;;  %v645_v41 = vld [vmem:[%s17673_s25 + $0x7c0] sm:$0xff] }
 0x644   : > { %11058 = vmatpush1.bf16.msra.mxu1 %v17096_v45  ;;  %8742 = vmatpush1.bf16.msra.mxu0 %v17108_v55  ;;  %v19881_v45 = vpack.c.bf16 %v594_v30, %v569_v19  ;;  %v17135_v55 = vld [vmem:[#allocation4 + $0x18c0] ss:$16 sps:$4 sm:$0xff]   ;;  %v17114_v19 = vld [vmem:[#allocation4 + $0x16e8] ss:$16 sps:$4 sm:$0xff]  }
 0x645   : > { %11059 = vmatprep.subr.bf16.mxu1 %v17104_v13  ;;  %8743 = vmatprep.subr.bf16.mxu0 %v17119_v51  ;;  %v17116_v13 = vld [vmem:[#allocation4 + $0x16ec] ss:$16 sps:$4 sm:$0xff]   ;;  %v17146_v51 = vld [vmem:[#allocation4 + $0x18e4] ss:$16 sps:$4 sm:$0xff]   ;;  %v17144_v30 = vld [vmem:[#allocation4 + $0x18e0] ss:$16 sps:$4 sm:$0xff]  }
 0x646   : > { %8595 = vmatmul.mubr.bf16.gmra.mrb[8].mxu0 %v19869_v37  ;;  %10911 = vmatmul.mubr.bf16.gmra.mrb[40].mxu1 %v19677_v46  ;;  %v19883_v46 = vpack.c.bf16 %v645_v41, %v620_v0  ;;  %v17122_v0 = vld [vmem:[#allocation4 + $0x170c] ss:$16 sps:$4 sm:$0xff]  }
 0x647   : > { %8604 = vmatprep.mubr.bf16.mxu0 %v19871_v15  ;;  %10920 = vmatprep.mubr.bf16.mxu1 %v19679_v58  ;;  %v17111_v58 = vld [vmem:[#allocation4 + $0x16c8] ss:$16 sps:$4 sm:$0xff]  }
 0x648   : > { %11060 = vmatpush1.bf16.msra.mxu1 %v17102_v1  ;;  %8744 = vmatpush1.bf16.msra.mxu0 %v17117_v11  ;;  %v619_v1 = vld [vmem:[%s17673_s25 + $0x6f0] sm:$0xff]  ;;  %v644_v11 = vld [vmem:[%s17673_s25 + $0x7b8] sm:$0xff] }
 0x649   : > { %11061 = vmatprep.subr.bf16.mxu1 %v17107_v62  ;;  %8745 = vmatprep.subr.bf16.mxu0 %v17128_v48  ;;  %v670_v62 = vld [vmem:[%s17673_s25 + $0x888] sm:$0xff]  ;;  %v695_v48 = vld [vmem:[%s17673_s25 + $0x950] sm:$0xff] }
 0x64a   : > { %v19895_v41 = vpack.c.bf16 %v695_v48, %v670_v62  ;;  %v744_v62 = vld [vmem:[%s17673_s25 + $0xad8] sm:$0xff]  ;;  %v770_v48 = vld [vmem:[%s17673_s25 + $0xba8] sm:$0xff] }
 0x64c   : > { %11062 = vmatpush1.bf16.msra.mxu1 %v17105_v24  ;;  %8746 = vmatpush1.bf16.msra.mxu0 %v17126_v23  ;;  %v17125_v24 = vld [vmem:[#allocation4 + $0x172c] ss:$16 sps:$4 sm:$0xff]   ;;  %v669_v23 = vld [vmem:[%s17673_s25 + $0x880] sm:$0xff] }
 0x64d   : > { %11063 = vmatprep.subr.bf16.mxu1 %v17113_v60  ;;  %8747 = vmatprep.subr.bf16.mxu0 %v17137_v52  ;;  %v694_v60 = vld [vmem:[%s17673_s25 + $0x948] sm:$0xff]  ;;  %v720_v52 = vld [vmem:[%s17673_s25 + $0xa18] sm:$0xff] }
 0x64e   : > { %8605 = vmatmul.mubr.bf16.gmra.mrb[12].mxu0 %v19881_v45  ;;  %10921 = vmatmul.mubr.bf16.gmra.mrb[44].mxu1 %v19689_v44  ;;  %v19893_v44 = vpack.c.bf16 %v644_v11, %v619_v1  ;;  %v719_v11 = vld [vmem:[%s17673_s25 + $0xa10] sm:$0xff] }
 0x64f   : > { %8614 = vmatprep.mubr.bf16.mxu0 %v19883_v46  ;;  %10930 = vmatprep.mubr.bf16.mxu1 %v19691_v3  ;;  %v17120_v3 = vld [vmem:[#allocation4 + $0x1708] ss:$16 sps:$4 sm:$0xff]  }
 0x650   : > { %11064 = vmatpush1.bf16.msra.mxu1 %v17111_v58  ;;  %8748 = vmatpush1.bf16.msra.mxu0 %v17135_v55  ;;  %v745_v58 = vld [vmem:[%s17673_s25 + $0xae0] sm:$0xff]  ;;  %v17123_v55 = vld [vmem:[#allocation4 + $0x1728] ss:$16 sps:$4 sm:$0xff]  }
 0x651   : > { %11065 = vmatprep.subr.bf16.mxu1 %v17116_v13  ;;  %8749 = vmatprep.subr.bf16.mxu0 %v17146_v51  ;;  %v17131_v13 = vld [vmem:[#allocation4 + $0x174c] ss:$16 sps:$4 sm:$0xff]   ;;  %v19905_v51 = vpack.c.bf16 %v694_v60, %v669_v23  ;;  %v19907_v1 = vpack.c.bf16 %v745_v58, %v720_v52  ;;  %v769_v23 = vld [vmem:[%s17673_s25 + $0xba0] sm:$0xff] }
 0x652   : > { %v794_v60 = vld [vmem:[%s17673_s25 + $0xc68] sm:$0xff]  ;;  %v820_v52 = vld [vmem:[%s17673_s25 + $0xd38] sm:$0xff]  ;;  %v845_v58 = vld [vmem:[%s17673_s25 + $0xe00] sm:$0xff] }
 0x654   : > { %11066 = vmatpush1.bf16.msra.mxu1 %v17114_v19  ;;  %8750 = vmatpush1.bf16.msra.mxu0 %v17144_v30  ;;  %v795_v19 = vld [vmem:[%s17673_s25 + $0xc70] sm:$0xff]  ;;  %v17132_v30 = vld [vmem:[#allocation4 + $0x1768] ss:$16 sps:$4 sm:$0xff]  }
 0x655   : > { %11067 = vmatprep.subr.bf16.mxu1 %v17122_v0  ;;  %v17140_v0 = vld [vmem:[#allocation4 + $0x178c] ss:$16 sps:$4 sm:$0xff]  }
 0x656   : > { %8615 = vmatmul.mubr.bf16.gmra.mrb[16].mxu0 %v19893_v44  ;;  %10931 = vmatmul.mubr.bf16.gmra.mrb[48].mxu1 %v19701_v20  ;;  %v17129_v20 = vld [vmem:[#allocation4 + $0x1748] ss:$16 sps:$4 sm:$0xff]  }
 0x657   : > { %8624 = vmatprep.mubr.bf16.mxu0 %v19895_v41  ;;  %10940 = vmatprep.mubr.bf16.mxu1 %v19703_v7  ;;  %v17134_v7 = vld [vmem:[#allocation4 + $0x176c] ss:$16 sps:$4 sm:$0xff]  }
 0x658   : > { %11068 = vmatpush1.bf16.msra.mxu1 %v17120_v3  ;;  %v19917_v3 = vpack.c.bf16 %v744_v62, %v719_v11  ;;  %v819_v11 = vld [vmem:[%s17673_s25 + $0xd30] sm:$0xff]  ;;  %v844_v62 = vld [vmem:[%s17673_s25 + $0xdf8] sm:$0xff] }
 0x659   : > { %11069 = vmatprep.subr.bf16.mxu1 %v17125_v24  ;;  %v19919_v24 = vpack.c.bf16 %v795_v19, %v770_v48  ;;  %v870_v48 = vld [vmem:[%s17673_s25 + $0xec8] sm:$0xff]  ;;  %v895_v19 = vld [vmem:[%s17673_s25 + $0xf90] sm:$0xff] }
 0x65c   : > { %11070 = vmatpush1.bf16.msra.mxu1 %v17123_v55  ;;  %v17141_v55 = vld [vmem:[#allocation4 + $0x17a8] ss:$16 sps:$4 sm:$0xff]  }
 0x65d   : > { %11071 = vmatprep.subr.bf16.mxu1 %v17131_v13  ;;  %v17149_v13 = vld [vmem:[#allocation4 + $0x17cc] ss:$16 sps:$4 sm:$0xff]  }
 0x65e   : > { %8625 = vmatmul.mubr.bf16.gmra.mrb[20].mxu0 %v19905_v51  ;;  %10941 = vmatmul.mubr.bf16.gmra.mrb[52].mxu1 %v19713_v14  ;;  %v17138_v14 = vld [vmem:[#allocation4 + $0x1788] ss:$16 sps:$4 sm:$0xff]  }
 0x65f   : > { %8634 = vmatprep.mubr.bf16.mxu0 %v19907_v1  ;;  %10950 = vmatprep.mubr.bf16.mxu1 %v19715_v54  ;;  %v17143_v54 = vld [vmem:[#allocation4 + $0x17ac] ss:$16 sps:$4 sm:$0xff]  }
 0x660   : > { %11072 = vmatpush1.bf16.msra.mxu1 %v17129_v20  ;;  %v19929_v20 = vpack.c.bf16 %v794_v60, %v769_v23  ;;  %v920_v23 = vld [vmem:[%s17673_s25 + $0x1058] sm:$0xff]  ;;  %v945_v60 = vld [vmem:[%s17673_s25 + $0x1120] sm:$0xff] }
 0x661   : > { %11073 = vmatprep.subr.bf16.mxu1 %v17134_v7  ;;  %v19931_v7 = vpack.c.bf16 %v845_v58, %v820_v52  ;;  %v19955_v58 = vpack.c.bf16 %v945_v60, %v920_v23  ;;  %v1120_v60 = vld [vmem:[%s17673_s25 + $0x1698] sm:$0xff] }
 0x664   : > { %11074 = vmatpush1.bf16.msra.mxu1 %v17132_v30  ;;  %v17150_v30 = vld [vmem:[#allocation4 + $0x17e8] ss:$16 sps:$4 sm:$0xff]  }
 0x665   : > { %11075 = vmatprep.subr.bf16.mxu1 %v17140_v0  ;;  %v17155_v0 = vld [vmem:[#allocation4 + $0x180c] ss:$16 sps:$4 sm:$0xff]  }
 0x666   : > { %8635 = vmatmul.mubr.bf16.gmra.mrb[24].mxu0 %v19917_v3  ;;  %10951 = vmatmul.mubr.bf16.gmra.mrb[56].mxu1 %v19725_v40  ;;  %v17147_v40 = vld [vmem:[#allocation4 + $0x17c8] ss:$16 sps:$4 sm:$0xff]  }
 0x667   : > { %8644 = vmatprep.mubr.bf16.mxu0 %v19919_v24  ;;  %10960 = vmatprep.mubr.bf16.mxu1 %v19727_v61  ;;  %v17152_v61 = vld [vmem:[#allocation4 + $0x17ec] ss:$16 sps:$4 sm:$0xff]  }
 0x668   : > { %11076 = vmatpush1.bf16.msra.mxu1 %v17138_v14  ;;  %v19941_v14 = vpack.c.bf16 %v844_v62, %v819_v11  ;;  %v1020_v11 = vld [vmem:[%s17673_s25 + $0x1378] sm:$0xff]  ;;  %v1045_v62 = vld [vmem:[%s17673_s25 + $0x1440] sm:$0xff] }
 0x669   : > { %11077 = vmatprep.subr.bf16.mxu1 %v17143_v54  ;;  %v19943_v54 = vpack.c.bf16 %v895_v19, %v870_v48  ;;  %v19979_v19 = vpack.c.bf16 %v1045_v62, %v1020_v11 }
 0x66c   : > { %11078 = vmatpush1.bf16.msra.mxu1 %v17141_v55  ;;  %v970_v55 = vld [vmem:[%s17673_s25 + $0x11e8] sm:$0xff] }
 0x66d   : > { %11079 = vmatprep.subr.bf16.mxu1 %v17149_v13  ;;  %v995_v13 = vld [vmem:[%s17673_s25 + $0x12b0] sm:$0xff] }
 0x66e   : > { %8645 = vmatmul.mubr.bf16.gmra.mrb[28].mxu0 %v19929_v20  ;;  %10961 = vmatmul.mubr.bf16.gmra.mrb[60].mxu1 %v19737_v49  ;;  %v869_v49 = vld [vmem:[%s17673_s25 + $0xec0] sm:$0xff] }
 0x66f   : > { %8654 = vmatprep.mubr.bf16.mxu0 %v19931_v7  ;;  %10970 = vmatprep.mubr.bf16.mxu1 %v19739_v22  ;;  %v894_v22 = vld [vmem:[%s17673_s25 + $0xf88] sm:$0xff] }
 0x670   : > { %11080 = vmatpush1.bf16.msra.mxu1 %v17147_v40  ;;  %v19953_v52 = vpack.c.bf16 %v894_v22, %v869_v49  ;;  %v17407_v49 = vmov 0.0|0.0  }
 0x671   : > { %11081 = vmatprep.subr.bf16.mxu1 %v17152_v61  ;;  %v19967_v61 = vpack.c.bf16 %v995_v13, %v970_v55  ;;  %13948 = vmatprep.subr.bf16.mxu0 %v17407_v49  ;;  %v1170_v13 = vld [vmem:[%s17673_s25 + $0x1828] sm:$0xff] }
 0x674   : > { %11082 = vmatpush1.bf16.msra.mxu1 %v17150_v30  ;;  %v1070_v30 = vld [vmem:[%s17673_s25 + $0x1508] sm:$0xff] }
 0x675   : > { %11244 = vmatprep.subr.bf16.mxu1 %v17155_v0  ;;  %v1095_v0 = vld [vmem:[%s17673_s25 + $0x15d0] sm:$0xff] }
 0x676   : > { %8655 = vmatmul.mubr.bf16.gmra.mrb[32].mxu0 %v19941_v14  ;;  %10971 = vmatmul.mubr.bf16.gmra.mrb[64].mxu1 %v19749_v59  ;;  %v919_v59 = vld [vmem:[%s17673_s25 + $0x1050] sm:$0xff]  ;;  %v19992_v23 = vpack.c.bf16 %v1095_v0, %v1070_v30 }
 0x677   : > { %8664 = vmatprep.mubr.bf16.mxu0 %v19943_v54  ;;  %10980 = vmatprep.mubr.bf16.mxu1 %v19751_v26  ;;  %v944_v26 = vld [vmem:[%s17673_s25 + $0x1118] sm:$0xff]  ;;  %v11566_v0 = vld [vmem:[#allocation7 + $0x8] sm:$0xff] }
 0x678   : > { %v19965_v40 = vpack.c.bf16 %v944_v26, %v919_v59  ;;  %v1145_v59 = vld [vmem:[%s17673_s25 + $0x1760] sm:$0xff] }
 0x679   : > { %v20004_v55 = vpack.c.bf16 %v1145_v59, %v1120_v60  ;;  %v11568_v59 = vld [vmem:[#allocation7 + $0x18] sm:$0xff] }
 0x67e   : > { %8665 = vmatmul.mubr.bf16.gmra.mrb[36].mxu0 %v19953_v52  ;;  %10981 = vmatmul.mubr.bf16.gmra.mrb[68].mxu1 %v19761_v17  ;;  %v969_v17 = vld [vmem:[%s17673_s25 + $0x11e0] sm:$0xff] }
 0x67f   : > { %8674 = vmatprep.mubr.bf16.mxu0 %v19955_v58  ;;  %10990 = vmatprep.mubr.bf16.mxu1 %v19763_v50  ;;  %v994_v50 = vld [vmem:[%s17673_s25 + $0x12a8] sm:$0xff] }
 0x680   : > { %v19977_v48 = vpack.c.bf16 %v994_v50, %v969_v17  ;;  %v1195_v17 = vld [vmem:[%s17673_s25 + $0x18f0] sm:$0xff] }
 0x681   : > { %v20016_v11 = vpack.c.bf16 %v1195_v17, %v1170_v13  ;;  %v17161_v13 = vld [vmem:[#allocation4 + $0x184c] ss:$16 sps:$4 sm:$0xff]  }
 0x686   : > { %8675 = vmatmul.mubr.bf16.gmra.mrb[40].mxu0 %v19965_v40  ;;  %10991 = vmatmul.mubr.bf16.gmra.mrb[72].mxu1 %v19773_v5  ;;  %v1019_v5 = vld [vmem:[%s17673_s25 + $0x1370] sm:$0xff] }
 0x687   : > { %8684 = vmatprep.mubr.bf16.mxu0 %v19967_v61  ;;  %11000 = vmatprep.mubr.bf16.mxu1 %v19775_v25  ;;  %v1044_v25 = vld [vmem:[%s17673_s25 + $0x1438] sm:$0xff] }
 0x688   : > { %v19990_v22 = vpack.c.bf16 %v1044_v25, %v1019_v5  ;;  %v17408_v5 = vmov 0   ;;  %v446_v25 = vld [vmem:[%s17673_s25 + $0x188] sm:$0xff] }
 0x68e   : > { %8685 = vmatmul.mubr.bf16.gmra.mrb[44].mxu0 %v19977_v48  ;;  %11001 = vmatmul.mubr.bf16.gmra.mrb[76].mxu1 %v19785_v31  ;;  %v1069_v31 = vld [vmem:[%s17673_s25 + $0x1500] sm:$0xff] }
 0x68f   : > { %8694 = vmatprep.mubr.bf16.mxu0 %v19979_v19  ;;  %11010 = vmatprep.mubr.bf16.mxu1 %v19787_v18  ;;  %v1094_v18 = vld [vmem:[%s17673_s25 + $0x15c8] sm:$0xff] }
 0x690   : > { %v20002_v26 = vpack.c.bf16 %v1094_v18, %v1069_v31  ;;  %v17153_v31 = vld [vmem:[#allocation4 + $0x1808] ss:$16 sps:$4 sm:$0xff]   ;;  %v17158_v18 = vld [vmem:[#allocation4 + $0x182c] ss:$16 sps:$4 sm:$0xff]  }
 0x696   : > { %8695 = vmatmul.mubr.bf16.gmra.mrb[48].mxu0 %v19990_v22  ;;  %11011 = vmatmul.mubr.bf16.gmra.mrb[80].mxu1 %v19797_v27  ;;  %v1119_v27 = vld [vmem:[%s17673_s25 + $0x1690] sm:$0xff] }
 0x697   : > { %8704 = vmatprep.mubr.bf16.mxu0 %v19992_v23  ;;  %11020 = vmatprep.mubr.bf16.mxu1 %v19799_v29  ;;  %v1144_v29 = vld [vmem:[%s17673_s25 + $0x1758] sm:$0xff] }
 0x698   : > { %v20014_v50 = vpack.c.bf16 %v1144_v29, %v1119_v27  ;;  %v496_v27 = vld [vmem:[%s17673_s25 + $0x318] sm:$0xff] }
 0x699   : > { %v17156_v29 = vld [vmem:[#allocation4 + $0x1828] ss:$16 sps:$4 sm:$0xff]  }
 0x69e   : > { %8705 = vmatmul.mubr.bf16.gmra.mrb[52].mxu0 %v20002_v26  ;;  %11021 = vmatmul.mubr.bf16.gmra.mrb[84].mxu1 %v19809_v8  ;;  %v1169_v8 = vld [vmem:[%s17673_s25 + $0x1820] sm:$0xff] }
 0x69f   : > { %8714 = vmatprep.mubr.bf16.mxu0 %v20004_v55  ;;  %11030 = vmatprep.mubr.bf16.mxu1 %v19811_v53  ;;  %v1194_v53 = vld [vmem:[%s17673_s25 + $0x18e8] sm:$0xff] }
 0x6a0   : > { %v20024_v62 = vpack.c.bf16 %v1194_v53, %v1169_v8  ;;  %v11570_v53 = vld [vmem:[#allocation7 + $0x28] sm:$0xff] }
 0x6a6   : > { %8715 = vmatmul.mubr.bf16.gmra.mrb[56].mxu0 %v20014_v50  ;;  %11031 = vmatmul.mubr.bf16.gmra.mrb[88].mxu1 %v19821_v42  ;;  %v421_v42 = vld [vmem:[%s17673_s25 + $0xc0] sm:$0xff] }
 0x6a7   : > { %8724 = vmatprep.mubr.bf16.mxu0 %v20016_v11  ;;  %11040 = vmatprep.mubr.bf16.mxu1 %v19823_v57  ;;  %v20032_v30 = vpack.c.bf16 %v446_v25, %v421_v42  ;;  %v11565_v57 = vld [vmem:[#allocation7] sm:$0xff]  ;;  %v17164_v25 = vld [vmem:[#allocation4 + $0x186c] ss:$16 sps:$4 sm:$0xff]  }
 0x6a8   : > { %v13949_v60 = vpack.c.bf16 %v11566_v0, %v11565_v57  ;;  %v17159_v42 = vld [vmem:[#allocation4 + $0x1848] ss:$16 sps:$4 sm:$0xff]   ;;  %v11572_v0 = vld [vmem:[#allocation7 + $0x38] sm:$0xff] }
 0x6ae   : > { %8725 = vmatmul.mubr.bf16.gmra.mrb[60].mxu0 %v20024_v62  ;;  %11041 = vmatmul.mubr.bf16.gmra.mrb[92].mxu1 %v19833_v12  ;;  %v11567_v12 = vld [vmem:[#allocation7 + $0x10] sm:$0xff] }
 0x6af   : > { %8767 = vmatprep.mubr.bf16.mxu0 %v17408_v5  ;;  %11083 = vmatprep.mubr.bf16.mxu1 %v19835_v28  ;;  %v471_v28 = vld [vmem:[%s17673_s25 + $0x250] sm:$0xff]  ;;  %v13952_v17 = vpack.c.bf16 %v11568_v59, %v11567_v12  ;;  %v17167_v12 = vld [vmem:[#allocation4 + $0x188c] ss:$16 sps:$4 sm:$0xff]  }
 0x6b0   : > { %v20040_v8 = vpack.c.bf16 %v496_v27, %v471_v28  ;;  %v11574_v27 = vld [vmem:[#allocation7 + $0x48] sm:$0xff] }
 0x6b6   : > { %8768 = vmatmul.mubr.bf16.vlgmr.msra.gmra.mrb[0].mxu0 %v20032_v30  ;;  %11084 = vmatmul.mubr.bf16.vlgmr.msra.gmra.mrb[32].mxu1 %v19845_v16  ;;  %v11569_v16 = vld [vmem:[#allocation7 + $0x20] sm:$0xff] }
 0x6b7   : > { %11245 = vmatpush1.bf16.msra.mxu1 %v17153_v31  ;;  %8777 = vmatprep.mubr.bf16.mxu0 %v17408_v5  ;;  %v13955_v57 = vpack.c.bf16 %v11570_v53, %v11569_v16  ;;  %v521_v31 = vld [vmem:[%s17673_s25 + $0x3e0] sm:$0xff]  ;;  %v571_v53 = vld [vmem:[%s17673_s25 + $0x570] sm:$0xff] }
 0x6b8   : > { %11093 = vmatprep.mubr.bf16.mxu1 %v19847_v38  ;;  %11246 = vmatprep.subr.bf16.mxu1 %v17158_v18  ;;  %v11571_v38 = vld [vmem:[#allocation7 + $0x30] sm:$0xff]  ;;  %v546_v18 = vld [vmem:[%s17673_s25 + $0x4a8] sm:$0xff]  ;;  %v11576_v16 = vld [vmem:[#allocation7 + $0x58] sm:$0xff] }
 0x6b9   : > { %13950 = vmatpush1.bf16.msra.mxu0 %v13949_v60  ;;  %v17162_v60 = vld [vmem:[#allocation4 + $0x1868] ss:$16 sps:$4 sm:$0xff]   ;;  %v13958_v59 = vpack.c.bf16 %v11572_v0, %v11571_v38  ;;  %v20050_v28 = vpack.c.bf16 %v546_v18, %v521_v31  ;;  %v11578_v31 = vld [vmem:[#allocation7 + $0x68] sm:$0xff] }
 0x6ba   : > { %13951 = vmatprep.subr.bf16.mxu0 %v17407_v49  ;;  %v17176_v18 = vld [vmem:[#allocation4 + $0x18ec] ss:$16 sps:$4 sm:$0xff]  }
 0x6bb   : > { %11247 = vmatpush1.bf16.msra.mxu1 %v17156_v29  ;;  %v17170_v29 = vld [vmem:[#allocation4 + $0x18ac] ss:$16 sps:$4 sm:$0xff]  }
 0x6bc   : > { %11248 = vmatprep.subr.bf16.mxu1 %v17161_v13 }
 0x6bd   : > { %13953 = vmatpush1.bf16.msra.mxu0 %v13952_v17  ;;  %v11575_v17 = vld [vmem:[#allocation7 + $0x50] sm:$0xff] }
 0x6be   : > { %8778 = vmatmul.mubr.bf16.gmra.mrb[4].mxu0 %v20040_v8  ;;  %11094 = vmatmul.mubr.bf16.gmra.mrb[36].mxu1 %v19857_v32  ;;  %v11573_v32 = vld [vmem:[#allocation7 + $0x40] sm:$0xff]  ;;  %v13964_v38 = vpack.c.bf16 %v11576_v16, %v11575_v17  ;;  %v11582_v17 = vld [vmem:[#allocation7 + $0x88] sm:$0xff]  ;;  %v11583_v16 = vld [vmem:[#allocation7 + $0x90] sm:$0xff] }
 0x6bf   : > { %8787 = vmatprep.mubr.bf16.mxu0 %v17408_v5  ;;  %11103 = vmatprep.mubr.bf16.mxu1 %v19859_v6  ;;  %v17165_v6 = vld [vmem:[#allocation4 + $0x1888] ss:$16 sps:$4 sm:$0xff]   ;;  %v13961_v13 = vpack.c.bf16 %v11574_v27, %v11573_v32  ;;  %v621_v32 = vld [vmem:[%s17673_s25 + $0x700] sm:$0xff] }
 0x6c0   : > { %11249 = vmatpush1.bf16.msra.mxu1 %v17159_v42  ;;  %13954 = vmatprep.subr.bf16.mxu0 %v17407_v49  ;;  %v596_v42 = vld [vmem:[%s17673_s25 + $0x638] sm:$0xff]  ;;  %v646_v27 = vld [vmem:[%s17673_s25 + $0x7c8] sm:$0xff] }
 0x6c1   : > { %11250 = vmatprep.subr.bf16.mxu1 %v17164_v25  ;;  %13956 = vmatpush1.bf16.msra.mxu0 %v13955_v57  ;;  %v17168_v25 = vld [vmem:[#allocation4 + $0x18a8] ss:$16 sps:$4 sm:$0xff]   ;;  %v17173_v57 = vld [vmem:[#allocation4 + $0x18cc] ss:$16 sps:$4 sm:$0xff]   ;;  %v20060_v0 = vpack.c.bf16 %v596_v42, %v571_v53  ;;  %v671_v42 = vld [vmem:[%s17673_s25 + $0x890] sm:$0xff] }
 0x6c2   : > { %13957 = vmatprep.subr.bf16.mxu0 %v17407_v49  ;;  %v11584_v53 = vld [vmem:[#allocation7 + $0x98] sm:$0xff] }
 0x6c4   : > { %11251 = vmatpush1.bf16.msra.mxu1 %v17162_v60 }
 0x6c5   : > { %11252 = vmatprep.subr.bf16.mxu1 %v17167_v12  ;;  %13959 = vmatpush1.bf16.msra.mxu0 %v13958_v59  ;;  %v11579_v12 = vld [vmem:[#allocation7 + $0x70] sm:$0xff]  ;;  %v11580_v59 = vld [vmem:[#allocation7 + $0x78] sm:$0xff] }
 0x6c6   : > { %8788 = vmatmul.mubr.bf16.gmra.mrb[8].mxu0 %v20050_v28  ;;  %11104 = vmatmul.mubr.bf16.gmra.mrb[40].mxu1 %v19869_v37  ;;  %v11577_v37 = vld [vmem:[#allocation7 + $0x60] sm:$0xff] }
 0x6c7   : > { %8797 = vmatprep.mubr.bf16.mxu0 %v17408_v5  ;;  %11113 = vmatprep.mubr.bf16.mxu1 %v19871_v15  ;;  %v17171_v15 = vld [vmem:[#allocation4 + $0x18c8] ss:$16 sps:$4 sm:$0xff]   ;;  %v13967_v60 = vpack.c.bf16 %v11578_v31, %v11577_v37  ;;  %v11586_v37 = vld [vmem:[#allocation7 + $0xa8] sm:$0xff] }
 0x6c8   : > { %11253 = vmatpush1.bf16.msra.mxu1 %v17165_v6  ;;  %13960 = vmatprep.subr.bf16.mxu0 %v17407_v49  ;;  %v17174_v6 = vld [vmem:[#allocation4 + $0x18e8] ss:$16 sps:$4 sm:$0xff]  }
 0x6c9   : > { %11254 = vmatprep.subr.bf16.mxu1 %v17170_v29  ;;  %13962 = vmatpush1.bf16.msra.mxu0 %v13961_v13  ;;  %v13970_v29 = vpack.c.bf16 %v11580_v59, %v11579_v12  ;;  %v20070_v13 = vpack.c.bf16 %v646_v27, %v621_v32  ;;  %v746_v31 = vld [vmem:[%s17673_s25 + $0xae8] sm:$0xff]  ;;  %v796_v12 = vld [vmem:[%s17673_s25 + $0xc78] sm:$0xff] }
 0x6ca   : > { %13963 = vmatprep.subr.bf16.mxu0 %v17407_v49  ;;  %v11590_v27 = vld [vmem:[#allocation7 + $0xc8] sm:$0xff] }
 0x6cc   : > { %11255 = vmatpush1.bf16.msra.mxu1 %v17168_v25  ;;  %v696_v25 = vld [vmem:[%s17673_s25 + $0x958] sm:$0xff] }
 0x6cd   : > { %11256 = vmatprep.subr.bf16.mxu1 %v17173_v57  ;;  %13965 = vmatpush1.bf16.msra.mxu0 %v13964_v38  ;;  %v13976_v57 = vpack.c.bf16 %v11584_v53, %v11583_v16  ;;  %v20080_v38 = vpack.c.bf16 %v696_v25, %v671_v42  ;;  %v11594_v42 = vld [vmem:[#allocation7 + $0xe8] sm:$0xff] }
 0x6ce   : > { %8798 = vmatmul.mubr.bf16.gmra.mrb[12].mxu0 %v20060_v0  ;;  %11114 = vmatmul.mubr.bf16.gmra.mrb[44].mxu1 %v19881_v45  ;;  %v11581_v45 = vld [vmem:[#allocation7 + $0x80] sm:$0xff] }
 0x6cf   : > { %8807 = vmatprep.mubr.bf16.mxu0 %v17408_v5  ;;  %11123 = vmatprep.mubr.bf16.mxu1 %v19883_v46  ;;  %v13973_v46 = vpack.c.bf16 %v11582_v17, %v11581_v45  ;;  %v11592_v17 = vld [vmem:[#allocation7 + $0xd8] sm:$0xff]  ;;  %v946_v25 = vld [vmem:[%s17673_s25 + $0x1128] sm:$0xff] }
 0x6d0   : > { %11257 = vmatpush1.bf16.msra.mxu1 %v17171_v15  ;;  %13966 = vmatprep.subr.bf16.mxu0 %v17407_v49 }
 0x6d1   : > { %11258 = vmatprep.subr.bf16.mxu1 %v17176_v18  ;;  %13968 = vmatpush1.bf16.msra.mxu0 %v13967_v60  ;;  %v11588_v60 = vld [vmem:[#allocation7 + $0xb8] sm:$0xff] }
 0x6d2   : > { %13969 = vmatprep.subr.bf16.mxu0 %v17407_v49 }
 0x6d4   : > { %11259 = vmatpush1.bf16.msra.mxu1 %v17174_v6  ;;  %v846_v6 = vld [vmem:[%s17673_s25 + $0xe08] sm:$0xff] }
 0x6d5   : > { %13971 = vmatpush1.bf16.msra.mxu0 %v13970_v29 }
 0x6d6   : > { %8808 = vmatmul.mubr.bf16.gmra.mrb[16].mxu0 %v20070_v13  ;;  %11124 = vmatmul.mubr.bf16.gmra.mrb[48].mxu1 %v19893_v44  ;;  %v11585_v44 = vld [vmem:[#allocation7 + $0xa0] sm:$0xff] }
 0x6d7   : > { %8817 = vmatprep.mubr.bf16.mxu0 %v17408_v5  ;;  %11133 = vmatprep.mubr.bf16.mxu1 %v19895_v41  ;;  %v721_v41 = vld [vmem:[%s17673_s25 + $0xa20] sm:$0xff]  ;;  %v13979_v15 = vpack.c.bf16 %v11586_v37, %v11585_v44 }
 0x6d8   : > { %13972 = vmatprep.subr.bf16.mxu0 %v17407_v49  ;;  %v20090_v18 = vpack.c.bf16 %v746_v31, %v721_v41  ;;  %v11595_v41 = vld [vmem:[#allocation7 + $0xf0] sm:$0xff]  ;;  %v11596_v31 = vld [vmem:[#allocation7 + $0xf8] sm:$0xff] }
 0x6d9   : > { %13974 = vmatpush1.bf16.msra.mxu0 %v13973_v46  ;;  %v896_v46 = vld [vmem:[%s17673_s25 + $0xf98] sm:$0xff] }
 0x6da   : > { %13975 = vmatprep.subr.bf16.mxu0 %v17407_v49 }
 0x6dd   : > { %13977 = vmatpush1.bf16.msra.mxu0 %v13976_v57 }
 0x6de   : > { %8818 = vmatmul.mubr.bf16.gmra.mrb[20].mxu0 %v20080_v38  ;;  %11134 = vmatmul.mubr.bf16.gmra.mrb[52].mxu1 %v19905_v51  ;;  %v11587_v51 = vld [vmem:[#allocation7 + $0xb0] sm:$0xff] }
 0x6df   : > { %8827 = vmatprep.mubr.bf16.mxu0 %v17408_v5  ;;  %11143 = vmatprep.mubr.bf16.mxu1 %v19907_v1  ;;  %v771_v1 = vld [vmem:[%s17673_s25 + $0xbb0] sm:$0xff]  ;;  %v13982_v59 = vpack.c.bf16 %v11588_v60, %v11587_v51 }
 0x6e0   : > { %13978 = vmatprep.subr.bf16.mxu0 %v17407_v49  ;;  %v20099_v32 = vpack.c.bf16 %v796_v12, %v771_v1  ;;  %v1121_v1 = vld [vmem:[%s17673_s25 + $0x16a0] sm:$0xff] }
 0x6e1   : > { %13980 = vmatpush1.bf16.msra.mxu0 %v13979_v15  ;;  %v13994_v15 = vpack.c.bf16 %v11596_v31, %v11595_v41 }
 0x6e2   : > { %13981 = vmatprep.subr.bf16.mxu0 %v17407_v49 }
 0x6e5   : > { %13983 = vmatpush1.bf16.msra.mxu0 %v13982_v59  ;;  %v1196_v59 = vld [vmem:[%s17673_s25 + $0x18f8] sm:$0xff] }
 0x6e6   : > { %8828 = vmatmul.mubr.bf16.gmra.mrb[24].mxu0 %v20090_v18  ;;  %11144 = vmatmul.mubr.bf16.gmra.mrb[56].mxu1 %v19917_v3  ;;  %v11589_v3 = vld [vmem:[#allocation7 + $0xc0] sm:$0xff] }
 0x6e7   : > { %8837 = vmatprep.mubr.bf16.mxu0 %v17408_v5  ;;  %11153 = vmatprep.mubr.bf16.mxu1 %v19919_v24  ;;  %v821_v24 = vld [vmem:[%s17673_s25 + $0xd40] sm:$0xff]  ;;  %v13985_v29 = vpack.c.bf16 %v11590_v27, %v11589_v3 }
 0x6e8   : > { %13984 = vmatprep.subr.bf16.mxu0 %v17407_v49  ;;  %v20108_v45 = vpack.c.bf16 %v846_v6, %v821_v24 }
 0x6e9   : > { %13986 = vmatpush1.bf16.msra.mxu0 %v13985_v29 }
 0x6ea   : > { %13987 = vmatprep.subr.bf16.mxu0 %v17407_v49 }
 0x6ee   : > { %8838 = vmatmul.mubr.bf16.gmra.mrb[28].mxu0 %v20099_v32  ;;  %11154 = vmatmul.mubr.bf16.gmra.mrb[60].mxu1 %v19929_v20  ;;  %v11591_v20 = vld [vmem:[#allocation7 + $0xd0] sm:$0xff] }
 0x6ef   : > { %8847 = vmatprep.mubr.bf16.mxu0 %v17408_v5  ;;  %11163 = vmatprep.mubr.bf16.mxu1 %v19931_v7  ;;  %v871_v7 = vld [vmem:[%s17673_s25 + $0xed0] sm:$0xff]  ;;  %v13988_v16 = vpack.c.bf16 %v11592_v17, %v11591_v20 }
 0x6f0   : > { %v20117_v53 = vpack.c.bf16 %v896_v46, %v871_v7  ;;  %v11599_v7 = vld [vmem:[#allocation7 + $0x110] sm:$0xff]  ;;  %v11600_v46 = vld [vmem:[#allocation7 + $0x118] sm:$0xff] }
 0x6f1   : > { %13989 = vmatpush1.bf16.msra.mxu0 %v13988_v16 }
 0x6f2   : > { %13990 = vmatprep.subr.bf16.mxu0 %v17407_v49 }
 0x6f6   : > { %8848 = vmatmul.mubr.bf16.gmra.mrb[32].mxu0 %v20108_v45  ;;  %11164 = vmatmul.mubr.bf16.gmra.mrb[64].mxu1 %v19941_v14  ;;  %v11593_v14 = vld [vmem:[#allocation7 + $0xe0] sm:$0xff] }
 0x6f7   : > { %8857 = vmatprep.mubr.bf16.mxu0 %v17408_v5  ;;  %11173 = vmatprep.mubr.bf16.mxu1 %v19943_v54  ;;  %v921_v54 = vld [vmem:[%s17673_s25 + $0x1060] sm:$0xff]  ;;  %v13991_v57 = vpack.c.bf16 %v11594_v42, %v11593_v14  ;;  %v14000_v14 = vpack.c.bf16 %v11600_v46, %v11599_v7 }
 0x6f8   : > { %v20126_v44 = vpack.c.bf16 %v946_v25, %v921_v54 }
 0x6f9   : > { %13992 = vmatpush1.bf16.msra.mxu0 %v13991_v57  ;;  %v11601_v57 = vld [vmem:[#allocation7 + $0x120] sm:$0xff] }
 0x6fa   : > { %13993 = vmatprep.subr.bf16.mxu0 %v17407_v49 }
 0x6fd   : > { %13995 = vmatpush1.bf16.msra.mxu0 %v13994_v15 }
 0x6fe   : > { %8858 = vmatmul.mubr.bf16.gmra.mrb[36].mxu0 %v20117_v53  ;;  %11174 = vmatmul.mubr.bf16.gmra.mrb[68].mxu1 %v19953_v52  ;;  %v971_v52 = vld [vmem:[%s17673_s25 + $0x11f0] sm:$0xff] }
 0x6ff   : > { %8867 = vmatprep.mubr.bf16.mxu0 %v17408_v5  ;;  %11183 = vmatprep.mubr.bf16.mxu1 %v19955_v58  ;;  %v996_v58 = vld [vmem:[%s17673_s25 + $0x12b8] sm:$0xff] }
 0x700   : > { %v20135_v37 = vpack.c.bf16 %v996_v58, %v971_v52  ;;  %13996 = vmatprep.subr.bf16.mxu0 %v17407_v49 }
 0x706   : > { %8868 = vmatmul.mubr.bf16.gmra.mrb[40].mxu0 %v20126_v44  ;;  %11184 = vmatmul.mubr.bf16.gmra.mrb[72].mxu1 %v19965_v40  ;;  %v1021_v40 = vld [vmem:[%s17673_s25 + $0x1380] sm:$0xff] }
 0x707   : > { %8877 = vmatprep.mubr.bf16.mxu0 %v17408_v5  ;;  %11193 = vmatprep.mubr.bf16.mxu1 %v19967_v61  ;;  %v1046_v61 = vld [vmem:[%s17673_s25 + $0x1448] sm:$0xff] }
 0x708   : > { %v20144_v51 = vpack.c.bf16 %v1046_v61, %v1021_v40 }
 0x70e   : > { %8878 = vmatmul.mubr.bf16.gmra.mrb[44].mxu0 %v20135_v37  ;;  %11194 = vmatmul.mubr.bf16.gmra.mrb[76].mxu1 %v19977_v48  ;;  %v1071_v48 = vld [vmem:[%s17673_s25 + $0x1510] sm:$0xff] }
 0x70f   : > { %8887 = vmatprep.mubr.bf16.mxu0 %v17408_v5  ;;  %11203 = vmatprep.mubr.bf16.mxu1 %v19979_v19  ;;  %v1096_v19 = vld [vmem:[%s17673_s25 + $0x15d8] sm:$0xff] }
 0x710   : > { %v20152_v60 = vpack.c.bf16 %v1096_v19, %v1071_v48  ;;  %v11603_v48 = vld [vmem:[#allocation7 + $0x130] sm:$0xff]  ;;  %v11604_v19 = vld [vmem:[#allocation7 + $0x138] sm:$0xff] }
 0x716   : > { %8888 = vmatmul.mubr.bf16.gmra.mrb[48].mxu0 %v20144_v51  ;;  %11204 = vmatmul.mubr.bf16.gmra.mrb[80].mxu1 %v19990_v22  ;;  %v1146_v22 = vld [vmem:[%s17673_s25 + $0x1768] sm:$0xff] }
 0x717   : > { %8897 = vmatprep.mubr.bf16.mxu0 %v17408_v5  ;;  %11213 = vmatprep.mubr.bf16.mxu1 %v19992_v23  ;;  %v20160_v12 = vpack.c.bf16 %v1146_v22, %v1121_v1  ;;  %v1171_v23 = vld [vmem:[%s17673_s25 + $0x1830] sm:$0xff] }
 0x718   : > { %v20168_v3 = vpack.c.bf16 %v1196_v59, %v1171_v23  ;;  %v14006_v23 = vpack.c.bf16 %v11604_v19, %v11603_v48 }
 0x71e   : > { %8898 = vmatmul.mubr.bf16.gmra.mrb[52].mxu0 %v20152_v60  ;;  %11214 = vmatmul.mubr.bf16.gmra.mrb[84].mxu1 %v20002_v26  ;;  %v2399_v26 = vlaneseq }
 0x71f   : > { %8907 = vmatprep.mubr.bf16.mxu0 %v17408_v5  ;;  %11223 = vmatprep.mubr.bf16.mxu1 %v20004_v55 }
 0x720   : > { %v20193_v55 = vshrl.u32 %v2399_v26, 7 }
 0x726   : > { %8908 = vmatmul.mubr.bf16.gmra.mrb[56].mxu0 %v20160_v12  ;;  %11224 = vmatmul.mubr.bf16.gmra.mrb[88].mxu1 %v20014_v50  ;;  %v2401_v50 = vsub.s32 0, %v20193_v55 }
 0x727   : > { %8917 = vmatprep.mubr.bf16.mxu0 %v17408_v5  ;;  %11233 = vmatprep.mubr.bf16.mxu1 %v20016_v11  ;;  %v20196_v11 = vld [vmem:[#allocation6] sm:$0xf] }
 0x72e   : > { %8918 = vmatmul.mubr.bf16.gmra.mrb[60].mxu0 %v20168_v3  ;;  %11234 = vmatmul.mubr.bf16.gmra.mrb[92].mxu1 %v20024_v62  ;;  %v2405_v62 = vsub.s32 1, %v20193_v55 }
 0x72f   : > { %11276 = vmatprep.mubr.bf16.mxu1 %v17408_v5 }
 0x736   : > { %11277 = vmatmul.mubr.bf16.vlgmr.msra.gmra.mrb[32].mxu1 %v20032_v30  ;;  %v20202_v30 = vrot.slane %v20196_v11, %v2401_v50 }
 0x737   : > { %11286 = vmatprep.mubr.bf16.mxu1 %v17408_v5 }
 0x73e   : > { %11287 = vmatmul.mubr.bf16.gmra.mrb[36].mxu1 %v20040_v8  ;;  %v20205_v8 = vrot.slane %v20196_v11, %v2405_v62  ;;  %v11606_v62 = vld [vmem:[#allocation7 + $0x148] sm:$0xff] }
 0x73f   : > { %11296 = vmatprep.mubr.bf16.mxu1 %v17408_v5 }
 0x746   : > { %11297 = vmatmul.mubr.bf16.gmra.mrb[40].mxu1 %v20050_v28 }
 0x747   : > { %11306 = vmatprep.mubr.bf16.mxu1 %v17408_v5 }
 0x74e   : > { %11307 = vmatmul.mubr.bf16.gmra.mrb[44].mxu1 %v20060_v0 }
 0x74f   : > { %11316 = vmatprep.mubr.bf16.mxu1 %v17408_v5 }
 0x756   : > { %11317 = vmatmul.mubr.bf16.gmra.mrb[48].mxu1 %v20070_v13 }
 0x757   : > { %11326 = vmatprep.mubr.bf16.mxu1 %v17408_v5 }
 0x75e   : > { %11327 = vmatmul.mubr.bf16.gmra.mrb[52].mxu1 %v20080_v38  ;;  %v11597_v38 = vld [vmem:[#allocation7 + $0x100] sm:$0xff] }
 0x75f   : > { %11336 = vmatprep.mubr.bf16.mxu1 %v17408_v5 }
 0x766   : > { %11337 = vmatmul.mubr.bf16.gmra.mrb[56].mxu1 %v20090_v18  ;;  %v11598_v18 = vld [vmem:[#allocation7 + $0x108] sm:$0xff] }
 0x767   : > { %11346 = vmatprep.mubr.bf16.mxu1 %v17408_v5 }
 0x76e   : > { %11347 = vmatmul.mubr.bf16.gmra.mrb[60].mxu1 %v20099_v32 }
 0x76f   : > { %11356 = vmatprep.mubr.bf16.mxu1 %v17408_v5 }
 0x776   : > { %11357 = vmatmul.mubr.bf16.gmra.mrb[64].mxu1 %v20108_v45  ;;  %v13997_v45 = vpack.c.bf16 %v11598_v18, %v11597_v38 }
 0x777   : > { %11366 = vmatprep.mubr.bf16.mxu1 %v17408_v5 }
 0x77e   : > { %11367 = vmatmul.mubr.bf16.gmra.mrb[68].mxu1 %v20117_v53 }
 0x77f   : > { %11376 = vmatprep.mubr.bf16.mxu1 %v17408_v5 }
 0x786   : > { %11377 = vmatmul.mubr.bf16.gmra.mrb[72].mxu1 %v20126_v44  ;;  %v11602_v44 = vld [vmem:[#allocation7 + $0x128] sm:$0xff] }
 0x787   : > { %11386 = vmatprep.mubr.bf16.mxu1 %v17408_v5  ;;  %v14003_v15 = vpack.c.bf16 %v11602_v44, %v11601_v57 }
 0x789   : > { %v8769_v28 = vpop.f32.mrb[0].mxu0 }
 0x78a   : > { %v14116_v0 = vadd.f32 %v8769_v28, %v20202_v30  ;;  %v8771_v13 = vpop.f32.mrb[1].mxu0 }
 0x78b   : > { %v14117_v32 = vadd.f32 %v8771_v13, %v20205_v8  ;;  %v8773_v27 = vpop.f32.mrb[2].mxu0 }
 0x78c   : > { %v8775_v24 = vpop.f32.mrb[3].mxu0  ;;  %v11437_v20 = vmax.f32 %v14116_v0, 0.0  ;;  %v14118_v17 = vadd.f32 %v8773_v27, %v20202_v30 }
 0x78d   : > { %v11438_v6 = vmax.f32 %v14117_v32, 0.0  ;;  %v14119_v29 = vadd.f32 %v8775_v24, %v20205_v8 }
 0x78e   : > { %11387 = vmatmul.mubr.bf16.gmra.mrb[76].mxu1 %v20135_v37  ;;  %v11441_v42 = vmax.f32 %v14118_v17, 0.0 }
 0x78f   : > { %v11442_v16 = vmax.f32 %v14119_v29, 0.0  ;;  %11700 = vmatprep.mubr.f32.mxu0 %v11438_v6  ;;  %11396 = vmatprep.mubr.bf16.mxu1 %v17408_v5  ;;  %v11607_v6 = vld [vmem:[#allocation7 + $0x150] sm:$0xff]  ;;  %v11608_v29 = vld [vmem:[#allocation7 + $0x158] sm:$0xff] }
 0x790   : > { %11701 = vmatmul.mubr.f32.vlgmr.msra.gmra.mrb[64].mxu0 %v11437_v20  ;;  %v14012_v17 = vpack.c.bf16 %v11608_v29, %v11607_v6  ;;  %v11617_v6 = vld [vmem:[#allocation7 + $0x1a0] sm:$0xff]  ;;  %v11618_v29 = vld [vmem:[#allocation7 + $0x1a8] sm:$0xff] }
 0x791   : > { %v8779_v53 = vpop.f32.mrb[4].mxu0  ;;  %11705 = vmatprep.mubr.f32.mxu0 %v11442_v16  ;;  %13998 = vmatpush1.bf16.msra.mxu0 %v13997_v45 }
 0x792   : > { %v14120_v54 = vadd.f32 %v8779_v53, %v20202_v30  ;;  %v8781_v25 = vpop.f32.mrb[5].mxu0  ;;  %13999 = vmatprep.subr.bf16.mxu0 %v17407_v49  ;;  %v11610_v53 = vld [vmem:[#allocation7 + $0x168] sm:$0xff] }
 0x793   : > { %v14121_v52 = vadd.f32 %v8781_v25, %v20205_v8  ;;  %v8783_v58 = vpop.f32.mrb[6].mxu0 }
 0x794   : > { %v8785_v37 = vpop.f32.mrb[7].mxu0  ;;  %11706 = vmatmul.mubr.f32.gmra.mrb[66].mxu0 %v11441_v42  ;;  %v11445_v40 = vmax.f32 %v14120_v54, 0.0  ;;  %v14122_v61 = vadd.f32 %v8783_v58, %v20202_v30 }
 0x795   : > { %v11446_v41 = vmax.f32 %v14121_v52, 0.0  ;;  %v14123_v31 = vadd.f32 %v8785_v37, %v20205_v8  ;;  %14001 = vmatpush1.bf16.msra.mxu0 %v14000_v14  ;;  %v11611_v37 = vld [vmem:[#allocation7 + $0x170] sm:$0xff] }
 0x796   : > { %11397 = vmatmul.mubr.bf16.gmra.mrb[80].mxu1 %v20144_v51  ;;  %14002 = vmatprep.subr.bf16.mxu0 %v17407_v49  ;;  %v11449_v59 = vmax.f32 %v14122_v61, 0.0  ;;  %v11605_v51 = vld [vmem:[#allocation7 + $0x140] sm:$0xff] }
 0x797   : > { %v11450_v1 = vmax.f32 %v14123_v31, 0.0  ;;  %11710 = vmatprep.mubr.f32.mxu0 %v11446_v41  ;;  %11406 = vmatprep.mubr.bf16.mxu1 %v17408_v5  ;;  %v14009_v32 = vpack.c.bf16 %v11606_v62, %v11605_v51  ;;  %v11612_v41 = vld [vmem:[#allocation7 + $0x178] sm:$0xff] }
 0x798   : > { %11711 = vmatmul.mubr.f32.gmra.mrb[68].mxu0 %v11445_v40  ;;  %v14018_v40 = vpack.c.bf16 %v11612_v41, %v11611_v37  ;;  %v11622_v37 = vld [vmem:[#allocation7 + $0x1c8] sm:$0xff] }
 0x799   : > { %v8789_v22 = vpop.f32.mrb[8].mxu0  ;;  %11715 = vmatprep.mubr.f32.mxu0 %v11450_v1  ;;  %14004 = vmatpush1.bf16.msra.mxu0 %v14003_v15  ;;  %v11614_v1 = vld [vmem:[#allocation7 + $0x188] sm:$0xff] }
 0x79a   : > { %v14124_v26 = vadd.f32 %v8789_v22, %v20202_v30  ;;  %v8791_v50 = vpop.f32.mrb[9].mxu0  ;;  %14005 = vmatprep.subr.bf16.mxu0 %v17407_v49 }
 0x79b   : > { %v14125_v28 = vadd.f32 %v8791_v50, %v20205_v8  ;;  %v8793_v0 = vpop.f32.mrb[10].mxu0 }
 0x79c   : > { %v8795_v13 = vpop.f32.mrb[11].mxu0  ;;  %11716 = vmatmul.mubr.f32.gmra.mrb[70].mxu0 %v11449_v59  ;;  %v11453_v27 = vmax.f32 %v14124_v26, 0.0  ;;  %v14126_v24 = vadd.f32 %v8793_v0, %v20202_v30  ;;  %v11616_v0 = vld [vmem:[#allocation7 + $0x198] sm:$0xff] }
 0x79d   : > { %v11454_v38 = vmax.f32 %v14125_v28, 0.0  ;;  %v14127_v18 = vadd.f32 %v8795_v13, %v20205_v8  ;;  %14007 = vmatpush1.bf16.msra.mxu0 %v14006_v23  ;;  %v11615_v28 = vld [vmem:[#allocation7 + $0x190] sm:$0xff] }
 0x79e   : > { %11407 = vmatmul.mubr.bf16.gmra.mrb[84].mxu1 %v20152_v60  ;;  %14008 = vmatprep.subr.bf16.mxu0 %v17407_v49  ;;  %v11457_v7 = vmax.f32 %v14126_v24, 0.0  ;;  %v11609_v60 = vld [vmem:[#allocation7 + $0x160] sm:$0xff] }
 0x79f   : > { %v11458_v45 = vmax.f32 %v14127_v18, 0.0  ;;  %11720 = vmatprep.mubr.f32.mxu0 %v11454_v38  ;;  %11416 = vmatprep.mubr.bf16.mxu1 %v17408_v5  ;;  %v14015_v44 = vpack.c.bf16 %v11610_v53, %v11609_v60  ;;  %v14024_v18 = vpack.c.bf16 %v11616_v0, %v11615_v28  ;;  %v11619_v53 = vld [vmem:[#allocation7 + $0x1b0] sm:$0xff]  ;;  %v11626_v28 = vld [vmem:[#allocation7 + $0x1e8] sm:$0xff] }
 0x7a0   : > { %11721 = vmatmul.mubr.f32.gmra.mrb[72].mxu0 %v11453_v27 }
 0x7a1   : > { %v8799_v20 = vpop.f32.mrb[12].mxu0  ;;  %11725 = vmatprep.mubr.f32.mxu0 %v11458_v45  ;;  %14010 = vmatpush1.bf16.msra.mxu0 %v14009_v32 }
 0x7a2   : > { %v14128_v46 = vadd.f32 %v8799_v20, %v20202_v30  ;;  %v8801_v16 = vpop.f32.mrb[13].mxu0  ;;  %14011 = vmatprep.subr.bf16.mxu0 %v17407_v49 }
 0x7a3   : > { %v14129_v14 = vadd.f32 %v8801_v16, %v20205_v8  ;;  %v8803_v42 = vpop.f32.mrb[14].mxu0 }
 0x7a4   : > { %v8805_v54 = vpop.f32.mrb[15].mxu0  ;;  %11726 = vmatmul.mubr.f32.gmra.mrb[74].mxu0 %v11457_v7  ;;  %v11461_v52 = vmax.f32 %v14128_v46, 0.0  ;;  %v14130_v58 = vadd.f32 %v8803_v42, %v20202_v30  ;;  %v14027_v46 = vpack.c.bf16 %v11618_v29, %v11617_v6  ;;  %v11627_v29 = vld [vmem:[#allocation7 + $0x1f0] sm:$0xff] }
 0x7a5   : > { %v11462_v25 = vmax.f32 %v14129_v14, 0.0  ;;  %v14131_v57 = vadd.f32 %v8805_v54, %v20205_v8  ;;  %14013 = vmatpush1.bf16.msra.mxu0 %v14012_v17  ;;  %v11620_v14 = vld [vmem:[#allocation7 + $0x1b8] sm:$0xff] }
 0x7a6   : > { %11417 = vmatmul.mubr.bf16.gmra.mrb[88].mxu1 %v20160_v12  ;;  %14014 = vmatprep.subr.bf16.mxu0 %v17407_v49  ;;  %v11465_v61 = vmax.f32 %v14130_v58, 0.0  ;;  %v11613_v12 = vld [vmem:[#allocation7 + $0x180] sm:$0xff] }
 0x7a7   : > { %v11466_v31 = vmax.f32 %v14131_v57, 0.0  ;;  %11730 = vmatprep.mubr.f32.mxu0 %v11462_v25  ;;  %11426 = vmatprep.mubr.bf16.mxu1 %v17408_v5  ;;  %v14021_v50 = vpack.c.bf16 %v11614_v1, %v11613_v12  ;;  %v14030_v25 = vpack.c.bf16 %v11620_v14, %v11619_v53  ;;  %v11621_v58 = vld [vmem:[#allocation7 + $0x1c0] sm:$0xff]  ;;  %v11623_v1 = vld [vmem:[#allocation7 + $0x1d0] sm:$0xff] }
 0x7a8   : > { %11731 = vmatmul.mubr.f32.gmra.mrb[76].mxu0 %v11461_v52 }
 0x7a9   : > { %v8809_v15 = vpop.f32.mrb[16].mxu0  ;;  %11735 = vmatprep.mubr.f32.mxu0 %v11466_v31  ;;  %14016 = vmatpush1.bf16.msra.mxu0 %v14015_v44 }
 0x7aa   : > { %v14132_v48 = vadd.f32 %v8809_v15, %v20202_v30  ;;  %v8811_v19 = vpop.f32.mrb[17].mxu0  ;;  %14017 = vmatprep.subr.bf16.mxu0 %v17407_v49 }
 0x7ab   : > { %v14133_v22 = vadd.f32 %v8811_v19, %v20205_v8  ;;  %v8813_v23 = vpop.f32.mrb[18].mxu0 }
 0x7ac   : > { %v8815_v59 = vpop.f32.mrb[19].mxu0  ;;  %11736 = vmatmul.mubr.f32.gmra.mrb[78].mxu0 %v11465_v61  ;;  %v11469_v51 = vmax.f32 %v14132_v48, 0.0  ;;  %v14134_v62 = vadd.f32 %v8813_v23, %v20202_v30  ;;  %v14033_v48 = vpack.c.bf16 %v11622_v37, %v11621_v58 }
 0x7ad   : > { %v11470_v26 = vmax.f32 %v14133_v22, 0.0  ;;  %v14135_v5 = vadd.f32 %v8815_v59, %v20205_v8  ;;  %14019 = vmatpush1.bf16.msra.mxu0 %v14018_v40  ;;  %v11624_v22 = vld [vmem:[#allocation7 + $0x1d8] sm:$0xff] }
 0x7ae   : > { %11427 = vmatmul.mubr.bf16.gmra.mrb[92].mxu1 %v20168_v3  ;;  %14020 = vmatprep.subr.bf16.mxu0 %v17407_v49  ;;  %v11473_v32 = vmax.f32 %v14134_v62, 0.0  ;;  %v11625_v62 = vld [vmem:[#allocation7 + $0x1e0] sm:$0xff] }
 0x7af   : > { %v11474_v13 = vmax.f32 %v14135_v5, 0.0  ;;  %11740 = vmatprep.mubr.f32.mxu0 %v11470_v26  ;;  %v14036_v26 = vpack.c.bf16 %v11624_v22, %v11623_v1 }
 0x7b0   : > { %11741 = vmatmul.mubr.f32.gmra.mrb[80].mxu0 %v11469_v51 }
 0x7b1   : > { %v8819_v38 = vpop.f32.mrb[20].mxu0  ;;  %11745 = vmatprep.mubr.f32.mxu0 %v11474_v13  ;;  %14022 = vmatpush1.bf16.msra.mxu0 %v14021_v50 }
 0x7b2   : > { %v14136_v27 = vadd.f32 %v8819_v38, %v20202_v30  ;;  %v8821_v24 = vpop.f32.mrb[21].mxu0  ;;  %14023 = vmatprep.subr.bf16.mxu0 %v17407_v49 }
 0x7b3   : > { %v14137_v3 = vadd.f32 %v8821_v24, %v20205_v8  ;;  %v8823_v45 = vpop.f32.mrb[22].mxu0 }
 0x7b4   : > { %v8825_v20 = vpop.f32.mrb[23].mxu0  ;;  %11746 = vmatmul.mubr.f32.gmra.mrb[82].mxu0 %v11473_v32  ;;  %v11477_v16 = vmax.f32 %v14136_v27, 0.0  ;;  %v14138_v60 = vadd.f32 %v8823_v45, %v20202_v30  ;;  %v14039_v27 = vpack.c.bf16 %v11626_v28, %v11625_v62 }
 0x7b5   : > { %v11478_v17 = vmax.f32 %v14137_v3, 0.0  ;;  %v14139_v7 = vadd.f32 %v8825_v20, %v20205_v8  ;;  %14025 = vmatpush1.bf16.msra.mxu0 %v14024_v18  ;;  %v11628_v3 = vld [vmem:[#allocation7 + $0x1f8] sm:$0xff]  ;;  %v6534_v20 = vadd.f32 %v18089_v2, %v20202_v30 }
 0x7b6   : > { %14026 = vmatprep.subr.bf16.mxu0 %v17407_v49  ;;  %v11481_v57 = vmax.f32 %v14138_v60, 0.0 }
 0x7b7   : > { %v11482_v42 = vmax.f32 %v14139_v7, 0.0  ;;  %11750 = vmatprep.mubr.f32.mxu0 %v11478_v17  ;;  %v6536_v17 = vadd.f32 %v18091_v43, %v20205_v8 }
 0x7b8   : > { %11751 = vmatmul.mubr.f32.gmra.mrb[84].mxu0 %v11477_v16  ;;  %v6538_v16 = vadd.f32 %v18095_v56, %v20202_v30  ;;  %v6544_v56 = vadd.f32 %v18109_v36, %v20202_v30 }
 0x7b9   : > { %v8829_v54 = vpop.f32.mrb[24].mxu0  ;;  %11755 = vmatprep.mubr.f32.mxu0 %v11482_v42  ;;  %14028 = vmatpush1.bf16.msra.mxu0 %v14027_v46  ;;  %v14042_v46 = vpack.c.bf16 %v11628_v3, %v11627_v29  ;;  %v6540_v42 = vadd.f32 %v18099_v39, %v20205_v8  ;;  %v6548_v39 = vadd.f32 %v18115_v4, %v20202_v30 }
 0x7ba   : > { %v14140_v44 = vadd.f32 %v8829_v54, %v20202_v30  ;;  %v8831_v52 = vpop.f32.mrb[25].mxu0  ;;  %14029 = vmatprep.subr.bf16.mxu0 %v17407_v49  ;;  %v6556_v4 = vadd.f32 %v18131_v47, %v20205_v8 }
 0x7bb   : > { %v14141_v41 = vadd.f32 %v8831_v52, %v20205_v8  ;;  %v8833_v31 = vpop.f32.mrb[26].mxu0 }
 0x7bc   : > { %v8835_v15 = vpop.f32.mrb[27].mxu0  ;;  %11756 = vmatmul.mubr.f32.gmra.mrb[86].mxu0 %v11481_v57  ;;  %v11485_v19 = vmax.f32 %v14140_v44, 0.0  ;;  %v14142_v12 = vadd.f32 %v8833_v31, %v20202_v30 }
 0x7bd   : > { %v11486_v40 = vmax.f32 %v14141_v41, 0.0  ;;  %v14143_v61 = vadd.f32 %v8835_v15, %v20205_v8  ;;  %14031 = vmatpush1.bf16.msra.mxu0 %v14030_v25 }
 0x7be   : > { %14032 = vmatprep.subr.bf16.mxu0 %v17407_v49  ;;  %v11489_v5 = vmax.f32 %v14142_v12, 0.0 }
 0x7bf   : > { %v11490_v23 = vmax.f32 %v14143_v61, 0.0  ;;  %11760 = vmatprep.mubr.f32.mxu0 %v11486_v40  ;;  %v6550_v40 = vadd.f32 %v18119_v34, %v20205_v8  ;;  %v6558_v34 = vadd.f32 %v18135_v63, %v20202_v30  ;;  %v20684_v63 = vld [vmem:[#allocation17_spill] sm:$0xff] }
 0x7c0   : > { %11761 = vmatmul.mubr.f32.gmra.mrb[88].mxu0 %v11485_v19 }
 0x7c1   : > { %v8839_v59 = vpop.f32.mrb[28].mxu0  ;;  %11765 = vmatprep.mubr.f32.mxu0 %v11490_v23  ;;  %14034 = vmatpush1.bf16.msra.mxu0 %v14033_v48  ;;  %v6554_v23 = vadd.f32 %v18129_v35, %v20202_v30 }
 0x7c2   : > { %v14144_v50 = vadd.f32 %v8839_v59, %v20202_v30  ;;  %v8841_v51 = vpop.f32.mrb[29].mxu0  ;;  %14035 = vmatprep.subr.bf16.mxu0 %v17407_v49 }
 0x7c3   : > { %v14145_v0 = vadd.f32 %v8841_v51, %v20205_v8  ;;  %v8843_v13 = vpop.f32.mrb[30].mxu0  ;;  %v6560_v51 = vadd.f32 %v18139_v21, %v20205_v8  ;;  %v20685_v21 = vld [vmem:[#allocation18_spill] sm:$0xff] }
 0x7c4   : > { %v8845_v38 = vpop.f32.mrb[31].mxu0  ;;  %11766 = vmatmul.mubr.f32.gmra.mrb[90].mxu0 %v11489_v5  ;;  %v11493_v24 = vmax.f32 %v14144_v50, 0.0  ;;  %v14146_v6 = vadd.f32 %v8843_v13, %v20202_v30  ;;  %v6568_v29 = vadd.f32 %v20685_v21, %v20202_v30 }
 0x7c5   : > { %v11494_v18 = vmax.f32 %v14145_v0, 0.0  ;;  %v14147_v32 = vadd.f32 %v8845_v38, %v20205_v8  ;;  %14037 = vmatpush1.bf16.msra.mxu0 %v14036_v26 }
 0x7c6   : > { %14038 = vmatprep.subr.bf16.mxu0 %v17407_v49  ;;  %v11497_v60 = vmax.f32 %v14146_v6, 0.0 }
 0x7c7   : > { %v11498_v45 = vmax.f32 %v14147_v32, 0.0  ;;  %11770 = vmatprep.mubr.f32.mxu0 %v11494_v18  ;;  %v20683_v32 = vld [vmem:[#allocation16_spill] sm:$0xff] }
 0x7c8   : > { %11771 = vmatmul.mubr.f32.gmra.mrb[92].mxu0 %v11493_v24  ;;  %v6566_v24 = vadd.f32 %v20684_v63, %v20205_v8 }
 0x7c9   : > { %v8849_v7 = vpop.f32.mrb[32].mxu0  ;;  %11775 = vmatprep.mubr.f32.mxu0 %v11498_v45  ;;  %14040 = vmatpush1.bf16.msra.mxu0 %v14039_v27  ;;  %v6564_v27 = vadd.f32 %v20683_v32, %v20202_v30  ;;  %v20694_v32 = vld [vmem:[#allocation27_spill] sm:$0xff] }
 0x7ca   : > { %v14149_v53 = vadd.f32 %v8849_v7, %v6534_v20  ;;  %v8851_v14 = vpop.f32.mrb[33].mxu0  ;;  %14041 = vmatprep.subr.bf16.mxu0 %v17407_v49  ;;  %v6546_v49 = vadd.f32 %v18111_v9, %v20205_v8 }
 0x7cb   : > { %v14151_v2 = vadd.f32 %v8851_v14, %v6536_v17  ;;  %v8853_v54 = vpop.f32.mrb[34].mxu0  ;;  %v20686_v17 = vld [vmem:[#allocation19_spill] sm:$0xff] }
 0x7cc   : > { %v14153_v25 = vadd.f32 %v8853_v54, %v6538_v16  ;;  %v8855_v57 = vpop.f32.mrb[35].mxu0  ;;  %11776 = vmatmul.mubr.f32.gmra.mrb[94].mxu0 %v11497_v60  ;;  %v11501_v52 = vmax.f32 %v14149_v53, 0.0  ;;  %v6570_v7 = vadd.f32 %v20686_v17, %v20205_v8 }
 0x7cd   : > { %v11502_v43 = vmax.f32 %v14151_v2, 0.0  ;;  %v14155_v44 = vadd.f32 %v8855_v57, %v6540_v42  ;;  %14043 = vmatpush1.bf16.msra.mxu0 %v14042_v46  ;;  %v6576_v57 = vadd.f32 %v18171_v33, %v20205_v8 }
 0x7ce   : > { %v11505_v41 = vmax.f32 %v14153_v25, 0.0  ;;  %v6574_v25 = vadd.f32 %v18169_v10, %v20202_v30 }
 0x7cf   : > { %v11506_v58 = vmax.f32 %v14155_v44, 0.0  ;;  %11780 = vmatprep.mubr.f32.mxu0 %v11502_v43  ;;  %v20687_v44 = vld [vmem:[#allocation20_spill] sm:$0xff] }
 0x7d0   : > { %11781 = vmatmul.mubr.f32.gmra.mrb[96].mxu0 %v11501_v52  ;;  %v6578_v52 = vadd.f32 %v20687_v44, %v20202_v30  ;;  %v20699_v44 = vld [vmem:[#allocation32_spill] sm:$0xff] }
 0x7d1   : > { %v8859_v37 = vpop.f32.mrb[36].mxu0  ;;  %11785 = vmatprep.mubr.f32.mxu0 %v11506_v58 }
 0x7d2   : > { %v14157_v31 = vadd.f32 %v8859_v37, %v6544_v56  ;;  %v8861_v15 = vpop.f32.mrb[37].mxu0  ;;  %v20688_v37 = vld [vmem:[#allocation21_spill] sm:$0xff] }
 0x7d3   : > { %v14159_v61 = vadd.f32 %v8861_v15, %v6546_v49  ;;  %v8863_v48 = vpop.f32.mrb[38].mxu0 }
 0x7d4   : > { %v14161_v19 = vadd.f32 %v8863_v48, %v6548_v39  ;;  %v8865_v12 = vpop.f32.mrb[39].mxu0  ;;  %11786 = vmatmul.mubr.f32.gmra.mrb[98].mxu0 %v11505_v41  ;;  %v11509_v22 = vmax.f32 %v14157_v31, 0.0  ;;  %v6580_v39 = vadd.f32 %v20688_v37, %v20205_v8  ;;  %v2409_v37 = vsub.s32 2, %v20193_v55 }
 0x7d5   : > { %v11510_v36 = vmax.f32 %v14159_v61, 0.0  ;;  %v14163_v1 = vadd.f32 %v8865_v12, %v6550_v40 }
 0x7d6   : > { %v11513_v26 = vmax.f32 %v14161_v19, 0.0  ;;  %v20689_v19 = vld [vmem:[#allocation22_spill] sm:$0xff] }
 0x7d7   : > { %v11514_v9 = vmax.f32 %v14163_v1, 0.0  ;;  %11790 = vmatprep.mubr.f32.mxu0 %v11510_v36  ;;  %v6584_v12 = vadd.f32 %v20689_v19, %v20202_v30  ;;  %v20690_v36 = vld [vmem:[#allocation23_spill] sm:$0xff] }
 0x7d8   : > { %11791 = vmatmul.mubr.f32.gmra.mrb[100].mxu0 %v11509_v22  ;;  %v6586_v1 = vadd.f32 %v20690_v36, %v20205_v8 }
 0x7d9   : > { %v8869_v59 = vpop.f32.mrb[40].mxu0  ;;  %11795 = vmatprep.mubr.f32.mxu0 %v11514_v9  ;;  %v20691_v9 = vld [vmem:[#allocation24_spill] sm:$0xff] }
 0x7da   : > { %v14165_v5 = vadd.f32 %v8869_v59, %v6554_v23  ;;  %v8871_v50 = vpop.f32.mrb[41].mxu0  ;;  %v6588_v23 = vadd.f32 %v20691_v9, %v20202_v30 }
 0x7db   : > { %v14167_v62 = vadd.f32 %v8871_v50, %v6556_v4  ;;  %v8873_v28 = vpop.f32.mrb[42].mxu0 }
 0x7dc   : > { %v14169_v0 = vadd.f32 %v8873_v28, %v6558_v34  ;;  %v8875_v13 = vpop.f32.mrb[43].mxu0  ;;  %11796 = vmatmul.mubr.f32.gmra.mrb[102].mxu0 %v11513_v26  ;;  %v11517_v18 = vmax.f32 %v14165_v5, 0.0  ;;  %v20692_v26 = vld [vmem:[#allocation25_spill] sm:$0xff] }
 0x7dd   : > { %v11518_v35 = vmax.f32 %v14167_v62, 0.0  ;;  %v14171_v38 = vadd.f32 %v8875_v13, %v6560_v51  ;;  %v6590_v5 = vadd.f32 %v20692_v26, %v20205_v8 }
 0x7de   : > { %v11521_v3 = vmax.f32 %v14169_v0, 0.0 }
 0x7df   : > { %v11522_v47 = vmax.f32 %v14171_v38, 0.0  ;;  %11800 = vmatprep.mubr.f32.mxu0 %v11518_v35 }
 0x7e0   : > { %11801 = vmatmul.mubr.f32.gmra.mrb[104].mxu0 %v11517_v18  ;;  %v20693_v18 = vld [vmem:[#allocation26_spill] sm:$0xff] }
 0x7e1   : > { %v8879_v6 = vpop.f32.mrb[44].mxu0  ;;  %11805 = vmatprep.mubr.f32.mxu0 %v11522_v47  ;;  %v6594_v47 = vadd.f32 %v20693_v18, %v20202_v30 }
 0x7e2   : > { %v14173_v45 = vadd.f32 %v8879_v6, %v6564_v27  ;;  %v8881_v20 = vpop.f32.mrb[45].mxu0  ;;  %v6596_v27 = vadd.f32 %v20694_v32, %v20205_v8 }
 0x7e3   : > { %v14175_v46 = vadd.f32 %v8881_v20, %v6566_v24  ;;  %v8883_v16 = vpop.f32.mrb[46].mxu0  ;;  %v20695_v24 = vld [vmem:[#allocation28_spill] sm:$0xff] }
 0x7e4   : > { %v14177_v60 = vadd.f32 %v8883_v16, %v6568_v29  ;;  %v8885_v53 = vpop.f32.mrb[47].mxu0  ;;  %11806 = vmatmul.mubr.f32.gmra.mrb[106].mxu0 %v11521_v3  ;;  %v11525_v2 = vmax.f32 %v14173_v45, 0.0  ;;  %v6598_v6 = vadd.f32 %v20695_v24, %v20202_v30  ;;  %v20696_v45 = vld [vmem:[#allocation29_spill] sm:$0xff] }
 0x7e5   : > { %v11526_v14 = vmax.f32 %v14175_v46, 0.0  ;;  %v14179_v42 = vadd.f32 %v8885_v53, %v6570_v7  ;;  %v6600_v20 = vadd.f32 %v20696_v45, %v20205_v8  ;;  %v12124_v24 = vld [vmem:[%s20648_s5 + $0x30] sm:$0xff] }
 0x7e6   : > { %v11529_v58 = vmax.f32 %v14177_v60, 0.0 }
 0x7e7   : > { %v11530_v54 = vmax.f32 %v14179_v42, 0.0  ;;  %11810 = vmatprep.mubr.f32.mxu0 %v11526_v14 }
 0x7e8   : > { %11811 = vmatmul.mubr.f32.gmra.mrb[108].mxu0 %v11525_v2  ;;  %v20697_v2 = vld [vmem:[#allocation30_spill] sm:$0xff] }
 0x7e9   : > { %v8889_v43 = vpop.f32.mrb[48].mxu0  ;;  %11815 = vmatprep.mubr.f32.mxu0 %v11530_v54  ;;  %v6604_v54 = vadd.f32 %v20697_v2, %v20202_v30 }
 0x7ea   : > { %v14181_v56 = vadd.f32 %v8889_v43, %v6574_v25  ;;  %v8891_v49 = vpop.f32.mrb[49].mxu0  ;;  %v20698_v25 = vld [vmem:[#allocation31_spill] sm:$0xff] }
 0x7eb   : > { %v14183_v41 = vadd.f32 %v8891_v49, %v6576_v57  ;;  %v8893_v31 = vpop.f32.mrb[50].mxu0  ;;  %v6606_v57 = vadd.f32 %v20698_v25, %v20205_v8 }
 0x7ec   : > { %v14185_v15 = vadd.f32 %v8893_v31, %v6578_v52  ;;  %v8895_v40 = vpop.f32.mrb[51].mxu0  ;;  %11816 = vmatmul.mubr.f32.gmra.mrb[110].mxu0 %v11529_v58  ;;  %v11533_v48 = vmax.f32 %v14181_v56, 0.0  ;;  %v6608_v52 = vadd.f32 %v20699_v44, %v20202_v30  ;;  %v20330_v30 = vrot.slane %v20196_v11, %v2409_v37 }
 0x7ed   : > { %v11534_v10 = vmax.f32 %v14183_v41, 0.0  ;;  %v14187_v61 = vadd.f32 %v8895_v40, %v6580_v39  ;;  %v20700_v39 = vld [vmem:[#allocation33_spill] sm:$0xff]  ;;  %v2413_v40 = vsub.s32 3, %v20193_v55 }
 0x7ee   : > { %v11537_v4 = vmax.f32 %v14185_v15, 0.0  ;;  %v6610_v41 = vadd.f32 %v20700_v39, %v20205_v8 }
 0x7ef   : > { %v11538_v33 = vmax.f32 %v14187_v61, 0.0  ;;  %11820 = vmatprep.mubr.f32.mxu0 %v11534_v10  ;;  %v20333_v36 = vrot.slane %v20196_v11, %v2413_v40  ;;  %v12119_v11 = vld [vmem:[%s20648_s5 + $0x8] sm:$0xff] }
 0x7f0   : > { %11821 = vmatmul.mubr.f32.gmra.mrb[112].mxu0 %v11533_v48 }
 0x7f1   : > { %v8899_v22 = vpop.f32.mrb[52].mxu0  ;;  %11825 = vmatprep.mubr.f32.mxu0 %v11538_v33 }
 0x7f2   : > { %v14189_v59 = vadd.f32 %v8899_v22, %v6584_v12  ;;  %v8901_v34 = vpop.f32.mrb[53].mxu0 }
 0x7f3   : > { %v14191_v50 = vadd.f32 %v8901_v34, %v6586_v1  ;;  %v8903_v51 = vpop.f32.mrb[54].mxu0  ;;  %v12120_v34 = vld [vmem:[%s20648_s5 + $0x10] sm:$0xff] }
 0x7f4   : > { %v14193_v62 = vadd.f32 %v8903_v51, %v6588_v23  ;;  %v8905_v28 = vpop.f32.mrb[55].mxu0  ;;  %11826 = vmatmul.mubr.f32.gmra.mrb[114].mxu0 %v11537_v4  ;;  %v11541_v35 = vmax.f32 %v14189_v59, 0.0  ;;  %v12118_v59 = vld [vmem:[%s20648_s5] sm:$0xff]  ;;  %v12121_v51 = vld [vmem:[%s20648_s5 + $0x18] sm:$0xff] }
 0x7f5   : > { %v11542_v0 = vmax.f32 %v14191_v50, 0.0  ;;  %v14195_v13 = vadd.f32 %v8905_v28, %v6590_v5  ;;  %v14044_v50 = vpack.c.bf16 %v12119_v11, %v12118_v59 }
 0x7f6   : > { %v11545_v21 = vmax.f32 %v14193_v62, 0.0 }
 0x7f7   : > { %v11546_v38 = vmax.f32 %v14195_v13, 0.0  ;;  %11830 = vmatprep.mubr.f32.mxu0 %v11542_v0  ;;  %v14048_v0 = vpack.c.bf16 %v12121_v51, %v12120_v34  ;;  %v12122_v13 = vld [vmem:[%s20648_s5 + $0x20] sm:$0xff]  ;;  %14045 = vmatprep.subr.bf16.mxu1 %v14044_v50 }
 0x7f8   : > { %11831 = vmatmul.mubr.f32.gmra.mrb[116].mxu0 %v11541_v35  ;;  %v12123_v35 = vld [vmem:[%s20648_s5 + $0x28] sm:$0xff]  ;;  %14047 = vmatpush3.bf16.msra.mxu1 %v14044_v50 }
 0x7f9   : > { %v8909_v63 = vpop.f32.mrb[56].mxu0  ;;  %11835 = vmatprep.mubr.f32.mxu0 %v11546_v38  ;;  %14049 = vmatprep.subr.bf16.mxu1 %v14048_v0 }
 0x7fa   : > { %v14197_v29 = vadd.f32 %v8909_v63, %v6594_v47  ;;  %v8911_v3 = vpop.f32.mrb[57].mxu0  ;;  %v14052_v47 = vpack.c.bf16 %v12123_v35, %v12122_v13 }
 0x7fb   : > { %v14199_v17 = vadd.f32 %v8911_v3, %v6596_v27  ;;  %v8913_v7 = vpop.f32.mrb[58].mxu0 }
 0x7fc   : > { %v14201_v46 = vadd.f32 %v8913_v7, %v6598_v6  ;;  %v8915_v16 = vpop.f32.mrb[59].mxu0  ;;  %11836 = vmatmul.mubr.f32.gmra.mrb[118].mxu0 %v11545_v21  ;;  %v11549_v14 = vmax.f32 %v14197_v29, 0.0  ;;  %v12125_v6 = vld [vmem:[%s20648_s5 + $0x38] sm:$0xff]  ;;  %14051 = vmatpush3.bf16.msra.mxu1 %v14048_v0 }
 0x7fd   : > { %v11550_v60 = vmax.f32 %v14199_v17, 0.0  ;;  %v14203_v53 = vadd.f32 %v8915_v16, %v6600_v20  ;;  %14053 = vmatprep.subr.bf16.mxu1 %v14052_v47  ;;  %v14056_v17 = vpack.c.bf16 %v12125_v6, %v12124_v24  ;;  %v12126_v16 = vld [vmem:[%s20648_s5 + $0x40] sm:$0xff] }
 0x7fe   : > { %v11553_v58 = vmax.f32 %v14201_v46, 0.0 }
 0x7ff   : > { %v11554_v42 = vmax.f32 %v14203_v53, 0.0  ;;  %11840 = vmatprep.mubr.f32.mxu0 %v11550_v60  ;;  %v12127_v60 = vld [vmem:[%s20648_s5 + $0x48] sm:$0xff] }
 0x800   : > { %11841 = vmatmul.mubr.f32.gmra.mrb[120].mxu0 %v11549_v14  ;;  %14055 = vmatpush3.bf16.msra.mxu1 %v14052_v47 }
 0x801   : > { %v8919_v43 = vpop.f32.mrb[60].mxu0  ;;  %11845 = vmatprep.mubr.f32.mxu0 %v11554_v42  ;;  %14057 = vmatprep.subr.bf16.mxu1 %v14056_v17  ;;  %v14060_v42 = vpack.c.bf16 %v12127_v60, %v12126_v16 }
 0x802   : > { %v14205_v56 = vadd.f32 %v8919_v43, %v6604_v54  ;;  %v8921_v49 = vpop.f32.mrb[61].mxu0  ;;  %v12129_v43 = vld [vmem:[%s20648_s5 + $0x58] sm:$0xff] }
 0x803   : > { %v14207_v31 = vadd.f32 %v8921_v49, %v6606_v57  ;;  %v8923_v15 = vpop.f32.mrb[62].mxu0  ;;  %v12128_v57 = vld [vmem:[%s20648_s5 + $0x50] sm:$0xff] }
 0x804   : > { %v14209_v10 = vadd.f32 %v8923_v15, %v6608_v52  ;;  %v8925_v61 = vpop.f32.mrb[63].mxu0  ;;  %11846 = vmatmul.mubr.f32.gmra.mrb[122].mxu0 %v11553_v58  ;;  %v11557_v19 = vmax.f32 %v14205_v56, 0.0  ;;  %14059 = vmatpush3.bf16.msra.mxu1 %v14056_v17  ;;  %v14064_v37 = vpack.c.bf16 %v12129_v43, %v12128_v57 }
 0x805   : > { %v11558_v48 = vmax.f32 %v14207_v31, 0.0  ;;  %v14211_v33 = vadd.f32 %v8925_v61, %v6610_v41  ;;  %14061 = vmatprep.subr.bf16.mxu1 %v14060_v42 }
 0x806   : > { %v11561_v1 = vmax.f32 %v14209_v10, 0.0 }
 0x807   : > { %v11562_v12 = vmax.f32 %v14211_v33, 0.0  ;;  %11850 = vmatprep.mubr.f32.mxu0 %v11558_v48 }
 0x808   : > { %11851 = vmatmul.mubr.f32.gmra.mrb[124].mxu0 %v11557_v19  ;;  %14063 = vmatpush3.bf16.msra.mxu1 %v14060_v42 }
 0x809   : > { %v11278_v8 = vpop.f32.mrb[32].mxu1  ;;  %11855 = vmatprep.mubr.f32.mxu0 %v11562_v12  ;;  %14065 = vmatprep.subr.bf16.mxu1 %v14064_v37 }
 0x80a   : > { %v14212_v55 = vadd.f32 %v11278_v8, %v20330_v30  ;;  %v11280_v22 = vpop.f32.mrb[33].mxu1 }
 0x80b   : > { %v14213_v9 = vadd.f32 %v11280_v22, %v20333_v36  ;;  %v11282_v23 = vpop.f32.mrb[34].mxu1 }
 0x80c   : > { %v11284_v4 = vpop.f32.mrb[35].mxu1  ;;  %11856 = vmatmul.mubr.f32.gmra.mrb[126].mxu0 %v11561_v1  ;;  %v11439_v62 = vmax.f32 %v14212_v55, 0.0  ;;  %v14214_v28 = vadd.f32 %v11282_v23, %v20330_v30  ;;  %14067 = vmatpush3.bf16.msra.mxu1 %v14064_v37 }
 0x80d   : > { %v11440_v26 = vmax.f32 %v14213_v9, 0.0  ;;  %v14215_v5 = vadd.f32 %v11284_v4, %v20333_v36 }
 0x80e   : > { %v11443_v32 = vmax.f32 %v14214_v28, 0.0 }
 0x80f   : > { %v11444_v38 = vmax.f32 %v14215_v5, 0.0  ;;  %11925 = vmatprep.mubr.f32.mxu0 %v11440_v26 }
 0x810   : > { %11926 = vmatmul.mubr.f32.vlgmr.msra.gmra.mrb[64].mxu0 %v11439_v62 }
 0x811   : > { %v11288_v18 = vpop.f32.mrb[36].mxu1  ;;  %11930 = vmatprep.mubr.f32.mxu0 %v11444_v38 }
 0x812   : > { %v14216_v27 = vadd.f32 %v11288_v18, %v20330_v30  ;;  %v11290_v63 = vpop.f32.mrb[37].mxu1 }
 0x813   : > { %v14217_v21 = vadd.f32 %v11290_v63, %v20333_v36  ;;  %v11292_v29 = vpop.f32.mrb[38].mxu1 }
 0x814   : > { %v11294_v3 = vpop.f32.mrb[39].mxu1  ;;  %11931 = vmatmul.mubr.f32.gmra.mrb[66].mxu0 %v11443_v32  ;;  %v11447_v7 = vmax.f32 %v14216_v27, 0.0  ;;  %v14218_v46 = vadd.f32 %v11292_v29, %v20330_v30 }
 0x815   : > { %v11448_v45 = vmax.f32 %v14217_v21, 0.0  ;;  %v14219_v20 = vadd.f32 %v11294_v3, %v20333_v36 }
 0x816   : > { %v11451_v2 = vmax.f32 %v14218_v46, 0.0 }
 0x817   : > { %v11452_v53 = vmax.f32 %v14219_v20, 0.0  ;;  %11935 = vmatprep.mubr.f32.mxu0 %v11448_v45 }
 0x818   : > { %11936 = vmatmul.mubr.f32.gmra.mrb[68].mxu0 %v11447_v7 }
 0x819   : > { %v11298_v14 = vpop.f32.mrb[40].mxu1  ;;  %11940 = vmatprep.mubr.f32.mxu0 %v11452_v53 }
 0x81a   : > { %v14220_v54 = vadd.f32 %v11298_v14, %v20330_v30  ;;  %v11300_v25 = vpop.f32.mrb[41].mxu1 }
 0x81b   : > { %v14221_v44 = vadd.f32 %v11300_v25, %v20333_v36  ;;  %v11302_v52 = vpop.f32.mrb[42].mxu1 }
 0x81c   : > { %v11304_v58 = vpop.f32.mrb[43].mxu1  ;;  %11941 = vmatmul.mubr.f32.gmra.mrb[70].mxu0 %v11451_v2  ;;  %v11455_v39 = vmax.f32 %v14220_v54, 0.0  ;;  %v14222_v41 = vadd.f32 %v11302_v52, %v20330_v30 }
 0x81d   : > { %v11456_v56 = vmax.f32 %v14221_v44, 0.0  ;;  %v14223_v49 = vadd.f32 %v11304_v58, %v20333_v36 }
 0x81e   : > { %v11459_v40 = vmax.f32 %v14222_v41, 0.0 }
 0x81f   : > { %v11460_v31 = vmax.f32 %v14223_v49, 0.0  ;;  %11945 = vmatprep.mubr.f32.mxu0 %v11456_v56 }
 0x820   : > { %11946 = vmatmul.mubr.f32.gmra.mrb[72].mxu0 %v11455_v39 }
 0x821   : > { %v11308_v15 = vpop.f32.mrb[44].mxu1  ;;  %11950 = vmatprep.mubr.f32.mxu0 %v11460_v31 }
 0x822   : > { %v14224_v10 = vadd.f32 %v11308_v15, %v20330_v30  ;;  %v11310_v61 = vpop.f32.mrb[45].mxu1 }
 0x823   : > { %v14225_v48 = vadd.f32 %v11310_v61, %v20333_v36  ;;  %v11312_v33 = vpop.f32.mrb[46].mxu1 }
 0x824   : > { %v11314_v19 = vpop.f32.mrb[47].mxu1  ;;  %11951 = vmatmul.mubr.f32.gmra.mrb[74].mxu0 %v11459_v40  ;;  %v11463_v1 = vmax.f32 %v14224_v10, 0.0  ;;  %v14226_v55 = vadd.f32 %v11312_v33, %v20330_v30 }
 0x825   : > { %v11464_v12 = vmax.f32 %v14225_v48, 0.0  ;;  %v14227_v8 = vadd.f32 %v11314_v19, %v20333_v36 }
 0x826   : > { %v11467_v23 = vmax.f32 %v14226_v55, 0.0 }
 0x827   : > { %v11468_v22 = vmax.f32 %v14227_v8, 0.0  ;;  %11955 = vmatprep.mubr.f32.mxu0 %v11464_v12 }
 0x828   : > { %11956 = vmatmul.mubr.f32.gmra.mrb[76].mxu0 %v11463_v1 }
 0x829   : > { %v11318_v9 = vpop.f32.mrb[48].mxu1  ;;  %11960 = vmatprep.mubr.f32.mxu0 %v11468_v22 }
 0x82a   : > { %v14228_v4 = vadd.f32 %v11318_v9, %v20330_v30  ;;  %v11320_v59 = vpop.f32.mrb[49].mxu1 }
 0x82b   : > { %v14229_v11 = vadd.f32 %v11320_v59, %v20333_v36  ;;  %v11322_v34 = vpop.f32.mrb[50].mxu1 }
 0x82c   : > { %v11324_v26 = vpop.f32.mrb[51].mxu1  ;;  %11961 = vmatmul.mubr.f32.gmra.mrb[78].mxu0 %v11467_v23  ;;  %v11471_v51 = vmax.f32 %v14228_v4, 0.0  ;;  %v14230_v62 = vadd.f32 %v11322_v34, %v20330_v30 }
 0x82d   : > { %v11472_v5 = vmax.f32 %v14229_v11, 0.0  ;;  %v14231_v50 = vadd.f32 %v11324_v26, %v20333_v36 }
 0x82e   : > { %v11475_v13 = vmax.f32 %v14230_v62, 0.0 }
 0x82f   : > { %v11476_v28 = vmax.f32 %v14231_v50, 0.0  ;;  %11965 = vmatprep.mubr.f32.mxu0 %v11472_v5 }
 0x830   : > { %11966 = vmatmul.mubr.f32.gmra.mrb[80].mxu0 %v11471_v51 }
 0x831   : > { %v11328_v0 = vpop.f32.mrb[52].mxu1  ;;  %11970 = vmatprep.mubr.f32.mxu0 %v11476_v28 }
 0x832   : > { %v14232_v35 = vadd.f32 %v11328_v0, %v20330_v30  ;;  %v11330_v38 = vpop.f32.mrb[53].mxu1 }
 0x833   : > { %v14233_v18 = vadd.f32 %v11330_v38, %v20333_v36  ;;  %v11332_v47 = vpop.f32.mrb[54].mxu1 }
 0x834   : > { %v11334_v32 = vpop.f32.mrb[55].mxu1  ;;  %11971 = vmatmul.mubr.f32.gmra.mrb[82].mxu0 %v11475_v13  ;;  %v11479_v24 = vmax.f32 %v14232_v35, 0.0  ;;  %v14234_v6 = vadd.f32 %v11332_v47, %v20330_v30 }
 0x835   : > { %v11480_v27 = vmax.f32 %v14233_v18, 0.0  ;;  %v14235_v63 = vadd.f32 %v11334_v32, %v20333_v36 }
 0x836   : > { %v11483_v3 = vmax.f32 %v14234_v6, 0.0 }
 0x837   : > { %v11484_v21 = vmax.f32 %v14235_v63, 0.0  ;;  %11975 = vmatprep.mubr.f32.mxu0 %v11480_v27 }
 0x838   : > { %11976 = vmatmul.mubr.f32.gmra.mrb[84].mxu0 %v11479_v24 }
 0x839   : > { %v11338_v29 = vpop.f32.mrb[56].mxu1  ;;  %11980 = vmatprep.mubr.f32.mxu0 %v11484_v21  ;;  %v12130_v21 = vld [vmem:[%s20648_s5 + $0x60] sm:$0xff] }
 0x83a   : > { %v14236_v45 = vadd.f32 %v11338_v29, %v20330_v30  ;;  %v11340_v20 = vpop.f32.mrb[57].mxu1  ;;  %v12131_v29 = vld [vmem:[%s20648_s5 + $0x68] sm:$0xff] }
 0x83b   : > { %v14237_v17 = vadd.f32 %v11340_v20, %v20333_v36  ;;  %v11342_v7 = vpop.f32.mrb[58].mxu1 }
 0x83c   : > { %v11344_v46 = vpop.f32.mrb[59].mxu1  ;;  %11981 = vmatmul.mubr.f32.gmra.mrb[86].mxu0 %v11483_v3  ;;  %v11487_v53 = vmax.f32 %v14236_v45, 0.0  ;;  %v14238_v14 = vadd.f32 %v11342_v7, %v20330_v30 }
 0x83d   : > { %v11488_v16 = vmax.f32 %v14237_v17, 0.0  ;;  %v14239_v60 = vadd.f32 %v11344_v46, %v20333_v36  ;;  %v14068_v17 = vpack.c.bf16 %v12131_v29, %v12130_v21 }
 0x83e   : > { %v11491_v54 = vmax.f32 %v14238_v14, 0.0  ;;  %v12132_v14 = vld [vmem:[%s20648_s5 + $0x70] sm:$0xff] }
 0x83f   : > { %v11492_v42 = vmax.f32 %v14239_v60, 0.0  ;;  %11985 = vmatprep.mubr.f32.mxu0 %v11488_v16  ;;  %14069 = vmatprep.subr.bf16.mxu1 %v14068_v17 }
 0x840   : > { %11986 = vmatmul.mubr.f32.gmra.mrb[88].mxu0 %v11487_v53  ;;  %14071 = vmatpush3.bf16.msra.mxu1 %v14068_v17 }
 0x841   : > { %v11348_v2 = vpop.f32.mrb[60].mxu1  ;;  %11990 = vmatprep.mubr.f32.mxu0 %v11492_v42  ;;  %v12133_v42 = vld [vmem:[%s20648_s5 + $0x78] sm:$0xff] }
 0x842   : > { %v14240_v25 = vadd.f32 %v11348_v2, %v20330_v30  ;;  %v11350_v57 = vpop.f32.mrb[61].mxu1 }
 0x843   : > { %v14241_v43 = vadd.f32 %v11350_v57, %v20333_v36  ;;  %v11352_v44 = vpop.f32.mrb[62].mxu1 }
 0x844   : > { %v11354_v52 = vpop.f32.mrb[63].mxu1  ;;  %11991 = vmatmul.mubr.f32.gmra.mrb[90].mxu0 %v11491_v54  ;;  %v11495_v49 = vmax.f32 %v14240_v25, 0.0  ;;  %v14242_v37 = vadd.f32 %v11352_v44, %v20330_v30  ;;  %v14072_v25 = vpack.c.bf16 %v12133_v42, %v12132_v14 }
 0x845   : > { %v11496_v58 = vmax.f32 %v14241_v43, 0.0  ;;  %v14243_v56 = vadd.f32 %v11354_v52, %v20333_v36 }
 0x846   : > { %v11499_v31 = vmax.f32 %v14242_v37, 0.0  ;;  %14073 = vmatprep.subr.bf16.mxu1 %v14072_v25 }
 0x847   : > { %v11500_v39 = vmax.f32 %v14243_v56, 0.0  ;;  %11995 = vmatprep.mubr.f32.mxu0 %v11496_v58  ;;  %14075 = vmatpush3.bf16.msra.mxu1 %v14072_v25 }
 0x848   : > { %11996 = vmatmul.mubr.f32.gmra.mrb[92].mxu0 %v11495_v49 }
 0x849   : > { %v11358_v41 = vpop.f32.mrb[64].mxu1  ;;  %12000 = vmatprep.mubr.f32.mxu0 %v11500_v39 }
 0x84a   : > { %v14244_v15 = vadd.f32 %v11358_v41, %v20330_v30  ;;  %v11360_v40 = vpop.f32.mrb[65].mxu1 }
 0x84b   : > { %v14245_v10 = vadd.f32 %v11360_v40, %v20333_v36  ;;  %v11362_v61 = vpop.f32.mrb[66].mxu1 }
 0x84c   : > { %v11364_v48 = vpop.f32.mrb[67].mxu1  ;;  %12001 = vmatmul.mubr.f32.gmra.mrb[94].mxu0 %v11499_v31  ;;  %v11503_v12 = vmax.f32 %v14244_v15, 0.0  ;;  %v14246_v8 = vadd.f32 %v11362_v61, %v20330_v30 }
 0x84d   : > { %v11504_v33 = vmax.f32 %v14245_v10, 0.0  ;;  %v14247_v19 = vadd.f32 %v11364_v48, %v20333_v36 }
 0x84e   : > { %v11507_v22 = vmax.f32 %v14246_v8, 0.0 }
 0x84f   : > { %v11508_v1 = vmax.f32 %v14247_v19, 0.0  ;;  %12005 = vmatprep.mubr.f32.mxu0 %v11504_v33 }
 0x850   : > { %12006 = vmatmul.mubr.f32.gmra.mrb[96].mxu0 %v11503_v12 }
 0x851   : > { %v11368_v55 = vpop.f32.mrb[68].mxu1  ;;  %12010 = vmatprep.mubr.f32.mxu0 %v11508_v1 }
 0x852   : > { %v14248_v9 = vadd.f32 %v11368_v55, %v20330_v30  ;;  %v11370_v23 = vpop.f32.mrb[69].mxu1 }
 0x853   : > { %v14249_v4 = vadd.f32 %v11370_v23, %v20333_v36  ;;  %v11372_v59 = vpop.f32.mrb[70].mxu1 }
 0x854   : > { %v11374_v11 = vpop.f32.mrb[71].mxu1  ;;  %12011 = vmatmul.mubr.f32.gmra.mrb[98].mxu0 %v11507_v22  ;;  %v11511_v5 = vmax.f32 %v14248_v9, 0.0  ;;  %v14250_v50 = vadd.f32 %v11372_v59, %v20330_v30 }
 0x855   : > { %v11512_v34 = vmax.f32 %v14249_v4, 0.0  ;;  %v14251_v26 = vadd.f32 %v11374_v11, %v20333_v36 }
 0x856   : > { %v11515_v28 = vmax.f32 %v14250_v50, 0.0 }
 0x857   : > { %v11516_v51 = vmax.f32 %v14251_v26, 0.0  ;;  %12015 = vmatprep.mubr.f32.mxu0 %v11512_v34 }
 0x858   : > { %12016 = vmatmul.mubr.f32.gmra.mrb[100].mxu0 %v11511_v5 }
 0x859   : > { %v11378_v62 = vpop.f32.mrb[72].mxu1  ;;  %12020 = vmatprep.mubr.f32.mxu0 %v11516_v51 }
 0x85a   : > { %v14252_v0 = vadd.f32 %v11378_v62, %v20330_v30  ;;  %v11380_v13 = vpop.f32.mrb[73].mxu1 }
 0x85b   : > { %v14253_v35 = vadd.f32 %v11380_v13, %v20333_v36  ;;  %v11382_v38 = vpop.f32.mrb[74].mxu1 }
 0x85c   : > { %v11384_v18 = vpop.f32.mrb[75].mxu1  ;;  %12021 = vmatmul.mubr.f32.gmra.mrb[102].mxu0 %v11515_v28  ;;  %v11519_v27 = vmax.f32 %v14252_v0, 0.0  ;;  %v14254_v63 = vadd.f32 %v11382_v38, %v20330_v30 }
 0x85d   : > { %v11520_v47 = vmax.f32 %v14253_v35, 0.0  ;;  %v14255_v32 = vadd.f32 %v11384_v18, %v20333_v36 }
 0x85e   : > { %v11523_v3 = vmax.f32 %v14254_v63, 0.0 }
 0x85f   : > { %v11524_v24 = vmax.f32 %v14255_v32, 0.0  ;;  %12025 = vmatprep.mubr.f32.mxu0 %v11520_v47 }
 0x860   : > { %12026 = vmatmul.mubr.f32.gmra.mrb[104].mxu0 %v11519_v27 }
 0x861   : > { %v11388_v6 = vpop.f32.mrb[76].mxu1  ;;  %12030 = vmatprep.mubr.f32.mxu0 %v11524_v24 }
 0x862   : > { %v14256_v45 = vadd.f32 %v11388_v6, %v20330_v30  ;;  %v11390_v20 = vpop.f32.mrb[77].mxu1 }
 0x863   : > { %v14257_v7 = vadd.f32 %v11390_v20, %v20333_v36  ;;  %v11392_v46 = vpop.f32.mrb[78].mxu1  ;;  %v20447_v20 = vld [vmem:[#allocation9] ss:$0 sm:$0xff] }
 0x864   : > { %v11394_v16 = vpop.f32.mrb[79].mxu1  ;;  %12031 = vmatmul.mubr.f32.gmra.mrb[106].mxu0 %v11523_v3  ;;  %v11527_v2 = vmax.f32 %v14256_v45, 0.0  ;;  %v14258_v54 = vadd.f32 %v11392_v46, %v20330_v30 }
 0x865   : > { %v11528_v60 = vmax.f32 %v14257_v7, 0.0  ;;  %v14259_v53 = vadd.f32 %v11394_v16, %v20333_v36  ;;  %v12398_v16 = vld [vmem:[%s20650_s7] sm:$0xff] }
 0x866   : > { %v11531_v44 = vmax.f32 %v14258_v54, 0.0 }
 0x867   : > { %v11532_v57 = vmax.f32 %v14259_v53, 0.0  ;;  %12035 = vmatprep.mubr.f32.mxu0 %v11528_v60 }
 0x868   : > { %12036 = vmatmul.mubr.f32.gmra.mrb[108].mxu0 %v11527_v2 }
 0x869   : > { %v11398_v43 = vpop.f32.mrb[80].mxu1  ;;  %12040 = vmatprep.mubr.f32.mxu0 %v11532_v57 }
 0x86a   : > { %v14260_v52 = vadd.f32 %v11398_v43, %v20330_v30  ;;  %v11400_v58 = vpop.f32.mrb[81].mxu1 }
 0x86b   : > { %v14261_v56 = vadd.f32 %v11400_v58, %v20333_v36  ;;  %v11402_v49 = vpop.f32.mrb[82].mxu1 }
 0x86c   : > { %v11404_v37 = vpop.f32.mrb[83].mxu1  ;;  %12041 = vmatmul.mubr.f32.gmra.mrb[110].mxu0 %v11531_v44  ;;  %v11535_v31 = vmax.f32 %v14260_v52, 0.0  ;;  %v14262_v15 = vadd.f32 %v11402_v49, %v20330_v30 }
 0x86d   : > { %v11536_v39 = vmax.f32 %v14261_v56, 0.0  ;;  %v14263_v41 = vadd.f32 %v11404_v37, %v20333_v36 }
 0x86e   : > { %v11539_v61 = vmax.f32 %v14262_v15, 0.0 }
 0x86f   : > { %v11540_v40 = vmax.f32 %v14263_v41, 0.0  ;;  %12045 = vmatprep.mubr.f32.mxu0 %v11536_v39 }
 0x870   : > { %12046 = vmatmul.mubr.f32.gmra.mrb[112].mxu0 %v11535_v31 }
 0x871   : > { %v11408_v10 = vpop.f32.mrb[84].mxu1  ;;  %12050 = vmatprep.mubr.f32.mxu0 %v11540_v40 }
 0x872   : > { %v14264_v48 = vadd.f32 %v11408_v10, %v20330_v30  ;;  %v11410_v33 = vpop.f32.mrb[85].mxu1 }
 0x873   : > { %v14265_v19 = vadd.f32 %v11410_v33, %v20333_v36  ;;  %v11412_v12 = vpop.f32.mrb[86].mxu1 }
 0x874   : > { %v11414_v8 = vpop.f32.mrb[87].mxu1  ;;  %12051 = vmatmul.mubr.f32.gmra.mrb[114].mxu0 %v11539_v61  ;;  %v11543_v22 = vmax.f32 %v14264_v48, 0.0  ;;  %v14266_v9 = vadd.f32 %v11412_v12, %v20330_v30 }
 0x875   : > { %v11544_v1 = vmax.f32 %v14265_v19, 0.0  ;;  %v14267_v55 = vadd.f32 %v11414_v8, %v20333_v36 }
 0x876   : > { %v11547_v59 = vmax.f32 %v14266_v9, 0.0 }
 0x877   : > { %v11548_v23 = vmax.f32 %v14267_v55, 0.0  ;;  %12055 = vmatprep.mubr.f32.mxu0 %v11544_v1 }
 0x878   : > { %12056 = vmatmul.mubr.f32.gmra.mrb[116].mxu0 %v11543_v22 }
 0x879   : > { %v11418_v4 = vpop.f32.mrb[88].mxu1  ;;  %12060 = vmatprep.mubr.f32.mxu0 %v11548_v23 }
 0x87a   : > { %v14268_v11 = vadd.f32 %v11418_v4, %v20330_v30  ;;  %v11420_v34 = vpop.f32.mrb[89].mxu1 }
 0x87b   : > { %v14269_v26 = vadd.f32 %v11420_v34, %v20333_v36  ;;  %v11422_v5 = vpop.f32.mrb[90].mxu1 }
 0x87c   : > { %v11424_v50 = vpop.f32.mrb[91].mxu1  ;;  %12061 = vmatmul.mubr.f32.gmra.mrb[118].mxu0 %v11547_v59  ;;  %v11551_v28 = vmax.f32 %v14268_v11, 0.0  ;;  %v14270_v0 = vadd.f32 %v11422_v5, %v20330_v30 }
 0x87d   : > { %v11552_v51 = vmax.f32 %v14269_v26, 0.0  ;;  %v14271_v62 = vadd.f32 %v11424_v50, %v20333_v36 }
 0x87e   : > { %v11555_v38 = vmax.f32 %v14270_v0, 0.0 }
 0x87f   : > { %v11556_v13 = vmax.f32 %v14271_v62, 0.0  ;;  %12065 = vmatprep.mubr.f32.mxu0 %v11552_v51 }
 0x880   : > { %12066 = vmatmul.mubr.f32.gmra.mrb[120].mxu0 %v11551_v28 }
 0x881   : > { %v11428_v35 = vpop.f32.mrb[92].mxu1  ;;  %12070 = vmatprep.mubr.f32.mxu0 %v11556_v13 }
 0x882   : > { %v14272_v18 = vadd.f32 %v11428_v35, %v20330_v30  ;;  %v11430_v47 = vpop.f32.mrb[93].mxu1 }
 0x883   : > { %v14273_v32 = vadd.f32 %v11430_v47, %v20333_v36  ;;  %v11432_v27 = vpop.f32.mrb[94].mxu1 }
 0x884   : > { %v11434_v63 = vpop.f32.mrb[95].mxu1  ;;  %12071 = vmatmul.mubr.f32.gmra.mrb[122].mxu0 %v11555_v38  ;;  %v11559_v21 = vmax.f32 %v14272_v18, 0.0  ;;  %v14274_v29 = vadd.f32 %v11432_v27, %v20330_v30  ;;  %v12399_v30 = vld [vmem:[%s20650_s7 + $0x8] sm:$0xff] }
 0x885   : > { %v11560_v24 = vmax.f32 %v14273_v32, 0.0  ;;  %v14275_v6 = vadd.f32 %v11434_v63, %v20333_v36  ;;  %v14076_v36 = vpack.c.bf16 %v12399_v30, %v12398_v16 }
 0x886   : > { %v11563_v45 = vmax.f32 %v14274_v29, 0.0 }
 0x887   : > { %v11564_v3 = vmax.f32 %v14275_v6, 0.0  ;;  %12075 = vmatprep.mubr.f32.mxu0 %v11560_v24  ;;  %14077 = vmatprep.subr.bf16.mxu1 %v14076_v36 }
 0x888   : > { %12076 = vmatmul.mubr.f32.gmra.mrb[124].mxu0 %v11559_v21 }
 0x889   : > { %12080 = vmatprep.mubr.f32.mxu0 %v11564_v3 }
 0x88c   : > { %12081 = vmatmul.mubr.f32.gmra.mrb[126].mxu0 %v11563_v45 }
 0x8e3   : > { %v11927_v17 = vpop.f32.mrb[64].mxu0 }
 0x8e4   : > { %v14276_v7 = vadd.f32 %v20447_v20, %v11927_v17  ;;  %v11929_v46 = vpop.f32.mrb[65].mxu0 }
 0x8e6   : > { %v12086_v60 = vmax.f32 %v14276_v7, 0.0 }
 0x8e7   : > { %v11932_v53 = vpop.f32.mrb[66].mxu0 }
 0x8e8   : > { %v14277_v14 = vadd.f32 %v20447_v20, %v11932_v53  ;;  %v11934_v42 = vpop.f32.mrb[67].mxu0  ;;  %13844 = vmatprep.mubr.f32.mxu1 %v12086_v60 }
 0x8ea   : > { %v12087_v2 = vmax.f32 %v14277_v14, 0.0 }
 0x8eb   : > { %v11937_v54 = vpop.f32.mrb[68].mxu0 }
 0x8ec   : > { %v14278_v25 = vadd.f32 %v20447_v20, %v11937_v54  ;;  %v11939_v57 = vpop.f32.mrb[69].mxu0  ;;  %13845 = vmatmul.mubr.f32.vlgmr.msra.gmra.mrb[96].mxu1 %v12087_v2 }
 0x8ed   : > { %14079 = vmatpush3.bf16.msra.mxu1 %v14076_v36 }
 0x8ee   : > { %v12088_v43 = vmax.f32 %v14278_v25, 0.0 }
 0x8ef   : > { %v11942_v44 = vpop.f32.mrb[70].mxu0 }
 0x8f0   : > { %v14279_v52 = vadd.f32 %v20447_v20, %v11942_v44  ;;  %v11944_v58 = vpop.f32.mrb[71].mxu0  ;;  %13847 = vmatprep.mubr.f32.mxu1 %v12088_v43 }
 0x8f2   : > { %v12089_v56 = vmax.f32 %v14279_v52, 0.0 }
 0x8f3   : > { %v11947_v49 = vpop.f32.mrb[72].mxu0 }
 0x8f4   : > { %v14280_v37 = vadd.f32 %v20447_v20, %v11947_v49  ;;  %v11949_v39 = vpop.f32.mrb[73].mxu0  ;;  %13848 = vmatmul.mubr.f32.gmra.mrb[98].mxu1 %v12089_v56 }
 0x8f6   : > { %v12090_v41 = vmax.f32 %v14280_v37, 0.0 }
 0x8f7   : > { %v11952_v31 = vpop.f32.mrb[74].mxu0 }
 0x8f8   : > { %v14281_v15 = vadd.f32 %v20447_v20, %v11952_v31  ;;  %v11954_v40 = vpop.f32.mrb[75].mxu0  ;;  %13850 = vmatprep.mubr.f32.mxu1 %v12090_v41 }
 0x8fa   : > { %v12091_v10 = vmax.f32 %v14281_v15, 0.0 }
 0x8fb   : > { %v11957_v61 = vpop.f32.mrb[76].mxu0 }
 0x8fc   : > { %v14282_v48 = vadd.f32 %v20447_v20, %v11957_v61  ;;  %v11959_v33 = vpop.f32.mrb[77].mxu0  ;;  %13851 = vmatmul.mubr.f32.gmra.mrb[100].mxu1 %v12091_v10 }
 0x8fe   : > { %v12092_v19 = vmax.f32 %v14282_v48, 0.0 }
 0x8ff   : > { %v11962_v12 = vpop.f32.mrb[78].mxu0 }
 0x900   : > { %v14283_v8 = vadd.f32 %v20447_v20, %v11962_v12  ;;  %v11964_v1 = vpop.f32.mrb[79].mxu0  ;;  %13853 = vmatprep.mubr.f32.mxu1 %v12092_v19 }
 0x901   : > { %v12400_v1 = vld [vmem:[%s20650_s7 + $0x10] sm:$0xff] }
 0x902   : > { %v12093_v55 = vmax.f32 %v14283_v8, 0.0 }
 0x903   : > { %v11967_v22 = vpop.f32.mrb[80].mxu0 }
 0x904   : > { %v14284_v9 = vadd.f32 %v20447_v20, %v11967_v22  ;;  %v11969_v23 = vpop.f32.mrb[81].mxu0  ;;  %13854 = vmatmul.mubr.f32.gmra.mrb[102].mxu1 %v12093_v55  ;;  %v12401_v55 = vld [vmem:[%s20650_s7 + $0x18] sm:$0xff] }
 0x905   : > { %v14080_v23 = vpack.c.bf16 %v12401_v55, %v12400_v1 }
 0x906   : > { %v12094_v4 = vmax.f32 %v14284_v9, 0.0 }
 0x907   : > { %v11972_v59 = vpop.f32.mrb[82].mxu0  ;;  %14081 = vmatprep.subr.bf16.mxu1 %v14080_v23 }
 0x908   : > { %v14285_v11 = vadd.f32 %v20447_v20, %v11972_v59  ;;  %v11974_v34 = vpop.f32.mrb[83].mxu0  ;;  %13856 = vmatprep.mubr.f32.mxu1 %v12094_v4  ;;  %14083 = vmatpush3.bf16.msra.mxu1 %v14080_v23 }
 0x90a   : > { %v12095_v26 = vmax.f32 %v14285_v11, 0.0 }
 0x90b   : > { %v11977_v5 = vpop.f32.mrb[84].mxu0 }
 0x90c   : > { %v14286_v50 = vadd.f32 %v20447_v20, %v11977_v5  ;;  %v11979_v51 = vpop.f32.mrb[85].mxu0  ;;  %13857 = vmatmul.mubr.f32.gmra.mrb[104].mxu1 %v12095_v26 }
 0x90e   : > { %v12096_v62 = vmax.f32 %v14286_v50, 0.0 }
 0x90f   : > { %v11982_v28 = vpop.f32.mrb[86].mxu0 }
 0x910   : > { %v14287_v0 = vadd.f32 %v20447_v20, %v11982_v28  ;;  %v11984_v13 = vpop.f32.mrb[87].mxu0  ;;  %13859 = vmatprep.mubr.f32.mxu1 %v12096_v62 }
 0x912   : > { %v12097_v35 = vmax.f32 %v14287_v0, 0.0 }
 0x913   : > { %v11987_v38 = vpop.f32.mrb[88].mxu0 }
 0x914   : > { %v14288_v18 = vadd.f32 %v20447_v20, %v11987_v38  ;;  %v11989_v47 = vpop.f32.mrb[89].mxu0  ;;  %13860 = vmatmul.mubr.f32.gmra.mrb[106].mxu1 %v12097_v35 }
 0x916   : > { %v12098_v32 = vmax.f32 %v14288_v18, 0.0 }
 0x917   : > { %v11992_v27 = vpop.f32.mrb[90].mxu0 }
 0x918   : > { %v14289_v63 = vadd.f32 %v20447_v20, %v11992_v27  ;;  %v11994_v24 = vpop.f32.mrb[91].mxu0  ;;  %13862 = vmatprep.mubr.f32.mxu1 %v12098_v32 }
 0x91a   : > { %v12099_v6 = vmax.f32 %v14289_v63, 0.0 }
 0x91b   : > { %v11997_v21 = vpop.f32.mrb[92].mxu0 }
 0x91c   : > { %v14290_v29 = vadd.f32 %v20447_v20, %v11997_v21  ;;  %v11999_v3 = vpop.f32.mrb[93].mxu0  ;;  %13863 = vmatmul.mubr.f32.gmra.mrb[108].mxu1 %v12099_v6 }
 0x91e   : > { %v12100_v45 = vmax.f32 %v14290_v29, 0.0 }
 0x91f   : > { %v12002_v17 = vpop.f32.mrb[94].mxu0 }
 0x920   : > { %v14291_v7 = vadd.f32 %v20447_v20, %v12002_v17  ;;  %v12004_v46 = vpop.f32.mrb[95].mxu0  ;;  %13865 = vmatprep.mubr.f32.mxu1 %v12100_v45 }
 0x922   : > { %v12101_v16 = vmax.f32 %v14291_v7, 0.0 }
 0x923   : > { %v12007_v30 = vpop.f32.mrb[96].mxu0 }
 0x924   : > { %v14292_v36 = vadd.f32 %v20447_v20, %v12007_v30  ;;  %v12009_v60 = vpop.f32.mrb[97].mxu0  ;;  %13866 = vmatmul.mubr.f32.gmra.mrb[110].mxu1 %v12101_v16 }
 0x926   : > { %v12102_v53 = vmax.f32 %v14292_v36, 0.0 }
 0x927   : > { %v12012_v14 = vpop.f32.mrb[98].mxu0 }
 0x928   : > { %v14293_v42 = vadd.f32 %v20447_v20, %v12012_v14  ;;  %v12014_v2 = vpop.f32.mrb[99].mxu0  ;;  %13868 = vmatprep.mubr.f32.mxu1 %v12102_v53  ;;  %v20493_v14 = vld [vmem:[#allocation10] ss:$0 sm:$0xff] }
 0x92a   : > { %v12103_v54 = vmax.f32 %v14293_v42, 0.0 }
 0x92b   : > { %v12017_v25 = vpop.f32.mrb[100].mxu0 }
 0x92c   : > { %v14294_v57 = vadd.f32 %v20447_v20, %v12017_v25  ;;  %v12019_v43 = vpop.f32.mrb[101].mxu0  ;;  %13869 = vmatmul.mubr.f32.gmra.mrb[112].mxu1 %v12103_v54 }
 0x92e   : > { %v12104_v44 = vmax.f32 %v14294_v57, 0.0 }
 0x92f   : > { %v12022_v52 = vpop.f32.mrb[102].mxu0 }
 0x930   : > { %v14295_v58 = vadd.f32 %v20447_v20, %v12022_v52  ;;  %v12024_v56 = vpop.f32.mrb[103].mxu0  ;;  %13871 = vmatprep.mubr.f32.mxu1 %v12104_v44 }
 0x932   : > { %v12105_v49 = vmax.f32 %v14295_v58, 0.0 }
 0x933   : > { %v12027_v37 = vpop.f32.mrb[104].mxu0 }
 0x934   : > { %v14296_v39 = vadd.f32 %v20447_v20, %v12027_v37  ;;  %v12029_v41 = vpop.f32.mrb[105].mxu0  ;;  %13872 = vmatmul.mubr.f32.gmra.mrb[114].mxu1 %v12105_v49 }
 0x936   : > { %v12106_v31 = vmax.f32 %v14296_v39, 0.0 }
 0x937   : > { %v12032_v15 = vpop.f32.mrb[106].mxu0 }
 0x938   : > { %v14297_v40 = vadd.f32 %v20447_v20, %v12032_v15  ;;  %v12034_v10 = vpop.f32.mrb[107].mxu0  ;;  %13874 = vmatprep.mubr.f32.mxu1 %v12106_v31 }
 0x93a   : > { %v12107_v61 = vmax.f32 %v14297_v40, 0.0 }
 0x93b   : > { %v12037_v48 = vpop.f32.mrb[108].mxu0 }
 0x93c   : > { %v14298_v33 = vadd.f32 %v20447_v20, %v12037_v48  ;;  %v12039_v19 = vpop.f32.mrb[109].mxu0  ;;  %13875 = vmatmul.mubr.f32.gmra.mrb[116].mxu1 %v12107_v61 }
 0x93e   : > { %v12108_v12 = vmax.f32 %v14298_v33, 0.0 }
 0x93f   : > { %v12042_v8 = vpop.f32.mrb[110].mxu0 }
 0x940   : > { %v14299_v22 = vadd.f32 %v20447_v20, %v12042_v8  ;;  %v12044_v9 = vpop.f32.mrb[111].mxu0  ;;  %13877 = vmatprep.mubr.f32.mxu1 %v12108_v12 }
 0x942   : > { %v12109_v4 = vmax.f32 %v14299_v22, 0.0 }
 0x943   : > { %v12047_v59 = vpop.f32.mrb[112].mxu0 }
 0x944   : > { %v14300_v11 = vadd.f32 %v20447_v20, %v12047_v59  ;;  %v12049_v34 = vpop.f32.mrb[113].mxu0  ;;  %13878 = vmatmul.mubr.f32.gmra.mrb[118].mxu1 %v12109_v4 }
 0x946   : > { %v12110_v26 = vmax.f32 %v14300_v11, 0.0 }
 0x947   : > { %v12052_v5 = vpop.f32.mrb[114].mxu0 }
 0x948   : > { %v14301_v50 = vadd.f32 %v20447_v20, %v12052_v5  ;;  %v12054_v51 = vpop.f32.mrb[115].mxu0  ;;  %13880 = vmatprep.mubr.f32.mxu1 %v12110_v26 }
 0x94a   : > { %v12111_v62 = vmax.f32 %v14301_v50, 0.0 }
 0x94b   : > { %v12057_v28 = vpop.f32.mrb[116].mxu0 }
 0x94c   : > { %v14302_v0 = vadd.f32 %v20447_v20, %v12057_v28  ;;  %v12059_v13 = vpop.f32.mrb[117].mxu0  ;;  %13881 = vmatmul.mubr.f32.gmra.mrb[120].mxu1 %v12111_v62 }
 0x94e   : > { %v12112_v35 = vmax.f32 %v14302_v0, 0.0 }
 0x94f   : > { %v12062_v38 = vpop.f32.mrb[118].mxu0 }
 0x950   : > { %v14303_v18 = vadd.f32 %v20447_v20, %v12062_v38  ;;  %v12064_v47 = vpop.f32.mrb[119].mxu0  ;;  %13883 = vmatprep.mubr.f32.mxu1 %v12112_v35 }
 0x952   : > { %v12113_v32 = vmax.f32 %v14303_v18, 0.0 }
 0x953   : > { %v12067_v27 = vpop.f32.mrb[120].mxu0 }
 0x954   : > { %v14304_v63 = vadd.f32 %v20447_v20, %v12067_v27  ;;  %v12069_v24 = vpop.f32.mrb[121].mxu0  ;;  %13884 = vmatmul.mubr.f32.gmra.mrb[122].mxu1 %v12113_v32 }
 0x956   : > { %v12114_v6 = vmax.f32 %v14304_v63, 0.0 }
 0x957   : > { %v12072_v21 = vpop.f32.mrb[122].mxu0 }
 0x958   : > { %v14305_v29 = vadd.f32 %v20447_v20, %v12072_v21  ;;  %v12074_v3 = vpop.f32.mrb[123].mxu0  ;;  %13886 = vmatprep.mubr.f32.mxu1 %v12114_v6 }
 0x95a   : > { %v12115_v45 = vmax.f32 %v14305_v29, 0.0 }
 0x95b   : > { %v12077_v17 = vpop.f32.mrb[124].mxu0 }
 0x95c   : > { %v14306_v7 = vadd.f32 %v20447_v20, %v12077_v17  ;;  %v12079_v46 = vpop.f32.mrb[125].mxu0  ;;  %13887 = vmatmul.mubr.f32.gmra.mrb[124].mxu1 %v12115_v45 }
 0x95e   : > { %v12116_v16 = vmax.f32 %v14306_v7, 0.0 }
 0x95f   : > { %v12082_v30 = vpop.f32.mrb[126].mxu0 }
 0x960   : > { %v14307_v36 = vadd.f32 %v20447_v20, %v12082_v30  ;;  %v12084_v60 = vpop.f32.mrb[127].mxu0  ;;  %13889 = vmatprep.mubr.f32.mxu1 %v12116_v16 }
 0x962   : > { %v12117_v53 = vmax.f32 %v14307_v36, 0.0 }
 0x964   : > { %13890 = vmatmul.mubr.f32.gmra.mrb[126].mxu1 %v12117_v53 }
 0x9bf   : > { %v13846_v42 = vpop.f32.mrb[96].mxu1 }
 0x9c0   : > { %v12213_v2 = vadd.f32 %v13846_v42, %v20493_v14  ;;  %v12207_v54 = vpop.f32.mrb[97].mxu1 }
 0x9c1   : > { %v12208_v25 = vadd.f32 %v20493_v14, %v12207_v54 }
 0x9c2   : > { %v12367_v43 = vmax.f32 %v12213_v2, 0.0 }
 0x9c3   : > { %v12366_v57 = vmax.f32 %v12208_v25, 0.0 }
 0x9c5   : > { %13900 = vmatprep.mubr.msk.f32.mxu1 %vm12402_vm0, %v12366_v57 }
 0x9c6   : > { %13901 = vmatmul.mubr.msk.f32.vlgmr.msra.gmra.mrb[128].mxu1 %vm12402_vm0, %v12367_v43 }
 0x9c7   : > { %v13849_v20 = vpop.f32.mrb[98].mxu1 }
 0x9c8   : > { %v12223_v44 = vadd.f32 %v13849_v20, %v20493_v14  ;;  %v12217_v52 = vpop.f32.mrb[99].mxu1 }
 0x9c9   : > { %v12218_v58 = vadd.f32 %v20493_v14, %v12217_v52 }
 0x9ca   : > { %v12369_v49 = vmax.f32 %v12223_v44, 0.0 }
 0x9cb   : > { %v12368_v56 = vmax.f32 %v12218_v58, 0.0 }
 0x9cd   : > { %13903 = vmatprep.mubr.msk.f32.mxu1 %vm12402_vm0, %v12368_v56 }
 0x9ce   : > { %13904 = vmatmul.mubr.msk.f32.gmra.mrb[130].mxu1 %vm12402_vm0, %v12369_v49 }
 0x9cf   : > { %v13852_v37 = vpop.f32.mrb[100].mxu1 }
 0x9d0   : > { %v12233_v39 = vadd.f32 %v13852_v37, %v20493_v14  ;;  %v12227_v41 = vpop.f32.mrb[101].mxu1 }
 0x9d1   : > { %v12228_v31 = vadd.f32 %v20493_v14, %v12227_v41 }
 0x9d2   : > { %v12371_v40 = vmax.f32 %v12233_v39, 0.0 }
 0x9d3   : > { %v12370_v15 = vmax.f32 %v12228_v31, 0.0 }
 0x9d5   : > { %13906 = vmatprep.mubr.msk.f32.mxu1 %vm12402_vm0, %v12370_v15 }
 0x9d6   : > { %13907 = vmatmul.mubr.msk.f32.gmra.mrb[132].mxu1 %vm12402_vm0, %v12371_v40 }
 0x9d7   : > { %v13855_v10 = vpop.f32.mrb[102].mxu1 }
 0x9d8   : > { %v12243_v61 = vadd.f32 %v13855_v10, %v20493_v14  ;;  %v12237_v48 = vpop.f32.mrb[103].mxu1 }
 0x9d9   : > { %v12238_v33 = vadd.f32 %v20493_v14, %v12237_v48 }
 0x9da   : > { %v12373_v12 = vmax.f32 %v12243_v61, 0.0 }
 0x9db   : > { %v12372_v19 = vmax.f32 %v12238_v33, 0.0 }
 0x9dd   : > { %13909 = vmatprep.mubr.msk.f32.mxu1 %vm12402_vm0, %v12372_v19 }
 0x9de   : > { %13910 = vmatmul.mubr.msk.f32.gmra.mrb[134].mxu1 %vm12402_vm0, %v12373_v12 }
 0x9df   : > { %v13858_v8 = vpop.f32.mrb[104].mxu1 }
 0x9e0   : > { %v12253_v1 = vadd.f32 %v13858_v8, %v20493_v14  ;;  %v12247_v55 = vpop.f32.mrb[105].mxu1 }
 0x9e1   : > { %v12248_v22 = vadd.f32 %v20493_v14, %v12247_v55 }
 0x9e2   : > { %v12375_v23 = vmax.f32 %v12253_v1, 0.0 }
 0x9e3   : > { %v12374_v9 = vmax.f32 %v12248_v22, 0.0 }
 0x9e5   : > { %13912 = vmatprep.mubr.msk.f32.mxu1 %vm12402_vm0, %v12374_v9 }
 0x9e6   : > { %13913 = vmatmul.mubr.msk.f32.gmra.mrb[136].mxu1 %vm12402_vm0, %v12375_v23 }
 0x9e7   : > { %v13861_v4 = vpop.f32.mrb[106].mxu1 }
 0x9e8   : > { %v12263_v59 = vadd.f32 %v13861_v4, %v20493_v14  ;;  %v12257_v11 = vpop.f32.mrb[107].mxu1 }
 0x9e9   : > { %v12258_v34 = vadd.f32 %v20493_v14, %v12257_v11 }
 0x9ea   : > { %v12377_v5 = vmax.f32 %v12263_v59, 0.0 }
 0x9eb   : > { %v12376_v26 = vmax.f32 %v12258_v34, 0.0 }
 0x9ed   : > { %13915 = vmatprep.mubr.msk.f32.mxu1 %vm12402_vm0, %v12376_v26 }
 0x9ee   : > { %13916 = vmatmul.mubr.msk.f32.gmra.mrb[138].mxu1 %vm12402_vm0, %v12377_v5 }
 0x9ef   : > { %v13864_v50 = vpop.f32.mrb[108].mxu1 }
 0x9f0   : > { %v12273_v51 = vadd.f32 %v13864_v50, %v20493_v14  ;;  %v12267_v62 = vpop.f32.mrb[109].mxu1 }
 0x9f1   : > { %v12268_v28 = vadd.f32 %v20493_v14, %v12267_v62 }
 0x9f2   : > { %v12379_v13 = vmax.f32 %v12273_v51, 0.0 }
 0x9f3   : > { %v12378_v0 = vmax.f32 %v12268_v28, 0.0 }
 0x9f5   : > { %13918 = vmatprep.mubr.msk.f32.mxu1 %vm12402_vm0, %v12378_v0 }
 0x9f6   : > { %13919 = vmatmul.mubr.msk.f32.gmra.mrb[140].mxu1 %vm12402_vm0, %v12379_v13 }
 0x9f7   : > { %v13867_v35 = vpop.f32.mrb[110].mxu1 }
 0x9f8   : > { %v12283_v38 = vadd.f32 %v13867_v35, %v20493_v14  ;;  %v12277_v18 = vpop.f32.mrb[111].mxu1 }
 0x9f9   : > { %v12278_v47 = vadd.f32 %v20493_v14, %v12277_v18 }
 0x9fa   : > { %v12381_v27 = vmax.f32 %v12283_v38, 0.0 }
 0x9fb   : > { %v12380_v32 = vmax.f32 %v12278_v47, 0.0 }
 0x9fd   : > { %13921 = vmatprep.mubr.msk.f32.mxu1 %vm12402_vm0, %v12380_v32 }
 0x9fe   : > { %13922 = vmatmul.mubr.msk.f32.gmra.mrb[142].mxu1 %vm12402_vm0, %v12381_v27 }
 0x9ff   : > { %v13870_v63 = vpop.f32.mrb[112].mxu1 }
 0xa00   : > { %v12293_v24 = vadd.f32 %v13870_v63, %v20493_v14  ;;  %v12287_v6 = vpop.f32.mrb[113].mxu1 }
 0xa01   : > { %v12288_v21 = vadd.f32 %v20493_v14, %v12287_v6 }
 0xa02   : > { %v12383_v3 = vmax.f32 %v12293_v24, 0.0 }
 0xa03   : > { %v12382_v29 = vmax.f32 %v12288_v21, 0.0 }
 0xa05   : > { %13924 = vmatprep.mubr.msk.f32.mxu1 %vm12402_vm0, %v12382_v29 }
 0xa06   : > { %13925 = vmatmul.mubr.msk.f32.gmra.mrb[144].mxu1 %vm12402_vm0, %v12383_v3 }
 0xa07   : > { %v13873_v45 = vpop.f32.mrb[114].mxu1 }
 0xa08   : > { %v12303_v17 = vadd.f32 %v13873_v45, %v20493_v14  ;;  %v12297_v7 = vpop.f32.mrb[115].mxu1 }
 0xa09   : > { %v12298_v46 = vadd.f32 %v20493_v14, %v12297_v7 }
 0xa0a   : > { %v12385_v30 = vmax.f32 %v12303_v17, 0.0 }
 0xa0b   : > { %v12384_v16 = vmax.f32 %v12298_v46, 0.0 }
 0xa0d   : > { %13927 = vmatprep.mubr.msk.f32.mxu1 %vm12402_vm0, %v12384_v16 }
 0xa0e   : > { %13928 = vmatmul.mubr.msk.f32.gmra.mrb[146].mxu1 %vm12402_vm0, %v12385_v30 }
 0xa0f   : > { %v13876_v36 = vpop.f32.mrb[116].mxu1 }
 0xa10   : > { %v12313_v60 = vadd.f32 %v13876_v36, %v20493_v14  ;;  %v12307_v53 = vpop.f32.mrb[117].mxu1 }
 0xa11   : > { %v12308_v42 = vadd.f32 %v20493_v14, %v12307_v53 }
 0xa12   : > { %v12387_v54 = vmax.f32 %v12313_v60, 0.0 }
 0xa13   : > { %v12386_v2 = vmax.f32 %v12308_v42, 0.0 }
 0xa15   : > { %13930 = vmatprep.mubr.msk.f32.mxu1 %vm12402_vm0, %v12386_v2 }
 0xa16   : > { %13931 = vmatmul.mubr.msk.f32.gmra.mrb[148].mxu1 %vm12402_vm0, %v12387_v54 }
 0xa17   : > { %v13879_v25 = vpop.f32.mrb[118].mxu1 }
 0xa18   : > { %v12323_v57 = vadd.f32 %v13879_v25, %v20493_v14  ;;  %v12317_v43 = vpop.f32.mrb[119].mxu1 }
 0xa19   : > { %v12318_v20 = vadd.f32 %v20493_v14, %v12317_v43 }
 0xa1a   : > { %v12389_v52 = vmax.f32 %v12323_v57, 0.0 }
 0xa1b   : > { %v12388_v44 = vmax.f32 %v12318_v20, 0.0 }
 0xa1d   : > { %13933 = vmatprep.mubr.msk.f32.mxu1 %vm12402_vm0, %v12388_v44 }
 0xa1e   : > { %13934 = vmatmul.mubr.msk.f32.gmra.mrb[150].mxu1 %vm12402_vm0, %v12389_v52 }
 0xa1f   : > { %v13882_v58 = vpop.f32.mrb[120].mxu1 }
 0xa20   : > { %v12333_v56 = vadd.f32 %v13882_v58, %v20493_v14  ;;  %v12327_v49 = vpop.f32.mrb[121].mxu1 }
 0xa21   : > { %v12328_v37 = vadd.f32 %v20493_v14, %v12327_v49 }
 0xa22   : > { %v12391_v41 = vmax.f32 %v12333_v56, 0.0 }
 0xa23   : > { %v12390_v39 = vmax.f32 %v12328_v37, 0.0 }
 0xa25   : > { %13936 = vmatprep.mubr.msk.f32.mxu1 %vm12402_vm0, %v12390_v39 }
 0xa26   : > { %13937 = vmatmul.mubr.msk.f32.gmra.mrb[152].mxu1 %vm12402_vm0, %v12391_v41 }
 0xa27   : > { %v13885_v31 = vpop.f32.mrb[122].mxu1 }
 0xa28   : > { %v12343_v15 = vadd.f32 %v13885_v31, %v20493_v14  ;;  %v12337_v40 = vpop.f32.mrb[123].mxu1 }
 0xa29   : > { %v12338_v10 = vadd.f32 %v20493_v14, %v12337_v40 }
 0xa2a   : > { %v12393_v48 = vmax.f32 %v12343_v15, 0.0 }
 0xa2b   : > { %v12392_v61 = vmax.f32 %v12338_v10, 0.0 }
 0xa2d   : > { %13939 = vmatprep.mubr.msk.f32.mxu1 %vm12402_vm0, %v12392_v61 }
 0xa2e   : > { %13940 = vmatmul.mubr.msk.f32.gmra.mrb[154].mxu1 %vm12402_vm0, %v12393_v48 }
 0xa2f   : > { %v13888_v33 = vpop.f32.mrb[124].mxu1 }
 0xa30   : > { %v12353_v19 = vadd.f32 %v13888_v33, %v20493_v14  ;;  %v12347_v12 = vpop.f32.mrb[125].mxu1 }
 0xa31   : > { %v12348_v8 = vadd.f32 %v20493_v14, %v12347_v12 }
 0xa32   : > { %v12395_v55 = vmax.f32 %v12353_v19, 0.0 }
 0xa33   : > { %v12394_v1 = vmax.f32 %v12348_v8, 0.0 }
 0xa35   : > { %13942 = vmatprep.mubr.msk.f32.mxu1 %vm12402_vm0, %v12394_v1 }
 0xa36   : > { %13943 = vmatmul.mubr.msk.f32.gmra.mrb[156].mxu1 %vm12402_vm0, %v12395_v55 }
 0xa37   : > { %v13891_v22 = vpop.f32.mrb[126].mxu1 }
 0xa38   : > { %v12363_v9 = vadd.f32 %v13891_v22, %v20493_v14  ;;  %v12357_v23 = vpop.f32.mrb[127].mxu1 }
 0xa39   : > { %v12358_v4 = vadd.f32 %v20493_v14, %v12357_v23 }
 0xa3a   : > { %v12397_v11 = vmax.f32 %v12363_v9, 0.0 }
 0xa3b   : > { %v12396_v59 = vmax.f32 %v12358_v4, 0.0 }
 0xa3d   : > { %13945 = vmatprep.mubr.msk.f32.mxu1 %vm12402_vm0, %v12396_v59 }
 0xa3e   : > { %13946 = vmatmul.mubr.msk.f32.gmra.mrb[158].mxu1 %vm12402_vm0, %v12397_v11 }
 0xa99   : > { %v13902_v14 = vpop.f32.mrb[128].mxu1 }
 0xa9a   : > { %12726 = vst.msk [vmem:[%s20564_s18 + $0x8] sm:$0xff] %vm12724_vm1, %v13902_v14  ;;  %v12565_v34 = vpop.f32.mrb[129].mxu1 }
 0xa9b   : > { %12725 = vst.msk [vmem:[%s20564_s18] sm:$0xff] %vm12724_vm1, %v12565_v34 }
 0xaa1   : > { %v13905_v26 = vpop.f32.mrb[130].mxu1 }
 0xaa2   : > { %12728 = vst.msk [vmem:[%s20564_s18 + $0x18] sm:$0xff] %vm12724_vm1, %v13905_v26  ;;  %v12575_v5 = vpop.f32.mrb[131].mxu1 }
 0xaa3   : > { %12727 = vst.msk [vmem:[%s20564_s18 + $0x10] sm:$0xff] %vm12724_vm1, %v12575_v5 }
 0xaa9   : > { %v13908_v50 = vpop.f32.mrb[132].mxu1 }
 0xaaa   : > { %12730 = vst.msk [vmem:[%s20564_s18 + $0x28] sm:$0xff] %vm12724_vm1, %v13908_v50  ;;  %v12585_v51 = vpop.f32.mrb[133].mxu1 }
 0xaab   : > { %12729 = vst.msk [vmem:[%s20564_s18 + $0x20] sm:$0xff] %vm12724_vm1, %v12585_v51 }
 0xab1   : > { %v13911_v62 = vpop.f32.mrb[134].mxu1 }
 0xab2   : > { %12732 = vst.msk [vmem:[%s20564_s18 + $0x38] sm:$0xff] %vm12724_vm1, %v13911_v62  ;;  %v12595_v28 = vpop.f32.mrb[135].mxu1 }
 0xab3   : > { %12731 = vst.msk [vmem:[%s20564_s18 + $0x30] sm:$0xff] %vm12724_vm1, %v12595_v28 }
 0xab9   : > { %v13914_v0 = vpop.f32.mrb[136].mxu1 }
 0xaba   : > { %12734 = vst.msk [vmem:[%s20564_s18 + $0x48] sm:$0xff] %vm12724_vm1, %v13914_v0  ;;  %v12605_v13 = vpop.f32.mrb[137].mxu1 }
 0xabb   : > { %12733 = vst.msk [vmem:[%s20564_s18 + $0x40] sm:$0xff] %vm12724_vm1, %v12605_v13 }
 0xac1   : > { %v13917_v35 = vpop.f32.mrb[138].mxu1 }
 0xac2   : > { %12736 = vst.msk [vmem:[%s20564_s18 + $0x58] sm:$0xff] %vm12724_vm1, %v13917_v35  ;;  %v12615_v38 = vpop.f32.mrb[139].mxu1 }
 0xac3   : > { %12735 = vst.msk [vmem:[%s20564_s18 + $0x50] sm:$0xff] %vm12724_vm1, %v12615_v38 }
 0xac9   : > { %v13920_v18 = vpop.f32.mrb[140].mxu1 }
 0xaca   : > { %12738 = vst.msk [vmem:[%s20564_s18 + $0x68] sm:$0xff] %vm12724_vm1, %v13920_v18  ;;  %v12625_v47 = vpop.f32.mrb[141].mxu1 }
 0xacb   : > { %12737 = vst.msk [vmem:[%s20564_s18 + $0x60] sm:$0xff] %vm12724_vm1, %v12625_v47 }
 0xad1   : > { %v13923_v32 = vpop.f32.mrb[142].mxu1 }
 0xad2   : > { %12740 = vst.msk [vmem:[%s20564_s18 + $0x78] sm:$0xff] %vm12724_vm1, %v13923_v32  ;;  %v12635_v27 = vpop.f32.mrb[143].mxu1 }
 0xad3   : > { %12739 = vst.msk [vmem:[%s20564_s18 + $0x70] sm:$0xff] %vm12724_vm1, %v12635_v27 }
 0xad9   : > { %v13926_v63 = vpop.f32.mrb[144].mxu1 }
 0xada   : > { %12742 = vst.msk [vmem:[%s20564_s18 + $0x88] sm:$0xff] %vm12724_vm1, %v13926_v63  ;;  %v12645_v24 = vpop.f32.mrb[145].mxu1 }
 0xadb   : > { %12741 = vst.msk [vmem:[%s20564_s18 + $0x80] sm:$0xff] %vm12724_vm1, %v12645_v24 }
 0xae1   : > { %v13929_v6 = vpop.f32.mrb[146].mxu1 }
 0xae2   : > { %12744 = vst.msk [vmem:[%s20564_s18 + $0x98] sm:$0xff] %vm12724_vm1, %v13929_v6  ;;  %v12655_v21 = vpop.f32.mrb[147].mxu1 }
 0xae3   : > { %12743 = vst.msk [vmem:[%s20564_s18 + $0x90] sm:$0xff] %vm12724_vm1, %v12655_v21 }
 0xae9   : > { %v13932_v29 = vpop.f32.mrb[148].mxu1 }
 0xaea   : > { %12746 = vst.msk [vmem:[%s20564_s18 + $0xa8] sm:$0xff] %vm12724_vm1, %v13932_v29  ;;  %v12665_v3 = vpop.f32.mrb[149].mxu1 }
 0xaeb   : > { %12745 = vst.msk [vmem:[%s20564_s18 + $0xa0] sm:$0xff] %vm12724_vm1, %v12665_v3 }
 0xaf1   : > { %v13935_v45 = vpop.f32.mrb[150].mxu1 }
 0xaf2   : > { %12748 = vst.msk [vmem:[%s20564_s18 + $0xb8] sm:$0xff] %vm12724_vm1, %v13935_v45  ;;  %v12675_v17 = vpop.f32.mrb[151].mxu1 }
 0xaf3   : > { %12747 = vst.msk [vmem:[%s20564_s18 + $0xb0] sm:$0xff] %vm12724_vm1, %v12675_v17 }
 0xaf9   : > { %v13938_v7 = vpop.f32.mrb[152].mxu1 }
 0xafa   : > { %12750 = vst.msk [vmem:[%s20564_s18 + $0xc8] sm:$0xff] %vm12724_vm1, %v13938_v7  ;;  %v12685_v46 = vpop.f32.mrb[153].mxu1 }
 0xafb   : > { %12749 = vst.msk [vmem:[%s20564_s18 + $0xc0] sm:$0xff] %vm12724_vm1, %v12685_v46 }
 0xb01   : > { %v13941_v16 = vpop.f32.mrb[154].mxu1 }
 0xb02   : > { %12752 = vst.msk [vmem:[%s20564_s18 + $0xd8] sm:$0xff] %vm12724_vm1, %v13941_v16  ;;  %v12695_v30 = vpop.f32.mrb[155].mxu1 }
 0xb03   : > { %12751 = vst.msk [vmem:[%s20564_s18 + $0xd0] sm:$0xff] %vm12724_vm1, %v12695_v30 }
 0xb09   : > { %v13944_v36 = vpop.f32.mrb[156].mxu1 }
 0xb0a   : > { %12754 = vst.msk [vmem:[%s20564_s18 + $0xe8] sm:$0xff] %vm12724_vm1, %v13944_v36  ;;  %v12705_v60 = vpop.f32.mrb[157].mxu1 }
 0xb0b   : > { %12753 = vst.msk [vmem:[%s20564_s18 + $0xe0] sm:$0xff] %vm12724_vm1, %v12705_v60 }
 0xb11   : > { %v13947_v53 = vpop.f32.mrb[158].mxu1 }
 0xb12   : > { %12756 = vst.msk [vmem:[%s20564_s18 + $0xf8] sm:$0xff] %vm12724_vm1, %v13947_v53  ;;  %v12715_v42 = vpop.f32.mrb[159].mxu1 }
 0xb13   : > { %12755 = vst.msk [vmem:[%s20564_s18 + $0xf0] sm:$0xff] %vm12724_vm1, %v12715_v42 }
 0xb14 PF: > { %p21_p5 = scmp.ge.s32.totalorder %s17609_s24, 4   ;;  %s20702_s27 = smov %s17385_s28 }
 0xb15   : > { %s20703_s28 = smov %s17389_s29  ;;  %s20704_s29 = smov %s17620_s11 }
 0xb16   : > { %s20705_s30 = smov %s17609_s24  ;;  %23 = sbr.rel (!%p21_p5) target bundleno = 6 (0x6), region = 112 }
 0xb1d   :  { %12779 = vsyncpa [#allocation3], 1 }
 0xb1e   :  { %12781 = vsyncpa [#allocation3 + $0x1], 1 }
 0xb1f   :  { %12782 = vsyncpa [#allocation5], 1 }
 0xb20   :  { %12783 = vsyncpa [#allocation8], 1 }
 0xb21   :  { %12784 = vsyncpa [#allocation11], 1 }

</bundles_post_ra>
